<compile_context>
chip_gen: v5e
topology: v5e:2x2
jax: 0.10.0
libtpu: 0.0.40
codegen_flags: <defaults>
</compile_context>

<pallas_src>
import functools

import jax
import jax.numpy as jnp
import numpy as np
from jax.experimental import pallas as pl
from jax.experimental.pallas import tpu as pltpu


# -----------------------------------------------------------------------------
# Config (stands in for `opt.model[...]`)
# -----------------------------------------------------------------------------
OPT = dict(
    FeatureNet_base_channels=8,
    pyramid_scale=2,
    monodepth2_min_depth=0.1,
    monodepth2_max_depth=10.0,
    min_depth=0.5,
    max_depth=8.0,
    scale_step=0.75,
    num_depth=[8, 8, 8],
    depth_interval=0.5,
    depth_interal_ratio=[4.0, 2.0, 1.0],
    height=16,
    width=16,
    monodepth2_height=32,
    monodepth2_width=32,
)

# Generation-aware VMEM limit: ~3/4 of reported capacity, capped at 64 MiB so
# the same setting is safe on v5e/v6e (128 MiB) and v7x (64 MiB).
try:
    _VMEM_CAP = int(pltpu.get_tpu_info().vmem_capacity_bytes)
except Exception:  # pragma: no cover - CPU tracing / older jax fallback
    _VMEM_CAP = 64 << 20
_VMEM_LIMIT = int(min((_VMEM_CAP * 3) // 4, 64 << 20))

# bf16 features for the regression kernels (halves HBM/VMEM traffic; native
# MXU/VPU dtype on v6e/v7x).  TODO(synk): keep f32 on v5e if precision-critical.
_FEAT_DTYPE = jnp.bfloat16


def _pick_tile(n, max_tile):
    """Largest pixel tile: full extent if small, else a multiple of 128 that
    divides n (keeps the (8,128) BlockSpec constraint satisfied)."""
    if n <= max_tile:
        return n
    t = (max_tile // 128) * 128
    while t >= 128:
        if n % t == 0:
            return t
        t -= 128
    return n


# -----------------------------------------------------------------------------
# Pallas kernel 1: weight-stationary conv matmul  (Cout,CK) @ (CK,T) + bias (+ReLU)
# -----------------------------------------------------------------------------
def _conv_matmul_kernel(relu, w_ref, b_ref, x_ref, o_ref):
    # w_ref: (Cout, CK) bf16   x_ref: (CK, T) bf16   b_ref: (Cout, 1) f32
    acc = jnp.dot(w_ref[...], x_ref[...], preferred_element_type=jnp.float32)
    acc = acc + b_ref[...]                       # broadcast over lane (pixel) axis
    if relu:
        acc = jnp.maximum(acc, 0.0)
    o_ref[...] = acc


def conv2d_pallas(x, w_flat, bias, stride, ksize, relu=True):
    """x: (B, C, H, W) NCHW.  w_flat: (C*ksize*ksize, Cout).  bias: (Cout,)."""
    B = x.shape[0]
    if ksize == 1 and stride == 1:
        _, CK, Ho, Wo = x.shape
        patches2d = x.reshape(B, CK, Ho * Wo)
    else:
        patches = jax.lax.conv_general_dilated_patches(
            x, filter_shape=(ksize, ksize), window_strides=(stride, stride),
            padding="SAME")                          # (B, C*k*k, Ho, Wo)
        _, CK, Ho, Wo = patches.shape
        patches2d = patches.reshape(B, CK, Ho * Wo)  # pixels already lane-minor

    HW = Ho * Wo
    Cout = w_flat.shape[1]
    a = patches2d.astype(jnp.bfloat16)
    w_t = w_flat.T.astype(jnp.bfloat16)              # (Cout, CK) weight-stationary
    b_col = bias.reshape(Cout, 1).astype(jnp.float32)

    T = _pick_tile(HW, 4096)
    grid = (B, HW // T)

    out = pl.pallas_call(
        functools.partial(_conv_matmul_kernel, relu),
        grid=grid,
        in_specs=[
            pl.BlockSpec((Cout, CK), lambda b, p: (0, 0)),
            pl.BlockSpec((Cout, 1), lambda b, p: (0, 0)),
            pl.BlockSpec((None, CK, T), lambda b, p: (b, 0, p)),
        ],
        out_specs=pl.BlockSpec((None, Cout, T), lambda b, p: (b, 0, p)),
        out_shape=jax.ShapeDtypeStruct((B, Cout, HW), jnp.float32),
        compiler_params=pltpu.CompilerParams(
            dimension_semantics=("parallel", "parallel"),
            vmem_limit_bytes=_VMEM_LIMIT),
    )(w_t, b_col, a)
    return out.reshape(B, Cout, Ho, Wo)


# -----------------------------------------------------------------------------
# Pallas kernel 2: per-view cost accumulation + softmax depth regression
# grid = (B, HW_tiles, Vs)  with Vs the reduction axis (arbitrary)
# -----------------------------------------------------------------------------
def _depth_reg_kernel(num_src, ref_ref, warp_ref, hypo_ref, out_ref, cost_ref):
    v = pl.program_id(2)

    @pl.when(v == 0)
    def _():
        cost_ref[...] = jnp.zeros_like(cost_ref)

    ref = ref_ref[...].astype(jnp.float32)            # (C, T)
    D = cost_ref.shape[0]
    # Per-hypothesis accumulation bounds the live intermediate to (C, T)
    # instead of materializing a (D, C, T) diff volume.
    for d in range(D):
        diff = warp_ref[d].astype(jnp.float32) - ref              # (C, T)
        sq = jnp.sum(diff * diff, axis=0, keepdims=True)          # (1, T)
        cost_ref[pl.ds(d, 1), :] = cost_ref[pl.ds(d, 1), :] + sq

    @pl.when(v == num_src - 1)
    def _():
        cost = cost_ref[...] * (1.0 / num_src)        # (D, T)
        neg = -cost
        m = jnp.max(neg, axis=0, keepdims=True)
        e = jnp.exp(neg - m)
        denom = jnp.sum(e, axis=0, keepdims=True)
        p = e * pl.reciprocal(denom, approx=True)     # softmax over depth hypos
        depth = jnp.sum(p * hypo_ref[...], axis=0, keepdims=True)  # (1, T)
        out_ref[...] = depth


def pallas_depth_regression(ref_feat, warped, depth_hypo):
    """ref_feat: (B,C,HW) bf16; warped: (B,Vs,D,C,HW) bf16; depth_hypo: (B,D,HW) f32."""
    B, C, HW = ref_feat.shape
    Vs, D = warped.shape[1], warped.shape[2]
    T = _pick_tile(HW, 2048)
    grid = (B, HW // T, Vs)

    out = pl.pallas_call(
        functools.partial(_depth_reg_kernel, Vs),
        grid=grid,
        in_specs=[
            pl.BlockSpec((None, C, T), lambda b, p, v: (b, 0, p)),
            pl.BlockSpec((None, None, D, C, T), lambda b, p, v: (b, v, 0, 0, p)),
            pl.BlockSpec((None, D, T), lambda b, p, v: (b, 0, p)),
        ],
        out_specs=pl.BlockSpec((None, 1, T), lambda b, p, v: (b, 0, p)),
        out_shape=jax.ShapeDtypeStruct((B, 1, HW), jnp.float32),
        scratch_shapes=[pltpu.VMEM((D, T), jnp.float32)],
        compiler_params=pltpu.CompilerParams(
            dimension_semantics=("parallel", "parallel", "arbitrary"),
            vmem_limit_bytes=_VMEM_LIMIT),
    )(ref_feat, warped, depth_hypo)
    return out[:, 0, :]                               # (B, HW)


# -----------------------------------------------------------------------------
# Pallas kernel 3: per-view / per-pixel-tile cost accumulation with
# uncertainty-weighted aggregation + softmax scale regression
# grid = (B, HW_tiles, Vs); both HW and Vs are reduction axes (arbitrary)
# -----------------------------------------------------------------------------
def _scale_reg_kernel(num_src, ref_ref, warp_ref, w_ref, hypo_ref, out_ref,
                      num_acc, den_acc):
    p_idx = pl.program_id(1)
    v = pl.program_id(2)
    n_p = pl.num_programs(1)

    @pl.when((p_idx == 0) & (v == 0))
    def _():
        num_acc[...] = jnp.zeros_like(num_acc)
        den_acc[...] = jnp.zeros_like(den_acc)

    ref = ref_ref[...].astype(jnp.float32)            # (C, T)
    w = w_ref[...]                                    # (1, T) f32 confidence
    S = num_acc.shape[0]
    for s in range(S):
        diff = warp_ref[s].astype(jnp.float32) - ref                # (C, T)
        c = jnp.sum(diff * diff, axis=0, keepdims=True)             # (1, T)
        contrib = jnp.sum(c * w, axis=1, keepdims=True)             # (1, 1)
        num_acc[pl.ds(s, 1), :] = num_acc[pl.ds(s, 1), :] + contrib

    @pl.when(v == 0)   # weight sum is accumulated once per pixel tile
    def _():
        den_acc[...] = den_acc[...] + jnp.sum(w, axis=1, keepdims=True)

    @pl.when((p_idx == n_p - 1) & (v == num_src - 1))
    def _():
        inv_den = pl.reciprocal(den_acc[...] + 1e-6, approx=True)   # (1, 1)
        agg = num_acc[...] * (1.0 / num_src) * inv_den              # (S, 1)
        neg = -agg
        m = jnp.max(neg, axis=0, keepdims=True)
        e = jnp.exp(neg - m)
        denom = jnp.sum(e, axis=0, keepdims=True)
        prob = e * pl.reciprocal(denom, approx=True)                # (S, 1)
        out_ref[...] = jnp.sum(prob * hypo_ref[...], axis=0, keepdims=True)


def pallas_scale_regression(ref_feat, warped, weight, scale_hypo):
    """ref_feat: (B,C,HW) bf16; warped: (B,Vs,S,C,HW) bf16; weight: (B,1,HW) f32;
    scale_hypo: (S,)."""
    B, C, HW = ref_feat.shape
    Vs, S = warped.shape[1], warped.shape[2]
    hypo = scale_hypo.reshape(S, 1).astype(jnp.float32)
    T = _pick_tile(HW, 2048)
    grid = (B, HW // T, Vs)

    out = pl.pallas_call(
        functools.partial(_scale_reg_kernel, Vs),
        grid=grid,
        in_specs=[
            pl.BlockSpec((None, C, T), lambda b, p, v: (b, 0, p)),
            pl.BlockSpec((None, None, S, C, T), lambda b, p, v: (b, v, 0, 0, p)),
            pl.BlockSpec((None, 1, T), lambda b, p, v: (b, 0, p)),
            pl.BlockSpec((S, 1), lambda b, p, v: (0, 0)),
        ],
        out_specs=pl.BlockSpec((None, 1, 1), lambda b, p, v: (b, 0, 0)),
        out_shape=jax.ShapeDtypeStruct((B, 1, 1), jnp.float32),
        scratch_shapes=[pltpu.VMEM((S, 1), jnp.float32),
                        pltpu.VMEM((1, 1), jnp.float32)],
        compiler_params=pltpu.CompilerParams(
            dimension_semantics=("parallel", "arbitrary", "arbitrary"),
            vmem_limit_bytes=_VMEM_LIMIT),
    )(ref_feat, warped, weight, hypo)
    return out[:, 0, 0]                               # (B,)


# -----------------------------------------------------------------------------
# Plain-JAX glue: resize, homography warping, depth range sampling
# -----------------------------------------------------------------------------
def resize_bilinear(x, size):
    """x: (B, C, H, W) -> (B, C, size[0], size[1]); align_corners=False style."""
    B, C, _, _ = x.shape
    return jax.image.resize(x, (B, C, size[0], size[1]), method="bilinear")


def _bilinear_sample_zeros(feat, x, y):
    """feat: (B,C,Hs,Ws); x,y: (B,D,HW) in source pixel coords -> (B,D,C,HW)."""
    B, C, Hs, Ws = feat.shape
    _, D, HW = x.shape
    feat_flat = feat.reshape(B, C, Hs * Ws)
    x0 = jnp.floor(x)
    y0 = jnp.floor(y)

    def gather(xi, yi):
        valid = ((xi >= 0) & (xi <= Ws - 1) & (yi >= 0) & (yi <= Hs - 1))
        xi_c = jnp.clip(xi, 0, Ws - 1).astype(jnp.int32)
        yi_c = jnp.clip(yi, 0, Hs - 1).astype(jnp.int32)
        idx = (yi_c * Ws + xi_c).reshape(B, 1, D * HW)
        idx = jnp.broadcast_to(idx, (B, C, D * HW))
        vals = jnp.take_along_axis(feat_flat, idx, axis=2)           # (B,C,D*HW)
        return vals * valid.reshape(B, 1, D * HW).astype(feat.dtype)

    wx1 = (x - x0).reshape(B, 1, D * HW)
    wx0 = 1.0 - wx1
    wy1 = (y - y0).reshape(B, 1, D * HW)
    wy0 = 1.0 - wy1
    out = (gather(x0, y0) * (wx0 * wy0)
           + gather(x0 + 1, y0) * (wx1 * wy0)
           + gather(x0, y0 + 1) * (wx0 * wy1)
           + gather(x0 + 1, y0 + 1) * (wx1 * wy1))
    return out.reshape(B, C, D, HW).transpose(0, 2, 1, 3)            # (B,D,C,HW)


def homo_warp(src_feat, K_src, K_ref, c2w_src, c2w_ref, depth):
    """Warp source features onto ref view for each depth plane.
    src_feat: (B,C,Hs,Ws); depth: (B,D,H,W) -> (B,D,C,H*W)."""
    B, _, _, _ = src_feat.shape
    _, D, H, W = depth.shape
    yy, xx = jnp.meshgrid(jnp.arange(H, dtype=jnp.float32),
                          jnp.arange(W, dtype=jnp.float32), indexing="ij")
    pix = jnp.stack([xx.ravel(), yy.ravel(), jnp.ones(H * W, jnp.float32)], axis=0)

    K_ref_inv = jnp.linalg.inv(K_ref)                                 # (B,3,3)
    cam_dirs = jnp.einsum("bij,jn->bin", K_ref_inv, pix)              # (B,3,HW)
    pts = cam_dirs[:, None, :, :] * depth.reshape(B, D, 1, H * W)     # (B,D,3,HW)

    w2c_src = jnp.linalg.inv(c2w_src)
    rel = jnp.einsum("bij,bjk->bik", w2c_src, c2w_ref)                # ref -> src
    R = rel[:, :3, :3]
    t = rel[:, :3, 3]
    pts_src = jnp.einsum("bij,bdjn->bdin", R, pts) + t[:, None, :, None]
    proj = jnp.einsum("bij,bdjn->bdin", K_src, pts_src)               # (B,D,3,HW)
    z = proj[:, :, 2]
    z = jnp.where(jnp.abs(z) < 1e-6, 1e-6, z)
    px = proj[:, :, 0] / z
    py = proj[:, :, 1] / z
    return _bilinear_sample_zeros(src_feat, px, py)


def depth_range_sample(cur_depth, num_depth, depth_interval, min_d, max_d):
    """cur_depth: (B,h,w); depth_interval: (B,h,w) -> (B,num_depth,h,w)."""
    offsets = jnp.arange(num_depth, dtype=jnp.float32) - (num_depth - 1) / 2.0
    hypo = cur_depth[:, None] + offsets[None, :, None, None] * depth_interval[:, None]
    return jnp.clip(hypo, min_d, max_d)


# -----------------------------------------------------------------------------
# Networks (parameters are flattened im2col weights)
# -----------------------------------------------------------------------------
def init_params(key, base=8):
    def conv_init(k, cin_kk, cout):
        w = jax.random.normal(k, (cin_kk, cout), jnp.float32) / np.sqrt(cin_kk)
        b = jnp.zeros((cout,), jnp.float32)
        return w, b

    keys = jax.random.split(key, 8)
    p = {}
    p["conv0_w"], p["conv0_b"] = conv_init(keys[0], 3 * 9, base)
    p["conv1_w"], p["conv1_b"] = conv_init(keys[1], base * 9, base * 2)
    p["conv2_w"], p["conv2_b"] = conv_init(keys[2], base * 2 * 9, base * 4)
    p["out1_w"], p["out1_b"] = conv_init(keys[3], base * 4, base * 4)
    p["out2_w"], p["out2_b"] = conv_init(keys[4], base * 2, base * 2)
    p["out3_w"], p["out3_b"] = conv_init(keys[5], base, base)
    # monodepth2 proxy (disp + uncert heads)
    p["mconv0_w"], p["mconv0_b"] = conv_init(keys[6], 3 * 9, base)
    p["mconv1_w"], p["mconv1_b"] = conv_init(keys[7], base, 2)
    return p


def feature_net(params, image):
    """image: (N,3,H,W) -> dict of stage1 (H/4), stage2 (H/2), stage3 (H)."""
    c0 = conv2d_pallas(image, params["conv0_w"], params["conv0_b"], 1, 3, relu=True)
    c1 = conv2d_pallas(c0, params["conv1_w"], params["conv1_b"], 2, 3, relu=True)
    c2 = conv2d_pallas(c1, params["conv2_w"], params["conv2_b"], 2, 3, relu=True)
    return {
        "stage1": conv2d_pallas(c2, params["out1_w"], params["out1_b"], 1, 1, relu=False),
        "stage2": conv2d_pallas(c1, params["out2_w"], params["out2_b"], 1, 1, relu=False),
        "stage3": conv2d_pallas(c0, params["out3_w"], params["out3_b"], 1, 1, relu=False),
    }


def disp_to_depth(disp, min_depth, max_depth):
    min_disp = 1.0 / max_depth
    max_disp = 1.0 / min_depth
    scaled_disp = min_disp + (max_disp - min_disp) * disp
    return scaled_disp, 1.0 / scaled_disp


def scale_prediction(feats, Ks, c2ws, scale_hypo, pred_depth_stage, pred_uncert_stage):
    ref_feat = feats[0]
    B, C, h, w = ref_feat.shape
    depth_s = scale_hypo[None, :, None, None] * pred_depth_stage[:, None]   # (B,S,h,w)
    warped = jnp.stack(
        [homo_warp(feats[v], Ks[v], Ks[0], c2ws[v], c2ws[0], depth_s)
         for v in range(1, len(feats))], axis=1)                # (B,Vs,S,C,HW)
    weight = (1.0 - pred_uncert_stage).reshape(B, 1, h * w).astype(jnp.float32)
    return pallas_scale_regression(
        ref_feat.reshape(B, C, h * w).astype(_FEAT_DTYPE),
        warped.astype(_FEAT_DTYPE), weight, scale_hypo)


def depth_prediction(feats, Ks, c2ws, depth_hypo, pred_uncert_stage):
    # TODO(synk): the original DepthPrediction applies a learned 3D cost-volume
    # regularizer before regression; here raw variance costs are regressed.
    del pred_uncert_stage
    ref_feat = feats[0]
    B, C, h, w = ref_feat.shape
    D = depth_hypo.shape[1]
    warped = jnp.stack(
        [homo_warp(feats[v], Ks[v], Ks[0], c2ws[v], c2ws[0], depth_hypo)
         for v in range(1, len(feats))], axis=1)                # (B,Vs,D,C,HW)
    depth = pallas_depth_regression(
        ref_feat.reshape(B, C, h * w).astype(_FEAT_DTYPE),
        warped.astype(_FEAT_DTYPE),
        depth_hypo.reshape(B, D, h * w).astype(jnp.float32))
    return depth.reshape(B, h, w)


# -----------------------------------------------------------------------------
# monoMVSNet forward
# -----------------------------------------------------------------------------
def mono_mvsnet_forward(params, images, intrinsics, cam_to_world, opt):
    """images: (B,V,3,H,W); intrinsics: list of V x (B,3,3);
    cam_to_world: list of V x (B,4,4)."""
    B, V, _, H, W = images.shape

    # ---- monodepth2 proxy (frozen) ----
    ref_image = images[:, 0]
    ref_rs = resize_bilinear(ref_image, (opt["monodepth2_height"], opt["monodepth2_width"]))
    h0 = conv2d_pallas(ref_rs, params["mconv0_w"], params["mconv0_b"], 1, 3, relu=True)
    mo = conv2d_pallas(h0, params["mconv1_w"], params["mconv1_b"], 1, 1, relu=False)
    disp = jax.nn.sigmoid(mo[:, 0:1])
    uncert_raw = mo[:, 1:2]
    _, pred_depth = disp_to_depth(disp, opt["monodepth2_min_depth"], opt["monodepth2_max_depth"])
    pred_uncert = jnp.exp(uncert_raw)
    pred_uncert = (pred_uncert - jnp.min(pred_uncert)) / (
        jnp.max(pred_uncert) - jnp.min(pred_uncert) + 1e-8)
    pred_depth = resize_bilinear(pred_depth, (H, W))
    pred_uncert = resize_bilinear(pred_uncert, (H, W))

    # ---- FeatureNet: all V views batched through one set of conv kernels ----
    feat_all = feature_net(params, images.reshape(B * V, 3, H, W))

    scale_map = {"stage1": float(opt["pyramid_scale"] ** 2),
                 "stage2": float(opt["pyramid_scale"]),
                 "stage3": 1.0}
    scale_hypo = jnp.arange(opt["min_depth"], opt["max_depth"] + opt["scale_step"],
                            opt["scale_step"], dtype=jnp.float32)

    output = {}
    depth = None
    for stage_idx in range(3):
        stage = f"stage{stage_idx + 1}"
        fa = feat_all[stage]
        Cs, hs, ws = fa.shape[1], fa.shape[2], fa.shape[3]
        fa = fa.reshape(B, V, Cs, hs, ws)
        feats = [fa[:, v] for v in range(V)]
        ss = scale_map[stage]

        # scale first two rows of K (fx, skew, cx / fy, cy)
        row_scale = jnp.array([1.0 / ss, 1.0 / ss, 1.0], jnp.float32).reshape(1, 3, 1)
        Ks = [K * row_scale for K in intrinsics]

        pred_uncert_stage = resize_bilinear(pred_uncert, (hs, ws))[:, 0]

        if stage == "stage1":
            pred_depth_stage = resize_bilinear(pred_depth, (hs, ws))[:, 0]
            pred_depth_stage = pred_depth_stage / jnp.median(pred_depth_stage)
            scale = scale_prediction(feats, Ks, cam_to_world, scale_hypo,
                                     pred_depth_stage, pred_uncert_stage)
            output["scale"] = scale
            cur_depth = scale[:, None, None] * pred_depth_stage
            cur_depth = jnp.clip(cur_depth, opt["min_depth"], opt["max_depth"])
        else:
            cur_depth = resize_bilinear(depth[:, None], (hs, ws))[:, 0]

        depth_interval = ((2.0 - pred_uncert_stage) / 2.0 * opt["depth_interval"]
                          * opt["depth_interal_ratio"][stage_idx])
        depth_hypo = depth_range_sample(cur_depth, opt["num_depth"][stage_idx],
                                        depth_interval, opt["min_depth"], opt["max_depth"])
        depth = depth_prediction(feats, Ks, cam_to_world, depth_hypo, pred_uncert_stage)
        output[f"depth_stage{stage_idx + 1}"] = depth
    return output


# -----------------------------------------------------------------------------
# Main
# -----------------------------------------------------------------------------
if __name__ == "__main__":
    key = jax.random.PRNGKey(0)
    B, V, H, W = 2, 3, OPT["height"], OPT["width"]

    k_img, _ = jax.random.split(key)
    images = jax.random.uniform(k_img, (B, V, 3, H, W), jnp.float32)

    fx = fy = float(W)
    cx, cy = W / 2.0, H / 2.0
    K = jnp.array([[fx, 0.0, cx], [0.0, fy, cy], [0.0, 0.0, 1.0]], jnp.float32)
    intrinsics = [jnp.broadcast_to(K, (B, 3, 3)) for _ in range(V)]

    cam_to_world = []
    for v in range(V):
        T = jnp.eye(4, dtype=jnp.float32).at[0, 3].set(0.1 * v)
        cam_to_world.append(jnp.broadcast_to(T, (B, 4, 4)))

    params = init_params(jax.random.PRNGKey(42), base=OPT["FeatureNet_base_channels"])

    forward_fn = jax.jit(functools.partial(mono_mvsnet_forward, opt=OPT))
    out = forward_fn(params, images, intrinsics, cam_to_world)
    out = jax.block_until_ready(out)

    assert out["scale"].shape == (B,)
    assert out["depth_stage1"].shape == (B, H // 4, W // 4)
    assert out["depth_stage2"].shape == (B, H // 2, W // 2)
    assert out["depth_stage3"].shape == (B, H, W)
    assert all(bool(jnp.all(jnp.isfinite(v))) for v in out.values())
    print("KERNEL_OK")
</pallas_src>

<mosaic_0001>
module attributes {stable_mosaic.version = 11 : i64} {
  func.func @_conv_matmul_kernel(%arg0: i32, %arg1: i32, %arg2: memref<8x27xbf16, #tpu.memory_space<vmem>>, %arg3: memref<8x1xf32, #tpu.memory_space<vmem>>, %arg4: memref<1x27x256xbf16, #tpu.memory_space<vmem>>, %arg5: memref<1x8x256xf32, #tpu.memory_space<vmem>>) attributes {dimension_semantics = [#tpu.dimension_semantics<parallel>, #tpu.dimension_semantics<parallel>], iteration_bounds = array<i64: 6, 1>, scalar_prefetch = 0 : i64, scratch_operands = 0 : i64, tpu.core_type = #tpu.core_type<tc>, window_params = [{pipeline_mode = #tpu.pipeline_mode<synchronous>, transform_indices = @transform_0, window_bounds = array<i64: 8, 27>}, {pipeline_mode = #tpu.pipeline_mode<synchronous>, transform_indices = @transform_1, window_bounds = array<i64: 8, 1>}, {transform_indices = @transform_2, window_bounds = array<i64: 1, 27, 256>}, {transform_indices = @transform_3, window_bounds = array<i64: 1, 8, 256>}]} {
    %c0 = arith.constant 0 : index
    %c0_0 = arith.constant 0 : index
    %0 = vector.load %arg2[%c0, %c0_0] : memref<8x27xbf16, #tpu.memory_space<vmem>>, vector<8x27xbf16>
    %c0_1 = arith.constant 0 : index
    %c0_2 = arith.constant 0 : index
    %c0_3 = arith.constant 0 : index
    %1 = vector.load %arg4[%c0_1, %c0_2, %c0_3] : memref<1x27x256xbf16, #tpu.memory_space<vmem>>, vector<1x27x256xbf16>
    %2 = vector.shape_cast %1 : vector<1x27x256xbf16> to vector<27x256xbf16>
    %cst = arith.constant dense<0.000000e+00> : vector<8x256xf32>
    %3 = tpu.matmul %0, %2, %cst {dimension_numbers = #tpu.dot_dimension_numbers<[1], [0], [0], [1], [0, 0, 1, 1], [], []>} : vector<8x27xbf16>, vector<27x256xbf16>, vector<8x256xf32> -> vector<8x256xf32>
    %c0_4 = arith.constant 0 : index
    %c0_5 = arith.constant 0 : index
    %4 = vector.load %arg3[%c0_4, %c0_5] : memref<8x1xf32, #tpu.memory_space<vmem>>, vector<8x1xf32>
    %5 = vector.broadcast %4 : vector<8x1xf32> to vector<8x256xf32>
    %6 = arith.addf %3, %5 : vector<8x256xf32>
    %cst_6 = arith.constant 0.000000e+00 : f32
    %7 = vector.broadcast %cst_6 : f32 to vector<8x256xf32>
    %8 = arith.maximumf %6, %7 : vector<8x256xf32>
    %c0_7 = arith.constant 0 : index
    %c0_8 = arith.constant 0 : index
    %c0_9 = arith.constant 0 : index
    %9 = vector.load %arg5[%c0_7, %c0_8, %c0_9] : memref<1x8x256xf32, #tpu.memory_space<vmem>>, vector<1x8x256xf32>
    %10 = vector.shape_cast %9 : vector<1x8x256xf32> to vector<8x256xf32>
    %11 = vector.shape_cast %8 : vector<8x256xf32> to vector<1x8x256xf32>
    tpu.vector_store %arg5[%c0_7, %c0_8, %c0_9], %11 {strides = array<i32>} : memref<1x8x256xf32, #tpu.memory_space<vmem>>, vector<1x8x256xf32>,
    return
  }
  func.func @transform_0(%arg0: i32, %arg1: i32) -> (i32, i32) {
    %c0_i32 = arith.constant 0 : i32
    %c0_i32_0 = arith.constant 0 : i32
    %c0_i32_1 = arith.constant 0 : i32
    return %c0_i32, %c0_i32_0 : i32, i32
  }
  func.func @transform_1(%arg0: i32, %arg1: i32) -> (i32, i32) {
    %c0_i32 = arith.constant 0 : i32
    %c0_i32_0 = arith.constant 0 : i32
    %c0_i32_1 = arith.constant 0 : i32
    return %c0_i32, %c0_i32_0 : i32, i32
  }
  func.func @transform_2(%arg0: i32, %arg1: i32) -> (i32, i32, i32) {
    %c0_i32 = arith.constant 0 : i32
    %c0_i32_0 = arith.constant 0 : i32
    return %arg0, %c0_i32, %arg1 : i32, i32, i32
  }
  func.func @transform_3(%arg0: i32, %arg1: i32) -> (i32, i32, i32) {
    %c0_i32 = arith.constant 0 : i32
    %c0_i32_0 = arith.constant 0 : i32
    return %arg0, %c0_i32, %arg1 : i32, i32, i32
  }
}

module attributes {stable_mosaic.version = 11 : i64} {
  func.func @_conv_matmul_kernel(%arg0: i32, %arg1: i32, %arg2: memref<16x72xbf16, #tpu.memory_space<vmem>>, %arg3: memref<16x1xf32, #tpu.memory_space<vmem>>, %arg4: memref<1x72x64xbf16, #tpu.memory_space<vmem>>, %arg5: memref<1x16x64xf32, #tpu.memory_space<vmem>>) attributes {dimension_semantics = [#tpu.dimension_semantics<parallel>, #tpu.dimension_semantics<parallel>], iteration_bounds = array<i64: 6, 1>, scalar_prefetch = 0 : i64, scratch_operands = 0 : i64, tpu.core_type = #tpu.core_type<tc>, window_params = [{pipeline_mode = #tpu.pipeline_mode<synchronous>, transform_indices = @transform_0, window_bounds = array<i64: 16, 72>}, {pipeline_mode = #tpu.pipeline_mode<synchronous>, transform_indices = @transform_1, window_bounds = array<i64: 16, 1>}, {transform_indices = @transform_2, window_bounds = array<i64: 1, 72, 64>}, {transform_indices = @transform_3, window_bounds = array<i64: 1, 16, 64>}]} {
    %c0 = arith.constant 0 : index
    %c0_0 = arith.constant 0 : index
    %0 = vector.load %arg2[%c0, %c0_0] : memref<16x72xbf16, #tpu.memory_space<vmem>>, vector<16x72xbf16>
    %c0_1 = arith.constant 0 : index
    %c0_2 = arith.constant 0 : index
    %c0_3 = arith.constant 0 : index
    %1 = vector.load %arg4[%c0_1, %c0_2, %c0_3] : memref<1x72x64xbf16, #tpu.memory_space<vmem>>, vector<1x72x64xbf16>
    %2 = vector.shape_cast %1 : vector<1x72x64xbf16> to vector<72x64xbf16>
    %cst = arith.constant dense<0.000000e+00> : vector<16x64xf32>
    %3 = tpu.matmul %0, %2, %cst {dimension_numbers = #tpu.dot_dimension_numbers<[1], [0], [0], [1], [0, 0, 1, 1], [], []>} : vector<16x72xbf16>, vector<72x64xbf16>, vector<16x64xf32> -> vector<16x64xf32>
    %c0_4 = arith.constant 0 : index
    %c0_5 = arith.constant 0 : index
    %4 = vector.load %arg3[%c0_4, %c0_5] : memref<16x1xf32, #tpu.memory_space<vmem>>, vector<16x1xf32>
    %5 = vector.broadcast %4 : vector<16x1xf32> to vector<16x64xf32>
    %6 = arith.addf %3, %5 : vector<16x64xf32>
    %cst_6 = arith.constant 0.000000e+00 : f32
    %7 = vector.broadcast %cst_6 : f32 to vector<16x64xf32>
    %8 = arith.maximumf %6, %7 : vector<16x64xf32>
    %c0_7 = arith.constant 0 : index
    %c0_8 = arith.constant 0 : index
    %c0_9 = arith.constant 0 : index
    %9 = vector.load %arg5[%c0_7, %c0_8, %c0_9] : memref<1x16x64xf32, #tpu.memory_space<vmem>>, vector<1x16x64xf32>
    %10 = vector.shape_cast %9 : vector<1x16x64xf32> to vector<16x64xf32>
    %11 = vector.shape_cast %8 : vector<16x64xf32> to vector<1x16x64xf32>
    tpu.vector_store %arg5[%c0_7, %c0_8, %c0_9], %11 {strides = array<i32>} : memref<1x16x64xf32, #tpu.memory_space<vmem>>, vector<1x16x64xf32>,
    return
  }
  func.func @transform_0(%arg0: i32, %arg1: i32) -> (i32, i32) {
    %c0_i32 = arith.constant 0 : i32
    %c0_i32_0 = arith.constant 0 : i32
    %c0_i32_1 = arith.constant 0 : i32
    return %c0_i32, %c0_i32_0 : i32, i32
  }
  func.func @transform_1(%arg0: i32, %arg1: i32) -> (i32, i32) {
    %c0_i32 = arith.constant 0 : i32
    %c0_i32_0 = arith.constant 0 : i32
    %c0_i32_1 = arith.constant 0 : i32
    return %c0_i32, %c0_i32_0 : i32, i32
  }
  func.func @transform_2(%arg0: i32, %arg1: i32) -> (i32, i32, i32) {
    %c0_i32 = arith.constant 0 : i32
    %c0_i32_0 = arith.constant 0 : i32
    return %arg0, %c0_i32, %arg1 : i32, i32, i32
  }
  func.func @transform_3(%arg0: i32, %arg1: i32) -> (i32, i32, i32) {
    %c0_i32 = arith.constant 0 : i32
    %c0_i32_0 = arith.constant 0 : i32
    return %arg0, %c0_i32, %arg1 : i32, i32, i32
  }
}

module attributes {stable_mosaic.version = 11 : i64} {
  func.func @_conv_matmul_kernel(%arg0: i32, %arg1: i32, %arg2: memref<32x32xbf16, #tpu.memory_space<vmem>>, %arg3: memref<32x1xf32, #tpu.memory_space<vmem>>, %arg4: memref<1x32x16xbf16, #tpu.memory_space<vmem>>, %arg5: memref<1x32x16xf32, #tpu.memory_space<vmem>>) attributes {dimension_semantics = [#tpu.dimension_semantics<parallel>, #tpu.dimension_semantics<parallel>], iteration_bounds = array<i64: 6, 1>, scalar_prefetch = 0 : i64, scratch_operands = 0 : i64, tpu.core_type = #tpu.core_type<tc>, window_params = [{pipeline_mode = #tpu.pipeline_mode<synchronous>, transform_indices = @transform_0, window_bounds = array<i64: 32, 32>}, {pipeline_mode = #tpu.pipeline_mode<synchronous>, transform_indices = @transform_1, window_bounds = array<i64: 32, 1>}, {transform_indices = @transform_2, window_bounds = array<i64: 1, 32, 16>}, {transform_indices = @transform_3, window_bounds = array<i64: 1, 32, 16>}]} {
    %c0 = arith.constant 0 : index
    %c0_0 = arith.constant 0 : index
    %0 = vector.load %arg2[%c0, %c0_0] : memref<32x32xbf16, #tpu.memory_space<vmem>>, vector<32x32xbf16>
    %c0_1 = arith.constant 0 : index
    %c0_2 = arith.constant 0 : index
    %c0_3 = arith.constant 0 : index
    %1 = vector.load %arg4[%c0_1, %c0_2, %c0_3] : memref<1x32x16xbf16, #tpu.memory_space<vmem>>, vector<1x32x16xbf16>
    %2 = vector.shape_cast %1 : vector<1x32x16xbf16> to vector<32x16xbf16>
    %cst = arith.constant dense<0.000000e+00> : vector<32x16xf32>
    %3 = tpu.matmul %0, %2, %cst {dimension_numbers = #tpu.dot_dimension_numbers<[1], [0], [0], [1], [0, 0, 1, 1], [], []>} : vector<32x32xbf16>, vector<32x16xbf16>, vector<32x16xf32> -> vector<32x16xf32>
    %c0_4 = arith.constant 0 : index
    %c0_5 = arith.constant 0 : index
    %4 = vector.load %arg3[%c0_4, %c0_5] : memref<32x1xf32, #tpu.memory_space<vmem>>, vector<32x1xf32>
    %5 = vector.broadcast %4 : vector<32x1xf32> to vector<32x16xf32>
    %6 = arith.addf %3, %5 : vector<32x16xf32>
    %c0_6 = arith.constant 0 : index
    %c0_7 = arith.constant 0 : index
    %c0_8 = arith.constant 0 : index
    %7 = vector.load %arg5[%c0_6, %c0_7, %c0_8] : memref<1x32x16xf32, #tpu.memory_space<vmem>>, vector<1x32x16xf32>
    %8 = vector.shape_cast %7 : vector<1x32x16xf32> to vector<32x16xf32>
    %9 = vector.shape_cast %6 : vector<32x16xf32> to vector<1x32x16xf32>
    tpu.vector_store %arg5[%c0_6, %c0_7, %c0_8], %9 {strides = array<i32>} : memref<1x32x16xf32, #tpu.memory_space<vmem>>, vector<1x32x16xf32>,
    return
  }
  func.func @transform_0(%arg0: i32, %arg1: i32) -> (i32, i32) {
    %c0_i32 = arith.constant 0 : i32
    %c0_i32_0 = arith.constant 0 : i32
    %c0_i32_1 = arith.constant 0 : i32
    return %c0_i32, %c0_i32_0 : i32, i32
  }
  func.func @transform_1(%arg0: i32, %arg1: i32) -> (i32, i32) {
    %c0_i32 = arith.constant 0 : i32
    %c0_i32_0 = arith.constant 0 : i32
    %c0_i32_1 = arith.constant 0 : i32
    return %c0_i32, %c0_i32_0 : i32, i32
  }
  func.func @transform_2(%arg0: i32, %arg1: i32) -> (i32, i32, i32) {
    %c0_i32 = arith.constant 0 : i32
    %c0_i32_0 = arith.constant 0 : i32
    return %arg0, %c0_i32, %arg1 : i32, i32, i32
  }
  func.func @transform_3(%arg0: i32, %arg1: i32) -> (i32, i32, i32) {
    %c0_i32 = arith.constant 0 : i32
    %c0_i32_0 = arith.constant 0 : i32
    return %arg0, %c0_i32, %arg1 : i32, i32, i32
  }
}

module attributes {stable_mosaic.version = 11 : i64} {
  func.func @_conv_matmul_kernel(%arg0: i32, %arg1: i32, %arg2: memref<32x144xbf16, #tpu.memory_space<vmem>>, %arg3: memref<32x1xf32, #tpu.memory_space<vmem>>, %arg4: memref<1x144x16xbf16, #tpu.memory_space<vmem>>, %arg5: memref<1x32x16xf32, #tpu.memory_space<vmem>>) attributes {dimension_semantics = [#tpu.dimension_semantics<parallel>, #tpu.dimension_semantics<parallel>], iteration_bounds = array<i64: 6, 1>, scalar_prefetch = 0 : i64, scratch_operands = 0 : i64, tpu.core_type = #tpu.core_type<tc>, window_params = [{pipeline_mode = #tpu.pipeline_mode<synchronous>, transform_indices = @transform_0, window_bounds = array<i64: 32, 144>}, {pipeline_mode = #tpu.pipeline_mode<synchronous>, transform_indices = @transform_1, window_bounds = array<i64: 32, 1>}, {transform_indices = @transform_2, window_bounds = array<i64: 1, 144, 16>}, {transform_indices = @transform_3, window_bounds = array<i64: 1, 32, 16>}]} {
    %c0 = arith.constant 0 : index
    %c0_0 = arith.constant 0 : index
    %0 = vector.load %arg2[%c0, %c0_0] : memref<32x144xbf16, #tpu.memory_space<vmem>>, vector<32x144xbf16>
    %c0_1 = arith.constant 0 : index
    %c0_2 = arith.constant 0 : index
    %c0_3 = arith.constant 0 : index
    %1 = vector.load %arg4[%c0_1, %c0_2, %c0_3] : memref<1x144x16xbf16, #tpu.memory_space<vmem>>, vector<1x144x16xbf16>
    %2 = vector.shape_cast %1 : vector<1x144x16xbf16> to vector<144x16xbf16>
    %cst = arith.constant dense<0.000000e+00> : vector<32x16xf32>
    %3 = tpu.matmul %0, %2, %cst {dimension_numbers = #tpu.dot_dimension_numbers<[1], [0], [0], [1], [0, 0, 1, 1], [], []>} : vector<32x144xbf16>, vector<144x16xbf16>, vector<32x16xf32> -> vector<32x16xf32>
    %c0_4 = arith.constant 0 : index
    %c0_5 = arith.constant 0 : index
    %4 = vector.load %arg3[%c0_4, %c0_5] : memref<32x1xf32, #tpu.memory_space<vmem>>, vector<32x1xf32>
    %5 = vector.broadcast %4 : vector<32x1xf32> to vector<32x16xf32>
    %6 = arith.addf %3, %5 : vector<32x16xf32>
    %cst_6 = arith.constant 0.000000e+00 : f32
    %7 = vector.broadcast %cst_6 : f32 to vector<32x16xf32>
    %8 = arith.maximumf %6, %7 : vector<32x16xf32>
    %c0_7 = arith.constant 0 : index
    %c0_8 = arith.constant 0 : index
    %c0_9 = arith.constant 0 : index
    %9 = vector.load %arg5[%c0_7, %c0_8, %c0_9] : memref<1x32x16xf32, #tpu.memory_space<vmem>>, vector<1x32x16xf32>
    %10 = vector.shape_cast %9 : vector<1x32x16xf32> to vector<32x16xf32>
    %11 = vector.shape_cast %8 : vector<32x16xf32> to vector<1x32x16xf32>
    tpu.vector_store %arg5[%c0_7, %c0_8, %c0_9], %11 {strides = array<i32>} : memref<1x32x16xf32, #tpu.memory_space<vmem>>, vector<1x32x16xf32>,
    return
  }
  func.func @transform_0(%arg0: i32, %arg1: i32) -> (i32, i32) {
    %c0_i32 = arith.constant 0 : i32
    %c0_i32_0 = arith.constant 0 : i32
    %c0_i32_1 = arith.constant 0 : i32
    return %c0_i32, %c0_i32_0 : i32, i32
  }
  func.func @transform_1(%arg0: i32, %arg1: i32) -> (i32, i32) {
    %c0_i32 = arith.constant 0 : i32
    %c0_i32_0 = arith.constant 0 : i32
    %c0_i32_1 = arith.constant 0 : i32
    return %c0_i32, %c0_i32_0 : i32, i32
  }
  func.func @transform_2(%arg0: i32, %arg1: i32) -> (i32, i32, i32) {
    %c0_i32 = arith.constant 0 : i32
    %c0_i32_0 = arith.constant 0 : i32
    return %arg0, %c0_i32, %arg1 : i32, i32, i32
  }
  func.func @transform_3(%arg0: i32, %arg1: i32) -> (i32, i32, i32) {
    %c0_i32 = arith.constant 0 : i32
    %c0_i32_0 = arith.constant 0 : i32
    return %arg0, %c0_i32, %arg1 : i32, i32, i32
  }
}

module attributes {stable_mosaic.version = 11 : i64} {
  func.func @_conv_matmul_kernel(%arg0: i32, %arg1: i32, %arg2: memref<8x27xbf16, #tpu.memory_space<vmem>>, %arg3: memref<8x1xf32, #tpu.memory_space<vmem>>, %arg4: memref<1x27x1024xbf16, #tpu.memory_space<vmem>>, %arg5: memref<1x8x1024xf32, #tpu.memory_space<vmem>>) attributes {dimension_semantics = [#tpu.dimension_semantics<parallel>, #tpu.dimension_semantics<parallel>], iteration_bounds = array<i64: 2, 1>, scalar_prefetch = 0 : i64, scratch_operands = 0 : i64, tpu.core_type = #tpu.core_type<tc>, window_params = [{pipeline_mode = #tpu.pipeline_mode<synchronous>, transform_indices = @transform_0, window_bounds = array<i64: 8, 27>}, {pipeline_mode = #tpu.pipeline_mode<synchronous>, transform_indices = @transform_1, window_bounds = array<i64: 8, 1>}, {transform_indices = @transform_2, window_bounds = array<i64: 1, 27, 1024>}, {transform_indices = @transform_3, window_bounds = array<i64: 1, 8, 1024>}]} {
    %c0 = arith.constant 0 : index
    %c0_0 = arith.constant 0 : index
    %0 = vector.load %arg2[%c0, %c0_0] : memref<8x27xbf16, #tpu.memory_space<vmem>>, vector<8x27xbf16>
    %c0_1 = arith.constant 0 : index
    %c0_2 = arith.constant 0 : index
    %c0_3 = arith.constant 0 : index
    %1 = vector.load %arg4[%c0_1, %c0_2, %c0_3] : memref<1x27x1024xbf16, #tpu.memory_space<vmem>>, vector<1x27x1024xbf16>
    %2 = vector.shape_cast %1 : vector<1x27x1024xbf16> to vector<27x1024xbf16>
    %cst = arith.constant dense<0.000000e+00> : vector<8x1024xf32>
    %3 = tpu.matmul %0, %2, %cst {dimension_numbers = #tpu.dot_dimension_numbers<[1], [0], [0], [1], [0, 0, 1, 1], [], []>} : vector<8x27xbf16>, vector<27x1024xbf16>, vector<8x1024xf32> -> vector<8x1024xf32>
    %c0_4 = arith.constant 0 : index
    %c0_5 = arith.constant 0 : index
    %4 = vector.load %arg3[%c0_4, %c0_5] : memref<8x1xf32, #tpu.memory_space<vmem>>, vector<8x1xf32>
    %5 = vector.broadcast %4 : vector<8x1xf32> to vector<8x1024xf32>
    %6 = arith.addf %3, %5 : vector<8x1024xf32>
    %cst_6 = arith.constant 0.000000e+00 : f32
    %7 = vector.broadcast %cst_6 : f32 to vector<8x1024xf32>
    %8 = arith.maximumf %6, %7 : vector<8x1024xf32>
    %c0_7 = arith.constant 0 : index
    %c0_8 = arith.constant 0 : index
    %c0_9 = arith.constant 0 : index
    %9 = vector.load %arg5[%c0_7, %c0_8, %c0_9] : memref<1x8x1024xf32, #tpu.memory_space<vmem>>, vector<1x8x1024xf32>
    %10 = vector.shape_cast %9 : vector<1x8x1024xf32> to vector<8x1024xf32>
    %11 = vector.shape_cast %8 : vector<8x1024xf32> to vector<1x8x1024xf32>
    tpu.vector_store %arg5[%c0_7, %c0_8, %c0_9], %11 {strides = array<i32>} : memref<1x8x1024xf32, #tpu.memory_space<vmem>>, vector<1x8x1024xf32>,
    return
  }
  func.func @transform_0(%arg0: i32, %arg1: i32) -> (i32, i32) {
    %c0_i32 = arith.constant 0 : i32
    %c0_i32_0 = arith.constant 0 : i32
    %c0_i32_1 = arith.constant 0 : i32
    return %c0_i32, %c0_i32_0 : i32, i32
  }
  func.func @transform_1(%arg0: i32, %arg1: i32) -> (i32, i32) {
    %c0_i32 = arith.constant 0 : i32
    %c0_i32_0 = arith.constant 0 : i32
    %c0_i32_1 = arith.constant 0 : i32
    return %c0_i32, %c0_i32_0 : i32, i32
  }
  func.func @transform_2(%arg0: i32, %arg1: i32) -> (i32, i32, i32) {
    %c0_i32 = arith.constant 0 : i32
    %c0_i32_0 = arith.constant 0 : i32
    return %arg0, %c0_i32, %arg1 : i32, i32, i32
  }
  func.func @transform_3(%arg0: i32, %arg1: i32) -> (i32, i32, i32) {
    %c0_i32 = arith.constant 0 : i32
    %c0_i32_0 = arith.constant 0 : i32
    return %arg0, %c0_i32, %arg1 : i32, i32, i32
  }
}

module attributes {stable_mosaic.version = 11 : i64} {
  func.func @_conv_matmul_kernel(%arg0: i32, %arg1: i32, %arg2: memref<2x8xbf16, #tpu.memory_space<vmem>>, %arg3: memref<2x1xf32, #tpu.memory_space<vmem>>, %arg4: memref<1x8x1024xbf16, #tpu.memory_space<vmem>>, %arg5: memref<1x2x1024xf32, #tpu.memory_space<vmem>>) attributes {dimension_semantics = [#tpu.dimension_semantics<parallel>, #tpu.dimension_semantics<parallel>], iteration_bounds = array<i64: 2, 1>, scalar_prefetch = 0 : i64, scratch_operands = 0 : i64, tpu.core_type = #tpu.core_type<tc>, window_params = [{pipeline_mode = #tpu.pipeline_mode<synchronous>, transform_indices = @transform_0, window_bounds = array<i64: 2, 8>}, {pipeline_mode = #tpu.pipeline_mode<synchronous>, transform_indices = @transform_1, window_bounds = array<i64: 2, 1>}, {transform_indices = @transform_2, window_bounds = array<i64: 1, 8, 1024>}, {transform_indices = @transform_3, window_bounds = array<i64: 1, 2, 1024>}]} {
    %c0 = arith.constant 0 : index
    %c0_0 = arith.constant 0 : index
    %0 = vector.load %arg2[%c0, %c0_0] : memref<2x8xbf16, #tpu.memory_space<vmem>>, vector<2x8xbf16>
    %c0_1 = arith.constant 0 : index
    %c0_2 = arith.constant 0 : index
    %c0_3 = arith.constant 0 : index
    %1 = vector.load %arg4[%c0_1, %c0_2, %c0_3] : memref<1x8x1024xbf16, #tpu.memory_space<vmem>>, vector<1x8x1024xbf16>
    %2 = vector.shape_cast %1 : vector<1x8x1024xbf16> to vector<8x1024xbf16>
    %cst = arith.constant dense<0.000000e+00> : vector<2x1024xf32>
    %3 = tpu.matmul %0, %2, %cst {dimension_numbers = #tpu.dot_dimension_numbers<[1], [0], [0], [1], [0, 0, 1, 1], [], []>} : vector<2x8xbf16>, vector<8x1024xbf16>, vector<2x1024xf32> -> vector<2x1024xf32>
    %c0_4 = arith.constant 0 : index
    %c0_5 = arith.constant 0 : index
    %4 = vector.load %arg3[%c0_4, %c0_5] : memref<2x1xf32, #tpu.memory_space<vmem>>, vector<2x1xf32>
    %5 = vector.broadcast %4 : vector<2x1xf32> to vector<2x1024xf32>
    %6 = arith.addf %3, %5 : vector<2x1024xf32>
    %c0_6 = arith.constant 0 : index
    %c0_7 = arith.constant 0 : index
    %c0_8 = arith.constant 0 : index
    %7 = vector.load %arg5[%c0_6, %c0_7, %c0_8] : memref<1x2x1024xf32, #tpu.memory_space<vmem>>, vector<1x2x1024xf32>
    %8 = vector.shape_cast %7 : vector<1x2x1024xf32> to vector<2x1024xf32>
    %9 = vector.shape_cast %6 : vector<2x1024xf32> to vector<1x2x1024xf32>
    tpu.vector_store %arg5[%c0_6, %c0_7, %c0_8], %9 {strides = array<i32>} : memref<1x2x1024xf32, #tpu.memory_space<vmem>>, vector<1x2x1024xf32>,
    return
  }
  func.func @transform_0(%arg0: i32, %arg1: i32) -> (i32, i32) {
    %c0_i32 = arith.constant 0 : i32
    %c0_i32_0 = arith.constant 0 : i32
    %c0_i32_1 = arith.constant 0 : i32
    return %c0_i32, %c0_i32_0 : i32, i32
  }
  func.func @transform_1(%arg0: i32, %arg1: i32) -> (i32, i32) {
    %c0_i32 = arith.constant 0 : i32
    %c0_i32_0 = arith.constant 0 : i32
    %c0_i32_1 = arith.constant 0 : i32
    return %c0_i32, %c0_i32_0 : i32, i32
  }
  func.func @transform_2(%arg0: i32, %arg1: i32) -> (i32, i32, i32) {
    %c0_i32 = arith.constant 0 : i32
    %c0_i32_0 = arith.constant 0 : i32
    return %arg0, %c0_i32, %arg1 : i32, i32, i32
  }
  func.func @transform_3(%arg0: i32, %arg1: i32) -> (i32, i32, i32) {
    %c0_i32 = arith.constant 0 : i32
    %c0_i32_0 = arith.constant 0 : i32
    return %arg0, %c0_i32, %arg1 : i32, i32, i32
  }
}

module attributes {stable_mosaic.version = 11 : i64} {
  func.func @_scale_reg_kernel(%arg0: i32, %arg1: i32, %arg2: i32, %arg3: memref<1x32x16xbf16, #tpu.memory_space<vmem>>, %arg4: memref<1x1x11x32x16xbf16, #tpu.memory_space<vmem>>, %arg5: memref<1x1x16xf32, #tpu.memory_space<vmem>>, %arg6: memref<11x1xf32, #tpu.memory_space<vmem>>, %arg7: memref<1x1x1xf32, #tpu.memory_space<vmem>>, %arg8: memref<11x1xf32, #tpu.memory_space<vmem>>, %arg9: memref<1x1xf32, #tpu.memory_space<vmem>>) attributes {dimension_semantics = [#tpu.dimension_semantics<parallel>, #tpu.dimension_semantics<arbitrary>, #tpu.dimension_semantics<arbitrary>], iteration_bounds = array<i64: 2, 1, 2>, scalar_prefetch = 0 : i64, scratch_operands = 2 : i64, tpu.core_type = #tpu.core_type<tc>, window_params = [{transform_indices = @transform_0, window_bounds = array<i64: 1, 32, 16>}, {transform_indices = @transform_1, window_bounds = array<i64: 1, 1, 11, 32, 16>}, {transform_indices = @transform_2, window_bounds = array<i64: 1, 1, 16>}, {pipeline_mode = #tpu.pipeline_mode<synchronous>, transform_indices = @transform_3, window_bounds = array<i64: 11, 1>}, {transform_indices = @transform_4, window_bounds = array<i64: 1, 1, 1>}]} {
    %c0_i32 = arith.constant 0 : i32
    %0 = arith.cmpi eq, %arg1, %c0_i32 : i32
    %c0_i32_0 = arith.constant 0 : i32
    %1 = arith.cmpi eq, %arg2, %c0_i32_0 : i32
    %2 = arith.andi %0, %1 : i1
    %3 = arith.extui %2 : i1 to i32
    %c0_i32_1 = arith.constant 0 : i32
    %4 = arith.cmpi ne, %3, %c0_i32_1 : i32
    scf.if %4 {
      %cst_121 = arith.constant 0.000000e+00 : f32
      %161 = vector.broadcast %cst_121 : f32 to vector<11x1xf32>
      %c0_122 = arith.constant 0 : index
      %c0_123 = arith.constant 0 : index
      %162 = vector.load %arg8[%c0_122, %c0_123] : memref<11x1xf32, #tpu.memory_space<vmem>>, vector<11x1xf32>
      tpu.vector_store %arg8[%c0_122, %c0_123], %161 {strides = array<i32>} : memref<11x1xf32, #tpu.memory_space<vmem>>, vector<11x1xf32>,
      %cst_124 = arith.constant 0.000000e+00 : f32
      %163 = vector.broadcast %cst_124 : f32 to vector<1x1xf32>
      %c0_125 = arith.constant 0 : index
      %c0_126 = arith.constant 0 : index
      %164 = vector.load %arg9[%c0_125, %c0_126] : memref<1x1xf32, #tpu.memory_space<vmem>>, vector<1x1xf32>
      tpu.vector_store %arg9[%c0_125, %c0_126], %163 {strides = array<i32>} : memref<1x1xf32, #tpu.memory_space<vmem>>, vector<1x1xf32>,
    } else {
    }
    %c0 = arith.constant 0 : index
    %c0_2 = arith.constant 0 : index
    %c0_3 = arith.constant 0 : index
    %5 = vector.load %arg3[%c0, %c0_2, %c0_3] : memref<1x32x16xbf16, #tpu.memory_space<vmem>>, vector<1x32x16xbf16>
    %6 = vector.shape_cast %5 : vector<1x32x16xbf16> to vector<32x16xbf16>
    %7 = arith.extf %6 : vector<32x16xbf16> to vector<32x16xf32>
    %c0_4 = arith.constant 0 : index
    %c0_5 = arith.constant 0 : index
    %c0_6 = arith.constant 0 : index
    %8 = vector.load %arg5[%c0_4, %c0_5, %c0_6] : memref<1x1x16xf32, #tpu.memory_space<vmem>>, vector<1x1x16xf32>
    %9 = vector.shape_cast %8 : vector<1x1x16xf32> to vector<1x16xf32>
    %c0_7 = arith.constant 0 : index
    %c0_8 = arith.constant 0 : index
    %c0_9 = arith.constant 0 : index
    %c0_10 = arith.constant 0 : index
    %c0_11 = arith.constant 0 : index
    %10 = vector.load %arg4[%c0_7, %c0_8, %c0_9, %c0_10, %c0_11] : memref<1x1x11x32x16xbf16, #tpu.memory_space<vmem>>, vector<1x1x1x32x16xbf16>
    %11 = vector.shape_cast %10 : vector<1x1x1x32x16xbf16> to vector<32x16xbf16>
    %12 = arith.extf %11 : vector<32x16xbf16> to vector<32x16xf32>
    %13 = arith.subf %12, %7 : vector<32x16xf32>
    %14 = arith.mulf %13, %13 : vector<32x16xf32>
    %cst = arith.constant dense<0.000000e+00> : vector<16xf32>
    %15 = vector.multi_reduction <add>, %14, %cst [0] : vector<32x16xf32> to vector<16xf32>
    %16 = vector.shape_cast %15 : vector<16xf32> to vector<1x16xf32>
    %17 = arith.mulf %16, %9 : vector<1x16xf32>
    %cst_12 = arith.constant dense<0.000000e+00> : vector<1xf32>
    %18 = vector.multi_reduction <add>, %17, %cst_12 [1] : vector<1x16xf32> to vector<1xf32>
    %19 = vector.shape_cast %18 : vector<1xf32> to vector<1x1xf32>
    %c0_13 = arith.constant 0 : index
    %c0_14 = arith.constant 0 : index
    %20 = vector.load %arg8[%c0_13, %c0_14] : memref<11x1xf32, #tpu.memory_space<vmem>>, vector<1x1xf32>
    %21 = arith.addf %20, %19 : vector<1x1xf32>
    %c0_15 = arith.constant 0 : index
    %c0_16 = arith.constant 0 : index
    %22 = vector.load %arg8[%c0_15, %c0_16] : memref<11x1xf32, #tpu.memory_space<vmem>>, vector<1x1xf32>
    tpu.vector_store %arg8[%c0_15, %c0_16], %21 {strides = array<i32>} : memref<11x1xf32, #tpu.memory_space<vmem>>, vector<1x1xf32>,
    %c0_17 = arith.constant 0 : index
    %c0_18 = arith.constant 0 : index
    %c1 = arith.constant 1 : index
    %c0_19 = arith.constant 0 : index
    %c0_20 = arith.constant 0 : index
    %23 = vector.load %arg4[%c0_17, %c0_18, %c1, %c0_19, %c0_20] : memref<1x1x11x32x16xbf16, #tpu.memory_space<vmem>>, vector<1x1x1x32x16xbf16>
    %24 = vector.shape_cast %23 : vector<1x1x1x32x16xbf16> to vector<32x16xbf16>
    %25 = arith.extf %24 : vector<32x16xbf16> to vector<32x16xf32>
    %26 = arith.subf %25, %7 : vector<32x16xf32>
    %27 = arith.mulf %26, %26 : vector<32x16xf32>
    %cst_21 = arith.constant dense<0.000000e+00> : vector<16xf32>
    %28 = vector.multi_reduction <add>, %27, %cst_21 [0] : vector<32x16xf32> to vector<16xf32>
    %29 = vector.shape_cast %28 : vector<16xf32> to vector<1x16xf32>
    %30 = arith.mulf %29, %9 : vector<1x16xf32>
    %cst_22 = arith.constant dense<0.000000e+00> : vector<1xf32>
    %31 = vector.multi_reduction <add>, %30, %cst_22 [1] : vector<1x16xf32> to vector<1xf32>
    %32 = vector.shape_cast %31 : vector<1xf32> to vector<1x1xf32>
    %c1_23 = arith.constant 1 : index
    %c0_24 = arith.constant 0 : index
    %33 = vector.load %arg8[%c1_23, %c0_24] : memref<11x1xf32, #tpu.memory_space<vmem>>, vector<1x1xf32>
    %34 = arith.addf %33, %32 : vector<1x1xf32>
    %c1_25 = arith.constant 1 : index
    %c0_26 = arith.constant 0 : index
    %35 = vector.load %arg8[%c1_25, %c0_26] : memref<11x1xf32, #tpu.memory_space<vmem>>, vector<1x1xf32>
    tpu.vector_store %arg8[%c1_25, %c0_26], %34 {strides = array<i32>} : memref<11x1xf32, #tpu.memory_space<vmem>>, vector<1x1xf32>,
    %c0_27 = arith.constant 0 : index
    %c0_28 = arith.constant 0 : index
    %c2 = arith.constant 2 : index
    %c0_29 = arith.constant 0 : index
    %c0_30 = arith.constant 0 : index
    %36 = vector.load %arg4[%c0_27, %c0_28, %c2, %c0_29, %c0_30] : memref<1x1x11x32x16xbf16, #tpu.memory_space<vmem>>, vector<1x1x1x32x16xbf16>
    %37 = vector.shape_cast %36 : vector<1x1x1x32x16xbf16> to vector<32x16xbf16>
    %38 = arith.extf %37 : vector<32x16xbf16> to vector<32x16xf32>
    %39 = arith.subf %38, %7 : vector<32x16xf32>
    %40 = arith.mulf %39, %39 : vector<32x16xf32>
    %cst_31 = arith.constant dense<0.000000e+00> : vector<16xf32>
    %41 = vector.multi_reduction <add>, %40, %cst_31 [0] : vector<32x16xf32> to vector<16xf32>
    %42 = vector.shape_cast %41 : vector<16xf32> to vector<1x16xf32>
    %43 = arith.mulf %42, %9 : vector<1x16xf32>
    %cst_32 = arith.constant dense<0.000000e+00> : vector<1xf32>
    %44 = vector.multi_reduction <add>, %43, %cst_32 [1] : vector<1x16xf32> to vector<1xf32>
    %45 = vector.shape_cast %44 : vector<1xf32> to vector<1x1xf32>
    %c2_33 = arith.constant 2 : index
    %c0_34 = arith.constant 0 : index
    %46 = vector.load %arg8[%c2_33, %c0_34] : memref<11x1xf32, #tpu.memory_space<vmem>>, vector<1x1xf32>
    %47 = arith.addf %46, %45 : vector<1x1xf32>
    %c2_35 = arith.constant 2 : index
    %c0_36 = arith.constant 0 : index
    %48 = vector.load %arg8[%c2_35, %c0_36] : memref<11x1xf32, #tpu.memory_space<vmem>>, vector<1x1xf32>
    tpu.vector_store %arg8[%c2_35, %c0_36], %47 {strides = array<i32>} : memref<11x1xf32, #tpu.memory_space<vmem>>, vector<1x1xf32>,
    %c0_37 = arith.constant 0 : index
    %c0_38 = arith.constant 0 : index
    %c3 = arith.constant 3 : index
    %c0_39 = arith.constant 0 : index
    %c0_40 = arith.constant 0 : index
    %49 = vector.load %arg4[%c0_37, %c0_38, %c3, %c0_39, %c0_40] : memref<1x1x11x32x16xbf16, #tpu.memory_space<vmem>>, vector<1x1x1x32x16xbf16>
    %50 = vector.shape_cast %49 : vector<1x1x1x32x16xbf16> to vector<32x16xbf16>
    %51 = arith.extf %50 : vector<32x16xbf16> to vector<32x16xf32>
    %52 = arith.subf %51, %7 : vector<32x16xf32>
    %53 = arith.mulf %52, %52 : vector<32x16xf32>
    %cst_41 = arith.constant dense<0.000000e+00> : vector<16xf32>
    %54 = vector.multi_reduction <add>, %53, %cst_41 [0] : vector<32x16xf32> to vector<16xf32>
    %55 = vector.shape_cast %54 : vector<16xf32> to vector<1x16xf32>
    %56 = arith.mulf %55, %9 : vector<1x16xf32>
    %cst_42 = arith.constant dense<0.000000e+00> : vector<1xf32>
    %57 = vector.multi_reduction <add>, %56, %cst_42 [1] : vector<1x16xf32> to vector<1xf32>
    %58 = vector.shape_cast %57 : vector<1xf32> to vector<1x1xf32>
    %c3_43 = arith.constant 3 : index
    %c0_44 = arith.constant 0 : index
    %59 = vector.load %arg8[%c3_43, %c0_44] : memref<11x1xf32, #tpu.memory_space<vmem>>, vector<1x1xf32>
    %60 = arith.addf %59, %58 : vector<1x1xf32>
    %c3_45 = arith.constant 3 : index
    %c0_46 = arith.constant 0 : index
    %61 = vector.load %arg8[%c3_45, %c0_46] : memref<11x1xf32, #tpu.memory_space<vmem>>, vector<1x1xf32>
    tpu.vector_store %arg8[%c3_45, %c0_46], %60 {strides = array<i32>} : memref<11x1xf32, #tpu.memory_space<vmem>>, vector<1x1xf32>,
    %c0_47 = arith.constant 0 : index
    %c0_48 = arith.constant 0 : index
    %c4 = arith.constant 4 : index
    %c0_49 = arith.constant 0 : index
    %c0_50 = arith.constant 0 : index
    %62 = vector.load %arg4[%c0_47, %c0_48, %c4, %c0_49, %c0_50] : memref<1x1x11x32x16xbf16, #tpu.memory_space<vmem>>, vector<1x1x1x32x16xbf16>
    %63 = vector.shape_cast %62 : vector<1x1x1x32x16xbf16> to vector<32x16xbf16>
    %64 = arith.extf %63 : vector<32x16xbf16> to vector<32x16xf32>
    %65 = arith.subf %64, %7 : vector<32x16xf32>
    %66 = arith.mulf %65, %65 : vector<32x16xf32>
    %cst_51 = arith.constant dense<0.000000e+00> : vector<16xf32>
    %67 = vector.multi_reduction <add>, %66, %cst_51 [0] : vector<32x16xf32> to vector<16xf32>
    %68 = vector.shape_cast %67 : vector<16xf32> to vector<1x16xf32>
    %69 = arith.mulf %68, %9 : vector<1x16xf32>
    %cst_52 = arith.constant dense<0.000000e+00> : vector<1xf32>
    %70 = vector.multi_reduction <add>, %69, %cst_52 [1] : vector<1x16xf32> to vector<1xf32>
    %71 = vector.shape_cast %70 : vector<1xf32> to vector<1x1xf32>
    %c4_53 = arith.constant 4 : index
    %c0_54 = arith.constant 0 : index
    %72 = vector.load %arg8[%c4_53, %c0_54] : memref<11x1xf32, #tpu.memory_space<vmem>>, vector<1x1xf32>
    %73 = arith.addf %72, %71 : vector<1x1xf32>
    %c4_55 = arith.constant 4 : index
    %c0_56 = arith.constant 0 : index
    %74 = vector.load %arg8[%c4_55, %c0_56] : memref<11x1xf32, #tpu.memory_space<vmem>>, vector<1x1xf32>
    tpu.vector_store %arg8[%c4_55, %c0_56], %73 {strides = array<i32>} : memref<11x1xf32, #tpu.memory_space<vmem>>, vector<1x1xf32>,
    %c0_57 = arith.constant 0 : index
    %c0_58 = arith.constant 0 : index
    %c5 = arith.constant 5 : index
    %c0_59 = arith.constant 0 : index
    %c0_60 = arith.constant 0 : index
    %75 = vector.load %arg4[%c0_57, %c0_58, %c5, %c0_59, %c0_60] : memref<1x1x11x32x16xbf16, #tpu.memory_space<vmem>>, vector<1x1x1x32x16xbf16>
    %76 = vector.shape_cast %75 : vector<1x1x1x32x16xbf16> to vector<32x16xbf16>
    %77 = arith.extf %76 : vector<32x16xbf16> to vector<32x16xf32>
    %78 = arith.subf %77, %7 : vector<32x16xf32>
    %79 = arith.mulf %78, %78 : vector<32x16xf32>
    %cst_61 = arith.constant dense<0.000000e+00> : vector<16xf32>
    %80 = vector.multi_reduction <add>, %79, %cst_61 [0] : vector<32x16xf32> to vector<16xf32>
    %81 = vector.shape_cast %80 : vector<16xf32> to vector<1x16xf32>
    %82 = arith.mulf %81, %9 : vector<1x16xf32>
    %cst_62 = arith.constant dense<0.000000e+00> : vector<1xf32>
    %83 = vector.multi_reduction <add>, %82, %cst_62 [1] : vector<1x16xf32> to vector<1xf32>
    %84 = vector.shape_cast %83 : vector<1xf32> to vector<1x1xf32>
    %c5_63 = arith.constant 5 : index
    %c0_64 = arith.constant 0 : index
    %85 = vector.load %arg8[%c5_63, %c0_64] : memref<11x1xf32, #tpu.memory_space<vmem>>, vector<1x1xf32>
    %86 = arith.addf %85, %84 : vector<1x1xf32>
    %c5_65 = arith.constant 5 : index
    %c0_66 = arith.constant 0 : index
    %87 = vector.load %arg8[%c5_65, %c0_66] : memref<11x1xf32, #tpu.memory_space<vmem>>, vector<1x1xf32>
    tpu.vector_store %arg8[%c5_65, %c0_66], %86 {strides = array<i32>} : memref<11x1xf32, #tpu.memory_space<vmem>>, vector<1x1xf32>,
    %c0_67 = arith.constant 0 : index
    %c0_68 = arith.constant 0 : index
    %c6 = arith.constant 6 : index
    %c0_69 = arith.constant 0 : index
    %c0_70 = arith.constant 0 : index
    %88 = vector.load %arg4[%c0_67, %c0_68, %c6, %c0_69, %c0_70] : memref<1x1x11x32x16xbf16, #tpu.memory_space<vmem>>, vector<1x1x1x32x16xbf16>
    %89 = vector.shape_cast %88 : vector<1x1x1x32x16xbf16> to vector<32x16xbf16>
    %90 = arith.extf %89 : vector<32x16xbf16> to vector<32x16xf32>
    %91 = arith.subf %90, %7 : vector<32x16xf32>
    %92 = arith.mulf %91, %91 : vector<32x16xf32>
    %cst_71 = arith.constant dense<0.000000e+00> : vector<16xf32>
    %93 = vector.multi_reduction <add>, %92, %cst_71 [0] : vector<32x16xf32> to vector<16xf32>
    %94 = vector.shape_cast %93 : vector<16xf32> to vector<1x16xf32>
    %95 = arith.mulf %94, %9 : vector<1x16xf32>
    %cst_72 = arith.constant dense<0.000000e+00> : vector<1xf32>
    %96 = vector.multi_reduction <add>, %95, %cst_72 [1] : vector<1x16xf32> to vector<1xf32>
    %97 = vector.shape_cast %96 : vector<1xf32> to vector<1x1xf32>
    %c6_73 = arith.constant 6 : index
    %c0_74 = arith.constant 0 : index
    %98 = vector.load %arg8[%c6_73, %c0_74] : memref<11x1xf32, #tpu.memory_space<vmem>>, vector<1x1xf32>
    %99 = arith.addf %98, %97 : vector<1x1xf32>
    %c6_75 = arith.constant 6 : index
    %c0_76 = arith.constant 0 : index
    %100 = vector.load %arg8[%c6_75, %c0_76] : memref<11x1xf32, #tpu.memory_space<vmem>>, vector<1x1xf32>
    tpu.vector_store %arg8[%c6_75, %c0_76], %99 {strides = array<i32>} : memref<11x1xf32, #tpu.memory_space<vmem>>, vector<1x1xf32>,
    %c0_77 = arith.constant 0 : index
    %c0_78 = arith.constant 0 : index
    %c7 = arith.constant 7 : index
    %c0_79 = arith.constant 0 : index
    %c0_80 = arith.constant 0 : index
    %101 = vector.load %arg4[%c0_77, %c0_78, %c7, %c0_79, %c0_80] : memref<1x1x11x32x16xbf16, #tpu.memory_space<vmem>>, vector<1x1x1x32x16xbf16>
    %102 = vector.shape_cast %101 : vector<1x1x1x32x16xbf16> to vector<32x16xbf16>
    %103 = arith.extf %102 : vector<32x16xbf16> to vector<32x16xf32>
    %104 = arith.subf %103, %7 : vector<32x16xf32>
    %105 = arith.mulf %104, %104 : vector<32x16xf32>
    %cst_81 = arith.constant dense<0.000000e+00> : vector<16xf32>
    %106 = vector.multi_reduction <add>, %105, %cst_81 [0] : vector<32x16xf32> to vector<16xf32>
    %107 = vector.shape_cast %106 : vector<16xf32> to vector<1x16xf32>
    %108 = arith.mulf %107, %9 : vector<1x16xf32>
    %cst_82 = arith.constant dense<0.000000e+00> : vector<1xf32>
    %109 = vector.multi_reduction <add>, %108, %cst_82 [1] : vector<1x16xf32> to vector<1xf32>
    %110 = vector.shape_cast %109 : vector<1xf32> to vector<1x1xf32>
    %c7_83 = arith.constant 7 : index
    %c0_84 = arith.constant 0 : index
    %111 = vector.load %arg8[%c7_83, %c0_84] : memref<11x1xf32, #tpu.memory_space<vmem>>, vector<1x1xf32>
    %112 = arith.addf %111, %110 : vector<1x1xf32>
    %c7_85 = arith.constant 7 : index
    %c0_86 = arith.constant 0 : index
    %113 = vector.load %arg8[%c7_85, %c0_86] : memref<11x1xf32, #tpu.memory_space<vmem>>, vector<1x1xf32>
    tpu.vector_store %arg8[%c7_85, %c0_86], %112 {strides = array<i32>} : memref<11x1xf32, #tpu.memory_space<vmem>>, vector<1x1xf32>,
    %c0_87 = arith.constant 0 : index
    %c0_88 = arith.constant 0 : index
    %c8 = arith.constant 8 : index
    %c0_89 = arith.constant 0 : index
    %c0_90 = arith.constant 0 : index
    %114 = vector.load %arg4[%c0_87, %c0_88, %c8, %c0_89, %c0_90] : memref<1x1x11x32x16xbf16, #tpu.memory_space<vmem>>, vector<1x1x1x32x16xbf16>
    %115 = vector.shape_cast %114 : vector<1x1x1x32x16xbf16> to vector<32x16xbf16>
    %116 = arith.extf %115 : vector<32x16xbf16> to vector<32x16xf32>
    %117 = arith.subf %116, %7 : vector<32x16xf32>
    %118 = arith.mulf %117, %117 : vector<32x16xf32>
    %cst_91 = arith.constant dense<0.000000e+00> : vector<16xf32>
    %119 = vector.multi_reduction <add>, %118, %cst_91 [0] : vector<32x16xf32> to vector<16xf32>
    %120 = vector.shape_cast %119 : vector<16xf32> to vector<1x16xf32>
    %121 = arith.mulf %120, %9 : vector<1x16xf32>
    %cst_92 = arith.constant dense<0.000000e+00> : vector<1xf32>
    %122 = vector.multi_reduction <add>, %121, %cst_92 [1] : vector<1x16xf32> to vector<1xf32>
    %123 = vector.shape_cast %122 : vector<1xf32> to vector<1x1xf32>
    %c8_93 = arith.constant 8 : index
    %c0_94 = arith.constant 0 : index
    %124 = vector.load %arg8[%c8_93, %c0_94] : memref<11x1xf32, #tpu.memory_space<vmem>>, vector<1x1xf32>
    %125 = arith.addf %124, %123 : vector<1x1xf32>
    %c8_95 = arith.constant 8 : index
    %c0_96 = arith.constant 0 : index
    %126 = vector.load %arg8[%c8_95, %c0_96] : memref<11x1xf32, #tpu.memory_space<vmem>>, vector<1x1xf32>
    tpu.vector_store %arg8[%c8_95, %c0_96], %125 {strides = array<i32>} : memref<11x1xf32, #tpu.memory_space<vmem>>, vector<1x1xf32>,
    %c0_97 = arith.constant 0 : index
    %c0_98 = arith.constant 0 : index
    %c9 = arith.constant 9 : index
    %c0_99 = arith.constant 0 : index
    %c0_100 = arith.constant 0 : index
    %127 = vector.load %arg4[%c0_97, %c0_98, %c9, %c0_99, %c0_100] : memref<1x1x11x32x16xbf16, #tpu.memory_space<vmem>>, vector<1x1x1x32x16xbf16>
    %128 = vector.shape_cast %127 : vector<1x1x1x32x16xbf16> to vector<32x16xbf16>
    %129 = arith.extf %128 : vector<32x16xbf16> to vector<32x16xf32>
    %130 = arith.subf %129, %7 : vector<32x16xf32>
    %131 = arith.mulf %130, %130 : vector<32x16xf32>
    %cst_101 = arith.constant dense<0.000000e+00> : vector<16xf32>
    %132 = vector.multi_reduction <add>, %131, %cst_101 [0] : vector<32x16xf32> to vector<16xf32>
    %133 = vector.shape_cast %132 : vector<16xf32> to vector<1x16xf32>
    %134 = arith.mulf %133, %9 : vector<1x16xf32>
    %cst_102 = arith.constant dense<0.000000e+00> : vector<1xf32>
    %135 = vector.multi_reduction <add>, %134, %cst_102 [1] : vector<1x16xf32> to vector<1xf32>
    %136 = vector.shape_cast %135 : vector<1xf32> to vector<1x1xf32>
    %c9_103 = arith.constant 9 : index
    %c0_104 = arith.constant 0 : index
    %137 = vector.load %arg8[%c9_103, %c0_104] : memref<11x1xf32, #tpu.memory_space<vmem>>, vector<1x1xf32>
    %138 = arith.addf %137, %136 : vector<1x1xf32>
    %c9_105 = arith.constant 9 : index
    %c0_106 = arith.constant 0 : index
    %139 = vector.load %arg8[%c9_105, %c0_106] : memref<11x1xf32, #tpu.memory_space<vmem>>, vector<1x1xf32>
    tpu.vector_store %arg8[%c9_105, %c0_106], %138 {strides = array<i32>} : memref<11x1xf32, #tpu.memory_space<vmem>>, vector<1x1xf32>,
    %c0_107 = arith.constant 0 : index
    %c0_108 = arith.constant 0 : index
    %c10 = arith.constant 10 : index
    %c0_109 = arith.constant 0 : index
    %c0_110 = arith.constant 0 : index
    %140 = vector.load %arg4[%c0_107, %c0_108, %c10, %c0_109, %c0_110] : memref<1x1x11x32x16xbf16, #tpu.memory_space<vmem>>, vector<1x1x1x32x16xbf16>
    %141 = vector.shape_cast %140 : vector<1x1x1x32x16xbf16> to vector<32x16xbf16>
    %142 = arith.extf %141 : vector<32x16xbf16> to vector<32x16xf32>
    %143 = arith.subf %142, %7 : vector<32x16xf32>
    %144 = arith.mulf %143, %143 : vector<32x16xf32>
    %cst_111 = arith.constant dense<0.000000e+00> : vector<16xf32>
    %145 = vector.multi_reduction <add>, %144, %cst_111 [0] : vector<32x16xf32> to vector<16xf32>
    %146 = vector.shape_cast %145 : vector<16xf32> to vector<1x16xf32>
    %147 = arith.mulf %146, %9 : vector<1x16xf32>
    %cst_112 = arith.constant dense<0.000000e+00> : vector<1xf32>
    %148 = vector.multi_reduction <add>, %147, %cst_112 [1] : vector<1x16xf32> to vector<1xf32>
    %149 = vector.shape_cast %148 : vector<1xf32> to vector<1x1xf32>
    %c10_113 = arith.constant 10 : index
    %c0_114 = arith.constant 0 : index
    %150 = vector.load %arg8[%c10_113, %c0_114] : memref<11x1xf32, #tpu.memory_space<vmem>>, vector<1x1xf32>
    %151 = arith.addf %150, %149 : vector<1x1xf32>
    %c10_115 = arith.constant 10 : index
    %c0_116 = arith.constant 0 : index
    %152 = vector.load %arg8[%c10_115, %c0_116] : memref<11x1xf32, #tpu.memory_space<vmem>>, vector<1x1xf32>
    tpu.vector_store %arg8[%c10_115, %c0_116], %151 {strides = array<i32>} : memref<11x1xf32, #tpu.memory_space<vmem>>, vector<1x1xf32>,
    %c0_i32_117 = arith.constant 0 : i32
    %153 = arith.cmpi eq, %arg2, %c0_i32_117 : i32
    %154 = arith.extui %153 : i1 to i32
    %c0_i32_118 = arith.constant 0 : i32
    %155 = arith.cmpi ne, %154, %c0_i32_118 : i32
    scf.if %155 {
      %c0_121 = arith.constant 0 : index
      %c0_122 = arith.constant 0 : index
      %161 = vector.load %arg9[%c0_121, %c0_122] : memref<1x1xf32, #tpu.memory_space<vmem>>, vector<1x1xf32>
      %cst_123 = arith.constant dense<0.000000e+00> : vector<1xf32>
      %162 = vector.multi_reduction <add>, %9, %cst_123 [1] : vector<1x16xf32> to vector<1xf32>
      %163 = vector.shape_cast %162 : vector<1xf32> to vector<1x1xf32>
      %164 = arith.addf %161, %163 : vector<1x1xf32>
      %c0_124 = arith.constant 0 : index
      %c0_125 = arith.constant 0 : index
      %165 = vector.load %arg9[%c0_124, %c0_125] : memref<1x1xf32, #tpu.memory_space<vmem>>, vector<1x1xf32>
      tpu.vector_store %arg9[%c0_124, %c0_125], %164 {strides = array<i32>} : memref<1x1xf32, #tpu.memory_space<vmem>>, vector<1x1xf32>,
    } else {
    }
    %c0_i32_119 = arith.constant 0 : i32
    %156 = arith.cmpi eq, %arg1, %c0_i32_119 : i32
    %c1_i32 = arith.constant 1 : i32
    %157 = arith.cmpi eq, %arg2, %c1_i32 : i32
    %158 = arith.andi %156, %157 : i1
    %159 = arith.extui %158 : i1 to i32
    %c0_i32_120 = arith.constant 0 : i32
    %160 = arith.cmpi ne, %159, %c0_i32_120 : i32
    scf.if %160 {
      %c0_121 = arith.constant 0 : index
      %c0_122 = arith.constant 0 : index
      %161 = vector.load %arg9[%c0_121, %c0_122] : memref<1x1xf32, #tpu.memory_space<vmem>>, vector<1x1xf32>
      %cst_123 = arith.constant 9.99999997E-7 : f32
      %162 = vector.broadcast %cst_123 : f32 to vector<1x1xf32>
      %163 = arith.addf %161, %162 : vector<1x1xf32>
      %164 = tpu.reciprocal %163 {approx = true} : vector<1x1xf32> -> vector<1x1xf32>
      %c0_124 = arith.constant 0 : index
      %c0_125 = arith.constant 0 : index
      %165 = vector.load %arg8[%c0_124, %c0_125] : memref<11x1xf32, #tpu.memory_space<vmem>>, vector<11x1xf32>
      %cst_126 = arith.constant 5.000000e-01 : f32
      %166 = vector.broadcast %cst_126 : f32 to vector<11x1xf32>
      %167 = arith.mulf %165, %166 : vector<11x1xf32>
      %168 = vector.broadcast %164 : vector<1x1xf32> to vector<11x1xf32>
      %169 = arith.mulf %167, %168 : vector<11x1xf32>
      %cst_127 = arith.constant 0.000000e+00 : f32
      %170 = vector.broadcast %cst_127 : f32 to vector<11x1xf32>
      %171 = arith.subf %170, %169 : vector<11x1xf32>
      %cst_128 = arith.constant dense<0xFF800000> : vector<1xf32>
      %172 = vector.multi_reduction <maximumf>, %171, %cst_128 [0] : vector<11x1xf32> to vector<1xf32>
      %173 = vector.shape_cast %172 : vector<1xf32> to vector<1x1xf32>
      %174 = vector.broadcast %173 : vector<1x1xf32> to vector<11x1xf32>
      %175 = arith.subf %171, %174 : vector<11x1xf32>
      %176 = math.exp %175 : vector<11x1xf32>
      %cst_129 = arith.constant dense<0.000000e+00> : vector<1xf32>
      %177 = vector.multi_reduction <add>, %176, %cst_129 [0] : vector<11x1xf32> to vector<1xf32>
      %178 = vector.shape_cast %177 : vector<1xf32> to vector<1x1xf32>
      %179 = tpu.reciprocal %178 {approx = true} : vector<1x1xf32> -> vector<1x1xf32>
      %180 = vector.broadcast %179 : vector<1x1xf32> to vector<11x1xf32>
      %181 = arith.mulf %176, %180 : vector<11x1xf32>
      %c0_130 = arith.constant 0 : index
      %c0_131 = arith.constant 0 : index
      %182 = vector.load %arg6[%c0_130, %c0_131] : memref<11x1xf32, #tpu.memory_space<vmem>>, vector<11x1xf32>
      %183 = arith.mulf %181, %182 : vector<11x1xf32>
      %cst_132 = arith.constant dense<0.000000e+00> : vector<1xf32>
      %184 = vector.multi_reduction <add>, %183, %cst_132 [0] : vector<11x1xf32> to vector<1xf32>
      %185 = vector.shape_cast %184 : vector<1xf32> to vector<1x1xf32>
      %c0_133 = arith.constant 0 : index
      %c0_134 = arith.constant 0 : index
      %c0_135 = arith.constant 0 : index
      %186 = vector.load %arg7[%c0_133, %c0_134, %c0_135] : memref<1x1x1xf32, #tpu.memory_space<vmem>>, vector<1x1x1xf32>
      %187 = vector.shape_cast %186 : vector<1x1x1xf32> to vector<1x1xf32>
      %188 = vector.shape_cast %185 : vector<1x1xf32> to vector<1x1x1xf32>
      tpu.vector_store %arg7[%c0_133, %c0_134, %c0_135], %188 {strides = array<i32>} : memref<1x1x1xf32, #tpu.memory_space<vmem>>, vector<1x1x1xf32>,
    } else {
    }
    return
  }
  func.func @transform_0(%arg0: i32, %arg1: i32, %arg2: i32) -> (i32, i32, i32) {
    %c0_i32 = arith.constant 0 : i32
    %c0_i32_0 = arith.constant 0 : i32
    return %arg0, %c0_i32, %arg1 : i32, i32, i32
  }
  func.func @transform_1(%arg0: i32, %arg1: i32, %arg2: i32) -> (i32, i32, i32, i32, i32) {
    %c0_i32 = arith.constant 0 : i32
    %c0_i32_0 = arith.constant 0 : i32
    %c0_i32_1 = arith.constant 0 : i32
    return %arg0, %arg2, %c0_i32, %c0_i32_0, %arg1 : i32, i32, i32, i32, i32
  }
  func.func @transform_2(%arg0: i32, %arg1: i32, %arg2: i32) -> (i32, i32, i32) {
    %c0_i32 = arith.constant 0 : i32
    %c0_i32_0 = arith.constant 0 : i32
    return %arg0, %c0_i32, %arg1 : i32, i32, i32
  }
  func.func @transform_3(%arg0: i32, %arg1: i32, %arg2: i32) -> (i32, i32) {
    %c0_i32 = arith.constant 0 : i32
    %c0_i32_0 = arith.constant 0 : i32
    %c0_i32_1 = arith.constant 0 : i32
    return %c0_i32, %c0_i32_0 : i32, i32
  }
  func.func @transform_4(%arg0: i32, %arg1: i32, %arg2: i32) -> (i32, i32, i32) {
    %c0_i32 = arith.constant 0 : i32
    %c0_i32_0 = arith.constant 0 : i32
    %c0_i32_1 = arith.constant 0 : i32
    return %arg0, %c0_i32, %c0_i32_0 : i32, i32, i32
  }
}

module attributes {stable_mosaic.version = 11 : i64} {
  func.func @_depth_reg_kernel(%arg0: i32, %arg1: i32, %arg2: i32, %arg3: memref<1x32x16xbf16, #tpu.memory_space<vmem>>, %arg4: memref<1x1x8x32x16xbf16, #tpu.memory_space<vmem>>, %arg5: memref<1x8x16xf32, #tpu.memory_space<vmem>>, %arg6: memref<1x1x16xf32, #tpu.memory_space<vmem>>, %arg7: memref<8x16xf32, #tpu.memory_space<vmem>>) attributes {dimension_semantics = [#tpu.dimension_semantics<parallel>, #tpu.dimension_semantics<parallel>, #tpu.dimension_semantics<arbitrary>], iteration_bounds = array<i64: 2, 1, 2>, scalar_prefetch = 0 : i64, scratch_operands = 1 : i64, tpu.core_type = #tpu.core_type<tc>, window_params = [{transform_indices = @transform_0, window_bounds = array<i64: 1, 32, 16>}, {transform_indices = @transform_1, window_bounds = array<i64: 1, 1, 8, 32, 16>}, {transform_indices = @transform_2, window_bounds = array<i64: 1, 8, 16>}, {transform_indices = @transform_3, window_bounds = array<i64: 1, 1, 16>}]} {
    %c0_i32 = arith.constant 0 : i32
    %0 = arith.cmpi eq, %arg2, %c0_i32 : i32
    %1 = arith.extui %0 : i1 to i32
    %c0_i32_0 = arith.constant 0 : i32
    %2 = arith.cmpi ne, %1, %c0_i32_0 : i32
    scf.if %2 {
      %cst_76 = arith.constant 0.000000e+00 : f32
      %89 = vector.broadcast %cst_76 : f32 to vector<8x16xf32>
      %c0_77 = arith.constant 0 : index
      %c0_78 = arith.constant 0 : index
      %90 = vector.load %arg7[%c0_77, %c0_78] : memref<8x16xf32, #tpu.memory_space<vmem>>, vector<8x16xf32>
      tpu.vector_store %arg7[%c0_77, %c0_78], %89 {strides = array<i32>} : memref<8x16xf32, #tpu.memory_space<vmem>>, vector<8x16xf32>,
    } else {
    }
    %c0 = arith.constant 0 : index
    %c0_1 = arith.constant 0 : index
    %c0_2 = arith.constant 0 : index
    %3 = vector.load %arg3[%c0, %c0_1, %c0_2] : memref<1x32x16xbf16, #tpu.memory_space<vmem>>, vector<1x32x16xbf16>
    %4 = vector.shape_cast %3 : vector<1x32x16xbf16> to vector<32x16xbf16>
    %5 = arith.extf %4 : vector<32x16xbf16> to vector<32x16xf32>
    %c0_3 = arith.constant 0 : index
    %c0_4 = arith.constant 0 : index
    %c0_5 = arith.constant 0 : index
    %c0_6 = arith.constant 0 : index
    %c0_7 = arith.constant 0 : index
    %6 = vector.load %arg4[%c0_3, %c0_4, %c0_5, %c0_6, %c0_7] : memref<1x1x8x32x16xbf16, #tpu.memory_space<vmem>>, vector<1x1x1x32x16xbf16>
    %7 = vector.shape_cast %6 : vector<1x1x1x32x16xbf16> to vector<32x16xbf16>
    %8 = arith.extf %7 : vector<32x16xbf16> to vector<32x16xf32>
    %9 = arith.subf %8, %5 : vector<32x16xf32>
    %10 = arith.mulf %9, %9 : vector<32x16xf32>
    %cst = arith.constant dense<0.000000e+00> : vector<16xf32>
    %11 = vector.multi_reduction <add>, %10, %cst [0] : vector<32x16xf32> to vector<16xf32>
    %12 = vector.shape_cast %11 : vector<16xf32> to vector<1x16xf32>
    %c0_8 = arith.constant 0 : index
    %c0_9 = arith.constant 0 : index
    %13 = vector.load %arg7[%c0_8, %c0_9] : memref<8x16xf32, #tpu.memory_space<vmem>>, vector<1x16xf32>
    %14 = arith.addf %13, %12 : vector<1x16xf32>
    %c0_10 = arith.constant 0 : index
    %c0_11 = arith.constant 0 : index
    %15 = vector.load %arg7[%c0_10, %c0_11] : memref<8x16xf32, #tpu.memory_space<vmem>>, vector<1x16xf32>
    tpu.vector_store %arg7[%c0_10, %c0_11], %14 {strides = array<i32>} : memref<8x16xf32, #tpu.memory_space<vmem>>, vector<1x16xf32>,
    %c0_12 = arith.constant 0 : index
    %c0_13 = arith.constant 0 : index
    %c1 = arith.constant 1 : index
    %c0_14 = arith.constant 0 : index
    %c0_15 = arith.constant 0 : index
    %16 = vector.load %arg4[%c0_12, %c0_13, %c1, %c0_14, %c0_15] : memref<1x1x8x32x16xbf16, #tpu.memory_space<vmem>>, vector<1x1x1x32x16xbf16>
    %17 = vector.shape_cast %16 : vector<1x1x1x32x16xbf16> to vector<32x16xbf16>
    %18 = arith.extf %17 : vector<32x16xbf16> to vector<32x16xf32>
    %19 = arith.subf %18, %5 : vector<32x16xf32>
    %20 = arith.mulf %19, %19 : vector<32x16xf32>
    %cst_16 = arith.constant dense<0.000000e+00> : vector<16xf32>
    %21 = vector.multi_reduction <add>, %20, %cst_16 [0] : vector<32x16xf32> to vector<16xf32>
    %22 = vector.shape_cast %21 : vector<16xf32> to vector<1x16xf32>
    %c1_17 = arith.constant 1 : index
    %c0_18 = arith.constant 0 : index
    %23 = vector.load %arg7[%c1_17, %c0_18] : memref<8x16xf32, #tpu.memory_space<vmem>>, vector<1x16xf32>
    %24 = arith.addf %23, %22 : vector<1x16xf32>
    %c1_19 = arith.constant 1 : index
    %c0_20 = arith.constant 0 : index
    %25 = vector.load %arg7[%c1_19, %c0_20] : memref<8x16xf32, #tpu.memory_space<vmem>>, vector<1x16xf32>
    tpu.vector_store %arg7[%c1_19, %c0_20], %24 {strides = array<i32>} : memref<8x16xf32, #tpu.memory_space<vmem>>, vector<1x16xf32>,
    %c0_21 = arith.constant 0 : index
    %c0_22 = arith.constant 0 : index
    %c2 = arith.constant 2 : index
    %c0_23 = arith.constant 0 : index
    %c0_24 = arith.constant 0 : index
    %26 = vector.load %arg4[%c0_21, %c0_22, %c2, %c0_23, %c0_24] : memref<1x1x8x32x16xbf16, #tpu.memory_space<vmem>>, vector<1x1x1x32x16xbf16>
    %27 = vector.shape_cast %26 : vector<1x1x1x32x16xbf16> to vector<32x16xbf16>
    %28 = arith.extf %27 : vector<32x16xbf16> to vector<32x16xf32>
    %29 = arith.subf %28, %5 : vector<32x16xf32>
    %30 = arith.mulf %29, %29 : vector<32x16xf32>
    %cst_25 = arith.constant dense<0.000000e+00> : vector<16xf32>
    %31 = vector.multi_reduction <add>, %30, %cst_25 [0] : vector<32x16xf32> to vector<16xf32>
    %32 = vector.shape_cast %31 : vector<16xf32> to vector<1x16xf32>
    %c2_26 = arith.constant 2 : index
    %c0_27 = arith.constant 0 : index
    %33 = vector.load %arg7[%c2_26, %c0_27] : memref<8x16xf32, #tpu.memory_space<vmem>>, vector<1x16xf32>
    %34 = arith.addf %33, %32 : vector<1x16xf32>
    %c2_28 = arith.constant 2 : index
    %c0_29 = arith.constant 0 : index
    %35 = vector.load %arg7[%c2_28, %c0_29] : memref<8x16xf32, #tpu.memory_space<vmem>>, vector<1x16xf32>
    tpu.vector_store %arg7[%c2_28, %c0_29], %34 {strides = array<i32>} : memref<8x16xf32, #tpu.memory_space<vmem>>, vector<1x16xf32>,
    %c0_30 = arith.constant 0 : index
    %c0_31 = arith.constant 0 : index
    %c3 = arith.constant 3 : index
    %c0_32 = arith.constant 0 : index
    %c0_33 = arith.constant 0 : index
    %36 = vector.load %arg4[%c0_30, %c0_31, %c3, %c0_32, %c0_33] : memref<1x1x8x32x16xbf16, #tpu.memory_space<vmem>>, vector<1x1x1x32x16xbf16>
    %37 = vector.shape_cast %36 : vector<1x1x1x32x16xbf16> to vector<32x16xbf16>
    %38 = arith.extf %37 : vector<32x16xbf16> to vector<32x16xf32>
    %39 = arith.subf %38, %5 : vector<32x16xf32>
    %40 = arith.mulf %39, %39 : vector<32x16xf32>
    %cst_34 = arith.constant dense<0.000000e+00> : vector<16xf32>
    %41 = vector.multi_reduction <add>, %40, %cst_34 [0] : vector<32x16xf32> to vector<16xf32>
    %42 = vector.shape_cast %41 : vector<16xf32> to vector<1x16xf32>
    %c3_35 = arith.constant 3 : index
    %c0_36 = arith.constant 0 : index
    %43 = vector.load %arg7[%c3_35, %c0_36] : memref<8x16xf32, #tpu.memory_space<vmem>>, vector<1x16xf32>
    %44 = arith.addf %43, %42 : vector<1x16xf32>
    %c3_37 = arith.constant 3 : index
    %c0_38 = arith.constant 0 : index
    %45 = vector.load %arg7[%c3_37, %c0_38] : memref<8x16xf32, #tpu.memory_space<vmem>>, vector<1x16xf32>
    tpu.vector_store %arg7[%c3_37, %c0_38], %44 {strides = array<i32>} : memref<8x16xf32, #tpu.memory_space<vmem>>, vector<1x16xf32>,
    %c0_39 = arith.constant 0 : index
    %c0_40 = arith.constant 0 : index
    %c4 = arith.constant 4 : index
    %c0_41 = arith.constant 0 : index
    %c0_42 = arith.constant 0 : index
    %46 = vector.load %arg4[%c0_39, %c0_40, %c4, %c0_41, %c0_42] : memref<1x1x8x32x16xbf16, #tpu.memory_space<vmem>>, vector<1x1x1x32x16xbf16>
    %47 = vector.shape_cast %46 : vector<1x1x1x32x16xbf16> to vector<32x16xbf16>
    %48 = arith.extf %47 : vector<32x16xbf16> to vector<32x16xf32>
    %49 = arith.subf %48, %5 : vector<32x16xf32>
    %50 = arith.mulf %49, %49 : vector<32x16xf32>
    %cst_43 = arith.constant dense<0.000000e+00> : vector<16xf32>
    %51 = vector.multi_reduction <add>, %50, %cst_43 [0] : vector<32x16xf32> to vector<16xf32>
    %52 = vector.shape_cast %51 : vector<16xf32> to vector<1x16xf32>
    %c4_44 = arith.constant 4 : index
    %c0_45 = arith.constant 0 : index
    %53 = vector.load %arg7[%c4_44, %c0_45] : memref<8x16xf32, #tpu.memory_space<vmem>>, vector<1x16xf32>
    %54 = arith.addf %53, %52 : vector<1x16xf32>
    %c4_46 = arith.constant 4 : index
    %c0_47 = arith.constant 0 : index
    %55 = vector.load %arg7[%c4_46, %c0_47] : memref<8x16xf32, #tpu.memory_space<vmem>>, vector<1x16xf32>
    tpu.vector_store %arg7[%c4_46, %c0_47], %54 {strides = array<i32>} : memref<8x16xf32, #tpu.memory_space<vmem>>, vector<1x16xf32>,
    %c0_48 = arith.constant 0 : index
    %c0_49 = arith.constant 0 : index
    %c5 = arith.constant 5 : index
    %c0_50 = arith.constant 0 : index
    %c0_51 = arith.constant 0 : index
    %56 = vector.load %arg4[%c0_48, %c0_49, %c5, %c0_50, %c0_51] : memref<1x1x8x32x16xbf16, #tpu.memory_space<vmem>>, vector<1x1x1x32x16xbf16>
    %57 = vector.shape_cast %56 : vector<1x1x1x32x16xbf16> to vector<32x16xbf16>
    %58 = arith.extf %57 : vector<32x16xbf16> to vector<32x16xf32>
    %59 = arith.subf %58, %5 : vector<32x16xf32>
    %60 = arith.mulf %59, %59 : vector<32x16xf32>
    %cst_52 = arith.constant dense<0.000000e+00> : vector<16xf32>
    %61 = vector.multi_reduction <add>, %60, %cst_52 [0] : vector<32x16xf32> to vector<16xf32>
    %62 = vector.shape_cast %61 : vector<16xf32> to vector<1x16xf32>
    %c5_53 = arith.constant 5 : index
    %c0_54 = arith.constant 0 : index
    %63 = vector.load %arg7[%c5_53, %c0_54] : memref<8x16xf32, #tpu.memory_space<vmem>>, vector<1x16xf32>
    %64 = arith.addf %63, %62 : vector<1x16xf32>
    %c5_55 = arith.constant 5 : index
    %c0_56 = arith.constant 0 : index
    %65 = vector.load %arg7[%c5_55, %c0_56] : memref<8x16xf32, #tpu.memory_space<vmem>>, vector<1x16xf32>
    tpu.vector_store %arg7[%c5_55, %c0_56], %64 {strides = array<i32>} : memref<8x16xf32, #tpu.memory_space<vmem>>, vector<1x16xf32>,
    %c0_57 = arith.constant 0 : index
    %c0_58 = arith.constant 0 : index
    %c6 = arith.constant 6 : index
    %c0_59 = arith.constant 0 : index
    %c0_60 = arith.constant 0 : index
    %66 = vector.load %arg4[%c0_57, %c0_58, %c6, %c0_59, %c0_60] : memref<1x1x8x32x16xbf16, #tpu.memory_space<vmem>>, vector<1x1x1x32x16xbf16>
    %67 = vector.shape_cast %66 : vector<1x1x1x32x16xbf16> to vector<32x16xbf16>
    %68 = arith.extf %67 : vector<32x16xbf16> to vector<32x16xf32>
    %69 = arith.subf %68, %5 : vector<32x16xf32>
    %70 = arith.mulf %69, %69 : vector<32x16xf32>
    %cst_61 = arith.constant dense<0.000000e+00> : vector<16xf32>
    %71 = vector.multi_reduction <add>, %70, %cst_61 [0] : vector<32x16xf32> to vector<16xf32>
    %72 = vector.shape_cast %71 : vector<16xf32> to vector<1x16xf32>
    %c6_62 = arith.constant 6 : index
    %c0_63 = arith.constant 0 : index
    %73 = vector.load %arg7[%c6_62, %c0_63] : memref<8x16xf32, #tpu.memory_space<vmem>>, vector<1x16xf32>
    %74 = arith.addf %73, %72 : vector<1x16xf32>
    %c6_64 = arith.constant 6 : index
    %c0_65 = arith.constant 0 : index
    %75 = vector.load %arg7[%c6_64, %c0_65] : memref<8x16xf32, #tpu.memory_space<vmem>>, vector<1x16xf32>
    tpu.vector_store %arg7[%c6_64, %c0_65], %74 {strides = array<i32>} : memref<8x16xf32, #tpu.memory_space<vmem>>, vector<1x16xf32>,
    %c0_66 = arith.constant 0 : index
    %c0_67 = arith.constant 0 : index
    %c7 = arith.constant 7 : index
    %c0_68 = arith.constant 0 : index
    %c0_69 = arith.constant 0 : index
    %76 = vector.load %arg4[%c0_66, %c0_67, %c7, %c0_68, %c0_69] : memref<1x1x8x32x16xbf16, #tpu.memory_space<vmem>>, vector<1x1x1x32x16xbf16>
    %77 = vector.shape_cast %76 : vector<1x1x1x32x16xbf16> to vector<32x16xbf16>
    %78 = arith.extf %77 : vector<32x16xbf16> to vector<32x16xf32>
    %79 = arith.subf %78, %5 : vector<32x16xf32>
    %80 = arith.mulf %79, %79 : vector<32x16xf32>
    %cst_70 = arith.constant dense<0.000000e+00> : vector<16xf32>
    %81 = vector.multi_reduction <add>, %80, %cst_70 [0] : vector<32x16xf32> to vector<16xf32>
    %82 = vector.shape_cast %81 : vector<16xf32> to vector<1x16xf32>
    %c7_71 = arith.constant 7 : index
    %c0_72 = arith.constant 0 : index
    %83 = vector.load %arg7[%c7_71, %c0_72] : memref<8x16xf32, #tpu.memory_space<vmem>>, vector<1x16xf32>
    %84 = arith.addf %83, %82 : vector<1x16xf32>
    %c7_73 = arith.constant 7 : index
    %c0_74 = arith.constant 0 : index
    %85 = vector.load %arg7[%c7_73, %c0_74] : memref<8x16xf32, #tpu.memory_space<vmem>>, vector<1x16xf32>
    tpu.vector_store %arg7[%c7_73, %c0_74], %84 {strides = array<i32>} : memref<8x16xf32, #tpu.memory_space<vmem>>, vector<1x16xf32>,
    %c1_i32 = arith.constant 1 : i32
    %86 = arith.cmpi eq, %arg2, %c1_i32 : i32
    %87 = arith.extui %86 : i1 to i32
    %c0_i32_75 = arith.constant 0 : i32
    %88 = arith.cmpi ne, %87, %c0_i32_75 : i32
    scf.if %88 {
      %c0_76 = arith.constant 0 : index
      %c0_77 = arith.constant 0 : index
      %89 = vector.load %arg7[%c0_76, %c0_77] : memref<8x16xf32, #tpu.memory_space<vmem>>, vector<8x16xf32>
      %cst_78 = arith.constant 5.000000e-01 : f32
      %90 = vector.broadcast %cst_78 : f32 to vector<8x16xf32>
      %91 = arith.mulf %89, %90 : vector<8x16xf32>
      %cst_79 = arith.constant 0.000000e+00 : f32
      %92 = vector.broadcast %cst_79 : f32 to vector<8x16xf32>
      %93 = arith.subf %92, %91 : vector<8x16xf32>
      %cst_80 = arith.constant dense<0xFF800000> : vector<16xf32>
      %94 = vector.multi_reduction <maximumf>, %93, %cst_80 [0] : vector<8x16xf32> to vector<16xf32>
      %95 = vector.shape_cast %94 : vector<16xf32> to vector<1x16xf32>
      %96 = vector.broadcast %95 : vector<1x16xf32> to vector<8x16xf32>
      %97 = arith.subf %93, %96 : vector<8x16xf32>
      %98 = math.exp %97 : vector<8x16xf32>
      %cst_81 = arith.constant dense<0.000000e+00> : vector<16xf32>
      %99 = vector.multi_reduction <add>, %98, %cst_81 [0] : vector<8x16xf32> to vector<16xf32>
      %100 = vector.shape_cast %99 : vector<16xf32> to vector<1x16xf32>
      %101 = tpu.reciprocal %100 {approx = true} : vector<1x16xf32> -> vector<1x16xf32>
      %102 = vector.broadcast %101 : vector<1x16xf32> to vector<8x16xf32>
      %103 = arith.mulf %98, %102 : vector<8x16xf32>
      %c0_82 = arith.constant 0 : index
      %c0_83 = arith.constant 0 : index
      %c0_84 = arith.constant 0 : index
      %104 = vector.load %arg5[%c0_82, %c0_83, %c0_84] : memref<1x8x16xf32, #tpu.memory_space<vmem>>, vector<1x8x16xf32>
      %105 = vector.shape_cast %104 : vector<1x8x16xf32> to vector<8x16xf32>
      %106 = arith.mulf %103, %105 : vector<8x16xf32>
      %cst_85 = arith.constant dense<0.000000e+00> : vector<16xf32>
      %107 = vector.multi_reduction <add>, %106, %cst_85 [0] : vector<8x16xf32> to vector<16xf32>
      %108 = vector.shape_cast %107 : vector<16xf32> to vector<1x16xf32>
      %c0_86 = arith.constant 0 : index
      %c0_87 = arith.constant 0 : index
      %c0_88 = arith.constant 0 : index
      %109 = vector.load %arg6[%c0_86, %c0_87, %c0_88] : memref<1x1x16xf32, #tpu.memory_space<vmem>>, vector<1x1x16xf32>
      %110 = vector.shape_cast %109 : vector<1x1x16xf32> to vector<1x16xf32>
      %111 = vector.shape_cast %108 : vector<1x16xf32> to vector<1x1x16xf32>
      tpu.vector_store %arg6[%c0_86, %c0_87, %c0_88], %111 {strides = array<i32>} : memref<1x1x16xf32, #tpu.memory_space<vmem>>, vector<1x1x16xf32>,
    } else {
    }
    return
  }
  func.func @transform_0(%arg0: i32, %arg1: i32, %arg2: i32) -> (i32, i32, i32) {
    %c0_i32 = arith.constant 0 : i32
    %c0_i32_0 = arith.constant 0 : i32
    return %arg0, %c0_i32, %arg1 : i32, i32, i32
  }
  func.func @transform_1(%arg0: i32, %arg1: i32, %arg2: i32) -> (i32, i32, i32, i32, i32) {
    %c0_i32 = arith.constant 0 : i32
    %c0_i32_0 = arith.constant 0 : i32
    %c0_i32_1 = arith.constant 0 : i32
    return %arg0, %arg2, %c0_i32, %c0_i32_0, %arg1 : i32, i32, i32, i32, i32
  }
  func.func @transform_2(%arg0: i32, %arg1: i32, %arg2: i32) -> (i32, i32, i32) {
    %c0_i32 = arith.constant 0 : i32
    %c0_i32_0 = arith.constant 0 : i32
    return %arg0, %c0_i32, %arg1 : i32, i32, i32
  }
  func.func @transform_3(%arg0: i32, %arg1: i32, %arg2: i32) -> (i32, i32, i32) {
    %c0_i32 = arith.constant 0 : i32
    %c0_i32_0 = arith.constant 0 : i32
    return %arg0, %c0_i32, %arg1 : i32, i32, i32
  }
}

module attributes {stable_mosaic.version = 11 : i64} {
  func.func @_conv_matmul_kernel(%arg0: i32, %arg1: i32, %arg2: memref<16x16xbf16, #tpu.memory_space<vmem>>, %arg3: memref<16x1xf32, #tpu.memory_space<vmem>>, %arg4: memref<1x16x64xbf16, #tpu.memory_space<vmem>>, %arg5: memref<1x16x64xf32, #tpu.memory_space<vmem>>) attributes {dimension_semantics = [#tpu.dimension_semantics<parallel>, #tpu.dimension_semantics<parallel>], iteration_bounds = array<i64: 6, 1>, scalar_prefetch = 0 : i64, scratch_operands = 0 : i64, tpu.core_type = #tpu.core_type<tc>, window_params = [{pipeline_mode = #tpu.pipeline_mode<synchronous>, transform_indices = @transform_0, window_bounds = array<i64: 16, 16>}, {pipeline_mode = #tpu.pipeline_mode<synchronous>, transform_indices = @transform_1, window_bounds = array<i64: 16, 1>}, {transform_indices = @transform_2, window_bounds = array<i64: 1, 16, 64>}, {transform_indices = @transform_3, window_bounds = array<i64: 1, 16, 64>}]} {
    %c0 = arith.constant 0 : index
    %c0_0 = arith.constant 0 : index
    %0 = vector.load %arg2[%c0, %c0_0] : memref<16x16xbf16, #tpu.memory_space<vmem>>, vector<16x16xbf16>
    %c0_1 = arith.constant 0 : index
    %c0_2 = arith.constant 0 : index
    %c0_3 = arith.constant 0 : index
    %1 = vector.load %arg4[%c0_1, %c0_2, %c0_3] : memref<1x16x64xbf16, #tpu.memory_space<vmem>>, vector<1x16x64xbf16>
    %2 = vector.shape_cast %1 : vector<1x16x64xbf16> to vector<16x64xbf16>
    %cst = arith.constant dense<0.000000e+00> : vector<16x64xf32>
    %3 = tpu.matmul %0, %2, %cst {dimension_numbers = #tpu.dot_dimension_numbers<[1], [0], [0], [1], [0, 0, 1, 1], [], []>} : vector<16x16xbf16>, vector<16x64xbf16>, vector<16x64xf32> -> vector<16x64xf32>
    %c0_4 = arith.constant 0 : index
    %c0_5 = arith.constant 0 : index
    %4 = vector.load %arg3[%c0_4, %c0_5] : memref<16x1xf32, #tpu.memory_space<vmem>>, vector<16x1xf32>
    %5 = vector.broadcast %4 : vector<16x1xf32> to vector<16x64xf32>
    %6 = arith.addf %3, %5 : vector<16x64xf32>
    %c0_6 = arith.constant 0 : index
    %c0_7 = arith.constant 0 : index
    %c0_8 = arith.constant 0 : index
    %7 = vector.load %arg5[%c0_6, %c0_7, %c0_8] : memref<1x16x64xf32, #tpu.memory_space<vmem>>, vector<1x16x64xf32>
    %8 = vector.shape_cast %7 : vector<1x16x64xf32> to vector<16x64xf32>
    %9 = vector.shape_cast %6 : vector<16x64xf32> to vector<1x16x64xf32>
    tpu.vector_store %arg5[%c0_6, %c0_7, %c0_8], %9 {strides = array<i32>} : memref<1x16x64xf32, #tpu.memory_space<vmem>>, vector<1x16x64xf32>,
    return
  }
  func.func @transform_0(%arg0: i32, %arg1: i32) -> (i32, i32) {
    %c0_i32 = arith.constant 0 : i32
    %c0_i32_0 = arith.constant 0 : i32
    %c0_i32_1 = arith.constant 0 : i32
    return %c0_i32, %c0_i32_0 : i32, i32
  }
  func.func @transform_1(%arg0: i32, %arg1: i32) -> (i32, i32) {
    %c0_i32 = arith.constant 0 : i32
    %c0_i32_0 = arith.constant 0 : i32
    %c0_i32_1 = arith.constant 0 : i32
    return %c0_i32, %c0_i32_0 : i32, i32
  }
  func.func @transform_2(%arg0: i32, %arg1: i32) -> (i32, i32, i32) {
    %c0_i32 = arith.constant 0 : i32
    %c0_i32_0 = arith.constant 0 : i32
    return %arg0, %c0_i32, %arg1 : i32, i32, i32
  }
  func.func @transform_3(%arg0: i32, %arg1: i32) -> (i32, i32, i32) {
    %c0_i32 = arith.constant 0 : i32
    %c0_i32_0 = arith.constant 0 : i32
    return %arg0, %c0_i32, %arg1 : i32, i32, i32
  }
}

module attributes {stable_mosaic.version = 11 : i64} {
  func.func @_depth_reg_kernel(%arg0: i32, %arg1: i32, %arg2: i32, %arg3: memref<1x16x64xbf16, #tpu.memory_space<vmem>>, %arg4: memref<1x1x8x16x64xbf16, #tpu.memory_space<vmem>>, %arg5: memref<1x8x64xf32, #tpu.memory_space<vmem>>, %arg6: memref<1x1x64xf32, #tpu.memory_space<vmem>>, %arg7: memref<8x64xf32, #tpu.memory_space<vmem>>) attributes {dimension_semantics = [#tpu.dimension_semantics<parallel>, #tpu.dimension_semantics<parallel>, #tpu.dimension_semantics<arbitrary>], iteration_bounds = array<i64: 2, 1, 2>, scalar_prefetch = 0 : i64, scratch_operands = 1 : i64, tpu.core_type = #tpu.core_type<tc>, window_params = [{transform_indices = @transform_0, window_bounds = array<i64: 1, 16, 64>}, {transform_indices = @transform_1, window_bounds = array<i64: 1, 1, 8, 16, 64>}, {transform_indices = @transform_2, window_bounds = array<i64: 1, 8, 64>}, {transform_indices = @transform_3, window_bounds = array<i64: 1, 1, 64>}]} {
    %c0_i32 = arith.constant 0 : i32
    %0 = arith.cmpi eq, %arg2, %c0_i32 : i32
    %1 = arith.extui %0 : i1 to i32
    %c0_i32_0 = arith.constant 0 : i32
    %2 = arith.cmpi ne, %1, %c0_i32_0 : i32
    scf.if %2 {
      %cst_76 = arith.constant 0.000000e+00 : f32
      %89 = vector.broadcast %cst_76 : f32 to vector<8x64xf32>
      %c0_77 = arith.constant 0 : index
      %c0_78 = arith.constant 0 : index
      %90 = vector.load %arg7[%c0_77, %c0_78] : memref<8x64xf32, #tpu.memory_space<vmem>>, vector<8x64xf32>
      tpu.vector_store %arg7[%c0_77, %c0_78], %89 {strides = array<i32>} : memref<8x64xf32, #tpu.memory_space<vmem>>, vector<8x64xf32>,
    } else {
    }
    %c0 = arith.constant 0 : index
    %c0_1 = arith.constant 0 : index
    %c0_2 = arith.constant 0 : index
    %3 = vector.load %arg3[%c0, %c0_1, %c0_2] : memref<1x16x64xbf16, #tpu.memory_space<vmem>>, vector<1x16x64xbf16>
    %4 = vector.shape_cast %3 : vector<1x16x64xbf16> to vector<16x64xbf16>
    %5 = arith.extf %4 : vector<16x64xbf16> to vector<16x64xf32>
    %c0_3 = arith.constant 0 : index
    %c0_4 = arith.constant 0 : index
    %c0_5 = arith.constant 0 : index
    %c0_6 = arith.constant 0 : index
    %c0_7 = arith.constant 0 : index
    %6 = vector.load %arg4[%c0_3, %c0_4, %c0_5, %c0_6, %c0_7] : memref<1x1x8x16x64xbf16, #tpu.memory_space<vmem>>, vector<1x1x1x16x64xbf16>
    %7 = vector.shape_cast %6 : vector<1x1x1x16x64xbf16> to vector<16x64xbf16>
    %8 = arith.extf %7 : vector<16x64xbf16> to vector<16x64xf32>
    %9 = arith.subf %8, %5 : vector<16x64xf32>
    %10 = arith.mulf %9, %9 : vector<16x64xf32>
    %cst = arith.constant dense<0.000000e+00> : vector<64xf32>
    %11 = vector.multi_reduction <add>, %10, %cst [0] : vector<16x64xf32> to vector<64xf32>
    %12 = vector.shape_cast %11 : vector<64xf32> to vector<1x64xf32>
    %c0_8 = arith.constant 0 : index
    %c0_9 = arith.constant 0 : index
    %13 = vector.load %arg7[%c0_8, %c0_9] : memref<8x64xf32, #tpu.memory_space<vmem>>, vector<1x64xf32>
    %14 = arith.addf %13, %12 : vector<1x64xf32>
    %c0_10 = arith.constant 0 : index
    %c0_11 = arith.constant 0 : index
    %15 = vector.load %arg7[%c0_10, %c0_11] : memref<8x64xf32, #tpu.memory_space<vmem>>, vector<1x64xf32>
    tpu.vector_store %arg7[%c0_10, %c0_11], %14 {strides = array<i32>} : memref<8x64xf32, #tpu.memory_space<vmem>>, vector<1x64xf32>,
    %c0_12 = arith.constant 0 : index
    %c0_13 = arith.constant 0 : index
    %c1 = arith.constant 1 : index
    %c0_14 = arith.constant 0 : index
    %c0_15 = arith.constant 0 : index
    %16 = vector.load %arg4[%c0_12, %c0_13, %c1, %c0_14, %c0_15] : memref<1x1x8x16x64xbf16, #tpu.memory_space<vmem>>, vector<1x1x1x16x64xbf16>
    %17 = vector.shape_cast %16 : vector<1x1x1x16x64xbf16> to vector<16x64xbf16>
    %18 = arith.extf %17 : vector<16x64xbf16> to vector<16x64xf32>
    %19 = arith.subf %18, %5 : vector<16x64xf32>
    %20 = arith.mulf %19, %19 : vector<16x64xf32>
    %cst_16 = arith.constant dense<0.000000e+00> : vector<64xf32>
    %21 = vector.multi_reduction <add>, %20, %cst_16 [0] : vector<16x64xf32> to vector<64xf32>
    %22 = vector.shape_cast %21 : vector<64xf32> to vector<1x64xf32>
    %c1_17 = arith.constant 1 : index
    %c0_18 = arith.constant 0 : index
    %23 = vector.load %arg7[%c1_17, %c0_18] : memref<8x64xf32, #tpu.memory_space<vmem>>, vector<1x64xf32>
    %24 = arith.addf %23, %22 : vector<1x64xf32>
    %c1_19 = arith.constant 1 : index
    %c0_20 = arith.constant 0 : index
    %25 = vector.load %arg7[%c1_19, %c0_20] : memref<8x64xf32, #tpu.memory_space<vmem>>, vector<1x64xf32>
    tpu.vector_store %arg7[%c1_19, %c0_20], %24 {strides = array<i32>} : memref<8x64xf32, #tpu.memory_space<vmem>>, vector<1x64xf32>,
    %c0_21 = arith.constant 0 : index
    %c0_22 = arith.constant 0 : index
    %c2 = arith.constant 2 : index
    %c0_23 = arith.constant 0 : index
    %c0_24 = arith.constant 0 : index
    %26 = vector.load %arg4[%c0_21, %c0_22, %c2, %c0_23, %c0_24] : memref<1x1x8x16x64xbf16, #tpu.memory_space<vmem>>, vector<1x1x1x16x64xbf16>
    %27 = vector.shape_cast %26 : vector<1x1x1x16x64xbf16> to vector<16x64xbf16>
    %28 = arith.extf %27 : vector<16x64xbf16> to vector<16x64xf32>
    %29 = arith.subf %28, %5 : vector<16x64xf32>
    %30 = arith.mulf %29, %29 : vector<16x64xf32>
    %cst_25 = arith.constant dense<0.000000e+00> : vector<64xf32>
    %31 = vector.multi_reduction <add>, %30, %cst_25 [0] : vector<16x64xf32> to vector<64xf32>
    %32 = vector.shape_cast %31 : vector<64xf32> to vector<1x64xf32>
    %c2_26 = arith.constant 2 : index
    %c0_27 = arith.constant 0 : index
    %33 = vector.load %arg7[%c2_26, %c0_27] : memref<8x64xf32, #tpu.memory_space<vmem>>, vector<1x64xf32>
    %34 = arith.addf %33, %32 : vector<1x64xf32>
    %c2_28 = arith.constant 2 : index
    %c0_29 = arith.constant 0 : index
    %35 = vector.load %arg7[%c2_28, %c0_29] : memref<8x64xf32, #tpu.memory_space<vmem>>, vector<1x64xf32>
    tpu.vector_store %arg7[%c2_28, %c0_29], %34 {strides = array<i32>} : memref<8x64xf32, #tpu.memory_space<vmem>>, vector<1x64xf32>,
    %c0_30 = arith.constant 0 : index
    %c0_31 = arith.constant 0 : index
    %c3 = arith.constant 3 : index
    %c0_32 = arith.constant 0 : index
    %c0_33 = arith.constant 0 : index
    %36 = vector.load %arg4[%c0_30, %c0_31, %c3, %c0_32, %c0_33] : memref<1x1x8x16x64xbf16, #tpu.memory_space<vmem>>, vector<1x1x1x16x64xbf16>
    %37 = vector.shape_cast %36 : vector<1x1x1x16x64xbf16> to vector<16x64xbf16>
    %38 = arith.extf %37 : vector<16x64xbf16> to vector<16x64xf32>
    %39 = arith.subf %38, %5 : vector<16x64xf32>
    %40 = arith.mulf %39, %39 : vector<16x64xf32>
    %cst_34 = arith.constant dense<0.000000e+00> : vector<64xf32>
    %41 = vector.multi_reduction <add>, %40, %cst_34 [0] : vector<16x64xf32> to vector<64xf32>
    %42 = vector.shape_cast %41 : vector<64xf32> to vector<1x64xf32>
    %c3_35 = arith.constant 3 : index
    %c0_36 = arith.constant 0 : index
    %43 = vector.load %arg7[%c3_35, %c0_36] : memref<8x64xf32, #tpu.memory_space<vmem>>, vector<1x64xf32>
    %44 = arith.addf %43, %42 : vector<1x64xf32>
    %c3_37 = arith.constant 3 : index
    %c0_38 = arith.constant 0 : index
    %45 = vector.load %arg7[%c3_37, %c0_38] : memref<8x64xf32, #tpu.memory_space<vmem>>, vector<1x64xf32>
    tpu.vector_store %arg7[%c3_37, %c0_38], %44 {strides = array<i32>} : memref<8x64xf32, #tpu.memory_space<vmem>>, vector<1x64xf32>,
    %c0_39 = arith.constant 0 : index
    %c0_40 = arith.constant 0 : index
    %c4 = arith.constant 4 : index
    %c0_41 = arith.constant 0 : index
    %c0_42 = arith.constant 0 : index
    %46 = vector.load %arg4[%c0_39, %c0_40, %c4, %c0_41, %c0_42] : memref<1x1x8x16x64xbf16, #tpu.memory_space<vmem>>, vector<1x1x1x16x64xbf16>
    %47 = vector.shape_cast %46 : vector<1x1x1x16x64xbf16> to vector<16x64xbf16>
    %48 = arith.extf %47 : vector<16x64xbf16> to vector<16x64xf32>
    %49 = arith.subf %48, %5 : vector<16x64xf32>
    %50 = arith.mulf %49, %49 : vector<16x64xf32>
    %cst_43 = arith.constant dense<0.000000e+00> : vector<64xf32>
    %51 = vector.multi_reduction <add>, %50, %cst_43 [0] : vector<16x64xf32> to vector<64xf32>
    %52 = vector.shape_cast %51 : vector<64xf32> to vector<1x64xf32>
    %c4_44 = arith.constant 4 : index
    %c0_45 = arith.constant 0 : index
    %53 = vector.load %arg7[%c4_44, %c0_45] : memref<8x64xf32, #tpu.memory_space<vmem>>, vector<1x64xf32>
    %54 = arith.addf %53, %52 : vector<1x64xf32>
    %c4_46 = arith.constant 4 : index
    %c0_47 = arith.constant 0 : index
    %55 = vector.load %arg7[%c4_46, %c0_47] : memref<8x64xf32, #tpu.memory_space<vmem>>, vector<1x64xf32>
    tpu.vector_store %arg7[%c4_46, %c0_47], %54 {strides = array<i32>} : memref<8x64xf32, #tpu.memory_space<vmem>>, vector<1x64xf32>,
    %c0_48 = arith.constant 0 : index
    %c0_49 = arith.constant 0 : index
    %c5 = arith.constant 5 : index
    %c0_50 = arith.constant 0 : index
    %c0_51 = arith.constant 0 : index
    %56 = vector.load %arg4[%c0_48, %c0_49, %c5, %c0_50, %c0_51] : memref<1x1x8x16x64xbf16, #tpu.memory_space<vmem>>, vector<1x1x1x16x64xbf16>
    %57 = vector.shape_cast %56 : vector<1x1x1x16x64xbf16> to vector<16x64xbf16>
    %58 = arith.extf %57 : vector<16x64xbf16> to vector<16x64xf32>
    %59 = arith.subf %58, %5 : vector<16x64xf32>
    %60 = arith.mulf %59, %59 : vector<16x64xf32>
    %cst_52 = arith.constant dense<0.000000e+00> : vector<64xf32>
    %61 = vector.multi_reduction <add>, %60, %cst_52 [0] : vector<16x64xf32> to vector<64xf32>
    %62 = vector.shape_cast %61 : vector<64xf32> to vector<1x64xf32>
    %c5_53 = arith.constant 5 : index
    %c0_54 = arith.constant 0 : index
    %63 = vector.load %arg7[%c5_53, %c0_54] : memref<8x64xf32, #tpu.memory_space<vmem>>, vector<1x64xf32>
    %64 = arith.addf %63, %62 : vector<1x64xf32>
    %c5_55 = arith.constant 5 : index
    %c0_56 = arith.constant 0 : index
    %65 = vector.load %arg7[%c5_55, %c0_56] : memref<8x64xf32, #tpu.memory_space<vmem>>, vector<1x64xf32>
    tpu.vector_store %arg7[%c5_55, %c0_56], %64 {strides = array<i32>} : memref<8x64xf32, #tpu.memory_space<vmem>>, vector<1x64xf32>,
    %c0_57 = arith.constant 0 : index
    %c0_58 = arith.constant 0 : index
    %c6 = arith.constant 6 : index
    %c0_59 = arith.constant 0 : index
    %c0_60 = arith.constant 0 : index
    %66 = vector.load %arg4[%c0_57, %c0_58, %c6, %c0_59, %c0_60] : memref<1x1x8x16x64xbf16, #tpu.memory_space<vmem>>, vector<1x1x1x16x64xbf16>
    %67 = vector.shape_cast %66 : vector<1x1x1x16x64xbf16> to vector<16x64xbf16>
    %68 = arith.extf %67 : vector<16x64xbf16> to vector<16x64xf32>
    %69 = arith.subf %68, %5 : vector<16x64xf32>
    %70 = arith.mulf %69, %69 : vector<16x64xf32>
    %cst_61 = arith.constant dense<0.000000e+00> : vector<64xf32>
    %71 = vector.multi_reduction <add>, %70, %cst_61 [0] : vector<16x64xf32> to vector<64xf32>
    %72 = vector.shape_cast %71 : vector<64xf32> to vector<1x64xf32>
    %c6_62 = arith.constant 6 : index
    %c0_63 = arith.constant 0 : index
    %73 = vector.load %arg7[%c6_62, %c0_63] : memref<8x64xf32, #tpu.memory_space<vmem>>, vector<1x64xf32>
    %74 = arith.addf %73, %72 : vector<1x64xf32>
    %c6_64 = arith.constant 6 : index
    %c0_65 = arith.constant 0 : index
    %75 = vector.load %arg7[%c6_64, %c0_65] : memref<8x64xf32, #tpu.memory_space<vmem>>, vector<1x64xf32>
    tpu.vector_store %arg7[%c6_64, %c0_65], %74 {strides = array<i32>} : memref<8x64xf32, #tpu.memory_space<vmem>>, vector<1x64xf32>,
    %c0_66 = arith.constant 0 : index
    %c0_67 = arith.constant 0 : index
    %c7 = arith.constant 7 : index
    %c0_68 = arith.constant 0 : index
    %c0_69 = arith.constant 0 : index
    %76 = vector.load %arg4[%c0_66, %c0_67, %c7, %c0_68, %c0_69] : memref<1x1x8x16x64xbf16, #tpu.memory_space<vmem>>, vector<1x1x1x16x64xbf16>
    %77 = vector.shape_cast %76 : vector<1x1x1x16x64xbf16> to vector<16x64xbf16>
    %78 = arith.extf %77 : vector<16x64xbf16> to vector<16x64xf32>
    %79 = arith.subf %78, %5 : vector<16x64xf32>
    %80 = arith.mulf %79, %79 : vector<16x64xf32>
    %cst_70 = arith.constant dense<0.000000e+00> : vector<64xf32>
    %81 = vector.multi_reduction <add>, %80, %cst_70 [0] : vector<16x64xf32> to vector<64xf32>
    %82 = vector.shape_cast %81 : vector<64xf32> to vector<1x64xf32>
    %c7_71 = arith.constant 7 : index
    %c0_72 = arith.constant 0 : index
    %83 = vector.load %arg7[%c7_71, %c0_72] : memref<8x64xf32, #tpu.memory_space<vmem>>, vector<1x64xf32>
    %84 = arith.addf %83, %82 : vector<1x64xf32>
    %c7_73 = arith.constant 7 : index
    %c0_74 = arith.constant 0 : index
    %85 = vector.load %arg7[%c7_73, %c0_74] : memref<8x64xf32, #tpu.memory_space<vmem>>, vector<1x64xf32>
    tpu.vector_store %arg7[%c7_73, %c0_74], %84 {strides = array<i32>} : memref<8x64xf32, #tpu.memory_space<vmem>>, vector<1x64xf32>,
    %c1_i32 = arith.constant 1 : i32
    %86 = arith.cmpi eq, %arg2, %c1_i32 : i32
    %87 = arith.extui %86 : i1 to i32
    %c0_i32_75 = arith.constant 0 : i32
    %88 = arith.cmpi ne, %87, %c0_i32_75 : i32
    scf.if %88 {
      %c0_76 = arith.constant 0 : index
      %c0_77 = arith.constant 0 : index
      %89 = vector.load %arg7[%c0_76, %c0_77] : memref<8x64xf32, #tpu.memory_space<vmem>>, vector<8x64xf32>
      %cst_78 = arith.constant 5.000000e-01 : f32
      %90 = vector.broadcast %cst_78 : f32 to vector<8x64xf32>
      %91 = arith.mulf %89, %90 : vector<8x64xf32>
      %cst_79 = arith.constant 0.000000e+00 : f32
      %92 = vector.broadcast %cst_79 : f32 to vector<8x64xf32>
      %93 = arith.subf %92, %91 : vector<8x64xf32>
      %cst_80 = arith.constant dense<0xFF800000> : vector<64xf32>
      %94 = vector.multi_reduction <maximumf>, %93, %cst_80 [0] : vector<8x64xf32> to vector<64xf32>
      %95 = vector.shape_cast %94 : vector<64xf32> to vector<1x64xf32>
      %96 = vector.broadcast %95 : vector<1x64xf32> to vector<8x64xf32>
      %97 = arith.subf %93, %96 : vector<8x64xf32>
      %98 = math.exp %97 : vector<8x64xf32>
      %cst_81 = arith.constant dense<0.000000e+00> : vector<64xf32>
      %99 = vector.multi_reduction <add>, %98, %cst_81 [0] : vector<8x64xf32> to vector<64xf32>
      %100 = vector.shape_cast %99 : vector<64xf32> to vector<1x64xf32>
      %101 = tpu.reciprocal %100 {approx = true} : vector<1x64xf32> -> vector<1x64xf32>
      %102 = vector.broadcast %101 : vector<1x64xf32> to vector<8x64xf32>
      %103 = arith.mulf %98, %102 : vector<8x64xf32>
      %c0_82 = arith.constant 0 : index
      %c0_83 = arith.constant 0 : index
      %c0_84 = arith.constant 0 : index
      %104 = vector.load %arg5[%c0_82, %c0_83, %c0_84] : memref<1x8x64xf32, #tpu.memory_space<vmem>>, vector<1x8x64xf32>
      %105 = vector.shape_cast %104 : vector<1x8x64xf32> to vector<8x64xf32>
      %106 = arith.mulf %103, %105 : vector<8x64xf32>
      %cst_85 = arith.constant dense<0.000000e+00> : vector<64xf32>
      %107 = vector.multi_reduction <add>, %106, %cst_85 [0] : vector<8x64xf32> to vector<64xf32>
      %108 = vector.shape_cast %107 : vector<64xf32> to vector<1x64xf32>
      %c0_86 = arith.constant 0 : index
      %c0_87 = arith.constant 0 : index
      %c0_88 = arith.constant 0 : index
      %109 = vector.load %arg6[%c0_86, %c0_87, %c0_88] : memref<1x1x64xf32, #tpu.memory_space<vmem>>, vector<1x1x64xf32>
      %110 = vector.shape_cast %109 : vector<1x1x64xf32> to vector<1x64xf32>
      %111 = vector.shape_cast %108 : vector<1x64xf32> to vector<1x1x64xf32>
      tpu.vector_store %arg6[%c0_86, %c0_87, %c0_88], %111 {strides = array<i32>} : memref<1x1x64xf32, #tpu.memory_space<vmem>>, vector<1x1x64xf32>,
    } else {
    }
    return
  }
  func.func @transform_0(%arg0: i32, %arg1: i32, %arg2: i32) -> (i32, i32, i32) {
    %c0_i32 = arith.constant 0 : i32
    %c0_i32_0 = arith.constant 0 : i32
    return %arg0, %c0_i32, %arg1 : i32, i32, i32
  }
  func.func @transform_1(%arg0: i32, %arg1: i32, %arg2: i32) -> (i32, i32, i32, i32, i32) {
    %c0_i32 = arith.constant 0 : i32
    %c0_i32_0 = arith.constant 0 : i32
    %c0_i32_1 = arith.constant 0 : i32
    return %arg0, %arg2, %c0_i32, %c0_i32_0, %arg1 : i32, i32, i32, i32, i32
  }
  func.func @transform_2(%arg0: i32, %arg1: i32, %arg2: i32) -> (i32, i32, i32) {
    %c0_i32 = arith.constant 0 : i32
    %c0_i32_0 = arith.constant 0 : i32
    return %arg0, %c0_i32, %arg1 : i32, i32, i32
  }
  func.func @transform_3(%arg0: i32, %arg1: i32, %arg2: i32) -> (i32, i32, i32) {
    %c0_i32 = arith.constant 0 : i32
    %c0_i32_0 = arith.constant 0 : i32
    return %arg0, %c0_i32, %arg1 : i32, i32, i32
  }
}

module attributes {stable_mosaic.version = 11 : i64} {
  func.func @_conv_matmul_kernel(%arg0: i32, %arg1: i32, %arg2: memref<8x8xbf16, #tpu.memory_space<vmem>>, %arg3: memref<8x1xf32, #tpu.memory_space<vmem>>, %arg4: memref<1x8x256xbf16, #tpu.memory_space<vmem>>, %arg5: memref<1x8x256xf32, #tpu.memory_space<vmem>>) attributes {dimension_semantics = [#tpu.dimension_semantics<parallel>, #tpu.dimension_semantics<parallel>], iteration_bounds = array<i64: 6, 1>, scalar_prefetch = 0 : i64, scratch_operands = 0 : i64, tpu.core_type = #tpu.core_type<tc>, window_params = [{pipeline_mode = #tpu.pipeline_mode<synchronous>, transform_indices = @transform_0, window_bounds = array<i64: 8, 8>}, {pipeline_mode = #tpu.pipeline_mode<synchronous>, transform_indices = @transform_1, window_bounds = array<i64: 8, 1>}, {transform_indices = @transform_2, window_bounds = array<i64: 1, 8, 256>}, {transform_indices = @transform_3, window_bounds = array<i64: 1, 8, 256>}]} {
    %c0 = arith.constant 0 : index
    %c0_0 = arith.constant 0 : index
    %0 = vector.load %arg2[%c0, %c0_0] : memref<8x8xbf16, #tpu.memory_space<vmem>>, vector<8x8xbf16>
    %c0_1 = arith.constant 0 : index
    %c0_2 = arith.constant 0 : index
    %c0_3 = arith.constant 0 : index
    %1 = vector.load %arg4[%c0_1, %c0_2, %c0_3] : memref<1x8x256xbf16, #tpu.memory_space<vmem>>, vector<1x8x256xbf16>
    %2 = vector.shape_cast %1 : vector<1x8x256xbf16> to vector<8x256xbf16>
    %cst = arith.constant dense<0.000000e+00> : vector<8x256xf32>
    %3 = tpu.matmul %0, %2, %cst {dimension_numbers = #tpu.dot_dimension_numbers<[1], [0], [0], [1], [0, 0, 1, 1], [], []>} : vector<8x8xbf16>, vector<8x256xbf16>, vector<8x256xf32> -> vector<8x256xf32>
    %c0_4 = arith.constant 0 : index
    %c0_5 = arith.constant 0 : index
    %4 = vector.load %arg3[%c0_4, %c0_5] : memref<8x1xf32, #tpu.memory_space<vmem>>, vector<8x1xf32>
    %5 = vector.broadcast %4 : vector<8x1xf32> to vector<8x256xf32>
    %6 = arith.addf %3, %5 : vector<8x256xf32>
    %c0_6 = arith.constant 0 : index
    %c0_7 = arith.constant 0 : index
    %c0_8 = arith.constant 0 : index
    %7 = vector.load %arg5[%c0_6, %c0_7, %c0_8] : memref<1x8x256xf32, #tpu.memory_space<vmem>>, vector<1x8x256xf32>
    %8 = vector.shape_cast %7 : vector<1x8x256xf32> to vector<8x256xf32>
    %9 = vector.shape_cast %6 : vector<8x256xf32> to vector<1x8x256xf32>
    tpu.vector_store %arg5[%c0_6, %c0_7, %c0_8], %9 {strides = array<i32>} : memref<1x8x256xf32, #tpu.memory_space<vmem>>, vector<1x8x256xf32>,
    return
  }
  func.func @transform_0(%arg0: i32, %arg1: i32) -> (i32, i32) {
    %c0_i32 = arith.constant 0 : i32
    %c0_i32_0 = arith.constant 0 : i32
    %c0_i32_1 = arith.constant 0 : i32
    return %c0_i32, %c0_i32_0 : i32, i32
  }
  func.func @transform_1(%arg0: i32, %arg1: i32) -> (i32, i32) {
    %c0_i32 = arith.constant 0 : i32
    %c0_i32_0 = arith.constant 0 : i32
    %c0_i32_1 = arith.constant 0 : i32
    return %c0_i32, %c0_i32_0 : i32, i32
  }
  func.func @transform_2(%arg0: i32, %arg1: i32) -> (i32, i32, i32) {
    %c0_i32 = arith.constant 0 : i32
    %c0_i32_0 = arith.constant 0 : i32
    return %arg0, %c0_i32, %arg1 : i32, i32, i32
  }
  func.func @transform_3(%arg0: i32, %arg1: i32) -> (i32, i32, i32) {
    %c0_i32 = arith.constant 0 : i32
    %c0_i32_0 = arith.constant 0 : i32
    return %arg0, %c0_i32, %arg1 : i32, i32, i32
  }
}

module attributes {stable_mosaic.version = 11 : i64} {
  func.func @_depth_reg_kernel(%arg0: i32, %arg1: i32, %arg2: i32, %arg3: memref<1x8x256xbf16, #tpu.memory_space<vmem>>, %arg4: memref<1x1x8x8x256xbf16, #tpu.memory_space<vmem>>, %arg5: memref<1x8x256xf32, #tpu.memory_space<vmem>>, %arg6: memref<1x1x256xf32, #tpu.memory_space<vmem>>, %arg7: memref<8x256xf32, #tpu.memory_space<vmem>>) attributes {dimension_semantics = [#tpu.dimension_semantics<parallel>, #tpu.dimension_semantics<parallel>, #tpu.dimension_semantics<arbitrary>], iteration_bounds = array<i64: 2, 1, 2>, scalar_prefetch = 0 : i64, scratch_operands = 1 : i64, tpu.core_type = #tpu.core_type<tc>, window_params = [{transform_indices = @transform_0, window_bounds = array<i64: 1, 8, 256>}, {transform_indices = @transform_1, window_bounds = array<i64: 1, 1, 8, 8, 256>}, {transform_indices = @transform_2, window_bounds = array<i64: 1, 8, 256>}, {transform_indices = @transform_3, window_bounds = array<i64: 1, 1, 256>}]} {
    %c0_i32 = arith.constant 0 : i32
    %0 = arith.cmpi eq, %arg2, %c0_i32 : i32
    %1 = arith.extui %0 : i1 to i32
    %c0_i32_0 = arith.constant 0 : i32
    %2 = arith.cmpi ne, %1, %c0_i32_0 : i32
    scf.if %2 {
      %cst_76 = arith.constant 0.000000e+00 : f32
      %89 = vector.broadcast %cst_76 : f32 to vector<8x256xf32>
      %c0_77 = arith.constant 0 : index
      %c0_78 = arith.constant 0 : index
      %90 = vector.load %arg7[%c0_77, %c0_78] : memref<8x256xf32, #tpu.memory_space<vmem>>, vector<8x256xf32>
      tpu.vector_store %arg7[%c0_77, %c0_78], %89 {strides = array<i32>} : memref<8x256xf32, #tpu.memory_space<vmem>>, vector<8x256xf32>,
    } else {
    }
    %c0 = arith.constant 0 : index
    %c0_1 = arith.constant 0 : index
    %c0_2 = arith.constant 0 : index
    %3 = vector.load %arg3[%c0, %c0_1, %c0_2] : memref<1x8x256xbf16, #tpu.memory_space<vmem>>, vector<1x8x256xbf16>
    %4 = vector.shape_cast %3 : vector<1x8x256xbf16> to vector<8x256xbf16>
    %5 = arith.extf %4 : vector<8x256xbf16> to vector<8x256xf32>
    %c0_3 = arith.constant 0 : index
    %c0_4 = arith.constant 0 : index
    %c0_5 = arith.constant 0 : index
    %c0_6 = arith.constant 0 : index
    %c0_7 = arith.constant 0 : index
    %6 = vector.load %arg4[%c0_3, %c0_4, %c0_5, %c0_6, %c0_7] : memref<1x1x8x8x256xbf16, #tpu.memory_space<vmem>>, vector<1x1x1x8x256xbf16>
    %7 = vector.shape_cast %6 : vector<1x1x1x8x256xbf16> to vector<8x256xbf16>
    %8 = arith.extf %7 : vector<8x256xbf16> to vector<8x256xf32>
    %9 = arith.subf %8, %5 : vector<8x256xf32>
    %10 = arith.mulf %9, %9 : vector<8x256xf32>
    %cst = arith.constant dense<0.000000e+00> : vector<256xf32>
    %11 = vector.multi_reduction <add>, %10, %cst [0] : vector<8x256xf32> to vector<256xf32>
    %12 = vector.shape_cast %11 : vector<256xf32> to vector<1x256xf32>
    %c0_8 = arith.constant 0 : index
    %c0_9 = arith.constant 0 : index
    %13 = vector.load %arg7[%c0_8, %c0_9] : memref<8x256xf32, #tpu.memory_space<vmem>>, vector<1x256xf32>
    %14 = arith.addf %13, %12 : vector<1x256xf32>
    %c0_10 = arith.constant 0 : index
    %c0_11 = arith.constant 0 : index
    %15 = vector.load %arg7[%c0_10, %c0_11] : memref<8x256xf32, #tpu.memory_space<vmem>>, vector<1x256xf32>
    tpu.vector_store %arg7[%c0_10, %c0_11], %14 {strides = array<i32>} : memref<8x256xf32, #tpu.memory_space<vmem>>, vector<1x256xf32>,
    %c0_12 = arith.constant 0 : index
    %c0_13 = arith.constant 0 : index
    %c1 = arith.constant 1 : index
    %c0_14 = arith.constant 0 : index
    %c0_15 = arith.constant 0 : index
    %16 = vector.load %arg4[%c0_12, %c0_13, %c1, %c0_14, %c0_15] : memref<1x1x8x8x256xbf16, #tpu.memory_space<vmem>>, vector<1x1x1x8x256xbf16>
    %17 = vector.shape_cast %16 : vector<1x1x1x8x256xbf16> to vector<8x256xbf16>
    %18 = arith.extf %17 : vector<8x256xbf16> to vector<8x256xf32>
    %19 = arith.subf %18, %5 : vector<8x256xf32>
    %20 = arith.mulf %19, %19 : vector<8x256xf32>
    %cst_16 = arith.constant dense<0.000000e+00> : vector<256xf32>
    %21 = vector.multi_reduction <add>, %20, %cst_16 [0] : vector<8x256xf32> to vector<256xf32>
    %22 = vector.shape_cast %21 : vector<256xf32> to vector<1x256xf32>
    %c1_17 = arith.constant 1 : index
    %c0_18 = arith.constant 0 : index
    %23 = vector.load %arg7[%c1_17, %c0_18] : memref<8x256xf32, #tpu.memory_space<vmem>>, vector<1x256xf32>
    %24 = arith.addf %23, %22 : vector<1x256xf32>
    %c1_19 = arith.constant 1 : index
    %c0_20 = arith.constant 0 : index
    %25 = vector.load %arg7[%c1_19, %c0_20] : memref<8x256xf32, #tpu.memory_space<vmem>>, vector<1x256xf32>
    tpu.vector_store %arg7[%c1_19, %c0_20], %24 {strides = array<i32>} : memref<8x256xf32, #tpu.memory_space<vmem>>, vector<1x256xf32>,
    %c0_21 = arith.constant 0 : index
    %c0_22 = arith.constant 0 : index
    %c2 = arith.constant 2 : index
    %c0_23 = arith.constant 0 : index
    %c0_24 = arith.constant 0 : index
    %26 = vector.load %arg4[%c0_21, %c0_22, %c2, %c0_23, %c0_24] : memref<1x1x8x8x256xbf16, #tpu.memory_space<vmem>>, vector<1x1x1x8x256xbf16>
    %27 = vector.shape_cast %26 : vector<1x1x1x8x256xbf16> to vector<8x256xbf16>
    %28 = arith.extf %27 : vector<8x256xbf16> to vector<8x256xf32>
    %29 = arith.subf %28, %5 : vector<8x256xf32>
    %30 = arith.mulf %29, %29 : vector<8x256xf32>
    %cst_25 = arith.constant dense<0.000000e+00> : vector<256xf32>
    %31 = vector.multi_reduction <add>, %30, %cst_25 [0] : vector<8x256xf32> to vector<256xf32>
    %32 = vector.shape_cast %31 : vector<256xf32> to vector<1x256xf32>
    %c2_26 = arith.constant 2 : index
    %c0_27 = arith.constant 0 : index
    %33 = vector.load %arg7[%c2_26, %c0_27] : memref<8x256xf32, #tpu.memory_space<vmem>>, vector<1x256xf32>
    %34 = arith.addf %33, %32 : vector<1x256xf32>
    %c2_28 = arith.constant 2 : index
    %c0_29 = arith.constant 0 : index
    %35 = vector.load %arg7[%c2_28, %c0_29] : memref<8x256xf32, #tpu.memory_space<vmem>>, vector<1x256xf32>
    tpu.vector_store %arg7[%c2_28, %c0_29], %34 {strides = array<i32>} : memref<8x256xf32, #tpu.memory_space<vmem>>, vector<1x256xf32>,
    %c0_30 = arith.constant 0 : index
    %c0_31 = arith.constant 0 : index
    %c3 = arith.constant 3 : index
    %c0_32 = arith.constant 0 : index
    %c0_33 = arith.constant 0 : index
    %36 = vector.load %arg4[%c0_30, %c0_31, %c3, %c0_32, %c0_33] : memref<1x1x8x8x256xbf16, #tpu.memory_space<vmem>>, vector<1x1x1x8x256xbf16>
    %37 = vector.shape_cast %36 : vector<1x1x1x8x256xbf16> to vector<8x256xbf16>
    %38 = arith.extf %37 : vector<8x256xbf16> to vector<8x256xf32>
    %39 = arith.subf %38, %5 : vector<8x256xf32>
    %40 = arith.mulf %39, %39 : vector<8x256xf32>
    %cst_34 = arith.constant dense<0.000000e+00> : vector<256xf32>
    %41 = vector.multi_reduction <add>, %40, %cst_34 [0] : vector<8x256xf32> to vector<256xf32>
    %42 = vector.shape_cast %41 : vector<256xf32> to vector<1x256xf32>
    %c3_35 = arith.constant 3 : index
    %c0_36 = arith.constant 0 : index
    %43 = vector.load %arg7[%c3_35, %c0_36] : memref<8x256xf32, #tpu.memory_space<vmem>>, vector<1x256xf32>
    %44 = arith.addf %43, %42 : vector<1x256xf32>
    %c3_37 = arith.constant 3 : index
    %c0_38 = arith.constant 0 : index
    %45 = vector.load %arg7[%c3_37, %c0_38] : memref<8x256xf32, #tpu.memory_space<vmem>>, vector<1x256xf32>
    tpu.vector_store %arg7[%c3_37, %c0_38], %44 {strides = array<i32>} : memref<8x256xf32, #tpu.memory_space<vmem>>, vector<1x256xf32>,
    %c0_39 = arith.constant 0 : index
    %c0_40 = arith.constant 0 : index
    %c4 = arith.constant 4 : index
    %c0_41 = arith.constant 0 : index
    %c0_42 = arith.constant 0 : index
    %46 = vector.load %arg4[%c0_39, %c0_40, %c4, %c0_41, %c0_42] : memref<1x1x8x8x256xbf16, #tpu.memory_space<vmem>>, vector<1x1x1x8x256xbf16>
    %47 = vector.shape_cast %46 : vector<1x1x1x8x256xbf16> to vector<8x256xbf16>
    %48 = arith.extf %47 : vector<8x256xbf16> to vector<8x256xf32>
    %49 = arith.subf %48, %5 : vector<8x256xf32>
    %50 = arith.mulf %49, %49 : vector<8x256xf32>
    %cst_43 = arith.constant dense<0.000000e+00> : vector<256xf32>
    %51 = vector.multi_reduction <add>, %50, %cst_43 [0] : vector<8x256xf32> to vector<256xf32>
    %52 = vector.shape_cast %51 : vector<256xf32> to vector<1x256xf32>
    %c4_44 = arith.constant 4 : index
    %c0_45 = arith.constant 0 : index
    %53 = vector.load %arg7[%c4_44, %c0_45] : memref<8x256xf32, #tpu.memory_space<vmem>>, vector<1x256xf32>
    %54 = arith.addf %53, %52 : vector<1x256xf32>
    %c4_46 = arith.constant 4 : index
    %c0_47 = arith.constant 0 : index
    %55 = vector.load %arg7[%c4_46, %c0_47] : memref<8x256xf32, #tpu.memory_space<vmem>>, vector<1x256xf32>
    tpu.vector_store %arg7[%c4_46, %c0_47], %54 {strides = array<i32>} : memref<8x256xf32, #tpu.memory_space<vmem>>, vector<1x256xf32>,
    %c0_48 = arith.constant 0 : index
    %c0_49 = arith.constant 0 : index
    %c5 = arith.constant 5 : index
    %c0_50 = arith.constant 0 : index
    %c0_51 = arith.constant 0 : index
    %56 = vector.load %arg4[%c0_48, %c0_49, %c5, %c0_50, %c0_51] : memref<1x1x8x8x256xbf16, #tpu.memory_space<vmem>>, vector<1x1x1x8x256xbf16>
    %57 = vector.shape_cast %56 : vector<1x1x1x8x256xbf16> to vector<8x256xbf16>
    %58 = arith.extf %57 : vector<8x256xbf16> to vector<8x256xf32>
    %59 = arith.subf %58, %5 : vector<8x256xf32>
    %60 = arith.mulf %59, %59 : vector<8x256xf32>
    %cst_52 = arith.constant dense<0.000000e+00> : vector<256xf32>
    %61 = vector.multi_reduction <add>, %60, %cst_52 [0] : vector<8x256xf32> to vector<256xf32>
    %62 = vector.shape_cast %61 : vector<256xf32> to vector<1x256xf32>
    %c5_53 = arith.constant 5 : index
    %c0_54 = arith.constant 0 : index
    %63 = vector.load %arg7[%c5_53, %c0_54] : memref<8x256xf32, #tpu.memory_space<vmem>>, vector<1x256xf32>
    %64 = arith.addf %63, %62 : vector<1x256xf32>
    %c5_55 = arith.constant 5 : index
    %c0_56 = arith.constant 0 : index
    %65 = vector.load %arg7[%c5_55, %c0_56] : memref<8x256xf32, #tpu.memory_space<vmem>>, vector<1x256xf32>
    tpu.vector_store %arg7[%c5_55, %c0_56], %64 {strides = array<i32>} : memref<8x256xf32, #tpu.memory_space<vmem>>, vector<1x256xf32>,
    %c0_57 = arith.constant 0 : index
    %c0_58 = arith.constant 0 : index
    %c6 = arith.constant 6 : index
    %c0_59 = arith.constant 0 : index
    %c0_60 = arith.constant 0 : index
    %66 = vector.load %arg4[%c0_57, %c0_58, %c6, %c0_59, %c0_60] : memref<1x1x8x8x256xbf16, #tpu.memory_space<vmem>>, vector<1x1x1x8x256xbf16>
    %67 = vector.shape_cast %66 : vector<1x1x1x8x256xbf16> to vector<8x256xbf16>
    %68 = arith.extf %67 : vector<8x256xbf16> to vector<8x256xf32>
    %69 = arith.subf %68, %5 : vector<8x256xf32>
    %70 = arith.mulf %69, %69 : vector<8x256xf32>
    %cst_61 = arith.constant dense<0.000000e+00> : vector<256xf32>
    %71 = vector.multi_reduction <add>, %70, %cst_61 [0] : vector<8x256xf32> to vector<256xf32>
    %72 = vector.shape_cast %71 : vector<256xf32> to vector<1x256xf32>
    %c6_62 = arith.constant 6 : index
    %c0_63 = arith.constant 0 : index
    %73 = vector.load %arg7[%c6_62, %c0_63] : memref<8x256xf32, #tpu.memory_space<vmem>>, vector<1x256xf32>
    %74 = arith.addf %73, %72 : vector<1x256xf32>
    %c6_64 = arith.constant 6 : index
    %c0_65 = arith.constant 0 : index
    %75 = vector.load %arg7[%c6_64, %c0_65] : memref<8x256xf32, #tpu.memory_space<vmem>>, vector<1x256xf32>
    tpu.vector_store %arg7[%c6_64, %c0_65], %74 {strides = array<i32>} : memref<8x256xf32, #tpu.memory_space<vmem>>, vector<1x256xf32>,
    %c0_66 = arith.constant 0 : index
    %c0_67 = arith.constant 0 : index
    %c7 = arith.constant 7 : index
    %c0_68 = arith.constant 0 : index
    %c0_69 = arith.constant 0 : index
    %76 = vector.load %arg4[%c0_66, %c0_67, %c7, %c0_68, %c0_69] : memref<1x1x8x8x256xbf16, #tpu.memory_space<vmem>>, vector<1x1x1x8x256xbf16>
    %77 = vector.shape_cast %76 : vector<1x1x1x8x256xbf16> to vector<8x256xbf16>
    %78 = arith.extf %77 : vector<8x256xbf16> to vector<8x256xf32>
    %79 = arith.subf %78, %5 : vector<8x256xf32>
    %80 = arith.mulf %79, %79 : vector<8x256xf32>
    %cst_70 = arith.constant dense<0.000000e+00> : vector<256xf32>
    %81 = vector.multi_reduction <add>, %80, %cst_70 [0] : vector<8x256xf32> to vector<256xf32>
    %82 = vector.shape_cast %81 : vector<256xf32> to vector<1x256xf32>
    %c7_71 = arith.constant 7 : index
    %c0_72 = arith.constant 0 : index
    %83 = vector.load %arg7[%c7_71, %c0_72] : memref<8x256xf32, #tpu.memory_space<vmem>>, vector<1x256xf32>
    %84 = arith.addf %83, %82 : vector<1x256xf32>
    %c7_73 = arith.constant 7 : index
    %c0_74 = arith.constant 0 : index
    %85 = vector.load %arg7[%c7_73, %c0_74] : memref<8x256xf32, #tpu.memory_space<vmem>>, vector<1x256xf32>
    tpu.vector_store %arg7[%c7_73, %c0_74], %84 {strides = array<i32>} : memref<8x256xf32, #tpu.memory_space<vmem>>, vector<1x256xf32>,
    %c1_i32 = arith.constant 1 : i32
    %86 = arith.cmpi eq, %arg2, %c1_i32 : i32
    %87 = arith.extui %86 : i1 to i32
    %c0_i32_75 = arith.constant 0 : i32
    %88 = arith.cmpi ne, %87, %c0_i32_75 : i32
    scf.if %88 {
      %c0_76 = arith.constant 0 : index
      %c0_77 = arith.constant 0 : index
      %89 = vector.load %arg7[%c0_76, %c0_77] : memref<8x256xf32, #tpu.memory_space<vmem>>, vector<8x256xf32>
      %cst_78 = arith.constant 5.000000e-01 : f32
      %90 = vector.broadcast %cst_78 : f32 to vector<8x256xf32>
      %91 = arith.mulf %89, %90 : vector<8x256xf32>
      %cst_79 = arith.constant 0.000000e+00 : f32
      %92 = vector.broadcast %cst_79 : f32 to vector<8x256xf32>
      %93 = arith.subf %92, %91 : vector<8x256xf32>
      %cst_80 = arith.constant dense<0xFF800000> : vector<256xf32>
      %94 = vector.multi_reduction <maximumf>, %93, %cst_80 [0] : vector<8x256xf32> to vector<256xf32>
      %95 = vector.shape_cast %94 : vector<256xf32> to vector<1x256xf32>
      %96 = vector.broadcast %95 : vector<1x256xf32> to vector<8x256xf32>
      %97 = arith.subf %93, %96 : vector<8x256xf32>
      %98 = math.exp %97 : vector<8x256xf32>
      %cst_81 = arith.constant dense<0.000000e+00> : vector<256xf32>
      %99 = vector.multi_reduction <add>, %98, %cst_81 [0] : vector<8x256xf32> to vector<256xf32>
      %100 = vector.shape_cast %99 : vector<256xf32> to vector<1x256xf32>
      %101 = tpu.reciprocal %100 {approx = true} : vector<1x256xf32> -> vector<1x256xf32>
      %102 = vector.broadcast %101 : vector<1x256xf32> to vector<8x256xf32>
      %103 = arith.mulf %98, %102 : vector<8x256xf32>
      %c0_82 = arith.constant 0 : index
      %c0_83 = arith.constant 0 : index
      %c0_84 = arith.constant 0 : index
      %104 = vector.load %arg5[%c0_82, %c0_83, %c0_84] : memref<1x8x256xf32, #tpu.memory_space<vmem>>, vector<1x8x256xf32>
      %105 = vector.shape_cast %104 : vector<1x8x256xf32> to vector<8x256xf32>
      %106 = arith.mulf %103, %105 : vector<8x256xf32>
      %cst_85 = arith.constant dense<0.000000e+00> : vector<256xf32>
      %107 = vector.multi_reduction <add>, %106, %cst_85 [0] : vector<8x256xf32> to vector<256xf32>
      %108 = vector.shape_cast %107 : vector<256xf32> to vector<1x256xf32>
      %c0_86 = arith.constant 0 : index
      %c0_87 = arith.constant 0 : index
      %c0_88 = arith.constant 0 : index
      %109 = vector.load %arg6[%c0_86, %c0_87, %c0_88] : memref<1x1x256xf32, #tpu.memory_space<vmem>>, vector<1x1x256xf32>
      %110 = vector.shape_cast %109 : vector<1x1x256xf32> to vector<1x256xf32>
      %111 = vector.shape_cast %108 : vector<1x256xf32> to vector<1x1x256xf32>
      tpu.vector_store %arg6[%c0_86, %c0_87, %c0_88], %111 {strides = array<i32>} : memref<1x1x256xf32, #tpu.memory_space<vmem>>, vector<1x1x256xf32>,
    } else {
    }
    return
  }
  func.func @transform_0(%arg0: i32, %arg1: i32, %arg2: i32) -> (i32, i32, i32) {
    %c0_i32 = arith.constant 0 : i32
    %c0_i32_0 = arith.constant 0 : i32
    return %arg0, %c0_i32, %arg1 : i32, i32, i32
  }
  func.func @transform_1(%arg0: i32, %arg1: i32, %arg2: i32) -> (i32, i32, i32, i32, i32) {
    %c0_i32 = arith.constant 0 : i32
    %c0_i32_0 = arith.constant 0 : i32
    %c0_i32_1 = arith.constant 0 : i32
    return %arg0, %arg2, %c0_i32, %c0_i32_0, %arg1 : i32, i32, i32, i32, i32
  }
  func.func @transform_2(%arg0: i32, %arg1: i32, %arg2: i32) -> (i32, i32, i32) {
    %c0_i32 = arith.constant 0 : i32
    %c0_i32_0 = arith.constant 0 : i32
    return %arg0, %c0_i32, %arg1 : i32, i32, i32
  }
  func.func @transform_3(%arg0: i32, %arg1: i32, %arg2: i32) -> (i32, i32, i32) {
    %c0_i32 = arith.constant 0 : i32
    %c0_i32_0 = arith.constant 0 : i32
    return %arg0, %c0_i32, %arg1 : i32, i32, i32
  }
}

</mosaic_0001>

<bundles_post_ra>
// kernel: mono_mvsnet_forward.14
= control target key start
LH: loop header
LB: loop body
LE: loop exit
PB: predicated region body
PF: predicated region fallthrough
CT: control target
= control target key end

     0   :  { %s479_s12 = smov 0   ;;  %s481_s13 = smov 0   ;;  %s522_s0 = inlined_call_operand.vmem [shape: bf16[8,27], index: 0, kind: input, shape index: {}]   ;;  %s523_s1 = inlined_call_operand.vmem [shape: f32[8,1], index: 1, kind: input, shape index: {}]   ;;  %s524_s2 = inlined_call_operand.vmem [shape: bf16[6,27,256], index: 2, kind: input, shape index: {}]   ;;  %s525_s3 = inlined_call_operand.vmem [shape: f32[6,8,256], index: 3, kind: output, shape index: {}]  }
   0x1   :  { %s483_s14 = smov 0  }
   0x2 LB: > { %s25_s15 = sadd.s32 1, %s451_s13  ;;  %p375_p0 = scmp.ge.s32.totalorder %s455_s14, 1  ;;  %s455_s14 = sphi %s483_s14, %s13_s14   ;;  %s451_s13 = sphi %s481_s13, %s527_s13   ;;  %s447_s12 = sphi %s479_s12, %s526_s12  }
   0x3   : > { %p27_p1 = scmp.ge.s32.totalorder %s25_s15, 6  ;;  %p158_p2 = scmp.lt.s32.totalorder %s455_s14, 7 }
   0x5   : > { %s529_s15 = smov (%p27_p1, %s25_s15), 0  ;;  %p159_p3 = pnand %p375_p0, %p158_p2 }
   0x6   : > { %p191_p4 = scmp.lt.s32.totalorder (!%p159_p3), %s447_s12, 5 }
   0x7   : > { %162 = sbr.rel (%p159_p3) target bundleno = 162 (0xa2), region = 32 }
   0xc   : > { %vm244_vm0 = vcmask 1044480   ;;  %v216_v0 = vld [vmem:[%s523_s1] sm:$0xff]  ;;  %s531_s12 = smov (!%p191_p4, %s447_s12), 5  ;;  %vm245_vm1 = vcmask 1045504   ;;  %v457_v1 = vmov 65535   ;;  %v458_v3 = vmov 0  }
   0xd   : > { %v246_v2 = vsel %vm244_vm0, 4294967295, %v457_v1  ;;  %432 = vset.pattern.permute.xlu0 %v458_v3  ;;  %s400_s18 = sshll.u32 %s531_s12, 5  ;;  %v211_v19 = vld [vmem:[%s522_s0] sm:$0xf]  ;;  %vm240_vm2 = vcmask 220160   ;;  %s401_s24 = sshll.u32 %s531_s12, 4 }
   0xe   : > { %219 = vperm.xlu0 %432, %v216_v0   ;;  %s198_s21 = scalar_lea.vmem %s524_s2, %s400_s18  ;;  %v247_v4 = vsel %vm245_vm1, %v246_v2, 0  ;;  %s208_s27 = scalar_lea.vmem %s525_s3, %s401_s24 }
   0xf   : > { %v390_v5 = vld [vmem:[%s198_s21 + $0x10] sm:$0xf]  ;;  %v405_v6 = vld [vmem:[%s198_s21 + $0x14] sm:$0x30]  ;;  %v404_v7 = vld [vmem:[%s198_s21 + $0x14] sm:$0xf] }
  0x10   : > { %v391_v8 = vor.u32 %v405_v6, %v390_v5  ;;  %v392_v9 = vld [vmem:[%s198_s21 + $0x18] sm:$0x30]  ;;  %v382_v11 = vld [vmem:[%s198_s21] sm:$0xf]  ;;  %v403_v12 = vld [vmem:[%s198_s21 + $0x4] sm:$0xf0] }
  0x11   : > { %v395_v10 = vor.u32 %v404_v7, %v392_v9  ;;  %v402_v14 = vld [vmem:[%s198_s21 + $0x4] sm:$0xf]  ;;  %v384_v15 = vld [vmem:[%s198_s21 + $0x8] sm:$0xf0]  ;;  %v383_v17 = vor.u32 %v403_v12, %v382_v11 }
  0x12   : > { %v249_v13 = vand.u32 %v391_v8, %v247_v4  ;;  %v387_v18 = vor.u32 %v402_v14, %v384_v15 }
  0x13   : > { %v252_v16 = vand.u32 %v395_v10, %v247_v4 }
  0x14   : > { %260 = vmatpush.bf16.msra.mxu0 %v249_v13 }
  0x15   : > { %273 = vmatpush.bf16.msra.mxu1 %v252_v16 }
  0x18   : > { %261 = vmatpush.bf16.msra.mxu0 %v383_v17 }
  0x19   : > { %274 = vmatpush.bf16.msra.mxu1 %v387_v18 }
  0x1b   : > { %396 = vmatmul.msk.bf16.vlgmr.msra.gmra.mxu0 %vm240_vm2, %v211_v19 }
  0x1c   : > { %397 = vmatmul.msk.bf16.vlgmr.msra.gmra.mxu1 %vm240_vm2, %v211_v19 }
  0x80   : > { %v220_v20 = vpop.permute.xlu0 %219 }
  0x98   : > { %v263_v21 = vpop.f32.mrf.mxu0 }
  0x99   : > { %v264_v22 = vadd.f32 %v263_v21, %v220_v20  ;;  %v276_v23 = vpop.f32.mrf.mxu1 }
  0x9a   : > { %v277_v24 = vadd.f32 %v276_v23, %v220_v20 }
  0x9b   : > { %v280_v25 = vmax.f32 %v264_v22, 0.0 }
  0x9c   : > { %v281_v26 = vmax.f32 %v277_v24, 0.0 }
  0x9d   : > { %282 = vst [vmem:[%s208_s27] sm:$0xff] %v280_v25 }
  0x9e   : > { %283 = vst [vmem:[%s208_s27 + $0x8] sm:$0xff] %v281_v26 }
  0xa0   : > { %v265_v27 = vpop.f32.mrf.mxu0 }
  0xa1   : > { %v278_v28 = vpop.f32.mrf.mxu1 }
  0xa2 PF: > { %s13_s14 = sadd.s32 1, %s455_s14   ;;  %s526_s12 = smov %s451_s13 }
  0xa3   : > { %p10_p5 = scmp.ge.s32.totalorder %s13_s14, 8   ;;  %s527_s13 = smov %s529_s15 }
  0xa5   :  { %12 = sbr.rel (!%p10_p5) target bundleno = 2 (0x2), region = 62 }

// kernel: mono_mvsnet_forward.15
= control target key start
LH: loop header
LB: loop body
LE: loop exit
PB: predicated region body
PF: predicated region fallthrough
CT: control target
= control target key end

     0   :  { %s477_s12 = smov 0   ;;  %s479_s13 = smov 0   ;;  %s519_s0 = inlined_call_operand.vmem [shape: bf16[16,72], index: 0, kind: input, shape index: {}]   ;;  %s520_s1 = inlined_call_operand.vmem [shape: f32[16,1], index: 1, kind: input, shape index: {}]   ;;  %s521_s2 = inlined_call_operand.vmem [shape: bf16[6,72,64], index: 2, kind: input, shape index: {}]   ;;  %s522_s3 = inlined_call_operand.vmem [shape: f32[6,16,64], index: 3, kind: output, shape index: {}]  }
   0x1   :  { %s481_s14 = smov 0  }
   0x2 LB: > { %s25_s15 = sadd.s32 1, %s450_s13  ;;  %p372_p0 = scmp.ge.s32.totalorder %s454_s14, 1  ;;  %s454_s14 = sphi %s481_s14, %s13_s14   ;;  %s450_s13 = sphi %s479_s13, %s524_s13   ;;  %s446_s12 = sphi %s477_s12, %s523_s12  }
   0x3   : > { %p27_p1 = scmp.ge.s32.totalorder %s25_s15, 6  ;;  %p156_p2 = scmp.lt.s32.totalorder %s454_s14, 7 }
   0x5   : > { %s526_s15 = smov (%p27_p1, %s25_s15), 0  ;;  %p157_p3 = pnand %p372_p0, %p156_p2 }
   0x6   : > { %p186_p4 = scmp.lt.s32.totalorder (!%p157_p3), %s446_s12, 5 }
   0x7   : > { %160 = sbr.rel (%p157_p3) target bundleno = 180 (0xb4), region = 32 }
   0xc   : > { %v214_v0 = vld [vmem:[%s520_s1] sm:$0xff]  ;;  %v456_v1 = vmov 0   ;;  %s528_s12 = smov (!%p186_p4, %s446_s12), 5  ;;  %v215_v3 = vld [vmem:[%s520_s1 + $0x8] sm:$0xff]  ;;  %vm262_vm0 = vcmask 1043456   ;;  %vm258_vm1 = vcmask 588800  }
   0xd   : > { %431 = vset.pattern.permute.xlu0 %v456_v1  ;;  %s405_s18 = smul.u32 36, %s528_s12  ;;  %v400_v11 = vld [vmem:[%s519_s0] sm:$0xff]  ;;  %s399_s26 = sshll.u32 %s528_s12, 4  ;;  %vm282_vm2 = vcmask 523264  }
   0xe   : > { %218 = vperm.xlu0 %431, %v214_v0   ;;  %s201_s29 = scalar_lea.vmem %s522_s3, %s399_s26 }
   0xf   : > { %s193_s21 = scalar_lea.vmem %s521_s2, %s405_s18 }
  0x10   : > { %v213_v2 = vld [vmem:[%s193_s21 + $0x20] sm:$0xf]  ;;  %v404_v7 = vld [vmem:[%s193_s21 + $0x18] sm:$0xff]  ;;  %v403_v8 = vld [vmem:[%s193_s21 + $0x10] sm:$0xff] }
  0x11   : > { %v248_v4 = vunpack.c.l.b16 %v213_v2  ;;  %v402_v9 = vld [vmem:[%s193_s21 + $0x8] sm:$0xff]  ;;  %v401_v10 = vld [vmem:[%s193_s21] sm:$0xff] }
  0x13   : > { %v253_v5 = vpack.c.b16 %v248_v4, %v248_v4 }
  0x15   : > { %v264_v6 = vsel %vm262_vm0, %v253_v5, 0 }
  0x16   : > { %223 = vperm.xlu0 %431, %v215_v3   ;;  %269 = vmatpush.bf16.msra.mxu0 %v264_v6 }
  0x1a   : > { %270 = vmatpush.bf16.msra.mxu0 %v404_v7 }
  0x1e   : > { %271 = vmatpush.bf16.msra.mxu0 %v403_v8 }
  0x22   : > { %272 = vmatpush.bf16.msra.mxu0 %v402_v9 }
  0x26   : > { %273 = vmatpush.bf16.msra.mxu0 %v401_v10 }
  0x29   : > { %396 = vmatmul.msk.bf16.vlgmr.msra.gmra.mxu0 %vm258_vm1, %v400_v11 }
  0x80   : > { %v219_v12 = vpop.permute.xlu0 %218 }
  0x88   : > { %v224_v16 = vpop.permute.xlu0 %223 }
  0xa6   : > { %v275_v13 = vpop.f32.mrf.mxu0 }
  0xa7   : > { %v276_v14 = vadd.f32 %v275_v13, %v219_v12 }
  0xa9   : > { %v280_v15 = vmax.f32 %v276_v14, 0.0 }
  0xab   : > { %283 = vst.msk [vmem:[%s201_s29] sm:$0xff] %vm282_vm2, %v280_v15 }
  0xae   : > { %v277_v17 = vpop.f32.mrf.mxu0 }
  0xaf   : > { %v278_v18 = vadd.f32 %v277_v17, %v224_v16 }
  0xb1   : > { %v281_v19 = vmax.f32 %v278_v18, 0.0 }
  0xb3   : > { %284 = vst.msk [vmem:[%s201_s29 + $0x8] sm:$0xff] %vm282_vm2, %v281_v19 }
  0xb4 PF: > { %s13_s14 = sadd.s32 1, %s454_s14   ;;  %s523_s12 = smov %s450_s13 }
  0xb5   : > { %p10_p5 = scmp.ge.s32.totalorder %s13_s14, 8   ;;  %s524_s13 = smov %s526_s15 }
  0xb7   :  { %12 = sbr.rel (!%p10_p5) target bundleno = 2 (0x2), region = 62 }

// kernel: custom-call.129
= control target key start
LH: loop header
LB: loop body
LE: loop exit
PB: predicated region body
PF: predicated region fallthrough
CT: control target
= control target key end

     0   :  { %5 = vsyncpa [#allocation2], 0  ;;  %s939_s0 = inlined_call_operand.hbm [shape: f32[2,4,4], index: 0, kind: input, shape index: {}]   ;;  %s940_s1 = inlined_call_operand.vmem [shape: f32[2,4,4], index: 1, kind: output, shape index: {0}]   ;;  %s941_s2 = inlined_call_operand.hbm [shape: s32[2,4], index: 2, kind: output, shape index: {1}]   ;;  %s942_s3 = inlined_call_operand.vmem [shape: s32[2,4], index: 3, kind: output, shape index: {2}]  }
   0x1   :  { %7 = vsyncpa [#allocation2 + $0x1], 0 }
   0x2   :  { %8 = vsyncpa [#allocation3], 0 }
   0x3   :  { %10 = vsyncpa [#allocation3 + $0x1], 0  ;;  %s754_s12 = smov 0   ;;  %s756_s13 = smov 0  }
   0x4   :  { %s758_s14 = smov 0   ;;  %s760_s15 = smov 0  }
   0x5 LB: > { %s775_s16 = sadd.s32 4294967295, %s727_s15   ;;  %s557_s17 = sadd.s32 4294967294, %s727_s15   ;;  %s727_s15 = sphi %s760_s15, %s948_s15   ;;  %s723_s14 = sphi %s758_s14, %s947_s14   ;;  %s719_s13 = sphi %s756_s13, %s946_s13   ;;  %s715_s12 = sphi %s754_s12, %s945_s12  }
   0x6   : > { %s779_s18 = sadd.s32 1, %s727_s15   ;;  %s20_s19 = sshrl.u32 %s727_s15, 3 }
   0x7   : > { %s21_s20 = sshrl.u32 %s779_s18, 3  ;;  %s25_s21 = sadd.s32 1, %s723_s14 }
   0x8   : > { %s22_s22 = ssub.s32 %s20_s19, %s21_s20  ;;  %p35_p0 = scmp.ne.s32.totalorder %s723_s14, %s719_s13 }
   0x9   : > { %p23_p1 = scmp.eq.s32.totalorder %s22_s22, 0  ;;  %p36_p2 = scmp.eq.s32.totalorder %s775_s16, 1 }
   0xa   : > { %p41_p3 = scmp.ne.s32.totalorder %s719_s13, %s715_s12  ;;  %p42_p4 = scmp.eq.s32.totalorder %s557_s17, 1 }
   0xb   : > { %s790_s23 = scalar_select %p23_p1, %s723_s14, %s25_s21  }
   0xc   : > { %p792_p5 = por %p36_p2, %p35_p0  ;;  %p796_p6 = por %p42_p4, %p41_p3 }
   0xd   : > { %p559_p7 = scmp.ge.s32.totalorder %s727_s15, 2  ;;  %p586_p8 = scmp.lt.s32.totalorder %s727_s15, 2 }
   0xe   : > { %s87_s26 = sand.u32 1, %s727_s15   ;;  %s561_s27 = sshll.u32 %s727_s15, 2 }
   0xf   : > { %s560_s28 = sshll.u32 %s87_s26, 2  ;;  %s95_s4 = scalar_lea.hbm %s939_s0, %s561_s27 }
  0x10   : > { %s97_s5 = sshll.u32 %s95_s4, 4  ;;  %s91_s6 = scalar_lea.vmem [#allocation1], %s560_s28  ;;  %s98_s5 = int_to_ptr.hbm [resolvable:$true] %s97_s5 }
  0x11   : > { %s99_s7 = sshll.u32 %s91_s6, 4  ;;  %s88_s8 = scalar_lea.sflag [#allocation2], %s87_s26  ;;  %s100_s7 = int_to_ptr.vmem [resolvable:$true] %s99_s7 }
  0x12   : > { %s631_s9 = sshra.s32 %s98_s5, 4  ;;  %s637_s19 = scalar_lea.hbm %s939_s0, 8  ;;  %s632_s9 = int_to_ptr.hbm [resolvable:$true] %s631_s9 }
  0x13   : > { %s633_s10 = scalar_lea.hbm %s632_s9, 4  ;;  %p638_p12 = scmp.lt.s32.totalorder %s632_s9, %s939_s0 }
  0x14   : > { %p634_p9 = scmp.ne.s32.totalorder %s632_s9, %s633_s10  ;;  %p639_p13 = scmp.lt.s32.totalorder %s637_s19, %s633_s10 }
  0x16   : > { %p635_p10 = pnand %p634_p9, %p586_p8  ;;  %p640_p0 = por %p639_p13, %p638_p12 }
  0x18   : > { %p636_p11 = pneg %p635_p10 }
  0x1a   : > { %p641_p1 = pnand %p640_p0, %p636_p11 }
  0x1c   : > { %644 = shalt.err (!%p641_p1)
}
  0x1d   : > { %579 = dma.hbm_to_vmem [thread:$0]  (%p586_p8), %s98_s5, 64, %s100_s7, %s88_s8  }
  0x1e   : > { %p562_p2 = scmp.ge.s32.totalorder %s727_s15, 1  ;;  %p104_p3 = scmp.lt.s32.totalorder %s727_s15, 3 }
  0x20   : > { %p105_p4 = pnand %p562_p2, %p104_p3 }
  0x22   : > { %108 = sbr.rel (%p105_p4) target bundleno = 498 (0x1f2), region = 20 }
  0x27   : > { %s110_s22 = sand.u32 1, %s775_s16  }
  0x28   : > { %s111_s26 = scalar_lea.sflag [#allocation2], %s110_s22 }
  0x29   : > { %707 = dma.done.wait %s111_s26, 64  }
  0x2a   : > { %708 = vsyncadd %s111_s26, 4294967232  ;;  %s820_s27 = sshll.u32 %s110_s22, 2  ;;  %s147_s28 = sand.u32 7, %s775_s16   ;;  %v152_v0 = vlaneseq  ;;  %v733_v2 = vmov 0  }
  0x2b   : > { %s826_s29 = scalar_lea.vmem [#allocation6], %s147_s28  ;;  %s130_s30 = sand.u32 1, %s719_s13  }
  0x2c   : > { %v824_v1 = vshrl.u32 %v152_v0, 7  ;;  %151 = vst [vmem:[%s826_s29] sm:$0x1] %v733_v2  ;;  %s833_s4 = sshll.u32 %s130_s30, 1  ;;  %s121_s5 = scalar_lea.vmem [#allocation1], %s820_s27 }
  0x2d   : > { %v141_v3 = vld [vmem:[%s121_s5] sm:$0xf]  ;;  %s125_s6 = scalar_lea.vmem [#allocation5], %s820_s27  ;;  %s132_s7 = scalar_lea.vmem [#allocation7], %s833_s4 }
  0x2e   : > { %156 = vst [vmem:[#allocation10] sm:$0xff] %v824_v1  ;;  %s138_s8 = scalar_lea.vmem [#allocation9], %s833_s4  ;;  %s839_s9 = scalar_lea.vmem [#allocation8], %s147_s28 }
  0x2f   : > { %142 = vst [vmem:[#allocation0] sm:$0xf] %v141_v3  ;;  %s841_s10 = smov 0  }
  0x36   : > { %v145_v4 = vld [vmem:[#allocation0] sm:$0xff] }
  0x37   : > { %146 = vst [vmem:[#allocation4] sm:$0xff] %v145_v4 }
  0x38 LB: >> { %vm172_vm0 = vcmp.lt.s32.totalorder %v824_v1, 4  ;;  %v848_v7 = vstv %s731_s10  ;;  %s213_s11 = ssub.s32 128, %s731_s10  ;;  %v219_v38 = vand.u32 127, %v152_v0  ;;  %s225_s17 = scalar_lea.vmem [#allocation4], %s731_s10  ;;  %v222_v41 = vld [vmem:[%s826_s29] ss:$0 sm:$0xff]  ;;  %s731_s10 = sphi %s841_s10, %s162_s10  }
  0x39   : >> { %vm171_vm1 = vcmp.ge.s32.totalorder %v824_v1, %v848_v7  ;;  %s231_s21 = scalar_lea.vmem [#allocation10], %s731_s10  ;;  %vm251_vm14 = vcmp.gt.s32.totalorder %v824_v1, %v848_v7  ;;  %s162_s10 = sadd.s32 1, %s731_s10  }
  0x3a   : >> { %vm173_vm3 = vmand %vm171_vm1, %vm172_vm0  ;;  %vm220_vm12 = vcmp.eq.s32.totalorder %v219_v38, %v848_v7  ;;  %v233_v43 = vld [vmem:[%s231_s21] ss:$0 sm:$0xff]  ;;  %p159_p8 = scmp.ge.s32.totalorder %s162_s10, 4  }
  0x3b   : > { %s393_s26 = sshrl.u32 (%p159_p8), %s775_s16, 3  ;;  %s399_s10 = sshll.u32 (%p159_p8), %s132_s7, 4  ;;  %s400_s10 = int_to_ptr.vmem [resolvable:$true] %s399_s10 }
  0x3c   : > { %s880_s28 = sshll.u32 (%p159_p8), %s393_s26, 1  ;;  %s347_s26 = scalar_lea.sflag (%p159_p8), [#allocation3], %s130_s30 }
  0x3e   : >> { %v167_v5 = vld [vmem:[#allocation4] sm:$0xff]  ;;  %v227_v39 = vld [vmem:[%s225_s17] ss:$0 sm:$0xff] }
  0x3f   : >> { %v168_v6 = vand.u32 2147483647, %v167_v5 }
  0x41   : >> { %vm567_vm2 = vcmp.gt.f32.partialorder %v168_v6, -inf }
  0x42   : >> { %vm175_vm4 = vmand %vm173_vm3, %vm567_vm2 }
  0x43   : >> { %v176_v8 = vsel %vm175_vm4, %v824_v1, %v848_v7  ;;  %v177_v9 = vsel %vm175_vm4, %v168_v6, -inf  ;;  %vm268_vm4 = vmand %vm251_vm14, %vm220_vm12 }
  0x44   : >> { %v178_v10 = vrot.slane %v177_v9, 1  ;;  %v179_v11 = vrot.slane %v176_v8, 1 }
  0x46   : >> { %vm180_vm5 = vcmp.ge.f32.partialorder %v178_v10, %v177_v9  ;;  %v183_v12 = vrot.slane %v178_v10, 1  ;;  %v184_v13 = vrot.slane %v179_v11, 1 }
  0x47   : >> { %v181_v14 = vsel %vm180_vm5, %v178_v10, %v177_v9  ;;  %v182_v15 = vsel %vm180_vm5, %v179_v11, %v176_v8  ;;  %vm243_vm5 = vcmp.gt.s32.totalorder %v219_v38, %v848_v7 }
  0x48   : >> { %vm185_vm6 = vcmp.ge.f32.partialorder %v183_v12, %v181_v14  ;;  %v188_v16 = vrot.slane %v183_v12, 1  ;;  %v189_v17 = vrot.slane %v184_v13, 1 }
  0x49   : >> { %v186_v18 = vsel %vm185_vm6, %v183_v12, %v181_v14  ;;  %v187_v19 = vsel %vm185_vm6, %v184_v13, %v182_v15 }
  0x4a   : >> { %vm190_vm7 = vcmp.ge.f32.partialorder %v188_v16, %v186_v18  ;;  %v193_v20 = vrot.slane %v188_v16, 1  ;;  %v194_v21 = vrot.slane %v189_v17, 1 }
  0x4b   : >> { %v191_v22 = vsel %vm190_vm7, %v188_v16, %v186_v18  ;;  %v192_v23 = vsel %vm190_vm7, %v189_v17, %v187_v19 }
  0x4c   : >> { %vm195_vm8 = vcmp.ge.f32.partialorder %v193_v20, %v191_v22  ;;  %v198_v24 = vrot.slane %v193_v20, 1  ;;  %v199_v25 = vrot.slane %v194_v21, 1 }
  0x4d   : >> { %v196_v26 = vsel %vm195_vm8, %v193_v20, %v191_v22  ;;  %v197_v27 = vsel %vm195_vm8, %v194_v21, %v192_v23 }
  0x4e   : >> { %vm200_vm9 = vcmp.ge.f32.partialorder %v198_v24, %v196_v26  ;;  %v203_v28 = vrot.slane %v198_v24, 1  ;;  %v204_v29 = vrot.slane %v199_v25, 1 }
  0x4f   : >> { %v201_v30 = vsel %vm200_vm9, %v198_v24, %v196_v26  ;;  %v202_v31 = vsel %vm200_vm9, %v199_v25, %v197_v27 }
  0x50   : >> { %vm205_vm10 = vcmp.ge.f32.partialorder %v203_v28, %v201_v30  ;;  %v208_v32 = vrot.slane %v203_v28, 1  ;;  %v209_v33 = vrot.slane %v204_v29, 1 }
  0x51   : >> { %v206_v34 = vsel %vm205_vm10, %v203_v28, %v201_v30  ;;  %v207_v35 = vsel %vm205_vm10, %v204_v29, %v202_v31 }
  0x52   : >> { %vm210_vm11 = vcmp.ge.f32.partialorder %v208_v32, %v206_v34 }
  0x53   : >> { %v212_v36 = vsel %vm210_vm11, %v209_v33, %v207_v35 }
  0x54   : >> { %214 = vrot.lane.b32.xlu0 %v212_v36, %s213_s11 }
  0xc6   : >> { %v215_v37 = vpop.permute.xlu0 %214 }
  0xc7   : >> { %576 = vpush %v215_v37 }
  0xf8   : >> { %s577_s19 = spop %576 }
  0xf9   : >> { %v221_v40 = vstv %s577_s19  ;;  %s226_s20 = scalar_lea.vmem [#allocation4], %s577_s19  ;;  %s232_s22 = scalar_lea.vmem [#allocation10], %s577_s19 }
  0xfa   : >> { %v228_v42 = vld [vmem:[%s226_s20] ss:$0 sm:$0xff]  ;;  %v223_v45 = vsel %vm220_vm12, %v221_v40, %v222_v41 }
  0xfb   : >> { %v234_v44 = vld [vmem:[%s232_s22] ss:$0 sm:$0xff]  ;;  %229 = vst [vmem:[%s226_s20] sm:$0x1] %v227_v39  ;;  %vm237_vm13 = vcmp.ne.f32.partialorder %v228_v42, 0.0  ;;  %v244_v61 = vsel %vm243_vm5, %v228_v42, 0.0 }
  0xfc   : >> { %230 = vst [vmem:[%s225_s17] sm:$0x1] %v228_v42  ;;  %vm238_vm15 = vmand %vm220_vm12, %vm237_vm13  ;;  %s397_s17 = scalar_lea.hbm (%p159_p8), %s941_s2, %s880_s28 }
  0xfd   : >> { %235 = vst [vmem:[%s232_s22] sm:$0x1] %v233_v43  ;;  %v239_v46 = vsel %vm238_vm15, %v228_v42, 1.0  ;;  %s401_s19 = sshll.u32 (%p159_p8), %s397_s17, 4  ;;  %s402_s19 = int_to_ptr.hbm [resolvable:$true] %s401_s19 }
  0xfe   : >> { %236 = vst [vmem:[%s231_s21] sm:$0x1] %v234_v44  ;;  %v252_v47 = vsel %vm251_vm14, %v239_v46, 1.0  ;;  %s673_s5 = sshra.s32 (%p159_p8), %s402_s19, 4  ;;  %s674_s5 = int_to_ptr.hbm [resolvable:$true] %s673_s5 }
  0xff   : >> { %629 = vrcp.f32 %v252_v47  ;;  %224 = vst [vmem:[%s826_s29] sm:$0x1] %v223_v45  ;;  %v264_v51 = vand.u32 2147483648, %v252_v47  ;;  %v262_v53 = vand.u32 2147483647, %v252_v47  ;;  %vm258_vm1 = vweird.f32 %v252_v47  ;;  %s571_s29 = sshll.u32 (%p159_p8), %s775_s16, 2  ;;  %s675_s16 = scalar_lea.hbm (%p159_p8), %s674_s5, 2 }
 0x100   : > { %s356_s22 = scalar_lea.vmem (%p159_p8), %s940_s1, %s571_s29  ;;  %p676_p9 = scmp.ne.s32.totalorder (%p159_p8), %s674_s5, %s675_s16 }
 0x101   : >> { %v265_v55 = vor.u32 1.1754944e-38, %v264_v51  ;;  %vm263_vm3 = vcmp.eq.f32.partialorder %v262_v53, 8.507059e+37  ;;  %s679_s29 = scalar_lea.hbm (%p159_p8), %s941_s2, 2  ;;  %p680_p12 = scmp.lt.s32.totalorder (%p159_p8), %s674_s5, %s941_s2 }
 0x102   : > { %p677_p10 = pnand (%p159_p8), %p676_p9, %p792_p5  ;;  %p681_p13 = scmp.lt.s32.totalorder (%p159_p8), %s679_s29, %s675_s16 }
 0x103   : >> { %v248_v57 = vld [vmem:[#allocation4] sm:$0xff] }
 0x104   : > { %p678_p11 = pneg (%p159_p8), %p677_p10  ;;  %p682_p0 = por (%p159_p8), %p681_p13, %p680_p12 }
 0x105   : >> { %v630_v48 = vpop.eup %629  ;;  %v275_v3 = vld [vmem:[#allocation10] sm:$0xff] (%p159_p8) }
 0x106   : >> { %v254_v49 = vmul.f32 %v630_v48, %v252_v47  ;;  %vm259_vm0 = vweird.f32 %v630_v48  ;;  %v332_v0 = vld [vmem:[#allocation6] sm:$0x3] (%p159_p8)  ;;  %p683_p1 = pnand (%p159_p8), %p682_p0, %p678_p11 }
 0x107   : >> { %vm260_vm2 = vmor %vm258_vm1, %vm259_vm0  ;;  %335 = vst [vmem:[%s132_s7] sm:$0x3] (%p159_p8), %v332_v0 }
 0x108   : >> { %v255_v50 = vsub.f32 1.0, %v254_v49 }
 0x10a   : >> { %v256_v52 = vmul.f32 %v630_v48, %v255_v50 }
 0x10c   : >> { %v257_v54 = vadd.f32 %v630_v48, %v256_v52 }
 0x10e   : >> { %v261_v56 = vsel %vm260_vm2, %v630_v48, %v257_v54 }
 0x10f   : >> { %v266_v58 = vsel %vm263_vm3, %v265_v55, %v261_v56 }
 0x110   : >> { %v267_v59 = vmul.f32 %v266_v58, %v248_v57 }
 0x112   : >> { %v269_v60 = vsel %vm268_vm4, %v267_v59, 0.0 }
 0x113   : >> { %270 = vadd.xlane.f32.xlu0 %v269_v60 }
 0x13c   : > { %291 = vxpose.xlu0.b32.start.end [1/1] (short) (narrow) (%p159_p8), %v275_v3, 8 }
 0x186   : >> { %v271_v62 = vpop.xlane.xlu0 %270 }
 0x187   : >> { %v272_v63 = vmul.f32 %v271_v62, %v244_v61  ;;  %161 = sbr.rel (!%p159_p8) target bundleno = 56 (0x38), region = 173 }
 0x189   : >> { %v273_v2 = vsub.f32 %v267_v59, %v272_v63 }
 0x18b   : >> { %274 = vst [vmem:[#allocation4] sm:$0xff] %v273_v2 }
 0x192   : > { %v326_v4 = vld [vmem:[#allocation4] sm:$0xf] }
 0x193   : > { %329 = vst [vmem:[%s125_s6] sm:$0xf] %v326_v4 }
 0x19a   : > { %v373_v1 = vld [vmem:[%s125_s6] sm:$0xf] }
 0x19b   : > { %374 = vst [vmem:[%s356_s22] sm:$0xf] %v373_v1 }
 0x19c   : > { %686 = shalt.err (!%p683_p1)
}
 0x19d   : > { %580 = dma.vmem_to_hbm [thread:$0]  (%p792_p5), %s400_s10, 32, %s402_s19, %s347_s26  }
 0x19e   : > { %s410_s6 = scalar_lea.vmem (%p792_p5), %s942_s3, %s880_s28 }
 0x1e0   : > { %v307_v5 = vpop.trf.xlu0 }
 0x1e1   : > { %323 = vst [vmem:[%s839_s9] sm:$0x1] %v307_v5 }
 0x1e5   : > { %407 = sbr.rel (!%p792_p5) target bundleno = 498 (0x1f2), region = 66 }
 0x1e8   : > { %v338_v6 = vld [vmem:[#allocation8] sm:$0x3] }
 0x1e9   : > { %341 = vst [vmem:[%s138_s8] sm:$0x3] %v338_v6 }
 0x1f0   : > { %v427_v7 = vld [vmem:[%s138_s8] sm:$0x3] }
 0x1f1   : > { %428 = vst [vmem:[%s410_s6] sm:$0x3] %v427_v7 }
 0x1f2 PF: > { %s456_s7 = sand.u32 1, %s715_s12   ;;  %p583_p2 = pnand %p559_p7, %p796_p6 }
 0x1f3   : > { %s457_s24 = scalar_lea.sflag [#allocation3], %s456_s7 }
 0x1f4   : > { %p584_p3 = pneg %p583_p2 }
 0x1f6   : > { %710 = dma.done.wait (%p584_p3), %s457_s24, 32  }
 0x1f7   : > { %712 = vsyncadd (%p584_p3), %s457_s24, 4294967264  ;;  %p13_p5 = scmp.ge.s32.totalorder %s779_s18, 4   ;;  %s945_s12 = smov %s719_s13 }
 0x1f8   : > { %s946_s13 = smov %s723_s14  ;;  %s947_s14 = smov %s790_s23 }
 0x1f9   : > { %s948_s15 = smov %s779_s18  ;;  %15 = sbr.rel (!%p13_p5) target bundleno = 5 (0x5), region = 184 }
 0x1fe   :  { %470 = vsyncpa [#allocation2], 1 }
 0x1ff   :  { %472 = vsyncpa [#allocation2 + $0x1], 1 }
 0x200   :  { %473 = vsyncpa [#allocation3], 1 }
 0x201   :  { %475 = vsyncpa [#allocation3 + $0x1], 1 }

// kernel: mono_mvsnet_forward.17
= control target key start
LH: loop header
LB: loop body
LE: loop exit
PB: predicated region body
PF: predicated region fallthrough
CT: control target
= control target key end

     0   :  { %s480_s12 = smov 0   ;;  %s482_s13 = smov 0   ;;  %s531_s0 = inlined_call_operand.vmem [shape: bf16[32,32], index: 0, kind: input, shape index: {}]   ;;  %s532_s1 = inlined_call_operand.vmem [shape: f32[32,1], index: 1, kind: input, shape index: {}]   ;;  %s533_s2 = inlined_call_operand.vmem [shape: bf16[6,32,16], index: 2, kind: input, shape index: {}]   ;;  %s534_s3 = inlined_call_operand.vmem [shape: f32[6,32,16], index: 3, kind: output, shape index: {}]  }
   0x1   :  { %s484_s14 = smov 0  }
   0x2 LB: > { %s25_s15 = sadd.s32 1, %s453_s13  ;;  %p375_p0 = scmp.ge.s32.totalorder %s457_s14, 1  ;;  %s457_s14 = sphi %s484_s14, %s13_s14   ;;  %s453_s13 = sphi %s482_s13, %s536_s13   ;;  %s449_s12 = sphi %s480_s12, %s535_s12  }
   0x3   : > { %p27_p1 = scmp.ge.s32.totalorder %s25_s15, 6  ;;  %p156_p2 = scmp.lt.s32.totalorder %s457_s14, 7 }
   0x5   : > { %s538_s15 = smov (%p27_p1, %s25_s15), 0  ;;  %p157_p3 = pnand %p375_p0, %p156_p2 }
   0x6   : > { %p186_p4 = scmp.lt.s32.totalorder (!%p157_p3), %s449_s12, 5 }
   0x7   : > { %160 = sbr.rel (%p157_p3) target bundleno = 161 (0xa1), region = 32 }
   0xc   : > { %v213_v0 = vld [vmem:[%s532_s1 + $0x10] sm:$0xff]  ;;  %v459_v1 = vmov 0   ;;  %v211_v2 = vld [vmem:[%s532_s1] sm:$0xff]  ;;  %s540_s12 = smov (!%p186_p4, %s449_s12), 5  ;;  %v214_v4 = vld [vmem:[%s532_s1 + $0x18] sm:$0xff]  ;;  %vm257_vm0 = vcmask 261120  }
   0xd   : > { %434 = vset.pattern.permute.xlu1 %v459_v1  ;;  %433 = vset.pattern.permute.xlu0 %v459_v1  ;;  %s400_s20 = sshll.u32 %s540_s12, 4  ;;  %v212_v5 = vld [vmem:[%s532_s1 + $0x8] sm:$0xff]  ;;  %v402_v7 = vld [vmem:[%s531_s0] sm:$0xff]  ;;  %s401_s5 = sshll.u32 %s540_s12, 5  ;;  %vm283_vm1 = vcmask 130048  }
   0xe   : > { %227 = vperm.xlu1 %434, %v213_v0   ;;  %217 = vperm.xlu0 %433, %v211_v2   ;;  %s193_s23 = scalar_lea.vmem %s533_s2, %s400_s20  ;;  %v403_v8 = vld [vmem:[%s531_s0 + $0x8] sm:$0xff]  ;;  %s201_s8 = scalar_lea.vmem %s534_s3, %s401_s5 }
   0xf   : > { %v405_v3 = vld [vmem:[%s193_s23 + $0x8] sm:$0xff]  ;;  %v404_v6 = vld [vmem:[%s193_s23] sm:$0xff] }
  0x10   : > { %270 = vmatpush.bf16.msra.mxu0 %v405_v3  ;;  %406 = vmatpush.bf16.msra.mxu1 %v405_v3 }
  0x14   : > { %271 = vmatpush.bf16.msra.mxu0 %v404_v6  ;;  %407 = vmatpush.bf16.msra.mxu1 %v404_v6 }
  0x16   : > { %232 = vperm.xlu1 %434, %v214_v4   ;;  %222 = vperm.xlu0 %433, %v212_v5  }
  0x17   : > { %396 = vmatmul.msk.bf16.vlgmr.msra.gmra.mxu0 %vm257_vm0, %v402_v7  ;;  %397 = vmatmul.msk.bf16.vlgmr.msra.gmra.mxu1 %vm257_vm0, %v403_v8 }
  0x80   : > { %v228_v9 = vpop.permute.xlu1 %227  ;;  %v218_v10 = vpop.permute.xlu0 %217 }
  0x88   : > { %v233_v15 = vpop.permute.xlu1 %232  ;;  %v223_v16 = vpop.permute.xlu0 %222 }
  0x94   : > { %v273_v11 = vpop.f32.mrf.mxu0  ;;  %v278_v12 = vpop.f32.mrf.mxu1 }
  0x95   : > { %v274_v13 = vadd.f32 %v273_v11, %v218_v10  ;;  %v279_v14 = vadd.f32 %v278_v12, %v228_v9 }
  0x97   : > { %284 = vst.msk [vmem:[%s201_s8] sm:$0xff] %vm283_vm1, %v274_v13 }
  0x98   : > { %286 = vst.msk [vmem:[%s201_s8 + $0x10] sm:$0xff] %vm283_vm1, %v279_v14 }
  0x9c   : > { %v275_v17 = vpop.f32.mrf.mxu0  ;;  %v280_v18 = vpop.f32.mrf.mxu1 }
  0x9d   : > { %v276_v19 = vadd.f32 %v275_v17, %v223_v16  ;;  %v281_v20 = vadd.f32 %v280_v18, %v233_v15 }
  0x9f   : > { %285 = vst.msk [vmem:[%s201_s8 + $0x8] sm:$0xff] %vm283_vm1, %v276_v19 }
  0xa0   : > { %287 = vst.msk [vmem:[%s201_s8 + $0x18] sm:$0xff] %vm283_vm1, %v281_v20 }
  0xa1 PF: > { %s13_s14 = sadd.s32 1, %s457_s14   ;;  %s535_s12 = smov %s453_s13 }
  0xa2   : > { %p10_p5 = scmp.ge.s32.totalorder %s13_s14, 8   ;;  %s536_s13 = smov %s538_s15 }
  0xa4   :  { %12 = sbr.rel (!%p10_p5) target bundleno = 2 (0x2), region = 62 }

// kernel: mono_mvsnet_forward.16
= control target key start
LH: loop header
LB: loop body
LE: loop exit
PB: predicated region body
PF: predicated region fallthrough
CT: control target
= control target key end

     0   :  { %s616_s12 = smov 0   ;;  %s618_s13 = smov 0   ;;  %s706_s0 = inlined_call_operand.vmem [shape: bf16[32,144], index: 0, kind: input, shape index: {}]   ;;  %s707_s1 = inlined_call_operand.vmem [shape: f32[32,1], index: 1, kind: input, shape index: {}]   ;;  %s708_s2 = inlined_call_operand.vmem [shape: bf16[6,144,16], index: 2, kind: input, shape index: {}]   ;;  %s709_s3 = inlined_call_operand.vmem [shape: f32[6,32,16], index: 3, kind: output, shape index: {}]  }
   0x1   :  { %s620_s14 = smov 0  }
   0x2 LB: > { %s25_s15 = sadd.s32 1, %s589_s13  ;;  %p461_p0 = scmp.ge.s32.totalorder %s593_s14, 1  ;;  %s593_s14 = sphi %s620_s14, %s13_s14   ;;  %s589_s13 = sphi %s618_s13, %s711_s13   ;;  %s585_s12 = sphi %s616_s12, %s710_s12  }
   0x3   : > { %p27_p1 = scmp.ge.s32.totalorder %s25_s15, 6  ;;  %p156_p2 = scmp.lt.s32.totalorder %s593_s14, 7 }
   0x5   : > { %s713_s15 = smov (%p27_p1, %s25_s15), 0  ;;  %p157_p3 = pnand %p461_p0, %p156_p2 }
   0x6   : > { %p186_p4 = scmp.lt.s32.totalorder (!%p157_p3), %s585_s12, 5 }
   0x7   : > { %160 = sbr.rel (%p157_p3) target bundleno = 195 (0xc3), region = 32 }
   0xc   : > { %s715_s12 = smov (!%p186_p4, %s585_s12), 5  ;;  %v522_v1 = vld [vmem:[%s706_s0 + $0x4] sm:$0xf]  ;;  %v469_v2 = vld [vmem:[%s706_s0 + $0x8] sm:$0xf0]  ;;  %v595_v6 = vmov 0  }
   0xd   : > { %s543_s16 = smul.u32 72, %s715_s12  ;;  %v472_v5 = vor.u32 %v522_v1, %v469_v2  ;;  %570 = vset.pattern.permute.xlu1 %v595_v6  ;;  %v227_v7 = vld [vmem:[%s707_s1 + $0x10] sm:$0xff]  ;;  %v225_v8 = vld [vmem:[%s707_s1] sm:$0xff]  ;;  %vm321_vm0 = vcmask 130048   ;;  %569 = vset.pattern.permute.xlu0 %v595_v6  ;;  %v228_v10 = vld [vmem:[%s707_s1 + $0x18] sm:$0xff]  ;;  %s521_s22 = sshll.u32 %s715_s12, 5 }
   0xe   : > { %241 = vperm.xlu1 %570, %v227_v7   ;;  %231 = vperm.xlu0 %569, %v225_v8   ;;  %v226_v12 = vld [vmem:[%s707_s1 + $0x8] sm:$0xff]  ;;  %v524_v14 = vld [vmem:[%s706_s0 + $0x14] sm:$0xf]  ;;  %v477_v15 = vld [vmem:[%s706_s0 + $0x18] sm:$0xf0]  ;;  %s201_s24 = scalar_lea.vmem %s709_s3, %s521_s22 }
   0xf   : > { %s640_s19 = scalar_lea.vmem %s708_s2, %s543_s16  ;;  %v480_v17 = vor.u32 %v524_v14, %v477_v15  ;;  %v467_v19 = vld [vmem:[%s706_s0] sm:$0xf]  ;;  %v523_v20 = vld [vmem:[%s706_s0 + $0x4] sm:$0xf0]  ;;  %v475_v22 = vld [vmem:[%s706_s0 + $0x10] sm:$0xf] }
  0x10   : > { %v533_v0 = vld [vmem:[%s640_s19 + $0x38] sm:$0xff]  ;;  %v534_v3 = vld [vmem:[%s640_s19 + $0x40] sm:$0xff]  ;;  %v532_v4 = vld [vmem:[%s640_s19 + $0x30] sm:$0xff]  ;;  %v468_v24 = vor.u32 %v523_v20, %v467_v19 }
  0x11   : > { %328 = vmatpush.bf16.msra.mxu0 %v533_v0  ;;  %535 = vmatpush.bf16.msra.mxu2 %v533_v0  ;;  %v531_v9 = vld [vmem:[%s640_s19 + $0x28] sm:$0xff]  ;;  %v530_v11 = vld [vmem:[%s640_s19 + $0x20] sm:$0xff]  ;;  %v529_v13 = vld [vmem:[%s640_s19 + $0x18] sm:$0xff] }
  0x12   : > { %354 = vmatpush.bf16.msra.mxu1 %v534_v3  ;;  %v528_v16 = vld [vmem:[%s640_s19 + $0x10] sm:$0xff]  ;;  %v527_v18 = vld [vmem:[%s640_s19 + $0x8] sm:$0xff]  ;;  %v526_v21 = vld [vmem:[%s640_s19] sm:$0xff] }
  0x13   : > { %v525_v23 = vld [vmem:[%s706_s0 + $0x14] sm:$0xf0] }
  0x14   : > { %v476_v25 = vor.u32 %v525_v23, %v475_v22 }
  0x15   : > { %329 = vmatpush.bf16.msra.mxu0 %v532_v4  ;;  %536 = vmatpush.bf16.msra.mxu2 %v532_v4 }
  0x16   : > { %517 = vmatmul.msk.bf16.vlgmr.msra.gmra.mxu1 %vm321_vm0, %v472_v5  ;;  %246 = vperm.xlu1 %570, %v228_v10  }
  0x17   : > { %236 = vperm.xlu0 %569, %v226_v12  }
  0x19   : > { %330 = vmatpush.bf16.msra.mxu0 %v531_v9  ;;  %537 = vmatpush.bf16.msra.mxu2 %v531_v9 }
  0x1d   : > { %331 = vmatpush.bf16.msra.mxu0 %v530_v11  ;;  %538 = vmatpush.bf16.msra.mxu2 %v530_v11 }
  0x21   : > { %332 = vmatpush.bf16.msra.mxu0 %v529_v13  ;;  %539 = vmatpush.bf16.msra.mxu2 %v529_v13 }
  0x25   : > { %333 = vmatpush.bf16.msra.mxu0 %v528_v16  ;;  %540 = vmatpush.bf16.msra.mxu2 %v528_v16 }
  0x26   : > { %518 = vmatmul.msk.bf16.gmra.mxu1 %vm321_vm0, %v480_v17 }
  0x29   : > { %334 = vmatpush.bf16.msra.mxu0 %v527_v18  ;;  %541 = vmatpush.bf16.msra.mxu2 %v527_v18 }
  0x2d   : > { %335 = vmatpush.bf16.msra.mxu0 %v526_v21  ;;  %542 = vmatpush.bf16.msra.mxu2 %v526_v21 }
  0x30   : > { %336 = vmatmul.bf16.vlgmr.msra.gmra.mxu0 %v468_v24  ;;  %341 = vmatmul.bf16.vlgmr.msra.gmra.mxu2 %v476_v25 }
  0x80   : > { %v232_v28 = vpop.permute.xlu0 %231  ;;  %v242_v32 = vpop.permute.xlu1 %241 }
  0x88   : > { %v247_v44 = vpop.permute.xlu1 %246 }
  0x89   : > { %v237_v37 = vpop.permute.xlu0 %236 }
  0x93   : > { %v356_v26 = vpop.f32.mrf.mxu1 }
  0x9b   : > { %v358_v27 = vpop.f32.mrf.mxu1 }
  0xa3   : > { %v361_v34 = vpop.f32.mrf.mxu1 }
  0xab   : > { %v363_v47 = vpop.f32.mrf.mxu1 }
  0xad   : > { %v337_v29 = vpop.f32.mrf.mxu0 }
  0xae   : > { %v338_v30 = vadd.f32 %v337_v29, %v232_v28 }
  0xb0   : > { %v357_v31 = vadd.f32 %v356_v26, %v338_v30 }
  0xb2   : > { %v366_v33 = vmax.f32 %v357_v31, 0.0 }
  0xb3   : > { %v342_v35 = vpop.f32.mrf.mxu2 }
  0xb4   : > { %370 = vst.msk [vmem:[%s201_s24] sm:$0xff] %vm321_vm0, %v366_v33  ;;  %v343_v36 = vadd.f32 %v342_v35, %v242_v32 }
  0xb5   : > { %v339_v38 = vpop.f32.mrf.mxu0 }
  0xb6   : > { %v362_v39 = vadd.f32 %v361_v34, %v343_v36  ;;  %v340_v40 = vadd.f32 %v339_v38, %v237_v37 }
  0xb8   : > { %v368_v41 = vmax.f32 %v362_v39, 0.0  ;;  %v359_v42 = vadd.f32 %v358_v27, %v340_v40 }
  0xba   : > { %372 = vst.msk [vmem:[%s201_s24 + $0x10] sm:$0xff] %vm321_vm0, %v368_v41  ;;  %v367_v43 = vmax.f32 %v359_v42, 0.0 }
  0xbb   : > { %v344_v45 = vpop.f32.mrf.mxu2 }
  0xbc   : > { %371 = vst.msk [vmem:[%s201_s24 + $0x8] sm:$0xff] %vm321_vm0, %v367_v43  ;;  %v345_v46 = vadd.f32 %v344_v45, %v247_v44 }
  0xbe   : > { %v364_v48 = vadd.f32 %v363_v47, %v345_v46 }
  0xc0   : > { %v369_v49 = vmax.f32 %v364_v48, 0.0 }
  0xc2   : > { %373 = vst.msk [vmem:[%s201_s24 + $0x18] sm:$0xff] %vm321_vm0, %v369_v49 }
  0xc3 PF: > { %s13_s14 = sadd.s32 1, %s593_s14   ;;  %s710_s12 = smov %s589_s13 }
  0xc4   : > { %p10_p5 = scmp.ge.s32.totalorder %s13_s14, 8   ;;  %s711_s13 = smov %s713_s15 }
  0xc6   :  { %12 = sbr.rel (!%p10_p5) target bundleno = 2 (0x2), region = 62 }

// kernel: custom-call.131
= control target key start
LH: loop header
LB: loop body
LE: loop exit
PB: predicated region body
PF: predicated region fallthrough
CT: control target
= control target key end

     0   :  { %s383_s6 = smov 0   ;;  %s385_s7 = smov 0   ;;  %s432_s0 = inlined_call_operand.vmem [shape: f32[2,1,4,4], index: 0, kind: input, shape index: {}]   ;;  %s433_s1 = inlined_call_operand.vmem [shape: f32[2,1,4,4], index: 1, kind: output, shape index: {}]  }
   0x1   :  { %s387_s8 = smov 0  }
   0x2 LB: > { %s309_s9 = sadd.s32 4294967295, %s370_s8   ;;  %s33_s10 = sadd.s32 1, %s366_s7  ;;  %s370_s8 = sphi %s387_s8, %s7_s8   ;;  %s366_s7 = sphi %s385_s7, %s435_s7   ;;  %s362_s6 = sphi %s383_s6, %s434_s6  }
   0x3   : > { %p35_p0 = scmp.ge.s32.totalorder %s33_s10, 2  ;;  %p311_p1 = scmp.ge.s32.totalorder %s370_s8, 2 }
   0x4   : > { %s49_s11 = sand.u32 (!%p311_p1), 1, %s370_s8   ;;  %s313_s12 = sshll.u32 (!%p311_p1), %s366_s7, 2 }
   0x5   : > { %s437_s10 = smov (%p35_p0, %s33_s10), 0  ;;  %47 = sbr.rel (%p311_p1) target bundleno = 12 (0xc), region = 16 }
   0x6   : > { %s312_s13 = sshll.u32 (!%p311_p1), %s49_s11, 2  ;;  %s56_s16 = scalar_lea.vmem (!%p311_p1), %s432_s0, %s313_s12 }
   0x7   : > { %s51_s17 = scalar_lea.vmem (!%p311_p1), [#allocation1], %s312_s13 }
   0xa   : > { %v73_v0 = vld [vmem:[%s56_s16] sm:$0xf] }
   0xb   : > { %74 = vst [vmem:[%s51_s17] sm:$0xf] %v73_v0 }
   0xc PF: > { %p314_p2 = scmp.ge.s32.totalorder %s370_s8, 1  ;;  %p91_p3 = scmp.lt.s32.totalorder %s370_s8, 3 }
   0xe   : > { %p92_p4 = pnand %p314_p2, %p91_p3 }
  0x10   : > { %95 = sbr.rel (%p92_p4) target bundleno = 556 (0x22c), region = 50 }
  0x15   : > { %s410_s18 = sand.u32 1, %s309_s9   ;;  %v113_v1 = vlaneseq  ;;  %v372_v20 = vmov -1.0   ;;  %s318_s22 = sshll.u32 %s362_s6, 2 }
  0x16   : > { %s315_s19 = sshll.u32 %s410_s18, 2  ;;  %s216_s25 = scalar_lea.vmem %s433_s1, %s318_s22 }
  0x17   : > { %s104_s20 = scalar_lea.vmem [#allocation1], %s315_s19  ;;  %v114_v3 = vand.u32 127, %v113_v1  ;;  %v117_v4 = vshrl.u32 %v113_v1, 7  ;;  %s108_s21 = scalar_lea.vmem [#allocation3], %s315_s19 }
  0x18   : > { %v111_v2 = vld [vmem:[%s104_s20] sm:$0xf] }
  0x19   : > { %112 = vst [vmem:[#allocation0] sm:$0xf] %v111_v2  ;;  %vm119_vm0 = vcmp.eq.s32.totalorder %v117_v4, %v114_v3  ;;  %vm115_vm1 = vcmp.lt.s32.totalorder %v114_v3, 4  ;;  %vm124_vm2 = vcmp.ge.s32.totalorder %v117_v4, %v114_v3  ;;  %vm151_vm8 = vcmp.eq.s32.totalorder %v114_v3, 0 }
  0x1a   : > { %vm125_vm3 = vmand %vm124_vm2, %vm115_vm1  ;;  %vm148_vm9 = vcmp.eq.s32.totalorder %v114_v3, %v117_v4  ;;  %v152_v21 = vsel %vm151_vm8, 1.0, %v372_v20  ;;  %vm159_vm10 = vcmp.eq.s32.totalorder %v114_v3, 1  ;;  %vm169_vm11 = vcmp.eq.s32.totalorder %v114_v3, 2 }
  0x1b   : > { %v153_v22 = vsel %vm148_vm9, %v152_v21, 0.0  ;;  %vm179_vm12 = vcmp.eq.s32.totalorder %v114_v3, 3 }
  0x20   : > { %v120_v5 = vld [vmem:[#allocation0] sm:$0xff] }
  0x21   : > { %v121_v6 = vsel %vm119_vm0, %v120_v5, 0.0  ;;  %v126_v15 = vsel %vm125_vm3, %v120_v5, 0.0 }
  0x22   : > { %122 = vadd.xlane.f32.xlu0 %v121_v6 }
  0x95   : > { %v123_v7 = vpop.xlane.xlu0 %122 }
  0x96   : > { %346 = vrcp.f32 %v123_v7  ;;  %v138_v11 = vand.u32 2147483648, %v123_v7  ;;  %v136_v13 = vand.u32 2147483647, %v123_v7  ;;  %vm132_vm5 = vweird.f32 %v123_v7 }
  0x98   : > { %v139_v16 = vor.u32 1.1754944e-38, %v138_v11  ;;  %vm137_vm7 = vcmp.eq.f32.partialorder %v136_v13, 8.507059e+37 }
  0x9c   : > { %v347_v8 = vpop.eup %346 }
  0x9d   : > { %v128_v9 = vmul.f32 %v347_v8, %v123_v7  ;;  %vm133_vm4 = vweird.f32 %v347_v8 }
  0x9e   : > { %vm134_vm6 = vmor %vm132_vm5, %vm133_vm4 }
  0x9f   : > { %v129_v10 = vsub.f32 1.0, %v128_v9 }
  0xa1   : > { %v130_v12 = vmul.f32 %v347_v8, %v129_v10 }
  0xa3   : > { %v131_v14 = vadd.f32 %v347_v8, %v130_v12 }
  0xa5   : > { %v135_v17 = vsel %vm134_vm6, %v347_v8, %v131_v14 }
  0xa6   : > { %v140_v18 = vsel %vm137_vm7, %v139_v16, %v135_v17 }
  0xa7   : > { %v141_v19 = vmul.f32 %v140_v18, %v126_v15 }
  0xa9   : > { %142 = vst [vmem:[#allocation4] sm:$0xff] %v141_v19 }
  0xb0   : > { %v155_v23 = vld [vmem:[#allocation4 + $0x1] ss:$0 sm:$0xff]  ;;  %v165_v26 = vld [vmem:[#allocation4 + $0x2] ss:$0 sm:$0xff]  ;;  %v175_v31 = vld [vmem:[#allocation4 + $0x3] ss:$0 sm:$0xff] }
  0xb1   : > { %v156_v24 = vxor.u32 2147483648, %v155_v23  ;;  %v166_v28 = vxor.u32 2147483648, %v165_v26  ;;  %v176_v33 = vxor.u32 2147483648, %v175_v31 }
  0xb3   : > { %v160_v25 = vmul.f32 %v156_v24, %v153_v22 }
  0xb5   : > { %161 = vadd.xlane.f32.xlu0 %v160_v25 }
 0x128   : > { %v162_v27 = vpop.xlane.xlu0 %161 }
 0x129   : > { %v163_v29 = vsel %vm159_vm10, %v162_v27, %v153_v22 }
 0x12a   : > { %v170_v30 = vmul.f32 %v166_v28, %v163_v29 }
 0x12c   : > { %171 = vadd.xlane.f32.xlu1 %v170_v30 }
 0x19f   : > { %v172_v32 = vpop.xlane.xlu1 %171 }
 0x1a0   : > { %v173_v34 = vsel %vm169_vm11, %v172_v32, %v163_v29 }
 0x1a1   : > { %v180_v35 = vmul.f32 %v176_v33, %v173_v34 }
 0x1a3   : > { %181 = vadd.xlane.f32.xlu1 %v180_v35 }
 0x216   : > { %v182_v36 = vpop.xlane.xlu1 %181 }
 0x217   : > { %v183_v37 = vsel %vm179_vm12, %v182_v36, %v173_v34 }
 0x218   : > { %v198_v38 = vmul.f32 %v183_v37, %v140_v18 }
 0x21a   : > { %v200_v39 = vsel %vm132_vm5, %v183_v37, %v198_v38 }
 0x21b   : > { %201 = vst [vmem:[#allocation2] sm:$0xff] %v200_v39 }
 0x222   : > { %v204_v40 = vld [vmem:[#allocation2] sm:$0xf] }
 0x223   : > { %207 = vst [vmem:[%s108_s21] sm:$0xf] %v204_v40 }
 0x22a   : > { %v233_v41 = vld [vmem:[%s108_s21] sm:$0xf] }
 0x22b   : > { %234 = vst [vmem:[%s216_s25] sm:$0xf] %v233_v41 }
 0x22c PF: > { %s7_s8 = sadd.s32 1, %s370_s8   ;;  %s434_s6 = smov %s366_s7 }
 0x22d   : > { %p4_p5 = scmp.ge.s32.totalorder %s7_s8, 4   ;;  %s435_s7 = smov %s437_s10 }
 0x22f   :  { %6 = sbr.rel (!%p4_p5) target bundleno = 2 (0x2), region = 113 }

// kernel: custom-call.130
= control target key start
LH: loop header
LB: loop body
LE: loop exit
PB: predicated region body
PF: predicated region fallthrough
CT: control target
= control target key end

     0   :  { %s382_s6 = smov 0   ;;  %s384_s7 = smov 0   ;;  %s431_s0 = inlined_call_operand.vmem [shape: f32[2,1,4,4], index: 0, kind: input, shape index: {}]   ;;  %s432_s1 = inlined_call_operand.vmem [shape: f32[2,1,4,4], index: 1, kind: output, shape index: {}]  }
   0x1   :  { %s386_s8 = smov 0  }
   0x2 LB: > { %s308_s9 = sadd.s32 4294967295, %s369_s8   ;;  %s33_s10 = sadd.s32 1, %s365_s7  ;;  %s369_s8 = sphi %s386_s8, %s7_s8   ;;  %s365_s7 = sphi %s384_s7, %s434_s7   ;;  %s361_s6 = sphi %s382_s6, %s433_s6  }
   0x3   : > { %p35_p0 = scmp.ge.s32.totalorder %s33_s10, 2  ;;  %p310_p1 = scmp.ge.s32.totalorder %s369_s8, 2 }
   0x4   : > { %s49_s11 = sand.u32 (!%p310_p1), 1, %s369_s8   ;;  %s312_s12 = sshll.u32 (!%p310_p1), %s365_s7, 2 }
   0x5   : > { %s436_s10 = smov (%p35_p0, %s33_s10), 0  ;;  %47 = sbr.rel (%p310_p1) target bundleno = 12 (0xc), region = 16 }
   0x6   : > { %s311_s13 = sshll.u32 (!%p310_p1), %s49_s11, 2  ;;  %s56_s16 = scalar_lea.vmem (!%p310_p1), %s431_s0, %s312_s12 }
   0x7   : > { %s51_s17 = scalar_lea.vmem (!%p310_p1), [#allocation1], %s311_s13 }
   0xa   : > { %v73_v0 = vld [vmem:[%s56_s16] sm:$0xf] }
   0xb   : > { %74 = vst [vmem:[%s51_s17] sm:$0xf] %v73_v0 }
   0xc PF: > { %p313_p2 = scmp.ge.s32.totalorder %s369_s8, 1  ;;  %p91_p3 = scmp.lt.s32.totalorder %s369_s8, 3 }
   0xe   : > { %p92_p4 = pnand %p313_p2, %p91_p3 }
  0x10   : > { %95 = sbr.rel (%p92_p4) target bundleno = 556 (0x22c), region = 50 }
  0x15   : > { %s409_s18 = sand.u32 1, %s308_s9   ;;  %v113_v1 = vlaneseq  ;;  %v371_v20 = vmov -1.0   ;;  %s317_s22 = sshll.u32 %s361_s6, 2 }
  0x16   : > { %s314_s19 = sshll.u32 %s409_s18, 2  ;;  %s215_s25 = scalar_lea.vmem %s432_s1, %s317_s22 }
  0x17   : > { %s104_s20 = scalar_lea.vmem [#allocation1], %s314_s19  ;;  %v114_v3 = vand.u32 127, %v113_v1  ;;  %v117_v4 = vshrl.u32 %v113_v1, 7  ;;  %s108_s21 = scalar_lea.vmem [#allocation3], %s314_s19 }
  0x18   : > { %v111_v2 = vld [vmem:[%s104_s20] sm:$0xf] }
  0x19   : > { %112 = vst [vmem:[#allocation0] sm:$0xf] %v111_v2  ;;  %vm119_vm0 = vcmp.eq.s32.totalorder %v117_v4, %v114_v3  ;;  %vm115_vm1 = vcmp.lt.s32.totalorder %v114_v3, 4  ;;  %vm124_vm2 = vcmp.le.s32.totalorder %v117_v4, %v114_v3  ;;  %vm151_vm8 = vcmp.eq.s32.totalorder %v114_v3, 3 }
  0x1a   : > { %vm125_vm3 = vmand %vm124_vm2, %vm115_vm1  ;;  %vm148_vm9 = vcmp.eq.s32.totalorder %v114_v3, %v117_v4  ;;  %v152_v21 = vsel %vm151_vm8, 1.0, %v371_v20  ;;  %vm159_vm10 = vcmp.eq.s32.totalorder %v114_v3, 2  ;;  %vm169_vm11 = vcmp.eq.s32.totalorder %v114_v3, 1 }
  0x1b   : > { %v153_v22 = vsel %vm148_vm9, %v152_v21, 0.0  ;;  %vm178_vm12 = vcmp.eq.s32.totalorder %v114_v3, 0 }
  0x20   : > { %v120_v5 = vld [vmem:[#allocation0] sm:$0xff] }
  0x21   : > { %v121_v6 = vsel %vm119_vm0, %v120_v5, 0.0  ;;  %v126_v15 = vsel %vm125_vm3, %v120_v5, 0.0 }
  0x22   : > { %122 = vadd.xlane.f32.xlu0 %v121_v6 }
  0x95   : > { %v123_v7 = vpop.xlane.xlu0 %122 }
  0x96   : > { %345 = vrcp.f32 %v123_v7  ;;  %v138_v11 = vand.u32 2147483648, %v123_v7  ;;  %v136_v13 = vand.u32 2147483647, %v123_v7  ;;  %vm132_vm5 = vweird.f32 %v123_v7 }
  0x98   : > { %v139_v16 = vor.u32 1.1754944e-38, %v138_v11  ;;  %vm137_vm7 = vcmp.eq.f32.partialorder %v136_v13, 8.507059e+37 }
  0x9c   : > { %v346_v8 = vpop.eup %345 }
  0x9d   : > { %v128_v9 = vmul.f32 %v346_v8, %v123_v7  ;;  %vm133_vm4 = vweird.f32 %v346_v8 }
  0x9e   : > { %vm134_vm6 = vmor %vm132_vm5, %vm133_vm4 }
  0x9f   : > { %v129_v10 = vsub.f32 1.0, %v128_v9 }
  0xa1   : > { %v130_v12 = vmul.f32 %v346_v8, %v129_v10 }
  0xa3   : > { %v131_v14 = vadd.f32 %v346_v8, %v130_v12 }
  0xa5   : > { %v135_v17 = vsel %vm134_vm6, %v346_v8, %v131_v14 }
  0xa6   : > { %v140_v18 = vsel %vm137_vm7, %v139_v16, %v135_v17 }
  0xa7   : > { %v141_v19 = vmul.f32 %v140_v18, %v126_v15 }
  0xa9   : > { %142 = vst [vmem:[#allocation4] sm:$0xff] %v141_v19 }
  0xb0   : > { %v155_v23 = vld [vmem:[#allocation4 + $0x2] ss:$0 sm:$0xff]  ;;  %v165_v26 = vld [vmem:[#allocation4 + $0x1] ss:$0 sm:$0xff]  ;;  %v174_v31 = vld [vmem:[#allocation4] ss:$0 sm:$0xff] }
  0xb1   : > { %v156_v24 = vxor.u32 2147483648, %v155_v23  ;;  %v166_v28 = vxor.u32 2147483648, %v165_v26  ;;  %v175_v33 = vxor.u32 2147483648, %v174_v31 }
  0xb3   : > { %v160_v25 = vmul.f32 %v156_v24, %v153_v22 }
  0xb5   : > { %161 = vadd.xlane.f32.xlu0 %v160_v25 }
 0x128   : > { %v162_v27 = vpop.xlane.xlu0 %161 }
 0x129   : > { %v163_v29 = vsel %vm159_vm10, %v162_v27, %v153_v22 }
 0x12a   : > { %v170_v30 = vmul.f32 %v166_v28, %v163_v29 }
 0x12c   : > { %171 = vadd.xlane.f32.xlu1 %v170_v30 }
 0x19f   : > { %v172_v32 = vpop.xlane.xlu1 %171 }
 0x1a0   : > { %v173_v34 = vsel %vm169_vm11, %v172_v32, %v163_v29 }
 0x1a1   : > { %v179_v35 = vmul.f32 %v175_v33, %v173_v34 }
 0x1a3   : > { %180 = vadd.xlane.f32.xlu1 %v179_v35 }
 0x216   : > { %v181_v36 = vpop.xlane.xlu1 %180 }
 0x217   : > { %v182_v37 = vsel %vm178_vm12, %v181_v36, %v173_v34 }
 0x218   : > { %v197_v38 = vmul.f32 %v182_v37, %v140_v18 }
 0x21a   : > { %v199_v39 = vsel %vm132_vm5, %v182_v37, %v197_v38 }
 0x21b   : > { %200 = vst [vmem:[#allocation2] sm:$0xff] %v199_v39 }
 0x222   : > { %v203_v40 = vld [vmem:[#allocation2] sm:$0xf] }
 0x223   : > { %206 = vst [vmem:[%s108_s21] sm:$0xf] %v203_v40 }
 0x22a   : > { %v232_v41 = vld [vmem:[%s108_s21] sm:$0xf] }
 0x22b   : > { %233 = vst [vmem:[%s215_s25] sm:$0xf] %v232_v41 }
 0x22c PF: > { %s7_s8 = sadd.s32 1, %s369_s8   ;;  %s433_s6 = smov %s365_s7 }
 0x22d   : > { %p4_p5 = scmp.ge.s32.totalorder %s7_s8, 4   ;;  %s434_s7 = smov %s436_s10 }
 0x22f   :  { %6 = sbr.rel (!%p4_p5) target bundleno = 2 (0x2), region = 112 }

// kernel: custom-call.115
= control target key start
LH: loop header
LB: loop body
LE: loop exit
PB: predicated region body
PF: predicated region fallthrough
CT: control target
= control target key end

     0   :  { %5 = vsyncpa [#allocation6], 0  ;;  %s911_s0 = inlined_call_operand.vmem [shape: f32[2,3,3], index: 0, kind: input, shape index: {}]   ;;  %s912_s1 = inlined_call_operand.vmem [shape: f32[2,3,3], index: 1, kind: output, shape index: {0}]   ;;  %s913_s2 = inlined_call_operand.hbm [shape: s32[2,3], index: 2, kind: output, shape index: {1}]   ;;  %s914_s3 = inlined_call_operand.vmem [shape: s32[2,3], index: 3, kind: output, shape index: {2}]  }
   0x1   :  { %7 = vsyncpa [#allocation6 + $0x1], 0  ;;  %s735_s12 = smov 0   ;;  %s737_s13 = smov 0  }
   0x2   :  { %s739_s14 = smov 0   ;;  %s741_s15 = smov 0  }
   0x3 LB: > { %s756_s16 = sadd.s32 4294967295, %s708_s15   ;;  %s571_s17 = sadd.s32 4294967294, %s708_s15   ;;  %s708_s15 = sphi %s741_s15, %s920_s15   ;;  %s704_s14 = sphi %s739_s14, %s919_s14   ;;  %s700_s13 = sphi %s737_s13, %s918_s13   ;;  %s696_s12 = sphi %s735_s12, %s917_s12  }
   0x4   : > { %s760_s18 = sadd.s32 1, %s708_s15   ;;  %s17_s19 = sshrl.u32 %s708_s15, 3 }
   0x5   : > { %s18_s20 = sshrl.u32 %s760_s18, 3  ;;  %s22_s21 = sadd.s32 1, %s704_s14 }
   0x6   : > { %s19_s22 = ssub.s32 %s17_s19, %s18_s20  ;;  %p32_p0 = scmp.ne.s32.totalorder %s704_s14, %s700_s13 }
   0x7   : > { %p20_p1 = scmp.eq.s32.totalorder %s19_s22, 0  ;;  %p33_p2 = scmp.eq.s32.totalorder %s756_s16, 1 }
   0x8   : > { %p38_p3 = scmp.ne.s32.totalorder %s700_s13, %s696_s12  ;;  %p39_p4 = scmp.eq.s32.totalorder %s571_s17, 1 }
   0x9   : > { %s771_s23 = scalar_select %p20_p1, %s704_s14, %s22_s21  }
   0xa   : > { %p773_p5 = por %p33_p2, %p32_p0  ;;  %p777_p6 = por %p39_p4, %p38_p3 }
   0xb   : > { %p573_p7 = scmp.ge.s32.totalorder %s708_s15, 2 }
   0xc   : > { %s85_s26 = sand.u32 (!%p573_p7), 1, %s708_s15   ;;  %s575_s27 = sshll.u32 (!%p573_p7), %s708_s15, 2 }
   0xd   : > { %83 = sbr.rel (%p573_p7) target bundleno = 20 (0x14), region = 16  ;;  %s574_s28 = sshll.u32 (!%p573_p7), %s85_s26, 2 }
   0xe   : > { %s89_s4 = scalar_lea.vmem (!%p573_p7), %s911_s0, %s575_s27  ;;  %s87_s5 = scalar_lea.vmem (!%p573_p7), [#allocation1], %s574_s28 }
  0x12   : > { %v106_v0 = vld [vmem:[%s89_s4] sm:$0xf] }
  0x13   : > { %107 = vst [vmem:[%s87_s5] sm:$0xf] %v106_v0 }
  0x14 PF: > { %p576_p8 = scmp.ge.s32.totalorder %s708_s15, 1  ;;  %p124_p9 = scmp.lt.s32.totalorder %s708_s15, 3 }
  0x16   : > { %p125_p10 = pnand %p576_p8, %p124_p9 }
  0x18   : > { %128 = sbr.rel (%p125_p10) target bundleno = 484 (0x1e4), region = 50 }
  0x1d   : > { %s135_s6 = sand.u32 1, %s756_s16   ;;  %s146_s7 = sand.u32 1, %s700_s13   ;;  %v168_v1 = vlaneseq  ;;  %v714_v4 = vmov 0  }
  0x1e   : > { %s793_s8 = sshll.u32 %s135_s6, 2  ;;  %s797_s9 = sshll.u32 %s146_s7, 1 }
  0x1f   : > { %v800_v2 = vshrl.u32 %v168_v1, 7  ;;  %s137_s10 = scalar_lea.vmem [#allocation1], %s793_s8  ;;  %s163_s11 = sand.u32 7, %s756_s16  }
  0x20   : > { %v157_v3 = vld [vmem:[%s137_s10] sm:$0xf]  ;;  %s805_s17 = scalar_lea.vmem [#allocation4], %s163_s11  ;;  %s141_s19 = scalar_lea.vmem [#allocation3], %s793_s8 }
  0x21   : > { %158 = vst [vmem:[#allocation0] sm:$0xf] %v157_v3  ;;  %s148_s20 = scalar_lea.vmem [#allocation5], %s797_s9  ;;  %s154_s21 = scalar_lea.vmem [#allocation8], %s797_s9 }
  0x22   : > { %172 = vst [vmem:[#allocation9] sm:$0xff] %v800_v2  ;;  %s811_s22 = scalar_lea.vmem [#allocation7], %s163_s11  ;;  %s813_s26 = smov 0  }
  0x23   : > { %167 = vst [vmem:[%s805_s17] sm:$0x1] %v714_v4 }
  0x28   : > { %v161_v5 = vld [vmem:[#allocation0] sm:$0xff] }
  0x29   : > { %162 = vst [vmem:[#allocation2] sm:$0xff] %v161_v5 }
  0x2a LB: >> { %vm188_vm0 = vcmp.lt.s32.totalorder %v800_v2, 3  ;;  %v820_v8 = vstv %s712_s26  ;;  %s229_s27 = ssub.s32 128, %s712_s26  ;;  %v235_v39 = vand.u32 127, %v168_v1  ;;  %s241_s28 = scalar_lea.vmem [#allocation2], %s712_s26  ;;  %v238_v42 = vld [vmem:[%s805_s17] ss:$0 sm:$0xff]  ;;  %s712_s26 = sphi %s813_s26, %s178_s26  }
  0x2b   : >> { %vm187_vm1 = vcmp.ge.s32.totalorder %v800_v2, %v820_v8  ;;  %s247_s4 = scalar_lea.vmem [#allocation9], %s712_s26  ;;  %vm267_vm14 = vcmp.gt.s32.totalorder %v800_v2, %v820_v8  ;;  %s178_s26 = sadd.s32 1, %s712_s26  }
  0x2c   : >> { %vm189_vm3 = vmand %vm187_vm1, %vm188_vm0  ;;  %vm236_vm12 = vcmp.eq.s32.totalorder %v235_v39, %v820_v8  ;;  %v249_v44 = vld [vmem:[%s247_s4] ss:$0 sm:$0xff]  ;;  %p175_p11 = scmp.ge.s32.totalorder %s178_s26, 3  }
  0x2d   : > { %s409_s6 = sshrl.u32 (%p175_p11), %s756_s16, 3  ;;  %s415_s26 = sshll.u32 (%p175_p11), %s148_s20, 4  ;;  %s416_s26 = int_to_ptr.vmem [resolvable:$true] %s415_s26 }
  0x2e   : > { %s852_s10 = sshll.u32 (%p175_p11), %s409_s6, 1  ;;  %s363_s6 = scalar_lea.sflag (%p175_p11), [#allocation6], %s146_s7 }
  0x30   : >> { %v183_v6 = vld [vmem:[#allocation2] sm:$0xff]  ;;  %v243_v40 = vld [vmem:[%s241_s28] ss:$0 sm:$0xff] }
  0x31   : >> { %v184_v7 = vand.u32 2147483647, %v183_v6 }
  0x33   : >> { %vm581_vm2 = vcmp.gt.f32.partialorder %v184_v7, -inf }
  0x34   : >> { %vm191_vm4 = vmand %vm189_vm3, %vm581_vm2 }
  0x35   : >> { %v192_v9 = vsel %vm191_vm4, %v800_v2, %v820_v8  ;;  %v193_v10 = vsel %vm191_vm4, %v184_v7, -inf  ;;  %vm284_vm4 = vmand %vm267_vm14, %vm236_vm12 }
  0x36   : >> { %v194_v11 = vrot.slane %v193_v10, 1  ;;  %v195_v12 = vrot.slane %v192_v9, 1 }
  0x38   : >> { %vm196_vm5 = vcmp.ge.f32.partialorder %v194_v11, %v193_v10  ;;  %v199_v13 = vrot.slane %v194_v11, 1  ;;  %v200_v14 = vrot.slane %v195_v12, 1 }
  0x39   : >> { %v197_v15 = vsel %vm196_vm5, %v194_v11, %v193_v10  ;;  %v198_v16 = vsel %vm196_vm5, %v195_v12, %v192_v9  ;;  %vm259_vm5 = vcmp.gt.s32.totalorder %v235_v39, %v820_v8 }
  0x3a   : >> { %vm201_vm6 = vcmp.ge.f32.partialorder %v199_v13, %v197_v15  ;;  %v204_v17 = vrot.slane %v199_v13, 1  ;;  %v205_v18 = vrot.slane %v200_v14, 1 }
  0x3b   : >> { %v202_v19 = vsel %vm201_vm6, %v199_v13, %v197_v15  ;;  %v203_v20 = vsel %vm201_vm6, %v200_v14, %v198_v16 }
  0x3c   : >> { %vm206_vm7 = vcmp.ge.f32.partialorder %v204_v17, %v202_v19  ;;  %v209_v21 = vrot.slane %v204_v17, 1  ;;  %v210_v22 = vrot.slane %v205_v18, 1 }
  0x3d   : >> { %v207_v23 = vsel %vm206_vm7, %v204_v17, %v202_v19  ;;  %v208_v24 = vsel %vm206_vm7, %v205_v18, %v203_v20 }
  0x3e   : >> { %vm211_vm8 = vcmp.ge.f32.partialorder %v209_v21, %v207_v23  ;;  %v214_v25 = vrot.slane %v209_v21, 1  ;;  %v215_v26 = vrot.slane %v210_v22, 1 }
  0x3f   : >> { %v212_v27 = vsel %vm211_vm8, %v209_v21, %v207_v23  ;;  %v213_v28 = vsel %vm211_vm8, %v210_v22, %v208_v24 }
  0x40   : >> { %vm216_vm9 = vcmp.ge.f32.partialorder %v214_v25, %v212_v27  ;;  %v219_v29 = vrot.slane %v214_v25, 1  ;;  %v220_v30 = vrot.slane %v215_v26, 1 }
  0x41   : >> { %v217_v31 = vsel %vm216_vm9, %v214_v25, %v212_v27  ;;  %v218_v32 = vsel %vm216_vm9, %v215_v26, %v213_v28 }
  0x42   : >> { %vm221_vm10 = vcmp.ge.f32.partialorder %v219_v29, %v217_v31  ;;  %v224_v33 = vrot.slane %v219_v29, 1  ;;  %v225_v34 = vrot.slane %v220_v30, 1 }
  0x43   : >> { %v222_v35 = vsel %vm221_vm10, %v219_v29, %v217_v31  ;;  %v223_v36 = vsel %vm221_vm10, %v220_v30, %v218_v32 }
  0x44   : >> { %vm226_vm11 = vcmp.ge.f32.partialorder %v224_v33, %v222_v35 }
  0x45   : >> { %v228_v37 = vsel %vm226_vm11, %v225_v34, %v223_v36 }
  0x46   : >> { %230 = vrot.lane.b32.xlu0 %v228_v37, %s229_s27 }
  0xb8   : >> { %v231_v38 = vpop.permute.xlu0 %230 }
  0xb9   : >> { %590 = vpush %v231_v38 }
  0xea   : >> { %s591_s29 = spop %590 }
  0xeb   : >> { %v237_v41 = vstv %s591_s29  ;;  %s242_s30 = scalar_lea.vmem [#allocation2], %s591_s29  ;;  %s248_s5 = scalar_lea.vmem [#allocation9], %s591_s29 }
  0xec   : >> { %v244_v43 = vld [vmem:[%s242_s30] ss:$0 sm:$0xff]  ;;  %v239_v46 = vsel %vm236_vm12, %v237_v41, %v238_v42 }
  0xed   : >> { %v250_v45 = vld [vmem:[%s248_s5] ss:$0 sm:$0xff]  ;;  %245 = vst [vmem:[%s242_s30] sm:$0x1] %v243_v40  ;;  %vm253_vm13 = vcmp.ne.f32.partialorder %v244_v43, 0.0  ;;  %v260_v62 = vsel %vm259_vm5, %v244_v43, 0.0 }
  0xee   : >> { %246 = vst [vmem:[%s241_s28] sm:$0x1] %v244_v43  ;;  %vm254_vm15 = vmand %vm236_vm12, %vm253_vm13  ;;  %s413_s28 = scalar_lea.hbm (%p175_p11), %s913_s2, %s852_s10 }
  0xef   : >> { %251 = vst [vmem:[%s248_s5] sm:$0x1] %v249_v44  ;;  %v255_v47 = vsel %vm254_vm15, %v244_v43, 1.0  ;;  %s417_s29 = sshll.u32 (%p175_p11), %s413_s28, 4  ;;  %s418_s29 = int_to_ptr.hbm [resolvable:$true] %s417_s29 }
  0xf0   : >> { %252 = vst [vmem:[%s247_s4] sm:$0x1] %v250_v45  ;;  %v268_v48 = vsel %vm267_vm14, %v255_v47, 1.0  ;;  %s656_s11 = sshra.s32 (%p175_p11), %s418_s29, 4  ;;  %s657_s11 = int_to_ptr.hbm [resolvable:$true] %s656_s11 }
  0xf1   : >> { %640 = vrcp.f32 %v268_v48  ;;  %240 = vst [vmem:[%s805_s17] sm:$0x1] %v239_v46  ;;  %v280_v52 = vand.u32 2147483648, %v268_v48  ;;  %v278_v54 = vand.u32 2147483647, %v268_v48  ;;  %vm274_vm1 = vweird.f32 %v268_v48  ;;  %s585_s17 = sshll.u32 (%p175_p11), %s756_s16, 2  ;;  %s658_s16 = scalar_lea.hbm (%p175_p11), %s657_s11, 2 }
  0xf2   : > { %s372_s5 = scalar_lea.vmem (%p175_p11), %s912_s1, %s585_s17  ;;  %p659_p12 = scmp.ne.s32.totalorder (%p175_p11), %s657_s11, %s658_s16 }
  0xf3   : >> { %v281_v56 = vor.u32 1.1754944e-38, %v280_v52  ;;  %vm279_vm3 = vcmp.eq.f32.partialorder %v278_v54, 8.507059e+37  ;;  %s662_s17 = scalar_lea.hbm (%p175_p11), %s913_s2, 2  ;;  %p663_p1 = scmp.lt.s32.totalorder (%p175_p11), %s657_s11, %s913_s2 }
  0xf4   : > { %p660_p13 = pnand (%p175_p11), %p659_p12, %p773_p5  ;;  %p664_p2 = scmp.lt.s32.totalorder (%p175_p11), %s662_s17, %s658_s16 }
  0xf5   : >> { %v264_v58 = vld [vmem:[#allocation2] sm:$0xff] }
  0xf6   : > { %p661_p0 = pneg (%p175_p11), %p660_p13  ;;  %p665_p3 = por (%p175_p11), %p664_p2, %p663_p1 }
  0xf7   : >> { %v641_v49 = vpop.eup %640  ;;  %v291_v4 = vld [vmem:[#allocation9] sm:$0xff] (%p175_p11) }
  0xf8   : >> { %v270_v50 = vmul.f32 %v641_v49, %v268_v48  ;;  %vm275_vm0 = vweird.f32 %v641_v49  ;;  %v348_v1 = vld [vmem:[#allocation4] sm:$0x3] (%p175_p11)  ;;  %p666_p4 = pnand (%p175_p11), %p665_p3, %p661_p0 }
  0xf9   : >> { %vm276_vm2 = vmor %vm274_vm1, %vm275_vm0  ;;  %351 = vst [vmem:[%s148_s20] sm:$0x3] (%p175_p11), %v348_v1 }
  0xfa   : >> { %v271_v51 = vsub.f32 1.0, %v270_v50 }
  0xfc   : >> { %v272_v53 = vmul.f32 %v641_v49, %v271_v51 }
  0xfe   : >> { %v273_v55 = vadd.f32 %v641_v49, %v272_v53 }
 0x100   : >> { %v277_v57 = vsel %vm276_vm2, %v641_v49, %v273_v55 }
 0x101   : >> { %v282_v59 = vsel %vm279_vm3, %v281_v56, %v277_v57 }
 0x102   : >> { %v283_v60 = vmul.f32 %v282_v59, %v264_v58 }
 0x104   : >> { %v285_v61 = vsel %vm284_vm4, %v283_v60, 0.0 }
 0x105   : >> { %286 = vadd.xlane.f32.xlu0 %v285_v61 }
 0x12e   : > { %307 = vxpose.xlu0.b32.start.end [1/1] (short) (narrow) (%p175_p11), %v291_v4, 8 }
 0x178   : >> { %v287_v63 = vpop.xlane.xlu0 %286 }
 0x179   : >> { %v288_v0 = vmul.f32 %v287_v63, %v260_v62  ;;  %177 = sbr.rel (!%p175_p11) target bundleno = 42 (0x2a), region = 202 }
 0x17b   : >> { %v289_v3 = vsub.f32 %v283_v60, %v288_v0 }
 0x17d   : >> { %290 = vst [vmem:[#allocation2] sm:$0xff] %v289_v3 }
 0x184   : > { %v342_v5 = vld [vmem:[#allocation2] sm:$0xf] }
 0x185   : > { %345 = vst [vmem:[%s141_s19] sm:$0xf] %v342_v5 }
 0x18c   : > { %v389_v2 = vld [vmem:[%s141_s19] sm:$0xf] }
 0x18d   : > { %390 = vst [vmem:[%s372_s5] sm:$0xf] %v389_v2 }
 0x18e   : > { %669 = shalt.err (!%p666_p4)
}
 0x18f   : > { %592 = dma.vmem_to_hbm [thread:$0]  (%p773_p5), %s416_s26, 32, %s418_s29, %s363_s6  }
 0x190   : > { %s426_s19 = scalar_lea.vmem (%p773_p5), %s914_s3, %s852_s10 }
 0x1d2   : > { %v323_v6 = vpop.trf.xlu0 }
 0x1d3   : > { %339 = vst [vmem:[%s811_s22] sm:$0x1] %v323_v6 }
 0x1d7   : > { %423 = sbr.rel (!%p773_p5) target bundleno = 484 (0x1e4), region = 96 }
 0x1da   : > { %v354_v7 = vld [vmem:[#allocation7] sm:$0x3] }
 0x1db   : > { %357 = vst [vmem:[%s154_s21] sm:$0x3] %v354_v7 }
 0x1e2   : > { %v443_v8 = vld [vmem:[%s154_s21] sm:$0x3] }
 0x1e3   : > { %444 = vst [vmem:[%s426_s19] sm:$0x3] %v443_v8 }
 0x1e4 PF: > { %s472_s20 = sand.u32 1, %s696_s12   ;;  %p595_p8 = pnand %p573_p7, %p777_p6 }
 0x1e5   : > { %s473_s24 = scalar_lea.sflag [#allocation6], %s472_s20 }
 0x1e6   : > { %p596_p9 = pneg %p595_p8 }
 0x1e8   : > { %691 = dma.done.wait (%p596_p9), %s473_s24, 32  }
 0x1e9   : > { %693 = vsyncadd (%p596_p9), %s473_s24, 4294967264  ;;  %p10_p5 = scmp.ge.s32.totalorder %s760_s18, 4   ;;  %s917_s12 = smov %s700_s13 }
 0x1ea   : > { %s918_s13 = smov %s704_s14  ;;  %s919_s14 = smov %s771_s23 }
 0x1eb   : > { %s920_s15 = smov %s760_s18  ;;  %12 = sbr.rel (!%p10_p5) target bundleno = 3 (0x3), region = 213 }
 0x1f0   :  { %486 = vsyncpa [#allocation6], 1 }
 0x1f1   :  { %488 = vsyncpa [#allocation6 + $0x1], 1 }

// kernel: custom-call.159
= control target key start
LH: loop header
LB: loop body
LE: loop exit
PB: predicated region body
PF: predicated region fallthrough
CT: control target
= control target key end

     0   :  { %5 = vsyncpa [#allocation6], 0  ;;  %s939_s0 = inlined_call_operand.vmem [shape: f32[2,3,3], index: 0, kind: input, shape index: {}]   ;;  %s940_s1 = inlined_call_operand.vmem [shape: f32[2,3,3], index: 1, kind: output, shape index: {0}]   ;;  %s941_s2 = inlined_call_operand.hbm [shape: s32[2,3], index: 2, kind: output, shape index: {1}]   ;;  %s942_s3 = inlined_call_operand.hbm [shape: s32[2,3], index: 3, kind: output, shape index: {2}]  }
   0x1   :  { %7 = vsyncpa [#allocation6 + $0x1], 0 }
   0x2   :  { %8 = vsyncpa [#allocation9], 0 }
   0x3   :  { %10 = vsyncpa [#allocation9 + $0x1], 0  ;;  %s758_s12 = smov 0   ;;  %s760_s13 = smov 0  }
   0x4   :  { %s762_s14 = smov 0   ;;  %s764_s15 = smov 0  }
   0x5 LB: > { %s779_s16 = sadd.s32 4294967295, %s731_s15   ;;  %s557_s17 = sadd.s32 4294967294, %s731_s15   ;;  %s731_s15 = sphi %s764_s15, %s948_s15   ;;  %s727_s14 = sphi %s762_s14, %s947_s14   ;;  %s723_s13 = sphi %s760_s13, %s946_s13   ;;  %s719_s12 = sphi %s758_s12, %s945_s12  }
   0x6   : > { %s783_s18 = sadd.s32 1, %s731_s15   ;;  %s20_s19 = sshrl.u32 %s731_s15, 3 }
   0x7   : > { %s21_s20 = sshrl.u32 %s783_s18, 3  ;;  %s25_s21 = sadd.s32 1, %s727_s14 }
   0x8   : > { %s22_s22 = ssub.s32 %s20_s19, %s21_s20  ;;  %p35_p0 = scmp.ne.s32.totalorder %s727_s14, %s723_s13 }
   0x9   : > { %p23_p1 = scmp.eq.s32.totalorder %s22_s22, 0  ;;  %p36_p2 = scmp.eq.s32.totalorder %s779_s16, 1 }
   0xa   : > { %p41_p3 = scmp.ne.s32.totalorder %s723_s13, %s719_s12  ;;  %p42_p4 = scmp.eq.s32.totalorder %s557_s17, 1 }
   0xb   : > { %s794_s23 = scalar_select %p23_p1, %s727_s14, %s25_s21  }
   0xc   : > { %p796_p5 = por %p36_p2, %p35_p0  ;;  %p800_p6 = por %p42_p4, %p41_p3 }
   0xd   : > { %p559_p7 = scmp.ge.s32.totalorder %s731_s15, 2 }
   0xe   : > { %s88_s26 = sand.u32 (!%p559_p7), 1, %s731_s15   ;;  %s561_s27 = sshll.u32 (!%p559_p7), %s731_s15, 2 }
   0xf   : > { %86 = sbr.rel (%p559_p7) target bundleno = 22 (0x16), region = 16  ;;  %s560_s28 = sshll.u32 (!%p559_p7), %s88_s26, 2 }
  0x10   : > { %s92_s4 = scalar_lea.vmem (!%p559_p7), %s939_s0, %s561_s27  ;;  %s90_s5 = scalar_lea.vmem (!%p559_p7), [#allocation1], %s560_s28 }
  0x14   : > { %v109_v0 = vld [vmem:[%s92_s4] sm:$0xf] }
  0x15   : > { %110 = vst [vmem:[%s90_s5] sm:$0xf] %v109_v0 }
  0x16 PF: > { %p562_p8 = scmp.ge.s32.totalorder %s731_s15, 1  ;;  %p127_p9 = scmp.lt.s32.totalorder %s731_s15, 3 }
  0x18   : > { %p128_p10 = pnand %p562_p8, %p127_p9 }
  0x1a   : > { %131 = sbr.rel (%p128_p10) target bundleno = 480 (0x1e0), region = 50 }
  0x1f   : > { %s138_s6 = sand.u32 1, %s779_s16   ;;  %s816_s7 = sand.u32 1, %s723_s13   ;;  %v172_v1 = vlaneseq  ;;  %v737_v4 = vmov 0  }
  0x20   : > { %s818_s8 = sshll.u32 %s138_s6, 2  ;;  %s565_s9 = sshll.u32 %s816_s7, 1 }
  0x21   : > { %v822_v2 = vshrl.u32 %v172_v1, 7  ;;  %s140_s10 = scalar_lea.vmem [#allocation1], %s818_s8  ;;  %s167_s11 = sand.u32 7, %s779_s16  }
  0x22   : > { %v161_v3 = vld [vmem:[%s140_s10] sm:$0xf]  ;;  %s827_s17 = scalar_lea.vmem [#allocation4], %s167_s11  ;;  %s144_s19 = scalar_lea.vmem [#allocation3], %s818_s8 }
  0x23   : > { %162 = vst [vmem:[#allocation0] sm:$0xf] %v161_v3  ;;  %s831_s20 = scalar_lea.vmem [#allocation5], %s565_s9  ;;  %s833_s21 = scalar_lea.vmem [#allocation8], %s565_s9 }
  0x24   : > { %176 = vst [vmem:[#allocation10] sm:$0xff] %v822_v2  ;;  %s835_s22 = scalar_lea.vmem [#allocation7], %s167_s11  ;;  %s837_s26 = smov 0  }
  0x25   : > { %171 = vst [vmem:[%s827_s17] sm:$0x1] %v737_v4 }
  0x2a   : > { %v165_v5 = vld [vmem:[#allocation0] sm:$0xff] }
  0x2b   : > { %166 = vst [vmem:[#allocation2] sm:$0xff] %v165_v5 }
  0x2c LB: >> { %vm192_vm0 = vcmp.lt.s32.totalorder %v822_v2, 3  ;;  %v844_v8 = vstv %s735_s26  ;;  %s233_s27 = ssub.s32 128, %s735_s26  ;;  %v239_v39 = vand.u32 127, %v172_v1  ;;  %s245_s28 = scalar_lea.vmem [#allocation2], %s735_s26  ;;  %v242_v42 = vld [vmem:[%s827_s17] ss:$0 sm:$0xff]  ;;  %s735_s26 = sphi %s837_s26, %s182_s26  }
  0x2d   : >> { %vm191_vm1 = vcmp.ge.s32.totalorder %v822_v2, %v844_v8  ;;  %s251_s4 = scalar_lea.vmem [#allocation10], %s735_s26  ;;  %vm271_vm14 = vcmp.gt.s32.totalorder %v822_v2, %v844_v8  ;;  %s182_s26 = sadd.s32 1, %s735_s26  }
  0x2e   : >> { %vm193_vm3 = vmand %vm191_vm1, %vm192_vm0  ;;  %vm240_vm12 = vcmp.eq.s32.totalorder %v239_v39, %v844_v8  ;;  %v253_v44 = vld [vmem:[%s251_s4] ss:$0 sm:$0xff]  ;;  %p179_p11 = scmp.ge.s32.totalorder %s182_s26, 3  }
  0x2f   : > { %s414_s6 = sshrl.u32 (%p179_p11), %s779_s16, 3  ;;  %s653_s10 = scalar_lea.hbm (%p179_p11), %s941_s2, 2 }
  0x30   : > { %s876_s9 = sshll.u32 (%p179_p11), %s414_s6, 1 }
  0x32   : >> { %v187_v6 = vld [vmem:[#allocation2] sm:$0xff]  ;;  %v247_v40 = vld [vmem:[%s245_s28] ss:$0 sm:$0xff] }
  0x33   : >> { %v188_v7 = vand.u32 2147483647, %v187_v6 }
  0x35   : >> { %vm567_vm2 = vcmp.gt.f32.partialorder %v188_v7, -inf }
  0x36   : >> { %vm195_vm4 = vmand %vm193_vm3, %vm567_vm2 }
  0x37   : >> { %v196_v9 = vsel %vm195_vm4, %v822_v2, %v844_v8  ;;  %v197_v10 = vsel %vm195_vm4, %v188_v7, -inf  ;;  %vm288_vm4 = vmand %vm271_vm14, %vm240_vm12 }
  0x38   : >> { %v198_v11 = vrot.slane %v197_v10, 1  ;;  %v199_v12 = vrot.slane %v196_v9, 1 }
  0x3a   : >> { %vm200_vm5 = vcmp.ge.f32.partialorder %v198_v11, %v197_v10  ;;  %v203_v13 = vrot.slane %v198_v11, 1  ;;  %v204_v14 = vrot.slane %v199_v12, 1 }
  0x3b   : >> { %v201_v15 = vsel %vm200_vm5, %v198_v11, %v197_v10  ;;  %v202_v16 = vsel %vm200_vm5, %v199_v12, %v196_v9  ;;  %vm263_vm5 = vcmp.gt.s32.totalorder %v239_v39, %v844_v8 }
  0x3c   : >> { %vm205_vm6 = vcmp.ge.f32.partialorder %v203_v13, %v201_v15  ;;  %v208_v17 = vrot.slane %v203_v13, 1  ;;  %v209_v18 = vrot.slane %v204_v14, 1 }
  0x3d   : >> { %v206_v19 = vsel %vm205_vm6, %v203_v13, %v201_v15  ;;  %v207_v20 = vsel %vm205_vm6, %v204_v14, %v202_v16 }
  0x3e   : >> { %vm210_vm7 = vcmp.ge.f32.partialorder %v208_v17, %v206_v19  ;;  %v213_v21 = vrot.slane %v208_v17, 1  ;;  %v214_v22 = vrot.slane %v209_v18, 1 }
  0x3f   : >> { %v211_v23 = vsel %vm210_vm7, %v208_v17, %v206_v19  ;;  %v212_v24 = vsel %vm210_vm7, %v209_v18, %v207_v20 }
  0x40   : >> { %vm215_vm8 = vcmp.ge.f32.partialorder %v213_v21, %v211_v23  ;;  %v218_v25 = vrot.slane %v213_v21, 1  ;;  %v219_v26 = vrot.slane %v214_v22, 1 }
  0x41   : >> { %v216_v27 = vsel %vm215_vm8, %v213_v21, %v211_v23  ;;  %v217_v28 = vsel %vm215_vm8, %v214_v22, %v212_v24 }
  0x42   : >> { %vm220_vm9 = vcmp.ge.f32.partialorder %v218_v25, %v216_v27  ;;  %v223_v29 = vrot.slane %v218_v25, 1  ;;  %v224_v30 = vrot.slane %v219_v26, 1 }
  0x43   : >> { %v221_v31 = vsel %vm220_vm9, %v218_v25, %v216_v27  ;;  %v222_v32 = vsel %vm220_vm9, %v219_v26, %v217_v28 }
  0x44   : >> { %vm225_vm10 = vcmp.ge.f32.partialorder %v223_v29, %v221_v31  ;;  %v228_v33 = vrot.slane %v223_v29, 1  ;;  %v229_v34 = vrot.slane %v224_v30, 1 }
  0x45   : >> { %v226_v35 = vsel %vm225_vm10, %v223_v29, %v221_v31  ;;  %v227_v36 = vsel %vm225_vm10, %v224_v30, %v222_v32 }
  0x46   : >> { %vm230_vm11 = vcmp.ge.f32.partialorder %v228_v33, %v226_v35 }
  0x47   : >> { %v232_v37 = vsel %vm230_vm11, %v229_v34, %v227_v36 }
  0x48   : >> { %234 = vrot.lane.b32.xlu0 %v232_v37, %s233_s27  ;;  %s418_s27 = scalar_lea.hbm (%p179_p11), %s941_s2, %s876_s9 }
  0x49   : > { %s422_s26 = sshll.u32 (%p179_p11), %s418_s27, 4  ;;  %s423_s26 = int_to_ptr.hbm [resolvable:$true] %s422_s26 }
  0xba   : >> { %v235_v38 = vpop.permute.xlu0 %234 }
  0xbb   : >> { %576 = vpush %v235_v38 }
  0xec   : >> { %s577_s29 = spop %576 }
  0xed   : >> { %v241_v41 = vstv %s577_s29  ;;  %s246_s30 = scalar_lea.vmem [#allocation2], %s577_s29  ;;  %s252_s5 = scalar_lea.vmem [#allocation10], %s577_s29 }
  0xee   : >> { %v248_v43 = vld [vmem:[%s246_s30] ss:$0 sm:$0xff]  ;;  %v243_v46 = vsel %vm240_vm12, %v241_v41, %v242_v42  ;;  %s367_s29 = scalar_lea.sflag (%p179_p11), [#allocation6], %s816_s7 }
  0xef   : >> { %v254_v45 = vld [vmem:[%s252_s5] ss:$0 sm:$0xff]  ;;  %249 = vst [vmem:[%s246_s30] sm:$0x1] %v247_v40  ;;  %vm257_vm13 = vcmp.ne.f32.partialorder %v248_v43, 0.0  ;;  %v264_v62 = vsel %vm263_vm5, %v248_v43, 0.0  ;;  %s647_s30 = sshra.s32 (%p179_p11), %s423_s26, 4  ;;  %s648_s30 = int_to_ptr.hbm [resolvable:$true] %s647_s30 }
  0xf0   : >> { %250 = vst [vmem:[%s245_s28] sm:$0x1] %v248_v43  ;;  %vm258_vm15 = vmand %vm240_vm12, %vm257_vm13  ;;  %s420_s28 = sshll.u32 (%p179_p11), %s831_s20, 4  ;;  %p654_p1 = scmp.lt.s32.totalorder (%p179_p11), %s648_s30, %s941_s2  ;;  %s421_s28 = int_to_ptr.vmem [resolvable:$true] %s420_s28 }
  0xf1   : >> { %255 = vst [vmem:[%s252_s5] sm:$0x1] %v253_v44  ;;  %v259_v47 = vsel %vm258_vm15, %v248_v43, 1.0 }
  0xf2   : >> { %256 = vst [vmem:[%s251_s4] sm:$0x1] %v254_v45  ;;  %v272_v48 = vsel %vm271_vm14, %v259_v47, 1.0  ;;  %s649_s4 = scalar_lea.hbm (%p179_p11), %s648_s30, 2 }
  0xf3   : >> { %631 = vrcp.f32 %v272_v48  ;;  %244 = vst [vmem:[%s827_s17] sm:$0x1] %v243_v46  ;;  %v284_v52 = vand.u32 2147483648, %v272_v48  ;;  %v282_v54 = vand.u32 2147483647, %v272_v48  ;;  %vm278_vm1 = vweird.f32 %v272_v48  ;;  %s571_s17 = sshll.u32 (%p179_p11), %s779_s16, 2  ;;  %p650_p12 = scmp.ne.s32.totalorder (%p179_p11), %s648_s30, %s649_s4 }
  0xf4   : > { %p655_p2 = scmp.lt.s32.totalorder (%p179_p11), %s653_s10, %s649_s4 }
  0xf5   : >> { %v285_v56 = vor.u32 1.1754944e-38, %v284_v52  ;;  %vm283_vm3 = vcmp.eq.f32.partialorder %v282_v54, 8.507059e+37  ;;  %p651_p13 = pnand (%p179_p11), %p650_p12, %p796_p5 }
  0xf6   : > { %p656_p3 = por (%p179_p11), %p655_p2, %p654_p1 }
  0xf7   : >> { %v268_v58 = vld [vmem:[#allocation2] sm:$0xff]  ;;  %p652_p0 = pneg (%p179_p11), %p651_p13 }
  0xf9   : >> { %v632_v49 = vpop.eup %631  ;;  %v295_v4 = vld [vmem:[#allocation10] sm:$0xff] (%p179_p11)  ;;  %p657_p4 = pnand (%p179_p11), %p656_p3, %p652_p0 }
  0xfa   : >> { %v274_v50 = vmul.f32 %v632_v49, %v272_v48  ;;  %vm279_vm0 = vweird.f32 %v632_v49  ;;  %v352_v1 = vld [vmem:[#allocation4] sm:$0x3] (%p179_p11) }
  0xfb   : >> { %vm280_vm2 = vmor %vm278_vm1, %vm279_vm0  ;;  %355 = vst [vmem:[%s831_s20] sm:$0x3] (%p179_p11), %v352_v1 }
  0xfc   : >> { %v275_v51 = vsub.f32 1.0, %v274_v50 }
  0xfe   : >> { %v276_v53 = vmul.f32 %v632_v49, %v275_v51 }
 0x100   : >> { %v277_v55 = vadd.f32 %v632_v49, %v276_v53 }
 0x102   : >> { %v281_v57 = vsel %vm280_vm2, %v632_v49, %v277_v55 }
 0x103   : >> { %v286_v59 = vsel %vm283_vm3, %v285_v56, %v281_v57 }
 0x104   : >> { %v287_v60 = vmul.f32 %v286_v59, %v268_v58 }
 0x106   : >> { %v289_v61 = vsel %vm288_vm4, %v287_v60, 0.0 }
 0x107   : >> { %290 = vadd.xlane.f32.xlu0 %v289_v61 }
 0x130   : > { %311 = vxpose.xlu0.b32.start.end [1/1] (short) (narrow) (%p179_p11), %v295_v4, 8 }
 0x17a   : >> { %v291_v63 = vpop.xlane.xlu0 %290 }
 0x17b   : >> { %v292_v0 = vmul.f32 %v291_v63, %v264_v62  ;;  %181 = sbr.rel (!%p179_p11) target bundleno = 44 (0x2c), region = 173 }
 0x17d   : >> { %v293_v3 = vsub.f32 %v287_v60, %v292_v0 }
 0x17f   : >> { %294 = vst [vmem:[#allocation2] sm:$0xff] %v293_v3 }
 0x186   : > { %v346_v5 = vld [vmem:[#allocation2] sm:$0xf] }
 0x187   : > { %349 = vst [vmem:[%s144_s19] sm:$0xf] %v346_v5 }
 0x188   : > { %660 = shalt.err (!%p657_p4)
}
 0x189   : > { %578 = dma.vmem_to_hbm [thread:$0]  (%p796_p5), %s421_s28, 32, %s423_s26, %s367_s29  }
 0x18a   : > { %s377_s5 = scalar_lea.vmem %s940_s1, %s571_s17  ;;  %s433_s6 = scalar_lea.hbm %s942_s3, %s876_s9 }
 0x18b   : > { %s435_s10 = sshll.u32 %s833_s21, 4  ;;  %s437_s11 = sshll.u32 %s433_s6, 4  ;;  %s436_s10 = int_to_ptr.vmem [resolvable:$true] %s435_s10  ;;  %s438_s11 = int_to_ptr.hbm [resolvable:$true] %s437_s11 }
 0x18c   : > { %s372_s28 = scalar_lea.sflag [#allocation9], %s816_s7  ;;  %s675_s26 = sshra.s32 %s438_s11, 4  ;;  %s676_s26 = int_to_ptr.hbm [resolvable:$true] %s675_s26 }
 0x18d   : > { %s677_s17 = scalar_lea.hbm %s676_s26, 2  ;;  %p682_p11 = scmp.lt.s32.totalorder %s676_s26, %s942_s3 }
 0x18e   : > { %v394_v2 = vld [vmem:[%s144_s19] sm:$0xf]  ;;  %p678_p8 = scmp.ne.s32.totalorder %s676_s26, %s677_s17 }
 0x18f   : > { %395 = vst [vmem:[%s377_s5] sm:$0xf] %v394_v2 }
 0x190   : > { %p679_p9 = pnand %p678_p8, %p796_p5 }
 0x192   : > { %p680_p10 = pneg %p679_p9 }
 0x1d4   : > { %v327_v6 = vpop.trf.xlu0 }
 0x1d5   : > { %343 = vst [vmem:[%s835_s22] sm:$0x1] %v327_v6  ;;  %s681_s22 = scalar_lea.hbm %s942_s3, 2 }
 0x1d6   : > { %p683_p12 = scmp.lt.s32.totalorder %s681_s22, %s677_s17 }
 0x1d8   : > { %p684_p13 = por %p683_p12, %p682_p11 }
 0x1da   : > { %p685_p0 = pnand %p684_p13, %p680_p10 }
 0x1dc   : > { %v358_v7 = vld [vmem:[#allocation7] sm:$0x3] }
 0x1dd   : > { %361 = vst [vmem:[%s833_s21] sm:$0x3] %v358_v7 }
 0x1de   : > { %688 = shalt.err (!%p685_p0)
}
 0x1df   : > { %579 = dma.vmem_to_hbm [thread:$0]  (%p796_p5), %s436_s10, 32, %s438_s11, %s372_s28  }
 0x1e0 PF: > { %s453_s7 = sand.u32 1, %s719_s12   ;;  %p583_p1 = pnand %p559_p7, %p800_p6 }
 0x1e1   : > { %s454_s21 = scalar_lea.sflag [#allocation6], %s453_s7 }
 0x1e2   : > { %p584_p2 = pneg %p583_p1 }
 0x1e4   : > { %710 = dma.done.wait (%p584_p2), %s454_s21, 32  }
 0x1e5   : > { %712 = vsyncadd (%p584_p2), %s454_s21, 4294967264  ;;  %s464_s27 = scalar_lea.sflag [#allocation9], %s453_s7 }
 0x1e6   : > { %714 = dma.done.wait (%p584_p2), %s464_s27, 32  }
 0x1e7   : > { %716 = vsyncadd (%p584_p2), %s464_s27, 4294967264  ;;  %p13_p5 = scmp.ge.s32.totalorder %s783_s18, 4   ;;  %s945_s12 = smov %s723_s13 }
 0x1e8   : > { %s946_s13 = smov %s727_s14  ;;  %s947_s14 = smov %s794_s23 }
 0x1e9   : > { %s948_s15 = smov %s783_s18  ;;  %15 = sbr.rel (!%p13_p5) target bundleno = 5 (0x5), region = 184 }
 0x1ee   :  { %470 = vsyncpa [#allocation6], 1 }
 0x1ef   :  { %472 = vsyncpa [#allocation6 + $0x1], 1 }
 0x1f0   :  { %473 = vsyncpa [#allocation9], 1 }
 0x1f1   :  { %475 = vsyncpa [#allocation9 + $0x1], 1 }

// kernel: custom-call.117
= control target key start
LH: loop header
LB: loop body
LE: loop exit
PB: predicated region body
PF: predicated region fallthrough
CT: control target
= control target key end

     0   :  { %s373_s6 = smov 0   ;;  %s375_s7 = smov 0   ;;  %s422_s0 = inlined_call_operand.vmem [shape: f32[2,1,3,3], index: 0, kind: input, shape index: {}]   ;;  %s423_s1 = inlined_call_operand.vmem [shape: f32[2,1,3,3], index: 1, kind: output, shape index: {}]  }
   0x1   :  { %s377_s8 = smov 0  }
   0x2 LB: > { %s299_s9 = sadd.s32 4294967295, %s360_s8   ;;  %s33_s10 = sadd.s32 1, %s356_s7  ;;  %s360_s8 = sphi %s377_s8, %s7_s8   ;;  %s356_s7 = sphi %s375_s7, %s425_s7   ;;  %s352_s6 = sphi %s373_s6, %s424_s6  }
   0x3   : > { %p35_p0 = scmp.ge.s32.totalorder %s33_s10, 2  ;;  %p301_p1 = scmp.ge.s32.totalorder %s360_s8, 2 }
   0x4   : > { %s49_s11 = sand.u32 (!%p301_p1), 1, %s360_s8   ;;  %s303_s12 = sshll.u32 (!%p301_p1), %s356_s7, 2 }
   0x5   : > { %s427_s10 = smov (%p35_p0, %s33_s10), 0  ;;  %47 = sbr.rel (%p301_p1) target bundleno = 12 (0xc), region = 16 }
   0x6   : > { %s302_s13 = sshll.u32 (!%p301_p1), %s49_s11, 2  ;;  %s56_s16 = scalar_lea.vmem (!%p301_p1), %s422_s0, %s303_s12 }
   0x7   : > { %s51_s17 = scalar_lea.vmem (!%p301_p1), [#allocation1], %s302_s13 }
   0xa   : > { %v73_v0 = vld [vmem:[%s56_s16] sm:$0xf] }
   0xb   : > { %74 = vst [vmem:[%s51_s17] sm:$0xf] %v73_v0 }
   0xc PF: > { %p304_p2 = scmp.ge.s32.totalorder %s360_s8, 1  ;;  %p91_p3 = scmp.lt.s32.totalorder %s360_s8, 3 }
   0xe   : > { %p92_p4 = pnand %p304_p2, %p91_p3 }
  0x10   : > { %95 = sbr.rel (%p92_p4) target bundleno = 437 (0x1b5), region = 50 }
  0x15   : > { %s400_s18 = sand.u32 1, %s299_s9   ;;  %v113_v1 = vlaneseq  ;;  %v362_v20 = vmov -1.0   ;;  %s308_s22 = sshll.u32 %s352_s6, 2 }
  0x16   : > { %s305_s19 = sshll.u32 %s400_s18, 2  ;;  %s206_s25 = scalar_lea.vmem %s423_s1, %s308_s22 }
  0x17   : > { %s104_s20 = scalar_lea.vmem [#allocation1], %s305_s19  ;;  %v114_v3 = vand.u32 127, %v113_v1  ;;  %v117_v4 = vshrl.u32 %v113_v1, 7  ;;  %s108_s21 = scalar_lea.vmem [#allocation3], %s305_s19 }
  0x18   : > { %v111_v2 = vld [vmem:[%s104_s20] sm:$0xf] }
  0x19   : > { %112 = vst [vmem:[#allocation0] sm:$0xf] %v111_v2  ;;  %vm119_vm0 = vcmp.eq.s32.totalorder %v117_v4, %v114_v3  ;;  %vm115_vm1 = vcmp.lt.s32.totalorder %v114_v3, 3  ;;  %vm124_vm2 = vcmp.ge.s32.totalorder %v117_v4, %v114_v3  ;;  %vm151_vm8 = vcmp.eq.s32.totalorder %v114_v3, 0 }
  0x1a   : > { %vm125_vm3 = vmand %vm124_vm2, %vm115_vm1  ;;  %vm148_vm9 = vcmp.eq.s32.totalorder %v114_v3, %v117_v4  ;;  %v152_v21 = vsel %vm151_vm8, 1.0, %v362_v20  ;;  %vm159_vm10 = vcmp.eq.s32.totalorder %v114_v3, 1  ;;  %vm169_vm11 = vcmp.eq.s32.totalorder %v114_v3, 2 }
  0x1b   : > { %v153_v22 = vsel %vm148_vm9, %v152_v21, 0.0 }
  0x20   : > { %v120_v5 = vld [vmem:[#allocation0] sm:$0xff] }
  0x21   : > { %v121_v6 = vsel %vm119_vm0, %v120_v5, 0.0  ;;  %v126_v15 = vsel %vm125_vm3, %v120_v5, 0.0 }
  0x22   : > { %122 = vadd.xlane.f32.xlu0 %v121_v6 }
  0x95   : > { %v123_v7 = vpop.xlane.xlu0 %122 }
  0x96   : > { %336 = vrcp.f32 %v123_v7  ;;  %v138_v11 = vand.u32 2147483648, %v123_v7  ;;  %v136_v13 = vand.u32 2147483647, %v123_v7  ;;  %vm132_vm5 = vweird.f32 %v123_v7 }
  0x98   : > { %v139_v16 = vor.u32 1.1754944e-38, %v138_v11  ;;  %vm137_vm7 = vcmp.eq.f32.partialorder %v136_v13, 8.507059e+37 }
  0x9c   : > { %v337_v8 = vpop.eup %336 }
  0x9d   : > { %v128_v9 = vmul.f32 %v337_v8, %v123_v7  ;;  %vm133_vm4 = vweird.f32 %v337_v8 }
  0x9e   : > { %vm134_vm6 = vmor %vm132_vm5, %vm133_vm4 }
  0x9f   : > { %v129_v10 = vsub.f32 1.0, %v128_v9 }
  0xa1   : > { %v130_v12 = vmul.f32 %v337_v8, %v129_v10 }
  0xa3   : > { %v131_v14 = vadd.f32 %v337_v8, %v130_v12 }
  0xa5   : > { %v135_v17 = vsel %vm134_vm6, %v337_v8, %v131_v14 }
  0xa6   : > { %v140_v18 = vsel %vm137_vm7, %v139_v16, %v135_v17 }
  0xa7   : > { %v141_v19 = vmul.f32 %v140_v18, %v126_v15 }
  0xa9   : > { %142 = vst [vmem:[#allocation4] sm:$0xff] %v141_v19 }
  0xb0   : > { %v155_v23 = vld [vmem:[#allocation4 + $0x1] ss:$0 sm:$0xff]  ;;  %v165_v26 = vld [vmem:[#allocation4 + $0x2] ss:$0 sm:$0xff] }
  0xb1   : > { %v156_v24 = vxor.u32 2147483648, %v155_v23  ;;  %v166_v28 = vxor.u32 2147483648, %v165_v26 }
  0xb3   : > { %v160_v25 = vmul.f32 %v156_v24, %v153_v22 }
  0xb5   : > { %161 = vadd.xlane.f32.xlu0 %v160_v25 }
 0x128   : > { %v162_v27 = vpop.xlane.xlu0 %161 }
 0x129   : > { %v163_v29 = vsel %vm159_vm10, %v162_v27, %v153_v22 }
 0x12a   : > { %v170_v30 = vmul.f32 %v166_v28, %v163_v29 }
 0x12c   : > { %171 = vadd.xlane.f32.xlu1 %v170_v30 }
 0x19f   : > { %v172_v31 = vpop.xlane.xlu1 %171 }
 0x1a0   : > { %v173_v32 = vsel %vm169_vm11, %v172_v31, %v163_v29 }
 0x1a1   : > { %v188_v33 = vmul.f32 %v173_v32, %v140_v18 }
 0x1a3   : > { %v190_v34 = vsel %vm132_vm5, %v173_v32, %v188_v33 }
 0x1a4   : > { %191 = vst [vmem:[#allocation2] sm:$0xff] %v190_v34 }
 0x1ab   : > { %v194_v35 = vld [vmem:[#allocation2] sm:$0xf] }
 0x1ac   : > { %197 = vst [vmem:[%s108_s21] sm:$0xf] %v194_v35 }
 0x1b3   : > { %v223_v36 = vld [vmem:[%s108_s21] sm:$0xf] }
 0x1b4   : > { %224 = vst [vmem:[%s206_s25] sm:$0xf] %v223_v36 }
 0x1b5 PF: > { %s7_s8 = sadd.s32 1, %s360_s8   ;;  %s424_s6 = smov %s356_s7 }
 0x1b6   : > { %p4_p5 = scmp.ge.s32.totalorder %s7_s8, 4   ;;  %s425_s7 = smov %s427_s10 }
 0x1b8   :  { %6 = sbr.rel (!%p4_p5) target bundleno = 2 (0x2), region = 112 }

// kernel: custom-call.116
= control target key start
LH: loop header
LB: loop body
LE: loop exit
PB: predicated region body
PF: predicated region fallthrough
CT: control target
= control target key end

     0   :  { %s372_s6 = smov 0   ;;  %s374_s7 = smov 0   ;;  %s421_s0 = inlined_call_operand.vmem [shape: f32[2,1,3,3], index: 0, kind: input, shape index: {}]   ;;  %s422_s1 = inlined_call_operand.vmem [shape: f32[2,1,3,3], index: 1, kind: output, shape index: {}]  }
   0x1   :  { %s376_s8 = smov 0  }
   0x2 LB: > { %s298_s9 = sadd.s32 4294967295, %s359_s8   ;;  %s33_s10 = sadd.s32 1, %s355_s7  ;;  %s359_s8 = sphi %s376_s8, %s7_s8   ;;  %s355_s7 = sphi %s374_s7, %s424_s7   ;;  %s351_s6 = sphi %s372_s6, %s423_s6  }
   0x3   : > { %p35_p0 = scmp.ge.s32.totalorder %s33_s10, 2  ;;  %p300_p1 = scmp.ge.s32.totalorder %s359_s8, 2 }
   0x4   : > { %s49_s11 = sand.u32 (!%p300_p1), 1, %s359_s8   ;;  %s302_s12 = sshll.u32 (!%p300_p1), %s355_s7, 2 }
   0x5   : > { %s426_s10 = smov (%p35_p0, %s33_s10), 0  ;;  %47 = sbr.rel (%p300_p1) target bundleno = 12 (0xc), region = 16 }
   0x6   : > { %s301_s13 = sshll.u32 (!%p300_p1), %s49_s11, 2  ;;  %s56_s16 = scalar_lea.vmem (!%p300_p1), %s421_s0, %s302_s12 }
   0x7   : > { %s51_s17 = scalar_lea.vmem (!%p300_p1), [#allocation1], %s301_s13 }
   0xa   : > { %v73_v0 = vld [vmem:[%s56_s16] sm:$0xf] }
   0xb   : > { %74 = vst [vmem:[%s51_s17] sm:$0xf] %v73_v0 }
   0xc PF: > { %p303_p2 = scmp.ge.s32.totalorder %s359_s8, 1  ;;  %p91_p3 = scmp.lt.s32.totalorder %s359_s8, 3 }
   0xe   : > { %p92_p4 = pnand %p303_p2, %p91_p3 }
  0x10   : > { %95 = sbr.rel (%p92_p4) target bundleno = 437 (0x1b5), region = 50 }
  0x15   : > { %s399_s18 = sand.u32 1, %s298_s9   ;;  %v113_v1 = vlaneseq  ;;  %v361_v20 = vmov -1.0   ;;  %s307_s22 = sshll.u32 %s351_s6, 2 }
  0x16   : > { %s304_s19 = sshll.u32 %s399_s18, 2  ;;  %s205_s25 = scalar_lea.vmem %s422_s1, %s307_s22 }
  0x17   : > { %s104_s20 = scalar_lea.vmem [#allocation1], %s304_s19  ;;  %v114_v3 = vand.u32 127, %v113_v1  ;;  %v117_v4 = vshrl.u32 %v113_v1, 7  ;;  %s108_s21 = scalar_lea.vmem [#allocation3], %s304_s19 }
  0x18   : > { %v111_v2 = vld [vmem:[%s104_s20] sm:$0xf] }
  0x19   : > { %112 = vst [vmem:[#allocation0] sm:$0xf] %v111_v2  ;;  %vm119_vm0 = vcmp.eq.s32.totalorder %v117_v4, %v114_v3  ;;  %vm115_vm1 = vcmp.lt.s32.totalorder %v114_v3, 3  ;;  %vm124_vm2 = vcmp.le.s32.totalorder %v117_v4, %v114_v3  ;;  %vm151_vm8 = vcmp.eq.s32.totalorder %v114_v3, 2 }
  0x1a   : > { %vm125_vm3 = vmand %vm124_vm2, %vm115_vm1  ;;  %vm148_vm9 = vcmp.eq.s32.totalorder %v114_v3, %v117_v4  ;;  %v152_v21 = vsel %vm151_vm8, 1.0, %v361_v20  ;;  %vm159_vm10 = vcmp.eq.s32.totalorder %v114_v3, 1  ;;  %vm168_vm11 = vcmp.eq.s32.totalorder %v114_v3, 0 }
  0x1b   : > { %v153_v22 = vsel %vm148_vm9, %v152_v21, 0.0 }
  0x20   : > { %v120_v5 = vld [vmem:[#allocation0] sm:$0xff] }
  0x21   : > { %v121_v6 = vsel %vm119_vm0, %v120_v5, 0.0  ;;  %v126_v15 = vsel %vm125_vm3, %v120_v5, 0.0 }
  0x22   : > { %122 = vadd.xlane.f32.xlu0 %v121_v6 }
  0x95   : > { %v123_v7 = vpop.xlane.xlu0 %122 }
  0x96   : > { %335 = vrcp.f32 %v123_v7  ;;  %v138_v11 = vand.u32 2147483648, %v123_v7  ;;  %v136_v13 = vand.u32 2147483647, %v123_v7  ;;  %vm132_vm5 = vweird.f32 %v123_v7 }
  0x98   : > { %v139_v16 = vor.u32 1.1754944e-38, %v138_v11  ;;  %vm137_vm7 = vcmp.eq.f32.partialorder %v136_v13, 8.507059e+37 }
  0x9c   : > { %v336_v8 = vpop.eup %335 }
  0x9d   : > { %v128_v9 = vmul.f32 %v336_v8, %v123_v7  ;;  %vm133_vm4 = vweird.f32 %v336_v8 }
  0x9e   : > { %vm134_vm6 = vmor %vm132_vm5, %vm133_vm4 }
  0x9f   : > { %v129_v10 = vsub.f32 1.0, %v128_v9 }
  0xa1   : > { %v130_v12 = vmul.f32 %v336_v8, %v129_v10 }
  0xa3   : > { %v131_v14 = vadd.f32 %v336_v8, %v130_v12 }
  0xa5   : > { %v135_v17 = vsel %vm134_vm6, %v336_v8, %v131_v14 }
  0xa6   : > { %v140_v18 = vsel %vm137_vm7, %v139_v16, %v135_v17 }
  0xa7   : > { %v141_v19 = vmul.f32 %v140_v18, %v126_v15 }
  0xa9   : > { %142 = vst [vmem:[#allocation4] sm:$0xff] %v141_v19 }
  0xb0   : > { %v155_v23 = vld [vmem:[#allocation4 + $0x1] ss:$0 sm:$0xff]  ;;  %v164_v26 = vld [vmem:[#allocation4] ss:$0 sm:$0xff] }
  0xb1   : > { %v156_v24 = vxor.u32 2147483648, %v155_v23  ;;  %v165_v28 = vxor.u32 2147483648, %v164_v26 }
  0xb3   : > { %v160_v25 = vmul.f32 %v156_v24, %v153_v22 }
  0xb5   : > { %161 = vadd.xlane.f32.xlu0 %v160_v25 }
 0x128   : > { %v162_v27 = vpop.xlane.xlu0 %161 }
 0x129   : > { %v163_v29 = vsel %vm159_vm10, %v162_v27, %v153_v22 }
 0x12a   : > { %v169_v30 = vmul.f32 %v165_v28, %v163_v29 }
 0x12c   : > { %170 = vadd.xlane.f32.xlu1 %v169_v30 }
 0x19f   : > { %v171_v31 = vpop.xlane.xlu1 %170 }
 0x1a0   : > { %v172_v32 = vsel %vm168_vm11, %v171_v31, %v163_v29 }
 0x1a1   : > { %v187_v33 = vmul.f32 %v172_v32, %v140_v18 }
 0x1a3   : > { %v189_v34 = vsel %vm132_vm5, %v172_v32, %v187_v33 }
 0x1a4   : > { %190 = vst [vmem:[#allocation2] sm:$0xff] %v189_v34 }
 0x1ab   : > { %v193_v35 = vld [vmem:[#allocation2] sm:$0xf] }
 0x1ac   : > { %196 = vst [vmem:[%s108_s21] sm:$0xf] %v193_v35 }
 0x1b3   : > { %v222_v36 = vld [vmem:[%s108_s21] sm:$0xf] }
 0x1b4   : > { %223 = vst [vmem:[%s205_s25] sm:$0xf] %v222_v36 }
 0x1b5 PF: > { %s7_s8 = sadd.s32 1, %s359_s8   ;;  %s423_s6 = smov %s355_s7 }
 0x1b6   : > { %p4_p5 = scmp.ge.s32.totalorder %s7_s8, 4   ;;  %s424_s7 = smov %s426_s10 }
 0x1b8   :  { %6 = sbr.rel (!%p4_p5) target bundleno = 2 (0x2), region = 111 }

// kernel: mono_mvsnet_forward.12
= control target key start
LH: loop header
LB: loop body
LE: loop exit
PB: predicated region body
PF: predicated region fallthrough
CT: control target
= control target key end

     0   :  { %s719_s12 = smov 0   ;;  %s721_s13 = smov 0   ;;  %s814_s0 = inlined_call_operand.vmem [shape: bf16[8,27], index: 0, kind: input, shape index: {}]   ;;  %s815_s1 = inlined_call_operand.vmem [shape: f32[8,1], index: 1, kind: input, shape index: {}]   ;;  %s816_s2 = inlined_call_operand.vmem [shape: bf16[2,27,1024], index: 2, kind: input, shape index: {}]   ;;  %s817_s3 = inlined_call_operand.vmem [shape: f32[2,8,1024], index: 3, kind: output, shape index: {}]  }
   0x1   :  { %s723_s14 = smov 0  }
   0x2 LB: > { %s25_s15 = sadd.s32 1, %s691_s13  ;;  %p549_p0 = scmp.ge.s32.totalorder %s695_s14, 1  ;;  %s695_s14 = sphi %s723_s14, %s13_s14   ;;  %s691_s13 = sphi %s721_s13, %s819_s13   ;;  %s687_s12 = sphi %s719_s12, %s818_s12  }
   0x3   : > { %p27_p1 = scmp.ge.s32.totalorder %s25_s15, 2  ;;  %p158_p2 = scmp.lt.s32.totalorder %s695_s14, 3 }
   0x5   : > { %s821_s15 = smov (%p27_p1, %s25_s15), 0  ;;  %p159_p3 = pnand %p549_p0, %p158_p2 }
   0x6   : > { %p191_p4 = scmp.lt.s32.totalorder (!%p159_p3), %s687_s12, 1 }
   0x7   : > { %162 = sbr.rel (%p159_p3) target bundleno = 186 (0xba), region = 32 }
   0xc   : > { %vm310_vm0 = vcmask 1044480   ;;  %s823_s12 = smov (!%p191_p4, %s687_s12), 1  ;;  %vm311_vm1 = vcmask 1045504   ;;  %v697_v0 = vmov 65535   ;;  %v698_v2 = vmov 0   ;;  %v228_v3 = vld [vmem:[%s815_s1] sm:$0xff] }
   0xd   : > { %v312_v1 = vsel %vm310_vm0, 4294967295, %v697_v0  ;;  %672 = vset.pattern.permute.xlu0 %v698_v2  ;;  %s628_s16 = sshll.u32 %s823_s12, 7  ;;  %v211_v43 = vld [vmem:[%s814_s0] sm:$0xf]  ;;  %vm306_vm2 = vcmask 220160   ;;  %s629_s24 = sshll.u32 %s823_s12, 6 }
   0xe   : > { %s746_s21 = scalar_lea.vmem %s816_s2, %s628_s16  ;;  %v313_v4 = vsel %vm311_vm1, %v312_v1, 0  ;;  %231 = vperm.xlu0 %672, %v228_v3   ;;  %s795_s27 = scalar_lea.vmem %s817_s3, %s629_s24 }
   0xf   : > { %v588_v5 = vld [vmem:[%s746_s21 + $0x40] sm:$0xf]  ;;  %v638_v7 = vld [vmem:[%s746_s21 + $0x44] sm:$0xf]  ;;  %v596_v10 = vld [vmem:[%s746_s21 + $0x48] sm:$0xf] }
  0x10   : > { %v642_v6 = vld [vmem:[%s746_s21 + $0x5c] sm:$0x30]  ;;  %v590_v9 = vld [vmem:[%s746_s21 + $0x60] sm:$0x30]  ;;  %v643_v11 = vld [vmem:[%s746_s21 + $0x64] sm:$0x30] }
  0x11   : > { %v589_v8 = vor.u32 %v642_v6, %v588_v5  ;;  %v593_v12 = vor.u32 %v638_v7, %v590_v9  ;;  %v597_v13 = vor.u32 %v643_v11, %v596_v10  ;;  %v639_v14 = vld [vmem:[%s746_s21 + $0x4c] sm:$0xf]  ;;  %v556_v16 = vld [vmem:[%s746_s21] sm:$0xf]  ;;  %v630_v20 = vld [vmem:[%s746_s21 + $0x4] sm:$0xf] }
  0x12   : > { %v598_v15 = vld [vmem:[%s746_s21 + $0x68] sm:$0x30]  ;;  %v634_v19 = vld [vmem:[%s746_s21 + $0x1c] sm:$0xf0]  ;;  %v558_v21 = vld [vmem:[%s746_s21 + $0x20] sm:$0xf0] }
  0x13   : > { %v315_v17 = vand.u32 %v589_v8, %v313_v4  ;;  %v601_v18 = vor.u32 %v639_v14, %v598_v15  ;;  %v318_v22 = vand.u32 %v593_v12, %v313_v4  ;;  %v321_v23 = vand.u32 %v597_v13, %v313_v4  ;;  %v564_v24 = vld [vmem:[%s746_s21 + $0x8] sm:$0xf]  ;;  %v631_v26 = vld [vmem:[%s746_s21 + $0xc] sm:$0xf]  ;;  %v612_v30 = vld [vmem:[%s746_s21 + $0x58] sm:$0xf] }
  0x14   : > { %v635_v25 = vld [vmem:[%s746_s21 + $0x24] sm:$0xf0]  ;;  %v557_v28 = vor.u32 %v634_v19, %v556_v16  ;;  %v566_v29 = vld [vmem:[%s746_s21 + $0x28] sm:$0xf0]  ;;  %v645_v31 = vld [vmem:[%s746_s21 + $0x74] sm:$0x30]  ;;  %v561_v32 = vor.u32 %v630_v20, %v558_v21 }
  0x15   : > { %344 = vmatpush.bf16.msra.mxu0 %v315_v17  ;;  %v324_v27 = vand.u32 %v601_v18, %v313_v4  ;;  %357 = vmatpush.bf16.msra.mxu1 %v318_v22  ;;  %v565_v33 = vor.u32 %v635_v25, %v564_v24  ;;  %v613_v34 = vor.u32 %v645_v31, %v612_v30  ;;  %v641_v35 = vld [vmem:[%s746_s21 + $0x5c] sm:$0xf]  ;;  %v604_v37 = vld [vmem:[%s746_s21 + $0x50] sm:$0xf]  ;;  %v640_v41 = vld [vmem:[%s746_s21 + $0x54] sm:$0xf] }
  0x16   : > { %370 = vmatpush.bf16.msra.mxu2 %v321_v23  ;;  %v614_v36 = vld [vmem:[%s746_s21 + $0x78] sm:$0x30]  ;;  %v569_v38 = vor.u32 %v631_v26, %v566_v29  ;;  %v644_v40 = vld [vmem:[%s746_s21 + $0x6c] sm:$0x30]  ;;  %v606_v42 = vld [vmem:[%s746_s21 + $0x70] sm:$0x30] }
  0x17   : > { %383 = vmatpush.bf16.msra.mxu3 %v324_v27  ;;  %v617_v39 = vor.u32 %v641_v35, %v614_v36  ;;  %v333_v44 = vand.u32 %v613_v34, %v313_v4  ;;  %v605_v45 = vor.u32 %v644_v40, %v604_v37  ;;  %v609_v46 = vor.u32 %v640_v41, %v606_v42  ;;  %v580_v47 = vld [vmem:[%s746_s21 + $0x18] sm:$0xf]  ;;  %v633_v50 = vld [vmem:[%s746_s21 + $0x1c] sm:$0xf]  ;;  %v572_v55 = vld [vmem:[%s746_s21 + $0x10] sm:$0xf] }
  0x18   : > { %v637_v48 = vld [vmem:[%s746_s21 + $0x34] sm:$0xf0]  ;;  %v582_v51 = vld [vmem:[%s746_s21 + $0x38] sm:$0xf0]  ;;  %v636_v56 = vld [vmem:[%s746_s21 + $0x2c] sm:$0xf0] }
  0x19   : > { %345 = vmatpush.bf16.msra.mxu0 %v557_v28  ;;  %v336_v49 = vand.u32 %v617_v39, %v313_v4  ;;  %358 = vmatpush.bf16.msra.mxu1 %v561_v32  ;;  %v327_v52 = vand.u32 %v605_v45, %v313_v4  ;;  %v330_v53 = vand.u32 %v609_v46, %v313_v4  ;;  %v632_v58 = vld [vmem:[%s746_s21 + $0x14] sm:$0xf] }
  0x1a   : > { %371 = vmatpush.bf16.msra.mxu2 %v565_v33  ;;  %v581_v54 = vor.u32 %v637_v48, %v580_v47  ;;  %v585_v57 = vor.u32 %v633_v50, %v582_v51  ;;  %v574_v59 = vld [vmem:[%s746_s21 + $0x30] sm:$0xf0]  ;;  %v573_v60 = vor.u32 %v636_v56, %v572_v55 }
  0x1b   : > { %384 = vmatpush.bf16.msra.mxu3 %v569_v38  ;;  %v577_v61 = vor.u32 %v632_v58, %v574_v59 }
  0x1c   : > { %618 = vmatmul.msk.bf16.vlgmr.msra.gmra.mxu0 %vm306_vm2, %v211_v43  ;;  %619 = vmatmul.msk.bf16.vlgmr.msra.gmra.mxu1 %vm306_vm2, %v211_v43 }
  0x1d   : > { %620 = vmatmul.msk.bf16.vlgmr.msra.gmra.mxu2 %vm306_vm2, %v211_v43  ;;  %396 = vmatpush.bf16.msrb.mxu0 %v327_v52 }
  0x1e   : > { %422 = vmatpush.bf16.msrb.mxu2 %v333_v44  ;;  %621 = vmatmul.msk.bf16.vlgmr.msra.gmra.mxu3 %vm306_vm2, %v211_v43 }
  0x1f   : > { %435 = vmatpush.bf16.msrb.mxu3 %v336_v49  ;;  %409 = vmatpush.bf16.msrb.mxu1 %v330_v53 }
  0x21   : > { %397 = vmatpush.bf16.msrb.mxu0 %v573_v60 }
  0x22   : > { %423 = vmatpush.bf16.msrb.mxu2 %v581_v54 }
  0x23   : > { %436 = vmatpush.bf16.msrb.mxu3 %v585_v57  ;;  %410 = vmatpush.bf16.msrb.mxu1 %v577_v61 }
  0x2c   : > { %622 = vmatmul.msk.bf16.vlgmr.msrb.gmra.mxu0 %vm306_vm2, %v211_v43  ;;  %623 = vmatmul.msk.bf16.vlgmr.msrb.gmra.mxu1 %vm306_vm2, %v211_v43 }
  0x2d   : > { %624 = vmatmul.msk.bf16.vlgmr.msrb.gmra.mxu2 %vm306_vm2, %v211_v43 }
  0x2e   : > { %625 = vmatmul.msk.bf16.vlgmr.msrb.gmra.mxu3 %vm306_vm2, %v211_v43 }
  0x80   : > { %v232_v62 = vpop.permute.xlu0 %231 }
  0x99   : > { %v347_v63 = vpop.f32.mrf.mxu0  ;;  %v360_v0 = vpop.f32.mrf.mxu1 }
  0x9a   : > { %v348_v1 = vadd.f32 %v347_v63, %v232_v62  ;;  %v361_v2 = vadd.f32 %v360_v0, %v232_v62 }
  0x9c   : > { %v442_v3 = vmax.f32 %v348_v1, 0.0  ;;  %v443_v4 = vmax.f32 %v361_v2, 0.0 }
  0x9e   : > { %450 = vst [vmem:[%s795_s27] sm:$0xff] %v442_v3 }
  0x9f   : > { %451 = vst [vmem:[%s795_s27 + $0x8] sm:$0xff] %v443_v4 }
  0xa0   : > { %v373_v5 = vpop.f32.mrf.mxu2 }
  0xa1   : > { %v374_v6 = vadd.f32 %v373_v5, %v232_v62  ;;  %v386_v7 = vpop.f32.mrf.mxu3  ;;  %v349_v8 = vpop.f32.mrf.mxu0 }
  0xa2   : > { %v387_v9 = vadd.f32 %v386_v7, %v232_v62  ;;  %v362_v10 = vpop.f32.mrf.mxu1 }
  0xa3   : > { %v444_v11 = vmax.f32 %v374_v6, 0.0 }
  0xa4   : > { %v445_v12 = vmax.f32 %v387_v9, 0.0 }
  0xa5   : > { %452 = vst [vmem:[%s795_s27 + $0x10] sm:$0xff] %v444_v11 }
  0xa6   : > { %453 = vst [vmem:[%s795_s27 + $0x18] sm:$0xff] %v445_v12 }
  0xa8   : > { %v375_v13 = vpop.f32.mrf.mxu2 }
  0xa9   : > { %v388_v14 = vpop.f32.mrf.mxu3  ;;  %v399_v15 = vpop.f32.mrf.mxu0 }
  0xaa   : > { %v400_v16 = vadd.f32 %v399_v15, %v232_v62  ;;  %v412_v17 = vpop.f32.mrf.mxu1 }
  0xab   : > { %v413_v18 = vadd.f32 %v412_v17, %v232_v62 }
  0xac   : > { %v446_v19 = vmax.f32 %v400_v16, 0.0 }
  0xad   : > { %v447_v20 = vmax.f32 %v413_v18, 0.0 }
  0xae   : > { %454 = vst [vmem:[%s795_s27 + $0x20] sm:$0xff] %v446_v19 }
  0xaf   : > { %455 = vst [vmem:[%s795_s27 + $0x28] sm:$0xff] %v447_v20 }
  0xb0   : > { %v425_v21 = vpop.f32.mrf.mxu2 }
  0xb1   : > { %v426_v22 = vadd.f32 %v425_v21, %v232_v62  ;;  %v438_v23 = vpop.f32.mrf.mxu3  ;;  %v401_v24 = vpop.f32.mrf.mxu0 }
  0xb2   : > { %v439_v25 = vadd.f32 %v438_v23, %v232_v62  ;;  %v414_v26 = vpop.f32.mrf.mxu1 }
  0xb3   : > { %v448_v27 = vmax.f32 %v426_v22, 0.0 }
  0xb4   : > { %v449_v28 = vmax.f32 %v439_v25, 0.0 }
  0xb5   : > { %456 = vst [vmem:[%s795_s27 + $0x30] sm:$0xff] %v448_v27 }
  0xb6   : > { %457 = vst [vmem:[%s795_s27 + $0x38] sm:$0xff] %v449_v28 }
  0xb8   : > { %v427_v29 = vpop.f32.mrf.mxu2 }
  0xb9   : > { %v440_v30 = vpop.f32.mrf.mxu3 }
  0xba PF: > { %s13_s14 = sadd.s32 1, %s695_s14   ;;  %s818_s12 = smov %s691_s13 }
  0xbb   : > { %p10_p5 = scmp.ge.s32.totalorder %s13_s14, 4   ;;  %s819_s13 = smov %s821_s15 }
  0xbd   :  { %12 = sbr.rel (!%p10_p5) target bundleno = 2 (0x2), region = 62 }

// kernel: mono_mvsnet_forward.13
= control target key start
LH: loop header
LB: loop body
LE: loop exit
PB: predicated region body
PF: predicated region fallthrough
CT: control target
= control target key end

     0   :  { %s580_s12 = smov 0   ;;  %s582_s13 = smov 0   ;;  %s645_s0 = inlined_call_operand.vmem [shape: bf16[2,8], index: 0, kind: input, shape index: {}]   ;;  %s646_s1 = inlined_call_operand.vmem [shape: f32[2,1], index: 1, kind: input, shape index: {}]   ;;  %s647_s2 = inlined_call_operand.vmem [shape: bf16[2,8,1024], index: 2, kind: input, shape index: {}]   ;;  %s648_s3 = inlined_call_operand.vmem [shape: f32[2,2,1024], index: 3, kind: output, shape index: {}]  }
   0x1   :  { %s584_s14 = smov 0  }
   0x2 LB: > { %s25_s15 = sadd.s32 1, %s553_s13  ;;  %p492_p0 = scmp.ge.s32.totalorder %s557_s14, 1  ;;  %s557_s14 = sphi %s584_s14, %s13_s14   ;;  %s553_s13 = sphi %s582_s13, %s650_s13   ;;  %s549_s12 = sphi %s580_s12, %s649_s12  }
   0x3   : > { %p27_p1 = scmp.ge.s32.totalorder %s25_s15, 2  ;;  %p158_p2 = scmp.lt.s32.totalorder %s557_s14, 3 }
   0x5   : > { %s652_s15 = smov (%p27_p1, %s25_s15), 0  ;;  %p159_p3 = pnand %p492_p0, %p158_p2 }
   0x6   : > { %p191_p4 = scmp.lt.s32.totalorder (!%p159_p3), %s549_s12, 1 }
   0x7   : > { %162 = sbr.rel (%p159_p3) target bundleno = 181 (0xb5), region = 32 }
   0xc   : > { %v559_v0 = vmov 0   ;;  %v216_v1 = vld [vmem:[%s646_s1] sm:$0x3]  ;;  %s654_s12 = smov (!%p191_p4, %s549_s12), 1  ;;  %vm246_vm0 = vcmask 1043456   ;;  %vm242_vm1 = vcmask 64512  }
   0xd   : > { %534 = vset.pattern.permute.xlu0 %v559_v0  ;;  %s507_s18 = sshll.u32 %s654_s12, 5  ;;  %v211_v26 = vld [vmem:[%s645_s0] sm:$0x1]  ;;  %s508_s24 = sshll.u32 %s654_s12, 4  ;;  %vm389_vm2 = vcmask 1041408   ;;  %vm391_vm3 = vcmask 1045508  }
   0xe   : > { %219 = vperm.xlu0 %534, %v216_v1   ;;  %s198_s21 = scalar_lea.vmem %s647_s2, %s507_s18  ;;  %s208_s27 = scalar_lea.vmem %s648_s3, %s508_s24 }
   0xf   : > { %v212_v2 = vld [vmem:[%s198_s21] sm:$0xff]  ;;  %v213_v3 = vld [vmem:[%s198_s21 + $0x8] sm:$0xff]  ;;  %v215_v4 = vld [vmem:[%s198_s21 + $0x18] sm:$0xff] }
  0x10   : > { %v226_v5 = vunpack.c.l.b16 %v212_v2  ;;  %v227_v6 = vunpack.c.h.b16 %v212_v2  ;;  %v228_v7 = vunpack.c.l.b16 %v213_v3  ;;  %v229_v8 = vunpack.c.h.b16 %v213_v3  ;;  %v214_v9 = vld [vmem:[%s198_s21 + $0x10] sm:$0xff] }
  0x11   : > { %v232_v10 = vunpack.c.l.b16 %v215_v4  ;;  %v233_v11 = vunpack.c.h.b16 %v215_v4  ;;  %v230_v12 = vunpack.c.l.b16 %v214_v9  ;;  %v231_v13 = vunpack.c.h.b16 %v214_v9 }
  0x12   : > { %v234_v14 = vpack.c.b16 %v226_v5, %v226_v5  ;;  %v235_v15 = vpack.c.b16 %v227_v6, %v227_v6  ;;  %v236_v16 = vpack.c.b16 %v228_v7, %v228_v7  ;;  %v237_v17 = vpack.c.b16 %v229_v8, %v229_v8 }
  0x13   : > { %v240_v18 = vpack.c.b16 %v232_v10, %v232_v10  ;;  %v241_v19 = vpack.c.b16 %v233_v11, %v233_v11  ;;  %v238_v20 = vpack.c.b16 %v230_v12, %v230_v12  ;;  %v239_v21 = vpack.c.b16 %v231_v13, %v231_v13 }
  0x14   : > { %v248_v22 = vsel %vm246_vm0, %v234_v14, 0  ;;  %v251_v23 = vsel %vm246_vm0, %v235_v15, 0  ;;  %v254_v24 = vsel %vm246_vm0, %v236_v16, 0  ;;  %v257_v25 = vsel %vm246_vm0, %v237_v17, 0 }
  0x15   : > { %278 = vmatpush.bf16.msra.mxu0 %v248_v22  ;;  %291 = vmatpush.bf16.msra.mxu1 %v251_v23  ;;  %v266_v27 = vsel %vm246_vm0, %v240_v18, 0  ;;  %v269_v28 = vsel %vm246_vm0, %v241_v19, 0  ;;  %v260_v29 = vsel %vm246_vm0, %v238_v20, 0  ;;  %v263_v30 = vsel %vm246_vm0, %v239_v21, 0 }
  0x16   : > { %304 = vmatpush.bf16.msra.mxu2 %v254_v24  ;;  %317 = vmatpush.bf16.msra.mxu3 %v257_v25 }
  0x18   : > { %497 = vmatmul.msk.bf16.vlgmr.msra.gmra.mxu0 %vm242_vm1, %v211_v26  ;;  %498 = vmatmul.msk.bf16.vlgmr.msra.gmra.mxu1 %vm242_vm1, %v211_v26 }
  0x19   : > { %499 = vmatmul.msk.bf16.vlgmr.msra.gmra.mxu2 %vm242_vm1, %v211_v26  ;;  %500 = vmatmul.msk.bf16.vlgmr.msra.gmra.mxu3 %vm242_vm1, %v211_v26 }
  0x1a   : > { %356 = vmatpush.bf16.msrb.mxu2 %v266_v27  ;;  %369 = vmatpush.bf16.msrb.mxu3 %v269_v28 }
  0x1b   : > { %330 = vmatpush.bf16.msrb.mxu0 %v260_v29  ;;  %343 = vmatpush.bf16.msrb.mxu1 %v263_v30 }
  0x28   : > { %501 = vmatmul.msk.bf16.vlgmr.msrb.gmra.mxu0 %vm242_vm1, %v211_v26  ;;  %502 = vmatmul.msk.bf16.vlgmr.msrb.gmra.mxu1 %vm242_vm1, %v211_v26 }
  0x29   : > { %503 = vmatmul.msk.bf16.vlgmr.msrb.gmra.mxu2 %vm242_vm1, %v211_v26  ;;  %504 = vmatmul.msk.bf16.vlgmr.msrb.gmra.mxu3 %vm242_vm1, %v211_v26 }
  0x80   : > { %v220_v33 = vpop.permute.xlu0 %219 }
  0x95   : > { %v280_v31 = vpop.f32.mrf.mxu0  ;;  %v293_v32 = vpop.f32.mrf.mxu1 }
  0x96   : > { %v294_v34 = vadd.f32 %v293_v32, %v220_v33  ;;  %v281_v38 = vadd.f32 %v280_v31, %v220_v33 }
  0x98   : > { %v383_v40 = vrot.slane %v294_v34, 6 }
  0x9a   : > { %v390_v45 = vsel %vm389_vm2, %v281_v38, %v383_v40 }
  0x9c   : > { %v306_v35 = vpop.f32.mrf.mxu2  ;;  %v319_v36 = vpop.f32.mrf.mxu3 }
  0x9d   : > { %v307_v37 = vadd.f32 %v306_v35, %v220_v33  ;;  %v320_v39 = vadd.f32 %v319_v36, %v220_v33  ;;  %v282_v41 = vpop.f32.mrf.mxu0  ;;  %v295_v42 = vpop.f32.mrf.mxu1 }
  0x9f   : > { %v384_v43 = vrot.slane %v307_v37, 4  ;;  %v385_v44 = vrot.slane %v320_v39, 2 }
  0xa1   : > { %v392_v46 = vsel %vm391_vm3, %v384_v43, %v385_v44 }
  0xa2   : > { %v393_v47 = vsel %vm246_vm0, %v390_v45, %v392_v46 }
  0xa3   : > { %399 = vst [vmem:[%s208_s27] sm:$0xff] %v393_v47 }
  0xa4   : > { %v308_v48 = vpop.f32.mrf.mxu2  ;;  %v321_v49 = vpop.f32.mrf.mxu3 }
  0xa5   : > { %v332_v50 = vpop.f32.mrf.mxu0  ;;  %v345_v51 = vpop.f32.mrf.mxu1 }
  0xa6   : > { %v346_v52 = vadd.f32 %v345_v51, %v220_v33  ;;  %v333_v55 = vadd.f32 %v332_v50, %v220_v33 }
  0xa8   : > { %v386_v56 = vrot.slane %v346_v52, 6 }
  0xaa   : > { %v394_v63 = vsel %vm389_vm2, %v333_v55, %v386_v56 }
  0xac   : > { %v358_v53 = vpop.f32.mrf.mxu2  ;;  %v371_v54 = vpop.f32.mrf.mxu3 }
  0xad   : > { %v359_v57 = vadd.f32 %v358_v53, %v220_v33  ;;  %v372_v58 = vadd.f32 %v371_v54, %v220_v33  ;;  %v334_v59 = vpop.f32.mrf.mxu0  ;;  %v347_v60 = vpop.f32.mrf.mxu1 }
  0xaf   : > { %v387_v61 = vrot.slane %v359_v57, 4  ;;  %v388_v62 = vrot.slane %v372_v58, 2 }
  0xb1   : > { %v395_v0 = vsel %vm391_vm3, %v387_v61, %v388_v62 }
  0xb2   : > { %v396_v1 = vsel %vm246_vm0, %v394_v63, %v395_v0 }
  0xb3   : > { %400 = vst [vmem:[%s208_s27 + $0x8] sm:$0xff] %v396_v1 }
  0xb4   : > { %v360_v2 = vpop.f32.mrf.mxu2  ;;  %v373_v3 = vpop.f32.mrf.mxu3 }
  0xb5 PF: > { %s13_s14 = sadd.s32 1, %s557_s14   ;;  %s649_s12 = smov %s553_s13 }
  0xb6   : > { %p10_p5 = scmp.ge.s32.totalorder %s13_s14, 4   ;;  %s650_s13 = smov %s652_s15 }
  0xb8   :  { %12 = sbr.rel (!%p10_p5) target bundleno = 2 (0x2), region = 62 }

// kernel: mono_mvsnet_forward.20
= control target key start
LH: loop header
LB: loop body
LE: loop exit
PB: predicated region body
PF: predicated region fallthrough
CT: control target
= control target key end

     0   :  { %s1189_s15 = smov 0   ;;  %s1191_s16 = smov 0   ;;  %s1440_s0 = inlined_call_operand.vmem [shape: bf16[2,32,16], index: 0, kind: input, shape index: {}]   ;;  %s1441_s1 = inlined_call_operand.vmem [shape: bf16[2,2,11,32,16], index: 1, kind: input, shape index: {}]   ;;  %s1442_s2 = inlined_call_operand.vmem [shape: f32[2,1,16], index: 2, kind: input, shape index: {}]   ;;  %s1443_s3 = inlined_call_operand.vmem [shape: f32[11,1], index: 3, kind: input, shape index: {}]   ;;  %s1444_s4 = inlined_call_operand.vmem [shape: f32[2,1,1], index: 4, kind: output, shape index: {}]  }
   0x1   :  { %s1193_s17 = smov 0   ;;  %s1195_s18 = smov 0  }
   0x2   :  { %s1197_s19 = smov 0  }
   0x3 LB: > { %s26_s20 = sadd.s32 1, %s1153_s17  ;;  %s33_s21 = sadd.s32 1, %s1157_s18  ;;  %s1161_s19 = sphi %s1197_s19, %s14_s19   ;;  %s1157_s18 = sphi %s1195_s18, %s1448_s18   ;;  %s1153_s17 = sphi %s1193_s17, %s1447_s17   ;;  %s1149_s16 = sphi %s1191_s16, %s1446_s16   ;;  %s1145_s15 = sphi %s1189_s15, %s1445_s15  }
   0x4   : > { %p27_p0 = scmp.ge.s32.totalorder %s26_s20, 2  ;;  %p902_p1 = scmp.ge.s32.totalorder %s1161_s19, 1 }
   0x5   : > { %p220_p2 = scmp.lt.s32.totalorder %s1161_s19, 5 }
   0x6   : > { %s1450_s20 = smov (%p27_p0, %s26_s20), 0  ;;  %s1452_s21 = smov (!%p27_p0, %s33_s21), %s1157_s18 }
   0x7   : > { %p221_p3 = pnand %p902_p1, %p220_p2  ;;  %p35_p4 = scmp.ge.s32.totalorder %s1452_s21, 2 }
   0x8   : > { %p265_p5 = scmp.lt.s32.totalorder (!%p221_p3), %s1149_s16, 1  ;;  %p275_p6 = scmp.lt.s32.totalorder (!%p221_p3), %s1145_s15, 1 }
   0x9   : > { %s1454_s21 = smov (%p35_p4, %s1452_s21), 0  ;;  %224 = sbr.rel (%p221_p3) target bundleno = 446 (0x1be), region = 36 }
   0xa   : > { %p295_p7 = scmp.eq.s32.totalorder (!%p221_p3), %s1145_s15, 0 }
   0xe   : > { %s1456_s16 = smov (!%p265_p5, %s1149_s16), 1  ;;  %vm300_vm0 = vcmask (%p295_p7), 7168   ;;  %vm302_vm1 = vcmask (%p295_p7), 2048   ;;  %vm304_vm2 = vcmask (%p295_p7), 0   ;;  %v1163_v0 = vmov (%p295_p7), 0.0  }
   0xf   : > { %s276_s22 = scalar_select %p275_p6, %s1145_s15, 1  ;;  %301 = vst.msk [vmem:[#allocation2] sm:$0xff] (%p295_p7), %vm300_vm0, %v1163_v0 }
  0x10   : > { %s951_s23 = sshll.u32 %s1456_s16, 4  ;;  %s1073_s24 = smul.u32 88, %s1456_s16  ;;  %303 = vst.msk [vmem:[#allocation2 + $0x8] sm:$0x7] (%p295_p7), %vm302_vm1, %v1163_v0 }
  0x11   : > { %s272_s27 = scalar_lea.vmem %s1440_s0, %s951_s23  ;;  %s1072_s28 = smul.u32 44, %s276_s22  ;;  %305 = vst.msk [vmem:[#allocation3] sm:$0x1] (%p295_p7), %vm304_vm2, %v1163_v0 }
  0x12   : > { %s290_s5 = scalar_lea.vmem %s1442_s2, %s1456_s16  ;;  %s293_s8 = scalar_lea.vmem %s1444_s4, %s1456_s16 }
  0x13   : > { %s282_s9 = sadd.s32 %s1073_s24, %s1072_s28  ;;  %299 = sbr.rel (!%p295_p7) target bundleno = 24 (0x18), region = 40 }
  0x14   : > { %s905_s10 = sshll.u32 %s282_s9, 2 }
  0x15   : > { %s1242_s13 = scalar_lea.vmem %s1441_s1, %s905_s10 }
  0x18 PF: > { %v955_v1 = vld [vmem:[%s272_s27] sm:$0xff]   ;;  %v1050_v2 = vld [vmem:[%s272_s27 + $0x8] sm:$0xff]   ;;  %vm331_vm3 = vcmask 130048   ;;  %v1056_v41 = vld [vmem:[%s1242_s13 + $0x30] sm:$0xff]   ;;  %vm346_vm4 = vcmask 122880   ;;  %vm352_vm5 = vcmask 0  }
  0x19   : > { %v1244_v3 = vunpack.c.l.bf16 %v955_v1  ;;  %v1246_v4 = vunpack.c.h.bf16 %v955_v1  ;;  %v1248_v5 = vunpack.c.l.bf16 %v1050_v2  ;;  %v1250_v6 = vunpack.c.h.bf16 %v1050_v2  ;;  %v1054_v7 = vld [vmem:[%s1242_s13 + $0x20] sm:$0xff]   ;;  %v1055_v8 = vld [vmem:[%s1242_s13 + $0x28] sm:$0xff]   ;;  %v1057_v50 = vld [vmem:[%s1242_s13 + $0x38] sm:$0xff]   ;;  %p947_p8 = scmp.ne.s32.totalorder %s1145_s15, 0 }
  0x1a   : > { %v963_v9 = vld [vmem:[%s1242_s13] sm:$0xff]   ;;  %v980_v10 = vunpack.c.l.bf16 %v1054_v7  ;;  %v981_v11 = vunpack.c.h.bf16 %v1054_v7  ;;  %v984_v12 = vunpack.c.l.bf16 %v1055_v8  ;;  %v985_v13 = vunpack.c.h.bf16 %v1055_v8  ;;  %v1051_v14 = vld [vmem:[%s1242_s13 + $0x8] sm:$0xff]  }
  0x1b   : > { %v964_v15 = vunpack.c.l.bf16 %v963_v9  ;;  %v965_v16 = vunpack.c.h.bf16 %v963_v9  ;;  %v968_v17 = vunpack.c.l.bf16 %v1051_v14  ;;  %v969_v18 = vunpack.c.h.bf16 %v1051_v14  ;;  %v1058_v35 = vld [vmem:[%s1242_s13 + $0x40] sm:$0xff]   ;;  %v1059_v40 = vld [vmem:[%s1242_s13 + $0x48] sm:$0xff]  }
  0x1c   : > { %v400_v19 = vsub.f32 %v980_v10, %v1244_v3  ;;  %v401_v20 = vsub.f32 %v981_v11, %v1246_v4  ;;  %v402_v21 = vsub.f32 %v984_v12, %v1248_v5  ;;  %v403_v22 = vsub.f32 %v985_v13, %v1250_v6 }
  0x1d   : > { %v323_v23 = vsub.f32 %v964_v15, %v1244_v3  ;;  %v324_v24 = vsub.f32 %v965_v16, %v1246_v4  ;;  %v325_v25 = vsub.f32 %v968_v17, %v1248_v5  ;;  %v326_v26 = vsub.f32 %v969_v18, %v1250_v6  ;;  %v1052_v15 = vld [vmem:[%s1242_s13 + $0x10] sm:$0xff]  }
  0x1e   : > { %v404_v27 = vmul.f32 %v400_v19, %v400_v19  ;;  %v405_v28 = vmul.f32 %v401_v20, %v401_v20  ;;  %v406_v29 = vmul.f32 %v402_v21, %v402_v21  ;;  %v407_v30 = vmul.f32 %v403_v22, %v403_v22 }
  0x1f   : > { %v327_v31 = vmul.f32 %v323_v23, %v323_v23  ;;  %v328_v32 = vmul.f32 %v324_v24, %v324_v24  ;;  %v329_v33 = vmul.f32 %v325_v25, %v325_v25  ;;  %v330_v34 = vmul.f32 %v326_v26, %v326_v26 }
  0x20   : > { %v408_v36 = vsel %vm331_vm3, %v404_v27, 0.0  ;;  %v409_v37 = vsel %vm331_vm3, %v405_v28, 0.0  ;;  %v411_v38 = vsel %vm331_vm3, %v406_v29, 0.0  ;;  %v413_v39 = vsel %vm331_vm3, %v407_v30, 0.0 }
  0x21   : > { %v410_v42 = vadd.f32 %v409_v37, %v408_v36  ;;  %v332_v43 = vsel %vm331_vm3, %v327_v31, 0.0  ;;  %v333_v44 = vsel %vm331_vm3, %v328_v32, 0.0  ;;  %v335_v45 = vsel %vm331_vm3, %v329_v33, 0.0  ;;  %v1053_v32 = vld [vmem:[%s1242_s13 + $0x18] sm:$0xff]  }
  0x22   : > { %v334_v46 = vadd.f32 %v333_v44, %v332_v43  ;;  %v337_v47 = vsel %vm331_vm3, %v330_v34, 0.0  ;;  %v996_v48 = vunpack.c.l.bf16 %v1058_v35  ;;  %v997_v49 = vunpack.c.h.bf16 %v1058_v35 }
  0x23   : > { %v412_v51 = vadd.f32 %v411_v38, %v410_v42  ;;  %v1000_v52 = vunpack.c.l.bf16 %v1059_v40  ;;  %v1001_v53 = vunpack.c.h.bf16 %v1059_v40  ;;  %v988_v54 = vunpack.c.l.bf16 %v1056_v41 }
  0x24   : > { %v336_v55 = vadd.f32 %v335_v45, %v334_v46  ;;  %v474_v56 = vsub.f32 %v996_v48, %v1244_v3  ;;  %v475_v57 = vsub.f32 %v997_v49, %v1246_v4  ;;  %v989_v58 = vunpack.c.h.bf16 %v1056_v41  ;;  %v1299_v45 = vld [vmem:[%s290_s5] sm:$0x1] }
  0x25   : > { %v414_v59 = vadd.f32 %v413_v39, %v412_v51  ;;  %v476_v60 = vsub.f32 %v1000_v52, %v1248_v5  ;;  %v477_v61 = vsub.f32 %v1001_v53, %v1250_v6  ;;  %v992_v62 = vunpack.c.l.bf16 %v1057_v50 }
  0x26   : > { %v338_v63 = vadd.f32 %v337_v47, %v336_v55  ;;  %v478_v0 = vmul.f32 %v474_v56, %v474_v56  ;;  %v479_v1 = vmul.f32 %v475_v57, %v475_v57  ;;  %v993_v2 = vunpack.c.h.bf16 %v1057_v50 }
  0x27   : > { %v415_v7 = vrot.slane %v414_v59, 4  ;;  %v480_v8 = vmul.f32 %v476_v60, %v476_v60  ;;  %v481_v9 = vmul.f32 %v477_v61, %v477_v61  ;;  %v437_v10 = vsub.f32 %v988_v54, %v1244_v3 }
  0x28   : > { %v339_v11 = vrot.slane %v338_v63, 4  ;;  %v482_v12 = vsel %vm331_vm3, %v478_v0, 0.0  ;;  %v483_v13 = vsel %vm331_vm3, %v479_v1, 0.0  ;;  %v438_v14 = vsub.f32 %v989_v58, %v1246_v4 }
  0x29   : > { %v416_v16 = vadd.f32 %v415_v7, %v414_v59  ;;  %v484_v17 = vadd.f32 %v483_v13, %v482_v12  ;;  %v485_v18 = vsel %vm331_vm3, %v480_v8, 0.0  ;;  %v487_v19 = vsel %vm331_vm3, %v481_v9, 0.0  ;;  %v1061_v7 = vld [vmem:[%s1242_s13 + $0x58] sm:$0xff]   ;;  %v1064_v12 = vld [vmem:[%s1242_s13 + $0x70] sm:$0xff]  }
  0x2a   : > { %v340_v20 = vadd.f32 %v339_v11, %v338_v63  ;;  %v439_v21 = vsub.f32 %v992_v62, %v1248_v5  ;;  %v440_v22 = vsub.f32 %v993_v2, %v1250_v6  ;;  %v441_v23 = vmul.f32 %v437_v10, %v437_v10  ;;  %v1060_v62 = vld [vmem:[%s1242_s13 + $0x50] sm:$0xff]  }
  0x2b   : > { %v417_v24 = vrot.slane %v416_v16, 2  ;;  %v486_v25 = vadd.f32 %v485_v18, %v484_v17  ;;  %v442_v26 = vmul.f32 %v438_v14, %v438_v14  ;;  %v972_v27 = vunpack.c.l.bf16 %v1052_v15 }
  0x2c   : > { %v341_v28 = vrot.slane %v340_v20, 2  ;;  %v443_v29 = vmul.f32 %v439_v21, %v439_v21  ;;  %v444_v30 = vmul.f32 %v440_v22, %v440_v22  ;;  %v445_v31 = vsel %vm331_vm3, %v441_v23, 0.0 }
  0x2d   : > { %v418_v33 = vadd.f32 %v417_v24, %v416_v16  ;;  %v488_v34 = vadd.f32 %v487_v19, %v486_v25  ;;  %v446_v35 = vsel %vm331_vm3, %v442_v26, 0.0  ;;  %v973_v36 = vunpack.c.h.bf16 %v1052_v15 }
  0x2e   : > { %v342_v37 = vadd.f32 %v341_v28, %v340_v20  ;;  %v447_v38 = vadd.f32 %v446_v35, %v445_v31  ;;  %v448_v39 = vsel %vm331_vm3, %v443_v29, 0.0  ;;  %v450_v40 = vsel %vm331_vm3, %v444_v30, 0.0  ;;  %v1065_v29 = vld [vmem:[%s1242_s13 + $0x78] sm:$0xff]  }
  0x2f   : > { %v419_v41 = vrot.slane %v418_v33, 1  ;;  %v489_v42 = vrot.slane %v488_v34, 4  ;;  %v976_v43 = vunpack.c.l.bf16 %v1053_v32  ;;  %v977_v44 = vunpack.c.h.bf16 %v1053_v32 }
  0x30   : > { %v343_v46 = vrot.slane %v342_v37, 1  ;;  %v449_v47 = vadd.f32 %v448_v39, %v447_v38  ;;  %v363_v48 = vsub.f32 %v972_v27, %v1244_v3  ;;  %v364_v49 = vsub.f32 %v973_v36, %v1246_v4 }
  0x31   : > { %v420_v50 = vadd.f32 %v419_v41, %v418_v33  ;;  %v490_v51 = vadd.f32 %v489_v42, %v488_v34  ;;  %v365_v52 = vsub.f32 %v976_v43, %v1248_v5  ;;  %v366_v53 = vsub.f32 %v977_v44, %v1250_v6 }
  0x32   : > { %v344_v54 = vadd.f32 %v343_v46, %v342_v37  ;;  %v451_v55 = vadd.f32 %v450_v40, %v449_v47  ;;  %v367_v56 = vmul.f32 %v363_v48, %v363_v48  ;;  %v368_v57 = vmul.f32 %v364_v49, %v364_v49  ;;  %v1062_v47 = vld [vmem:[%s1242_s13 + $0x60] sm:$0xff]  }
  0x33   : > { %v421_v58 = vmul.f32 %v420_v50, %v1299_v45  ;;  %v491_v59 = vrot.slane %v490_v51, 2  ;;  %v369_v60 = vmul.f32 %v365_v52, %v365_v52  ;;  %v370_v61 = vmul.f32 %v366_v53, %v366_v53 }
  0x34   : > { %v345_v63 = vmul.f32 %v344_v54, %v1299_v45  ;;  %v452_v0 = vrot.slane %v451_v55, 4  ;;  %v371_v1 = vsel %vm331_vm3, %v367_v56, 0.0  ;;  %v372_v2 = vsel %vm331_vm3, %v368_v57, 0.0 }
  0x35   : > { %v422_v8 = vsel %vm346_vm4, %v421_v58, 0.0  ;;  %v492_v9 = vadd.f32 %v491_v59, %v490_v51  ;;  %v373_v10 = vadd.f32 %v372_v2, %v371_v1  ;;  %v374_v11 = vsel %vm331_vm3, %v369_v60, 0.0 }
  0x36   : > { %423 = vadd.xlane.f32.xlu1 %v422_v8  ;;  %v347_v13 = vsel %vm346_vm4, %v345_v63, 0.0  ;;  %v453_v14 = vadd.f32 %v452_v0, %v451_v55  ;;  %v376_v15 = vsel %vm331_vm3, %v370_v61, 0.0  ;;  %v1004_v16 = vunpack.c.l.bf16 %v1060_v62  ;;  %v1063_v0 = vld [vmem:[%s1242_s13 + $0x68] sm:$0xff]  }
  0x37   : > { %348 = vadd.xlane.f32.xlu0 %v347_v13  ;;  %v493_v17 = vrot.slane %v492_v9, 1  ;;  %v375_v18 = vadd.f32 %v374_v11, %v373_v10  ;;  %v1005_v19 = vunpack.c.h.bf16 %v1060_v62  ;;  %v1008_v20 = vunpack.c.l.bf16 %v1061_v7  ;;  %v1066_v13 = vld [vmem:[%s1242_s13 + $0x80] sm:$0xff]  }
  0x38   : > { %v454_v21 = vrot.slane %v453_v14, 2  ;;  %v1009_v22 = vunpack.c.h.bf16 %v1061_v7  ;;  %v511_v23 = vsub.f32 %v1004_v16, %v1244_v3  ;;  %v1020_v24 = vunpack.c.l.bf16 %v1064_v12 }
  0x39   : > { %v494_v25 = vadd.f32 %v493_v17, %v492_v9  ;;  %v377_v26 = vadd.f32 %v376_v15, %v375_v18  ;;  %v512_v27 = vsub.f32 %v1005_v19, %v1246_v4  ;;  %v513_v28 = vsub.f32 %v1008_v20, %v1248_v5 }
  0x3a   : > { %v455_v30 = vadd.f32 %v454_v21, %v453_v14  ;;  %v514_v31 = vsub.f32 %v1009_v22, %v1250_v6  ;;  %v515_v32 = vmul.f32 %v511_v23, %v511_v23  ;;  %v1021_v33 = vunpack.c.h.bf16 %v1064_v12 }
  0x3b   : > { %v495_v34 = vmul.f32 %v494_v25, %v1299_v45  ;;  %v378_v35 = vrot.slane %v377_v26, 4  ;;  %v516_v36 = vmul.f32 %v512_v27, %v512_v27  ;;  %v517_v37 = vmul.f32 %v513_v28, %v513_v28 }
  0x3c   : > { %v456_v38 = vrot.slane %v455_v30, 1  ;;  %v518_v39 = vmul.f32 %v514_v31, %v514_v31  ;;  %v519_v40 = vsel %vm331_vm3, %v515_v32, 0.0  ;;  %v1024_v41 = vunpack.c.l.bf16 %v1065_v29 }
  0x3d   : > { %v496_v42 = vsel %vm346_vm4, %v495_v34, 0.0  ;;  %v379_v43 = vadd.f32 %v378_v35, %v377_v26  ;;  %v520_v44 = vsel %vm331_vm3, %v516_v36, 0.0  ;;  %v522_v46 = vsel %vm331_vm3, %v517_v37, 0.0  ;;  %v1067_v34 = vld [vmem:[%s1242_s13 + $0x88] sm:$0xff]  }
  0x3e   : > { %497 = vadd.xlane.f32.xlu2 %v496_v42  ;;  %v457_v48 = vadd.f32 %v456_v38, %v455_v30  ;;  %v521_v49 = vadd.f32 %v520_v44, %v519_v40  ;;  %v524_v50 = vsel %vm331_vm3, %v518_v39, 0.0  ;;  %v1025_v51 = vunpack.c.h.bf16 %v1065_v29 }
  0x3f   : > { %v380_v52 = vrot.slane %v379_v43, 2  ;;  %v585_v53 = vsub.f32 %v1020_v24, %v1244_v3  ;;  %v586_v54 = vsub.f32 %v1021_v33, %v1246_v4  ;;  %v587_v55 = vsub.f32 %v1024_v41, %v1248_v5 }
  0x40   : > { %v458_v56 = vmul.f32 %v457_v48, %v1299_v45  ;;  %v523_v57 = vadd.f32 %v522_v46, %v521_v49  ;;  %v588_v58 = vsub.f32 %v1025_v51, %v1250_v6  ;;  %v1012_v59 = vunpack.c.l.bf16 %v1062_v47 }
  0x41   : > { %v381_v60 = vadd.f32 %v380_v52, %v379_v43  ;;  %v589_v61 = vmul.f32 %v585_v53, %v585_v53  ;;  %v590_v62 = vmul.f32 %v586_v54, %v586_v54  ;;  %v591_v63 = vmul.f32 %v587_v55, %v587_v55  ;;  %v1070_v43 = vld [vmem:[%s1242_s13 + $0xa0] sm:$0xff]  }
  0x42   : > { %v459_v1 = vsel %vm346_vm4, %v458_v56, 0.0  ;;  %v525_v2 = vadd.f32 %v524_v50, %v523_v57  ;;  %v592_v7 = vmul.f32 %v588_v58, %v588_v58  ;;  %v1013_v8 = vunpack.c.h.bf16 %v1062_v47 }
  0x43   : > { %460 = vadd.xlane.f32.xlu1 %v459_v1  ;;  %v382_v9 = vrot.slane %v381_v60, 1  ;;  %v593_v10 = vsel %vm331_vm3, %v589_v61, 0.0  ;;  %v594_v11 = vsel %vm331_vm3, %v590_v62, 0.0  ;;  %v596_v12 = vsel %vm331_vm3, %v591_v63, 0.0  ;;  %v1071_v61 = vld [vmem:[%s1242_s13 + $0xa8] sm:$0xff]  }
  0x44   : > { %v526_v14 = vrot.slane %v525_v2, 4  ;;  %v595_v15 = vadd.f32 %v594_v11, %v593_v10  ;;  %v598_v16 = vsel %vm331_vm3, %v592_v7, 0.0  ;;  %v1016_v17 = vunpack.c.l.bf16 %v1063_v0 }
  0x45   : > { %v383_v18 = vadd.f32 %v382_v9, %v381_v60  ;;  %v1017_v19 = vunpack.c.h.bf16 %v1063_v0  ;;  %v548_v20 = vsub.f32 %v1012_v59, %v1244_v3  ;;  %v549_v21 = vsub.f32 %v1013_v8, %v1246_v4 }
  0x46   : > { %v527_v22 = vadd.f32 %v526_v14, %v525_v2  ;;  %v597_v23 = vadd.f32 %v596_v12, %v595_v15  ;;  %v550_v24 = vsub.f32 %v1016_v17, %v1248_v5  ;;  %v1028_v25 = vunpack.c.l.bf16 %v1066_v13  ;;  %v1068_v14 = vld [vmem:[%s1242_s13 + $0x90] sm:$0xff]  }
  0x47   : > { %v384_v26 = vmul.f32 %v383_v18, %v1299_v45  ;;  %v551_v27 = vsub.f32 %v1017_v19, %v1250_v6  ;;  %v552_v28 = vmul.f32 %v548_v20, %v548_v20  ;;  %v553_v29 = vmul.f32 %v549_v21, %v549_v21 }
  0x48   : > { %v528_v30 = vrot.slane %v527_v22, 2  ;;  %v599_v31 = vadd.f32 %v598_v16, %v597_v23  ;;  %v554_v32 = vmul.f32 %v550_v24, %v550_v24  ;;  %v1029_v33 = vunpack.c.h.bf16 %v1066_v13 }
  0x49   : > { %v385_v35 = vsel %vm346_vm4, %v384_v26, 0.0  ;;  %v555_v36 = vmul.f32 %v551_v27, %v551_v27  ;;  %v556_v37 = vsel %vm331_vm3, %v552_v28, 0.0  ;;  %v557_v38 = vsel %vm331_vm3, %v553_v29, 0.0 }
  0x4a   : > { %386 = vadd.xlane.f32.xlu0 %v385_v35  ;;  %v529_v39 = vadd.f32 %v528_v30, %v527_v22  ;;  %v600_v40 = vrot.slane %v599_v31, 4  ;;  %v558_v41 = vadd.f32 %v557_v38, %v556_v37  ;;  %v559_v42 = vsel %vm331_vm3, %v554_v32, 0.0  ;;  %v1069_v35 = vld [vmem:[%s1242_s13 + $0x98] sm:$0xff]  }
  0x4b   : > { %v561_v44 = vsel %vm331_vm3, %v555_v36, 0.0  ;;  %v1032_v46 = vunpack.c.l.bf16 %v1067_v34  ;;  %v1033_v47 = vunpack.c.h.bf16 %v1067_v34  ;;  %v622_v48 = vsub.f32 %v1028_v25, %v1244_v3 }
  0x4c   : > { %v530_v49 = vrot.slane %v529_v39, 1  ;;  %v601_v50 = vadd.f32 %v600_v40, %v599_v31  ;;  %v560_v51 = vadd.f32 %v559_v42, %v558_v41  ;;  %v623_v52 = vsub.f32 %v1029_v33, %v1246_v4 }
  0x4d   : > { %v624_v53 = vsub.f32 %v1032_v46, %v1248_v5  ;;  %v625_v54 = vsub.f32 %v1033_v47, %v1250_v6  ;;  %v626_v55 = vmul.f32 %v622_v48, %v622_v48  ;;  %v1044_v56 = vunpack.c.l.bf16 %v1070_v43 }
  0x4e   : > { %v531_v57 = vadd.f32 %v530_v49, %v529_v39  ;;  %v602_v58 = vrot.slane %v601_v50, 2  ;;  %v562_v59 = vadd.f32 %v561_v44, %v560_v51  ;;  %v627_v60 = vmul.f32 %v623_v52, %v623_v52 }
  0x4f   : > { %v628_v62 = vmul.f32 %v624_v53, %v624_v53  ;;  %v629_v63 = vmul.f32 %v625_v54, %v625_v54  ;;  %v630_v0 = vsel %vm331_vm3, %v626_v55, 0.0  ;;  %v1045_v1 = vunpack.c.h.bf16 %v1070_v43 }
  0x50   : > { %v532_v2 = vmul.f32 %v531_v57, %v1299_v45  ;;  %v603_v7 = vadd.f32 %v602_v58, %v601_v50  ;;  %v563_v8 = vrot.slane %v562_v59, 4  ;;  %v631_v9 = vsel %vm331_vm3, %v627_v60, 0.0 }
  0x51   : > { %v632_v10 = vadd.f32 %v631_v9, %v630_v0  ;;  %v633_v11 = vsel %vm331_vm3, %v628_v62, 0.0  ;;  %v635_v12 = vsel %vm331_vm3, %v629_v63, 0.0  ;;  %v1048_v13 = vunpack.c.l.bf16 %v1071_v61 }
  0x52   : > { %v533_v15 = vsel %vm346_vm4, %v532_v2, 0.0  ;;  %v604_v16 = vrot.slane %v603_v7, 1  ;;  %v564_v17 = vadd.f32 %v563_v8, %v562_v59  ;;  %v1049_v18 = vunpack.c.h.bf16 %v1071_v61 }
  0x53   : > { %534 = vadd.xlane.f32.xlu2 %v533_v15  ;;  %v634_v19 = vadd.f32 %v633_v11, %v632_v10  ;;  %v696_v20 = vsub.f32 %v1044_v56, %v1244_v3  ;;  %v697_v21 = vsub.f32 %v1045_v1, %v1246_v4  ;;  %v698_v22 = vsub.f32 %v1048_v13, %v1248_v5 }
  0x54   : > { %v605_v23 = vadd.f32 %v604_v16, %v603_v7  ;;  %v565_v24 = vrot.slane %v564_v17, 2  ;;  %v699_v25 = vsub.f32 %v1049_v18, %v1250_v6  ;;  %v1036_v26 = vunpack.c.l.bf16 %v1068_v14 }
  0x55   : > { %v636_v27 = vadd.f32 %v635_v12, %v634_v19  ;;  %v700_v28 = vmul.f32 %v696_v20, %v696_v20  ;;  %v701_v29 = vmul.f32 %v697_v21, %v697_v21  ;;  %v702_v30 = vmul.f32 %v698_v22, %v698_v22 }
  0x56   : > { %v606_v31 = vmul.f32 %v605_v23, %v1299_v45  ;;  %v566_v32 = vadd.f32 %v565_v24, %v564_v17  ;;  %v703_v33 = vmul.f32 %v699_v25, %v699_v25  ;;  %v1037_v34 = vunpack.c.h.bf16 %v1068_v14 }
  0x57   : > { %v637_v36 = vrot.slane %v636_v27, 4  ;;  %v704_v37 = vsel %vm331_vm3, %v700_v28, 0.0  ;;  %v705_v38 = vsel %vm331_vm3, %v701_v29, 0.0  ;;  %v707_v39 = vsel %vm331_vm3, %v702_v30, 0.0 }
  0x58   : > { %v607_v40 = vsel %vm346_vm4, %v606_v31, 0.0  ;;  %v567_v41 = vrot.slane %v566_v32, 1  ;;  %v706_v42 = vadd.f32 %v705_v38, %v704_v37  ;;  %v709_v43 = vsel %vm331_vm3, %v703_v33, 0.0  ;;  %v388_v38 = vld [vmem:[#allocation2 + $0x1] sm:$0x1] }
  0x59   : > { %608 = vadd.xlane.f32.xlu1 %v607_v40  ;;  %v638_v44 = vadd.f32 %v637_v36, %v636_v27  ;;  %v1040_v46 = vunpack.c.l.bf16 %v1069_v35  ;;  %v1041_v47 = vunpack.c.h.bf16 %v1069_v35  ;;  %v659_v48 = vsub.f32 %v1036_v26, %v1244_v3  ;;  %v425_v26 = vld [vmem:[#allocation2 + $0x2] sm:$0x1]  ;;  %v350_v27 = vld [vmem:[#allocation2] sm:$0x1]  ;;  %v462_v35 = vld [vmem:[#allocation2 + $0x3] sm:$0x1] }
  0x5a   : > { %v568_v49 = vadd.f32 %v567_v41, %v566_v32  ;;  %v708_v50 = vadd.f32 %v707_v39, %v706_v42  ;;  %v660_v51 = vsub.f32 %v1037_v34, %v1246_v4  ;;  %v499_v32 = vld [vmem:[#allocation2 + $0x4] sm:$0x1]  ;;  %v536_v41 = vld [vmem:[#allocation2 + $0x5] sm:$0x1] }
  0x5b   : > { %v639_v52 = vrot.slane %v638_v44, 2  ;;  %v661_v53 = vsub.f32 %v1040_v46, %v1248_v5  ;;  %v662_v54 = vsub.f32 %v1041_v47, %v1250_v6  ;;  %v663_v55 = vmul.f32 %v659_v48, %v659_v48  ;;  %v573_v48 = vld [vmem:[#allocation2 + $0x6] sm:$0x1] }
  0x5c   : > { %v569_v56 = vmul.f32 %v568_v49, %v1299_v45  ;;  %v710_v57 = vadd.f32 %v709_v43, %v708_v50  ;;  %v664_v58 = vmul.f32 %v660_v51, %v660_v51  ;;  %v647_v51 = vld [vmem:[#allocation2 + $0x8] sm:$0x1] }
  0x5d   : > { %v640_v59 = vadd.f32 %v639_v52, %v638_v44  ;;  %v665_v60 = vmul.f32 %v661_v53, %v661_v53  ;;  %v666_v61 = vmul.f32 %v662_v54, %v662_v54  ;;  %v667_v62 = vsel %vm331_vm3, %v663_v55, 0.0  ;;  %v610_v44 = vld [vmem:[#allocation2 + $0x7] sm:$0x1]  ;;  %v721_v54 = vld [vmem:[#allocation2 + $0xa] sm:$0x1] }
  0x5e   : > { %v570_v3 = vsel %vm346_vm4, %v569_v56, 0.0  ;;  %v711_v63 = vrot.slane %v710_v57, 4  ;;  %v668_v4 = vsel %vm331_vm3, %v664_v58, 0.0 }
  0x5f   : > { %571 = vadd.xlane.f32.xlu0 %v570_v3  ;;  %v641_v0 = vrot.slane %v640_v59, 1  ;;  %v669_v5 = vadd.f32 %v668_v4, %v667_v62  ;;  %v670_v6 = vsel %vm331_vm3, %v665_v60, 0.0  ;;  %v672_v2 = vsel %vm331_vm3, %v666_v61, 0.0 }
  0x60   : > { %v712_v1 = vadd.f32 %v711_v63, %v710_v57  ;;  %v684_v57 = vld [vmem:[#allocation2 + $0x9] sm:$0x1] }
  0x61   : > { %v642_v7 = vadd.f32 %v641_v0, %v640_v59  ;;  %v671_v8 = vadd.f32 %v670_v6, %v669_v5 }
  0x62   : > { %v713_v9 = vrot.slane %v712_v1, 2 }
  0x63   : > { %v643_v10 = vmul.f32 %v642_v7, %v1299_v45  ;;  %v673_v11 = vadd.f32 %v672_v2, %v671_v8 }
  0x64   : > { %v714_v12 = vadd.f32 %v713_v9, %v712_v1 }
  0x65   : > { %v644_v13 = vsel %vm346_vm4, %v643_v10, 0.0  ;;  %v674_v14 = vrot.slane %v673_v11, 4 }
  0x66   : > { %645 = vadd.xlane.f32.xlu2 %v644_v13  ;;  %v715_v15 = vrot.slane %v714_v12, 1 }
  0x67   : > { %v675_v16 = vadd.f32 %v674_v14, %v673_v11 }
  0x68   : > { %v716_v17 = vadd.f32 %v715_v15, %v714_v12 }
  0x69   : > { %v676_v18 = vrot.slane %v675_v16, 2 }
  0x6a   : > { %v717_v19 = vmul.f32 %v716_v17, %v1299_v45 }
  0x6b   : > { %v677_v20 = vadd.f32 %v676_v18, %v675_v16 }
  0x6c   : > { %v718_v21 = vsel %vm346_vm4, %v717_v19, 0.0 }
  0x6d   : > { %719 = vadd.xlane.f32.xlu1 %v718_v21  ;;  %v678_v22 = vrot.slane %v677_v20, 1 }
  0x6f   : > { %v679_v23 = vadd.f32 %v678_v22, %v677_v20 }
  0x71   : > { %v680_v24 = vmul.f32 %v679_v23, %v1299_v45 }
  0x73   : > { %v681_v25 = vsel %vm346_vm4, %v680_v24, 0.0 }
  0x74   : > { %682 = vadd.xlane.f32.xlu0 %v681_v25 }
  0xa9   : > { %v424_v28 = vpop.xlane.xlu1 %423 }
  0xaa   : > { %v426_v29 = vadd.f32 %v425_v26, %v424_v28  ;;  %v349_v30 = vpop.xlane.xlu0 %348 }
  0xab   : > { %v351_v31 = vadd.f32 %v350_v27, %v349_v30 }
  0xac   : > { %427 = vst.msk [vmem:[#allocation2 + $0x2] sm:$0x1] %vm352_vm5, %v426_v29 }
  0xad   : > { %353 = vst.msk [vmem:[#allocation2] sm:$0x1] %vm352_vm5, %v351_v31 }
  0xb1   : > { %v498_v33 = vpop.xlane.xlu2 %497 }
  0xb2   : > { %v500_v34 = vadd.f32 %v499_v32, %v498_v33 }
  0xb4   : > { %501 = vst.msk [vmem:[#allocation2 + $0x4] sm:$0x1] %vm352_vm5, %v500_v34 }
  0xb6   : > { %v461_v36 = vpop.xlane.xlu1 %460 }
  0xb7   : > { %v463_v37 = vadd.f32 %v462_v35, %v461_v36 }
  0xb9   : > { %464 = vst.msk [vmem:[#allocation2 + $0x3] sm:$0x1] %vm352_vm5, %v463_v37 }
  0xbd   : > { %v387_v39 = vpop.xlane.xlu0 %386 }
  0xbe   : > { %v389_v40 = vadd.f32 %v388_v38, %v387_v39 }
  0xc0   : > { %390 = vst.msk [vmem:[#allocation2 + $0x1] sm:$0x1] %vm352_vm5, %v389_v40 }
  0xc6   : > { %v535_v42 = vpop.xlane.xlu2 %534 }
  0xc7   : > { %v537_v43 = vadd.f32 %v536_v41, %v535_v42 }
  0xc9   : > { %538 = vst.msk [vmem:[#allocation2 + $0x5] sm:$0x1] %vm352_vm5, %v537_v43 }
  0xcc   : > { %v609_v46 = vpop.xlane.xlu1 %608 }
  0xcd   : > { %v611_v47 = vadd.f32 %v610_v44, %v609_v46 }
  0xcf   : > { %612 = vst.msk [vmem:[#allocation2 + $0x7] sm:$0x1] %vm352_vm5, %v611_v47 }
  0xd2   : > { %v572_v49 = vpop.xlane.xlu0 %571 }
  0xd3   : > { %v574_v50 = vadd.f32 %v573_v48, %v572_v49 }
  0xd5   : > { %575 = vst.msk [vmem:[#allocation2 + $0x6] sm:$0x1] %vm352_vm5, %v574_v50 }
  0xd9   : > { %v646_v52 = vpop.xlane.xlu2 %645 }
  0xda   : > { %v648_v53 = vadd.f32 %v647_v51, %v646_v52 }
  0xdc   : > { %649 = vst.msk [vmem:[#allocation2 + $0x8] sm:$0x1] %vm352_vm5, %v648_v53 }
  0xe0   : > { %v720_v55 = vpop.xlane.xlu1 %719 }
  0xe1   : > { %v722_v56 = vadd.f32 %v721_v54, %v720_v55 }
  0xe3   : > { %723 = vst.msk [vmem:[#allocation2 + $0xa] sm:$0x1] %vm352_vm5, %v722_v56 }
  0xe6   : > { %726 = sbr.rel (%p947_p8) target bundleno = 355 (0x163), region = 44 }
  0xe7   : > { %v683_v58 = vpop.xlane.xlu0 %682 }
  0xe8   : > { %v685_v59 = vadd.f32 %v684_v57, %v683_v58 }
  0xea   : > { %686 = vst.msk [vmem:[#allocation2 + $0x9] sm:$0x1] %vm352_vm5, %v685_v59 }
  0xeb   : > { %v728_v60 = vsel %vm346_vm4, %v1299_v45, 0.0  ;;  %v727_v61 = vld [vmem:[#allocation3] sm:$0x1] }
  0xec   : > { %729 = vadd.xlane.f32.xlu0 %v728_v60 }
 0x15f   : > { %v730_v62 = vpop.xlane.xlu0 %729 }
 0x160   : > { %v731_v3 = vadd.f32 %v730_v62, %v727_v61 }
 0x162   : > { %732 = vst.msk [vmem:[#allocation3] sm:$0x1] %vm352_vm5, %v731_v3 }
 0x163 PF: > { %p733_p9 = scmp.eq.s32.totalorder %s1145_s15, 1 }
 0x164   : > { %v741_v0 = vld [vmem:[#allocation2] sm:$0xff] (%p733_p9)  ;;  %vm752_vm6 = vcmask (%p733_p9), 7168   ;;  %vm754_vm7 = vcmask (%p733_p9), 2048   ;;  %v782_v37 = vld [vmem:[%s1443_s3 + $0x8] sm:$0x7] (%p733_p9) }
 0x165   : > { %737 = sbr.rel (!%p733_p9) target bundleno = 446 (0x1be), region = 48  ;;  %v743_v6 = vmul.f32 (%p733_p9), 0.5, %v741_v0  ;;  %v781_v36 = vld [vmem:[%s1443_s3] sm:$0xff] (%p733_p9) }
 0x169   : > { %v738_v63 = vld [vmem:[#allocation3] sm:$0x1] (%p733_p9)  ;;  %v742_v5 = vld [vmem:[#allocation2 + $0x8] sm:$0x7] (%p733_p9) }
 0x16a   : > { %v739_v4 = vadd.f32 1e-06, %v738_v63  ;;  %v744_v1 = vmul.f32 0.5, %v742_v5 }
 0x16c   : > { %1115 = vrcp.f32 %v739_v4 }
 0x172   : > { %v1116_v2 = vpop.eup %1115 }
 0x173   : > { %v746_v7 = vperm.slane %v1116_v2, 0 }
 0x175   : > { %v748_v45 = vmul.f32 %v746_v7, %v743_v6  ;;  %v749_v8 = vmul.f32 %v746_v7, %v744_v1 }
 0x177   : > { %v750_v9 = vsub.f32 0.0, %v748_v45  ;;  %v751_v10 = vsub.f32 0.0, %v749_v8 }
 0x179   : > { %v753_v11 = vsel %vm752_vm6, %v750_v9, -inf  ;;  %v755_v12 = vsel %vm754_vm7, %v751_v10, -inf }
 0x17a   : > { %v756_v13 = vmax.f32 %v753_v11, %v755_v12 }
 0x17c   : > { %v757_v14 = vrot.slane %v756_v13, 4 }
 0x17e   : > { %v758_v15 = vmax.f32 %v756_v13, %v757_v14 }
 0x180   : > { %v759_v16 = vrot.slane %v758_v15, 2 }
 0x182   : > { %v760_v17 = vmax.f32 %v758_v15, %v759_v16 }
 0x184   : > { %v761_v18 = vrot.slane %v760_v17, 1 }
 0x186   : > { %v762_v19 = vmax.f32 %v760_v17, %v761_v18 }
 0x188   : > { %v763_v20 = vsub.f32 %v750_v9, %v762_v19  ;;  %v764_v21 = vsub.f32 %v751_v10, %v762_v19 }
 0x18a   : > { %v765_v22 = vmul.f32 1.442695, %v763_v20  ;;  %v767_v23 = vmul.f32 1.442695, %v764_v21 }
 0x18c   : > { %1117 = vpow2.f32 %v765_v22 }
 0x18d   : > { %1119 = vpow2.f32 %v767_v23 }
 0x192   : > { %v1118_v24 = vpop.eup %1117 }
 0x193   : > { %v1120_v25 = vpop.eup %1119  ;;  %v769_v26 = vsel %vm752_vm6, %v1118_v24, 0.0 }
 0x194   : > { %v770_v27 = vsel %vm754_vm7, %v1120_v25, 0.0 }
 0x195   : > { %v771_v28 = vadd.f32 %v770_v27, %v769_v26 }
 0x197   : > { %v772_v29 = vrot.slane %v771_v28, 4 }
 0x199   : > { %v773_v30 = vadd.f32 %v772_v29, %v771_v28 }
 0x19b   : > { %v774_v31 = vrot.slane %v773_v30, 2 }
 0x19d   : > { %v775_v32 = vadd.f32 %v774_v31, %v773_v30 }
 0x19f   : > { %v776_v33 = vrot.slane %v775_v32, 1 }
 0x1a1   : > { %v777_v34 = vadd.f32 %v776_v33, %v775_v32 }
 0x1a3   : > { %1121 = vrcp.f32 %v777_v34 }
 0x1a9   : > { %v1122_v35 = vpop.eup %1121 }
 0x1aa   : > { %v779_v38 = vmul.f32 %v1122_v35, %v1118_v24  ;;  %v780_v39 = vmul.f32 %v1122_v35, %v1120_v25 }
 0x1ac   : > { %v783_v40 = vmul.f32 %v781_v36, %v779_v38  ;;  %v784_v41 = vmul.f32 %v782_v37, %v780_v39 }
 0x1ae   : > { %v785_v42 = vsel %vm752_vm6, %v783_v40, 0.0  ;;  %v786_v43 = vsel %vm754_vm7, %v784_v41, 0.0 }
 0x1af   : > { %v787_v44 = vadd.f32 %v786_v43, %v785_v42 }
 0x1b1   : > { %v788_v46 = vrot.slane %v787_v44, 4 }
 0x1b3   : > { %v789_v47 = vadd.f32 %v788_v46, %v787_v44 }
 0x1b5   : > { %v790_v48 = vrot.slane %v789_v47, 2 }
 0x1b7   : > { %v791_v49 = vadd.f32 %v790_v48, %v789_v47 }
 0x1b9   : > { %v792_v50 = vrot.slane %v791_v49, 1 }
 0x1bb   : > { %v793_v51 = vadd.f32 %v792_v50, %v791_v49 }
 0x1bd   : > { %794 = vst.msk [vmem:[%s293_s8] sm:$0x1] %vm352_vm5, %v793_v51 }
 0x1be PF: > { %s14_s19 = sadd.s32 1, %s1161_s19   ;;  %s1445_s15 = smov %s1153_s17 }
 0x1bf   : > { %p11_p10 = scmp.ge.s32.totalorder %s14_s19, 6   ;;  %s1446_s16 = smov %s1157_s18 }
 0x1c0   : > { %s1447_s17 = smov %s1450_s20  ;;  %s1448_s18 = smov %s1454_s21 }
 0x1c1   :  { %13 = sbr.rel (!%p11_p10) target bundleno = 3 (0x3), region = 94 }

// kernel: squeeze.85
= control target key start
LH: loop header
LB: loop body
LE: loop exit
PB: predicated region body
PF: predicated region fallthrough
CT: control target
= control target key end

     0   :  { %s44_s8 = smov 116   ;;  %s45_s9 = smov 120   ;;  %vm7_vm0 = vcmask 31744   ;;  %s65_s0 = inlined_call_operand.vmem [shape: f32[2,16], index: 0, kind: input, shape index: {}]   ;;  %s66_s1 = inlined_call_operand.vmem [shape: f32[2,4,4], index: 1, kind: output, shape index: {}]  }
   0x1   :  { %v4_v0 = vld [vmem:[%s65_s0] sm:$0x3]  ;;  %s43_s0 = smov 124  }
   0x2   :  { %5 = vst [vmem:[#allocation1] sm:$0x3] %v4_v0 }
   0x9   :  { %v9_v1 = vld [vmem:[#allocation1] sm:$0x3]  }
   0xa   :  { %v21_v2 = vld [vmem:[#allocation1] sm:$0x3]   ;;  %10 = vrot.lane.b32.xlu0 %v9_v1, %s43_s0 }
   0xb   :  { %22 = vrot.lane.b32.xlu1 %v21_v2, %s44_s8  ;;  %v15_v3 = vld [vmem:[#allocation1] sm:$0x3]  }
   0xc   :  { %v6_v4 = vld [vmem:[#allocation1] sm:$0x3]  }
   0xd   :  { %8 = vst.msk [vmem:[#allocation0] ss:$8 sm:$0x3] %vm7_vm0, %v6_v4  }
  0x12   :  { %16 = vrot.lane.b32.xlu0 %v15_v3, %s45_s9 }
  0x7c   :  { %v11_v5 = vpop.permute.xlu0 %10  }
  0x7d   :  { %v23_v6 = vpop.permute.xlu1 %22   ;;  %14 = vst.msk [vmem:[#allocation0 + $0x1] ss:$8 sm:$0x3] %vm7_vm0, %v11_v5  }
  0x7e   :  { %26 = vst.msk [vmem:[#allocation0 + $0x3] ss:$8 sm:$0x3] %vm7_vm0, %v23_v6  }
  0x84   :  { %v17_v7 = vpop.permute.xlu0 %16  }
  0x85   :  { %20 = vst.msk [vmem:[#allocation0 + $0x2] ss:$8 sm:$0x3] %vm7_vm0, %v17_v7  }
  0x8c   :  { %v29_v8 = vld [vmem:[#allocation0] sm:$0xf]  ;;  %v34_v9 = vld [vmem:[#allocation0 + $0x8] sm:$0xf] }
  0x8d   :  { %32 = vst [vmem:[%s66_s1] sm:$0xf] %v29_v8 }
  0x8e   :  { %39 = vst [vmem:[%s66_s1 + $0x4] sm:$0xf] %v34_v9 }

// kernel: mono_mvsnet_forward.21
= control target key start
LH: loop header
LB: loop body
LE: loop exit
PB: predicated region body
PF: predicated region fallthrough
CT: control target
= control target key end

     0   :  { %s947_s12 = smov 0   ;;  %s949_s13 = smov 0   ;;  %s1126_s0 = inlined_call_operand.vmem [shape: bf16[2,32,16], index: 0, kind: input, shape index: {}]   ;;  %s1127_s1 = inlined_call_operand.vmem [shape: bf16[2,2,8,32,16], index: 1, kind: input, shape index: {}]   ;;  %s1128_s2 = inlined_call_operand.vmem [shape: f32[2,8,16], index: 2, kind: input, shape index: {}]   ;;  %s1129_s3 = inlined_call_operand.vmem [shape: f32[2,1,16], index: 3, kind: output, shape index: {}]  }
   0x1   :  { %s951_s14 = smov 0   ;;  %s953_s15 = smov 0  }
   0x2   :  { %s955_s16 = smov 0  }
   0x3 LB: > { %s25_s17 = sadd.s32 1, %s916_s14  ;;  %s32_s18 = sadd.s32 1, %s920_s15  ;;  %s924_s16 = sphi %s955_s16, %s13_s16   ;;  %s920_s15 = sphi %s953_s15, %s1133_s15   ;;  %s916_s14 = sphi %s951_s14, %s1132_s14   ;;  %s912_s13 = sphi %s949_s13, %s1131_s13   ;;  %s908_s12 = sphi %s947_s12, %s1130_s12  }
   0x4   : > { %p26_p0 = scmp.ge.s32.totalorder %s25_s17, 2  ;;  %p713_p1 = scmp.ge.s32.totalorder %s924_s16, 1 }
   0x5   : > { %p198_p2 = scmp.lt.s32.totalorder %s924_s16, 5 }
   0x6   : > { %s1135_s17 = smov (%p26_p0, %s25_s17), 0  ;;  %s1137_s18 = smov (!%p26_p0, %s32_s18), %s920_s15 }
   0x7   : > { %p199_p3 = pnand %p713_p1, %p198_p2  ;;  %p34_p4 = scmp.ge.s32.totalorder %s1137_s18, 2 }
   0x8   : > { %p245_p5 = scmp.lt.s32.totalorder (!%p199_p3), %s912_s13, 1  ;;  %p255_p6 = scmp.lt.s32.totalorder (!%p199_p3), %s908_s12, 1 }
   0x9   : > { %s1139_s18 = smov (%p34_p4, %s1137_s18), 0  ;;  %202 = sbr.rel (%p199_p3) target bundleno = 171 (0xab), region = 32 }
   0xa   : > { %p720_p7 = scmp.ne.s32.totalorder (!%p199_p3), %s908_s12, 0 }
   0xe   : > { %s1141_s13 = smov (!%p245_p5, %s912_s13), 1 }
   0xf   : > { %s256_s19 = scalar_select %p255_p6, %s908_s12, 1 }
  0x10   : > { %s752_s20 = sshll.u32 %s1141_s13, 4  ;;  %s717_s21 = sshll.u32 %s1141_s13, 6 }
  0x11   : > { %s252_s24 = scalar_lea.vmem %s1126_s0, %s752_s20  ;;  %s716_s25 = sshll.u32 %s256_s19, 5 }
  0x12   : > { %s262_s26 = sadd.s32 %s717_s21, %s716_s25  ;;  %s719_s27 = sshll.u32 %s1141_s13, 3 }
  0x13   : > { %s718_s28 = sshll.u32 %s262_s26, 2  ;;  %s992_s4 = scalar_lea.vmem %s1128_s2, %s719_s27 }
  0x14   : > { %s997_s7 = scalar_lea.vmem %s1127_s1, %s718_s28  ;;  %s277_s10 = scalar_lea.vmem %s1129_s3, %s1141_s13 }
  0x15   : > { %281 = sbr.rel (%p720_p7) target bundleno = 28 (0x1c), region = 36 }
  0x1a   : > { %vm282_vm0 = vcmask 130048   ;;  %v926_v0 = vmov 0.0  }
  0x1b   : > { %283 = vst.msk [vmem:[#allocation2] sm:$0xff] %vm282_vm0, %v926_v0 }
  0x1c PF: > { %v754_v1 = vld [vmem:[%s252_s24] sm:$0xff]   ;;  %v825_v2 = vld [vmem:[%s252_s24 + $0x8] sm:$0xff]   ;;  %vm308_vm1 = vcmask 130048   ;;  %v827_v9 = vld [vmem:[%s997_s7 + $0x10] sm:$0xff]   ;;  %vm324_vm2 = vcmask 122880   ;;  %p749_p8 = scmp.ne.s32.totalorder %s908_s12, 1 }
  0x1d   : > { %v762_v3 = vld [vmem:[%s997_s7] sm:$0xff]   ;;  %v1005_v4 = vunpack.c.l.bf16 %v754_v1  ;;  %v1007_v5 = vunpack.c.h.bf16 %v754_v1  ;;  %v1009_v6 = vunpack.c.l.bf16 %v825_v2  ;;  %v1011_v7 = vunpack.c.h.bf16 %v825_v2  ;;  %v826_v8 = vld [vmem:[%s997_s7 + $0x8] sm:$0xff]   ;;  %v828_v14 = vld [vmem:[%s997_s7 + $0x18] sm:$0xff]  }
  0x1e   : > { %v763_v10 = vunpack.c.l.bf16 %v762_v3  ;;  %v764_v11 = vunpack.c.h.bf16 %v762_v3  ;;  %v767_v12 = vunpack.c.l.bf16 %v826_v8  ;;  %v768_v13 = vunpack.c.h.bf16 %v826_v8  ;;  %v829_v35 = vld [vmem:[%s997_s7 + $0x20] sm:$0xff]   ;;  %v830_v40 = vld [vmem:[%s997_s7 + $0x28] sm:$0xff]   ;;  %v831_v41 = vld [vmem:[%s997_s7 + $0x30] sm:$0xff]  }
  0x1f   : > { %v771_v15 = vunpack.c.l.bf16 %v827_v9  ;;  %v772_v16 = vunpack.c.h.bf16 %v827_v9  ;;  %v775_v17 = vunpack.c.l.bf16 %v828_v14  ;;  %v776_v18 = vunpack.c.h.bf16 %v828_v14  ;;  %v832_v50 = vld [vmem:[%s997_s7 + $0x38] sm:$0xff]  }
  0x20   : > { %v300_v19 = vsub.f32 %v763_v10, %v1005_v4  ;;  %v301_v20 = vsub.f32 %v764_v11, %v1007_v5  ;;  %v302_v21 = vsub.f32 %v767_v12, %v1009_v6  ;;  %v303_v22 = vsub.f32 %v768_v13, %v1011_v7 }
  0x21   : > { %v335_v23 = vsub.f32 %v771_v15, %v1005_v4  ;;  %v336_v24 = vsub.f32 %v772_v16, %v1007_v5  ;;  %v337_v25 = vsub.f32 %v775_v17, %v1009_v6  ;;  %v338_v26 = vsub.f32 %v776_v18, %v1011_v7  ;;  %v833_v15 = vld [vmem:[%s997_s7 + $0x40] sm:$0xff]  }
  0x22   : > { %v304_v27 = vmul.f32 %v300_v19, %v300_v19  ;;  %v305_v28 = vmul.f32 %v301_v20, %v301_v20  ;;  %v306_v29 = vmul.f32 %v302_v21, %v302_v21  ;;  %v307_v30 = vmul.f32 %v303_v22, %v303_v22 }
  0x23   : > { %v339_v31 = vmul.f32 %v335_v23, %v335_v23  ;;  %v340_v32 = vmul.f32 %v336_v24, %v336_v24  ;;  %v341_v33 = vmul.f32 %v337_v25, %v337_v25  ;;  %v342_v34 = vmul.f32 %v338_v26, %v338_v26 }
  0x24   : > { %v309_v36 = vsel %vm308_vm1, %v304_v27, 0.0  ;;  %v310_v37 = vsel %vm308_vm1, %v305_v28, 0.0  ;;  %v312_v38 = vsel %vm308_vm1, %v306_v29, 0.0  ;;  %v314_v39 = vsel %vm308_vm1, %v307_v30, 0.0 }
  0x25   : > { %v311_v42 = vadd.f32 %v310_v37, %v309_v36  ;;  %v343_v43 = vsel %vm308_vm1, %v339_v31, 0.0  ;;  %v344_v44 = vsel %vm308_vm1, %v340_v32, 0.0  ;;  %v346_v45 = vsel %vm308_vm1, %v341_v33, 0.0  ;;  %v834_v32 = vld [vmem:[%s997_s7 + $0x48] sm:$0xff]  }
  0x26   : > { %v345_v46 = vadd.f32 %v344_v44, %v343_v43  ;;  %v348_v47 = vsel %vm308_vm1, %v342_v34, 0.0  ;;  %v779_v48 = vunpack.c.l.bf16 %v829_v35  ;;  %v780_v49 = vunpack.c.h.bf16 %v829_v35 }
  0x27   : > { %v313_v51 = vadd.f32 %v312_v38, %v311_v42  ;;  %v783_v52 = vunpack.c.l.bf16 %v830_v40  ;;  %v784_v53 = vunpack.c.h.bf16 %v830_v40  ;;  %v787_v54 = vunpack.c.l.bf16 %v831_v41 }
  0x28   : > { %v347_v55 = vadd.f32 %v346_v45, %v345_v46  ;;  %v368_v56 = vsub.f32 %v779_v48, %v1005_v4  ;;  %v369_v57 = vsub.f32 %v780_v49, %v1007_v5  ;;  %v788_v58 = vunpack.c.h.bf16 %v831_v41  ;;  %v322_v45 = vld [vmem:[#allocation2] sm:$0x1] }
  0x29   : > { %v315_v59 = vadd.f32 %v314_v39, %v313_v51  ;;  %v370_v60 = vsub.f32 %v783_v52, %v1009_v6  ;;  %v371_v61 = vsub.f32 %v784_v53, %v1011_v7  ;;  %v791_v62 = vunpack.c.l.bf16 %v832_v50  ;;  %v356_v51 = vld [vmem:[#allocation2 + $0x1] sm:$0x1] }
  0x2a   : > { %v349_v63 = vadd.f32 %v348_v47, %v347_v55  ;;  %v372_v0 = vmul.f32 %v368_v56, %v368_v56  ;;  %v373_v1 = vmul.f32 %v369_v57, %v369_v57  ;;  %v792_v2 = vunpack.c.h.bf16 %v832_v50 }
  0x2b   : > { %v316_v3 = vrot.slane %v315_v59, 4  ;;  %v374_v8 = vmul.f32 %v370_v60, %v370_v60  ;;  %v375_v9 = vmul.f32 %v371_v61, %v371_v61  ;;  %v401_v10 = vsub.f32 %v787_v54, %v1005_v4 }
  0x2c   : > { %v350_v11 = vrot.slane %v349_v63, 4  ;;  %v376_v12 = vsel %vm308_vm1, %v372_v0, 0.0  ;;  %v377_v13 = vsel %vm308_vm1, %v373_v1, 0.0  ;;  %v402_v14 = vsub.f32 %v788_v58, %v1007_v5  ;;  %v836_v0 = vld [vmem:[%s997_s7 + $0x58] sm:$0xff]  }
  0x2d   : > { %v317_v16 = vadd.f32 %v316_v3, %v315_v59  ;;  %v378_v17 = vadd.f32 %v377_v13, %v376_v12  ;;  %v379_v18 = vsel %vm308_vm1, %v374_v8, 0.0  ;;  %v381_v19 = vsel %vm308_vm1, %v375_v9, 0.0  ;;  %v837_v9 = vld [vmem:[%s997_s7 + $0x60] sm:$0xff]  }
  0x2e   : > { %v351_v20 = vadd.f32 %v350_v11, %v349_v63  ;;  %v403_v21 = vsub.f32 %v791_v62, %v1009_v6  ;;  %v404_v22 = vsub.f32 %v792_v2, %v1011_v7  ;;  %v405_v23 = vmul.f32 %v401_v10, %v401_v10  ;;  %v835_v63 = vld [vmem:[%s997_s7 + $0x50] sm:$0xff]  }
  0x2f   : > { %v318_v24 = vrot.slane %v317_v16, 2  ;;  %v380_v25 = vadd.f32 %v379_v18, %v378_v17  ;;  %v406_v26 = vmul.f32 %v402_v14, %v402_v14  ;;  %v795_v27 = vunpack.c.l.bf16 %v833_v15 }
  0x30   : > { %v352_v28 = vrot.slane %v351_v20, 2  ;;  %v407_v29 = vmul.f32 %v403_v21, %v403_v21  ;;  %v408_v30 = vmul.f32 %v404_v22, %v404_v22  ;;  %v409_v31 = vsel %vm308_vm1, %v405_v23, 0.0  ;;  %v389_v22 = vld [vmem:[#allocation2 + $0x2] sm:$0x1] }
  0x31   : > { %v319_v33 = vadd.f32 %v318_v24, %v317_v16  ;;  %v382_v34 = vadd.f32 %v381_v19, %v380_v25  ;;  %v410_v35 = vsel %vm308_vm1, %v406_v26, 0.0  ;;  %v796_v36 = vunpack.c.h.bf16 %v833_v15 }
  0x32   : > { %v353_v37 = vadd.f32 %v352_v28, %v351_v20  ;;  %v411_v38 = vadd.f32 %v410_v35, %v409_v31  ;;  %v412_v39 = vsel %vm308_vm1, %v407_v29, 0.0  ;;  %v414_v40 = vsel %vm308_vm1, %v408_v30, 0.0 }
  0x33   : > { %v320_v41 = vrot.slane %v319_v33, 1  ;;  %v383_v42 = vrot.slane %v382_v34, 4  ;;  %v799_v43 = vunpack.c.l.bf16 %v834_v32  ;;  %v800_v44 = vunpack.c.h.bf16 %v834_v32 }
  0x34   : > { %v354_v46 = vrot.slane %v353_v37, 1  ;;  %v413_v47 = vadd.f32 %v412_v39, %v411_v38  ;;  %v434_v48 = vsub.f32 %v795_v27, %v1005_v4  ;;  %v435_v49 = vsub.f32 %v796_v36, %v1007_v5  ;;  %v838_v27 = vld [vmem:[%s997_s7 + $0x68] sm:$0xff]  }
  0x35   : > { %v321_v50 = vadd.f32 %v320_v41, %v319_v33  ;;  %v384_v52 = vadd.f32 %v383_v42, %v382_v34  ;;  %v436_v53 = vsub.f32 %v799_v43, %v1009_v6  ;;  %v437_v54 = vsub.f32 %v800_v44, %v1011_v7  ;;  %v839_v44 = vld [vmem:[%s997_s7 + $0x70] sm:$0xff]  }
  0x36   : > { %v355_v55 = vadd.f32 %v354_v46, %v353_v37  ;;  %v415_v56 = vadd.f32 %v414_v40, %v413_v47  ;;  %v438_v57 = vmul.f32 %v434_v48, %v434_v48  ;;  %v439_v58 = vmul.f32 %v435_v49, %v435_v49 }
  0x37   : > { %v323_v59 = vadd.f32 %v322_v45, %v321_v50  ;;  %v385_v60 = vrot.slane %v384_v52, 2  ;;  %v440_v61 = vmul.f32 %v436_v53, %v436_v53  ;;  %v441_v62 = vmul.f32 %v437_v54, %v437_v54  ;;  %v422_v45 = vld [vmem:[#allocation2 + $0x3] sm:$0x1] }
  0x38   : > { %v357_v1 = vadd.f32 %v356_v51, %v355_v55  ;;  %v416_v2 = vrot.slane %v415_v56, 4  ;;  %v442_v3 = vsel %vm308_vm1, %v438_v57, 0.0  ;;  %v443_v8 = vsel %vm308_vm1, %v439_v58, 0.0  ;;  %v840_v58 = vld [vmem:[%s997_s7 + $0x78] sm:$0xff]  }
  0x39   : > { %325 = vst.msk [vmem:[#allocation2] sm:$0x1] %vm324_vm2, %v323_v59  ;;  %v386_v10 = vadd.f32 %v385_v60, %v384_v52  ;;  %v444_v11 = vadd.f32 %v443_v8, %v442_v3  ;;  %v445_v12 = vsel %vm308_vm1, %v440_v61, 0.0  ;;  %v447_v13 = vsel %vm308_vm1, %v441_v62, 0.0 }
  0x3a   : > { %358 = vst.msk [vmem:[#allocation2 + $0x1] sm:$0x1] %vm324_vm2, %v357_v1  ;;  %v417_v14 = vadd.f32 %v416_v2, %v415_v56  ;;  %v803_v15 = vunpack.c.l.bf16 %v835_v63  ;;  %v804_v16 = vunpack.c.h.bf16 %v835_v63  ;;  %v807_v17 = vunpack.c.l.bf16 %v836_v0 }
  0x3b   : > { %v387_v18 = vrot.slane %v386_v10, 1  ;;  %v446_v19 = vadd.f32 %v445_v12, %v444_v11  ;;  %v808_v20 = vunpack.c.h.bf16 %v836_v0  ;;  %v811_v21 = vunpack.c.l.bf16 %v837_v9 }
  0x3c   : > { %v418_v23 = vrot.slane %v417_v14, 2  ;;  %v467_v24 = vsub.f32 %v803_v15, %v1005_v4  ;;  %v468_v25 = vsub.f32 %v804_v16, %v1007_v5  ;;  %v469_v26 = vsub.f32 %v807_v17, %v1009_v6  ;;  %v455_v15 = vld [vmem:[#allocation2 + $0x4] sm:$0x1] }
  0x3d   : > { %v388_v28 = vadd.f32 %v387_v18, %v386_v10  ;;  %v448_v29 = vadd.f32 %v447_v13, %v446_v19  ;;  %v470_v30 = vsub.f32 %v808_v20, %v1011_v7  ;;  %v812_v31 = vunpack.c.h.bf16 %v837_v9 }
  0x3e   : > { %v419_v32 = vadd.f32 %v418_v23, %v417_v14  ;;  %v471_v33 = vmul.f32 %v467_v24, %v467_v24  ;;  %v472_v34 = vmul.f32 %v468_v25, %v468_v25  ;;  %v473_v35 = vmul.f32 %v469_v26, %v469_v26 }
  0x3f   : > { %v390_v36 = vadd.f32 %v389_v22, %v388_v28  ;;  %v449_v37 = vrot.slane %v448_v29, 4  ;;  %v474_v38 = vmul.f32 %v470_v30, %v470_v30  ;;  %v815_v39 = vunpack.c.l.bf16 %v838_v27 }
  0x40   : > { %v420_v40 = vrot.slane %v419_v32, 1  ;;  %v475_v41 = vsel %vm308_vm1, %v471_v33, 0.0  ;;  %v476_v42 = vsel %vm308_vm1, %v472_v34, 0.0  ;;  %v478_v43 = vsel %vm308_vm1, %v473_v35, 0.0 }
  0x41   : > { %391 = vst.msk [vmem:[#allocation2 + $0x2] sm:$0x1] %vm324_vm2, %v390_v36  ;;  %v450_v46 = vadd.f32 %v449_v37, %v448_v29  ;;  %v477_v47 = vadd.f32 %v476_v42, %v475_v41  ;;  %v480_v48 = vsel %vm308_vm1, %v474_v38, 0.0  ;;  %v816_v49 = vunpack.c.h.bf16 %v838_v27  ;;  %v488_v37 = vld [vmem:[#allocation2 + $0x5] sm:$0x1] }
  0x42   : > { %v421_v50 = vadd.f32 %v420_v40, %v419_v32  ;;  %v500_v51 = vsub.f32 %v811_v21, %v1005_v4  ;;  %v501_v52 = vsub.f32 %v812_v31, %v1007_v5  ;;  %v502_v53 = vsub.f32 %v815_v39, %v1009_v6 }
  0x43   : > { %v451_v54 = vrot.slane %v450_v46, 2  ;;  %v479_v55 = vadd.f32 %v478_v43, %v477_v47  ;;  %v503_v56 = vsub.f32 %v816_v49, %v1011_v7  ;;  %v819_v57 = vunpack.c.l.bf16 %v839_v44 }
  0x44   : > { %v423_v59 = vadd.f32 %v422_v45, %v421_v50  ;;  %v504_v60 = vmul.f32 %v500_v51, %v500_v51  ;;  %v505_v61 = vmul.f32 %v501_v52, %v501_v52  ;;  %v506_v62 = vmul.f32 %v502_v53, %v502_v53  ;;  %v554_v52 = vld [vmem:[#allocation2 + $0x7] sm:$0x1] }
  0x45   : > { %v452_v63 = vadd.f32 %v451_v54, %v450_v46  ;;  %v481_v0 = vadd.f32 %v480_v48, %v479_v55  ;;  %v507_v1 = vmul.f32 %v503_v56, %v503_v56  ;;  %v820_v2 = vunpack.c.h.bf16 %v839_v44  ;;  %v521_v46 = vld [vmem:[#allocation2 + $0x6] sm:$0x1] }
  0x46   : > { %424 = vst.msk [vmem:[#allocation2 + $0x3] sm:$0x1] %vm324_vm2, %v423_v59  ;;  %v508_v3 = vsel %vm308_vm1, %v504_v60, 0.0  ;;  %v509_v8 = vsel %vm308_vm1, %v505_v61, 0.0  ;;  %v511_v9 = vsel %vm308_vm1, %v506_v62, 0.0  ;;  %v823_v10 = vunpack.c.l.bf16 %v840_v58 }
  0x47   : > { %v453_v11 = vrot.slane %v452_v63, 1  ;;  %v482_v12 = vrot.slane %v481_v0, 4  ;;  %v510_v13 = vadd.f32 %v509_v8, %v508_v3  ;;  %v513_v14 = vsel %vm308_vm1, %v507_v1, 0.0 }
  0x48   : > { %v824_v16 = vunpack.c.h.bf16 %v840_v58  ;;  %v533_v17 = vsub.f32 %v819_v57, %v1005_v4  ;;  %v534_v18 = vsub.f32 %v820_v2, %v1007_v5  ;;  %v535_v19 = vsub.f32 %v823_v10, %v1009_v6 }
  0x49   : > { %v454_v20 = vadd.f32 %v453_v11, %v452_v63  ;;  %v483_v21 = vadd.f32 %v482_v12, %v481_v0  ;;  %v512_v22 = vadd.f32 %v511_v9, %v510_v13 }
  0x4a   : > { %v536_v23 = vsub.f32 %v824_v16, %v1011_v7  ;;  %v537_v24 = vmul.f32 %v533_v17, %v533_v17  ;;  %v538_v25 = vmul.f32 %v534_v18, %v534_v18  ;;  %v539_v26 = vmul.f32 %v535_v19, %v535_v19 }
  0x4b   : > { %v456_v27 = vadd.f32 %v455_v15, %v454_v20  ;;  %v484_v28 = vrot.slane %v483_v21, 2  ;;  %v514_v29 = vadd.f32 %v513_v14, %v512_v22 }
  0x4c   : > { %v540_v30 = vmul.f32 %v536_v23, %v536_v23  ;;  %v541_v31 = vsel %vm308_vm1, %v537_v24, 0.0  ;;  %v542_v4 = vsel %vm308_vm1, %v538_v25, 0.0  ;;  %v544_v5 = vsel %vm308_vm1, %v539_v26, 0.0 }
  0x4d   : > { %457 = vst.msk [vmem:[#allocation2 + $0x4] sm:$0x1] %vm324_vm2, %v456_v27  ;;  %v485_v6 = vadd.f32 %v484_v28, %v483_v21  ;;  %v515_v32 = vrot.slane %v514_v29, 4  ;;  %v543_v33 = vadd.f32 %v542_v4, %v541_v31 }
  0x4e   : > { %v546_v7 = vsel %vm308_vm1, %v540_v30, 0.0 }
  0x4f   : > { %v486_v34 = vrot.slane %v485_v6, 1  ;;  %v516_v35 = vadd.f32 %v515_v32, %v514_v29  ;;  %v545_v36 = vadd.f32 %v544_v5, %v543_v33 }
  0x51   : > { %v487_v38 = vadd.f32 %v486_v34, %v485_v6  ;;  %v517_v39 = vrot.slane %v516_v35, 2  ;;  %v547_v40 = vadd.f32 %v546_v7, %v545_v36 }
  0x53   : > { %v489_v41 = vadd.f32 %v488_v37, %v487_v38  ;;  %v518_v42 = vadd.f32 %v517_v39, %v516_v35  ;;  %v548_v43 = vrot.slane %v547_v40, 4 }
  0x55   : > { %490 = vst.msk [vmem:[#allocation2 + $0x5] sm:$0x1] %vm324_vm2, %v489_v41  ;;  %v519_v44 = vrot.slane %v518_v42, 1  ;;  %v549_v45 = vadd.f32 %v548_v43, %v547_v40 }
  0x57   : > { %v520_v47 = vadd.f32 %v519_v44, %v518_v42  ;;  %v550_v48 = vrot.slane %v549_v45, 2 }
  0x59   : > { %v522_v49 = vadd.f32 %v521_v46, %v520_v47  ;;  %v551_v50 = vadd.f32 %v550_v48, %v549_v45 }
  0x5b   : > { %523 = vst.msk [vmem:[#allocation2 + $0x6] sm:$0x1] %vm324_vm2, %v522_v49  ;;  %v552_v51 = vrot.slane %v551_v50, 1 }
  0x5d   : > { %v553_v53 = vadd.f32 %v552_v51, %v551_v50  ;;  %560 = sbr.rel (%p749_p8) target bundleno = 171 (0xab), region = 40 }
  0x5f   : > { %v555_v54 = vadd.f32 %v554_v52, %v553_v53 }
  0x61   : > { %556 = vst.msk [vmem:[#allocation2 + $0x7] sm:$0x1] %vm324_vm2, %v555_v54 }
  0x62   : > { %v583_v16 = vld [vmem:[%s992_s4] sm:$0xff] }
  0x68   : > { %v561_v55 = vld [vmem:[#allocation2] sm:$0xff] }
  0x69   : > { %v562_v56 = vmul.f32 0.5, %v561_v55 }
  0x6b   : > { %v563_v57 = vsub.f32 0.0, %v562_v56 }
  0x6d   : > { %v564_v58 = vsel %vm308_vm1, %v563_v57, -inf }
  0x6e   : > { %v565_v59 = vrot.slane %v564_v58, 4 }
  0x70   : > { %v566_v60 = vmax.f32 %v564_v58, %v565_v59 }
  0x72   : > { %v567_v61 = vrot.slane %v566_v60, 2 }
  0x74   : > { %v568_v62 = vmax.f32 %v566_v60, %v567_v61 }
  0x76   : > { %v569_v63 = vrot.slane %v568_v62, 1 }
  0x78   : > { %v570_v0 = vmax.f32 %v568_v62, %v569_v63 }
  0x7a   : > { %v571_v1 = vsub.f32 %v563_v57, %v570_v0 }
  0x7c   : > { %v572_v2 = vmul.f32 1.442695, %v571_v1 }
  0x7e   : > { %882 = vpow2.f32 %v572_v2 }
  0x84   : > { %v883_v3 = vpop.eup %882 }
  0x85   : > { %v574_v8 = vsel %vm308_vm1, %v883_v3, 0.0 }
  0x86   : > { %v575_v9 = vrot.slane %v574_v8, 4 }
  0x88   : > { %v576_v10 = vadd.f32 %v575_v9, %v574_v8 }
  0x8a   : > { %v577_v11 = vrot.slane %v576_v10, 2 }
  0x8c   : > { %v578_v12 = vadd.f32 %v577_v11, %v576_v10 }
  0x8e   : > { %v579_v13 = vrot.slane %v578_v12, 1 }
  0x90   : > { %v580_v14 = vadd.f32 %v579_v13, %v578_v12 }
  0x92   : > { %884 = vrcp.f32 %v580_v14 }
  0x98   : > { %v885_v15 = vpop.eup %884 }
  0x99   : > { %v582_v17 = vmul.f32 %v885_v15, %v883_v3 }
  0x9b   : > { %v584_v18 = vmul.f32 %v583_v16, %v582_v17 }
  0x9d   : > { %v585_v19 = vsel %vm308_vm1, %v584_v18, 0.0 }
  0x9e   : > { %v586_v20 = vrot.slane %v585_v19, 4 }
  0xa0   : > { %v587_v21 = vadd.f32 %v586_v20, %v585_v19 }
  0xa2   : > { %v588_v22 = vrot.slane %v587_v21, 2 }
  0xa4   : > { %v589_v23 = vadd.f32 %v588_v22, %v587_v21 }
  0xa6   : > { %v590_v24 = vrot.slane %v589_v23, 1 }
  0xa8   : > { %v591_v25 = vadd.f32 %v590_v24, %v589_v23 }
  0xaa   : > { %592 = vst.msk [vmem:[%s277_s10] sm:$0x1] %vm324_vm2, %v591_v25 }
  0xab PF: > { %s13_s16 = sadd.s32 1, %s924_s16   ;;  %s1130_s12 = smov %s916_s14 }
  0xac   : > { %p10_p9 = scmp.ge.s32.totalorder %s13_s16, 6   ;;  %s1131_s13 = smov %s920_s15 }
  0xad   : > { %s1132_s14 = smov %s1135_s17  ;;  %s1133_s15 = smov %s1139_s18 }
  0xae   :  { %12 = sbr.rel (!%p10_p9) target bundleno = 3 (0x3), region = 83 }

// kernel: mono_mvsnet_forward.18
= control target key start
LH: loop header
LB: loop body
LE: loop exit
PB: predicated region body
PF: predicated region fallthrough
CT: control target
= control target key end

     0   :  { %s429_s12 = smov 0   ;;  %s431_s13 = smov 0   ;;  %s471_s0 = inlined_call_operand.vmem [shape: bf16[16,16], index: 0, kind: input, shape index: {}]   ;;  %s472_s1 = inlined_call_operand.vmem [shape: f32[16,1], index: 1, kind: input, shape index: {}]   ;;  %s473_s2 = inlined_call_operand.vmem [shape: bf16[6,16,64], index: 2, kind: input, shape index: {}]   ;;  %s474_s3 = inlined_call_operand.vmem [shape: f32[6,16,64], index: 3, kind: output, shape index: {}]  }
   0x1   :  { %s433_s14 = smov 0  }
   0x2 LB: > { %s25_s15 = sadd.s32 1, %s402_s13  ;;  %p338_p0 = scmp.ge.s32.totalorder %s406_s14, 1  ;;  %s406_s14 = sphi %s433_s14, %s13_s14   ;;  %s402_s13 = sphi %s431_s13, %s476_s13   ;;  %s398_s12 = sphi %s429_s12, %s475_s12  }
   0x3   : > { %p27_p1 = scmp.ge.s32.totalorder %s25_s15, 6  ;;  %p156_p2 = scmp.lt.s32.totalorder %s406_s14, 7 }
   0x5   : > { %s478_s15 = smov (%p27_p1, %s25_s15), 0  ;;  %p157_p3 = pnand %p338_p0, %p156_p2 }
   0x6   : > { %p186_p4 = scmp.lt.s32.totalorder (!%p157_p3), %s398_s12, 5 }
   0x7   : > { %160 = sbr.rel (%p157_p3) target bundleno = 156 (0x9c), region = 32 }
   0xc   : > { %v207_v0 = vld [vmem:[%s472_s1] sm:$0xff]  ;;  %v408_v1 = vmov 0   ;;  %s480_s12 = smov (!%p186_p4, %s398_s12), 5  ;;  %v208_v4 = vld [vmem:[%s472_s1 + $0x8] sm:$0xff]  ;;  %vm230_vm0 = vcmask 130048   ;;  %vm248_vm1 = vcmask 523264  }
   0xd   : > { %383 = vset.pattern.permute.xlu0 %v408_v1  ;;  %s354_s18 = sshll.u32 %s480_s12, 3  ;;  %v356_v3 = vld [vmem:[%s471_s0] sm:$0xff]  ;;  %s355_s26 = sshll.u32 %s480_s12, 4 }
   0xe   : > { %211 = vperm.xlu0 %383, %v207_v0   ;;  %s193_s21 = scalar_lea.vmem %s473_s2, %s354_s18  ;;  %s201_s29 = scalar_lea.vmem %s474_s3, %s355_s26 }
   0xf   : > { %v357_v2 = vld [vmem:[%s193_s21] sm:$0xff] }
  0x10   : > { %241 = vmatpush.bf16.msra.mxu0 %v357_v2 }
  0x13   : > { %351 = vmatmul.msk.bf16.vlgmr.msra.gmra.mxu0 %vm230_vm0, %v356_v3 }
  0x16   : > { %216 = vperm.xlu0 %383, %v208_v4  }
  0x80   : > { %v212_v5 = vpop.permute.xlu0 %211 }
  0x88   : > { %v217_v8 = vpop.permute.xlu0 %216 }
  0x90   : > { %v243_v6 = vpop.f32.mrf.mxu0 }
  0x91   : > { %v244_v7 = vadd.f32 %v243_v6, %v212_v5 }
  0x93   : > { %249 = vst.msk [vmem:[%s201_s29] sm:$0xff] %vm248_vm1, %v244_v7 }
  0x98   : > { %v245_v9 = vpop.f32.mrf.mxu0 }
  0x99   : > { %v246_v10 = vadd.f32 %v245_v9, %v217_v8 }
  0x9b   : > { %250 = vst.msk [vmem:[%s201_s29 + $0x8] sm:$0xff] %vm248_vm1, %v246_v10 }
  0x9c PF: > { %s13_s14 = sadd.s32 1, %s406_s14   ;;  %s475_s12 = smov %s402_s13 }
  0x9d   : > { %p10_p5 = scmp.ge.s32.totalorder %s13_s14, 8   ;;  %s476_s13 = smov %s478_s15 }
  0x9f   :  { %12 = sbr.rel (!%p10_p5) target bundleno = 2 (0x2), region = 62 }

// kernel: squeeze.99
= control target key start
LH: loop header
LB: loop body
LE: loop exit
PB: predicated region body
PF: predicated region fallthrough
CT: control target
= control target key end

     0   :  { %s66_s8 = smov 104   ;;  %s67_s9 = smov 88   ;;  %vm7_vm0 = vcmask 64512   ;;  %s117_s0 = inlined_call_operand.vmem [shape: f32[2,64], index: 0, kind: input, shape index: {}]   ;;  %s118_s1 = inlined_call_operand.vmem [shape: f32[2,8,8], index: 1, kind: output, shape index: {}]  }
   0x1   :  { %v4_v0 = vld [vmem:[%s117_s0] sm:$0x3]  ;;  %s65_s0 = smov 120   ;;  %s68_s10 = smov 112  }
   0x2   :  { %5 = vst [vmem:[#allocation0] sm:$0x3] %v4_v0  ;;  %s69_s11 = smov 96   ;;  %s70_s12 = smov 80  }
   0x3   :  { %s71_s13 = smov 72  }
   0x9   :  { %v9_v1 = vld [vmem:[#allocation0] sm:$0x3]  }
   0xa   :  { %v21_v2 = vld [vmem:[#allocation0] sm:$0x3]   ;;  %10 = vrot.lane.b32.xlu0 %v9_v1, %s65_s0 }
   0xb   :  { %22 = vrot.lane.b32.xlu1 %v21_v2, %s66_s8  ;;  %v33_v3 = vld [vmem:[#allocation0] sm:$0x3]  }
   0xc   :  { %34 = vrot.lane.b32.xlu2 %v33_v3, %s67_s9  ;;  %v15_v4 = vld [vmem:[#allocation0] sm:$0x3]  }
   0xd   :  { %v27_v5 = vld [vmem:[#allocation0] sm:$0x3]  }
   0xe   :  { %v39_v6 = vld [vmem:[#allocation0] sm:$0x3]  }
   0xf   :  { %v45_v7 = vld [vmem:[#allocation0] sm:$0x3]  }
  0x10   :  { %v6_v8 = vld [vmem:[#allocation0] sm:$0x3]  }
  0x11   :  { %8 = vst.msk [vmem:[%s118_s1] ss:$8 sm:$0x3] %vm7_vm0, %v6_v8  }
  0x12   :  { %16 = vrot.lane.b32.xlu0 %v15_v4, %s68_s10 }
  0x13   :  { %28 = vrot.lane.b32.xlu1 %v27_v5, %s69_s11 }
  0x14   :  { %40 = vrot.lane.b32.xlu2 %v39_v6, %s70_s12 }
  0x1a   :  { %46 = vrot.lane.b32.xlu0 %v45_v7, %s71_s13 }
  0x66   :  { %v35_v9 = vpop.permute.xlu2 %34  }
  0x67   :  { %55 = vst.msk [vmem:[%s118_s1 + $0x5] ss:$8 sm:$0x3] %vm7_vm0, %v35_v9  }
  0x6e   :  { %v41_v10 = vpop.permute.xlu2 %40  }
  0x6f   :  { %56 = vst.msk [vmem:[%s118_s1 + $0x6] ss:$8 sm:$0x3] %vm7_vm0, %v41_v10  }
  0x7c   :  { %v11_v11 = vpop.permute.xlu0 %10  }
  0x7d   :  { %v23_v12 = vpop.permute.xlu1 %22   ;;  %51 = vst.msk [vmem:[%s118_s1 + $0x1] ss:$8 sm:$0x3] %vm7_vm0, %v11_v11  }
  0x7e   :  { %53 = vst.msk [vmem:[%s118_s1 + $0x3] ss:$8 sm:$0x3] %vm7_vm0, %v23_v12  }
  0x84   :  { %v17_v13 = vpop.permute.xlu0 %16  }
  0x85   :  { %v29_v14 = vpop.permute.xlu1 %28   ;;  %52 = vst.msk [vmem:[%s118_s1 + $0x2] ss:$8 sm:$0x3] %vm7_vm0, %v17_v13  }
  0x86   :  { %54 = vst.msk [vmem:[%s118_s1 + $0x4] ss:$8 sm:$0x3] %vm7_vm0, %v29_v14  }
  0x8c   :  { %v47_v15 = vpop.permute.xlu0 %46  }
  0x8d   :  { %57 = vst.msk [vmem:[%s118_s1 + $0x7] ss:$8 sm:$0x3] %vm7_vm0, %v47_v15  }

// kernel: mono_mvsnet_forward.22
= control target key start
LH: loop header
LB: loop body
LE: loop exit
PB: predicated region body
PF: predicated region fallthrough
CT: control target
= control target key end

     0   :  { %s788_s12 = smov 0   ;;  %s790_s13 = smov 0   ;;  %s922_s0 = inlined_call_operand.vmem [shape: bf16[2,16,64], index: 0, kind: input, shape index: {}]   ;;  %s923_s1 = inlined_call_operand.vmem [shape: bf16[2,2,8,16,64], index: 1, kind: input, shape index: {}]   ;;  %s924_s2 = inlined_call_operand.vmem [shape: f32[2,8,64], index: 2, kind: input, shape index: {}]   ;;  %s925_s3 = inlined_call_operand.vmem [shape: f32[2,1,64], index: 3, kind: output, shape index: {}]  }
   0x1   :  { %s792_s14 = smov 0   ;;  %s794_s15 = smov 0  }
   0x2   :  { %s796_s16 = smov 0  }
   0x3 LB: > { %s25_s17 = sadd.s32 1, %s757_s14  ;;  %s32_s18 = sadd.s32 1, %s761_s15  ;;  %s765_s16 = sphi %s796_s16, %s13_s16   ;;  %s761_s15 = sphi %s794_s15, %s929_s15   ;;  %s757_s14 = sphi %s792_s14, %s928_s14   ;;  %s753_s13 = sphi %s790_s13, %s927_s13   ;;  %s749_s12 = sphi %s788_s12, %s926_s12  }
   0x4   : > { %p26_p0 = scmp.ge.s32.totalorder %s25_s17, 2  ;;  %p613_p1 = scmp.ge.s32.totalorder %s765_s16, 1 }
   0x5   : > { %p198_p2 = scmp.lt.s32.totalorder %s765_s16, 5 }
   0x6   : > { %s931_s17 = smov (%p26_p0, %s25_s17), 0  ;;  %s933_s18 = smov (!%p26_p0, %s32_s18), %s761_s15 }
   0x7   : > { %p199_p3 = pnand %p613_p1, %p198_p2  ;;  %p34_p4 = scmp.ge.s32.totalorder %s933_s18, 2 }
   0x8   : > { %p245_p5 = scmp.lt.s32.totalorder (!%p199_p3), %s753_s13, 1  ;;  %p255_p6 = scmp.lt.s32.totalorder (!%p199_p3), %s749_s12, 1 }
   0x9   : > { %s935_s18 = smov (%p34_p4, %s933_s18), 0  ;;  %202 = sbr.rel (%p199_p3) target bundleno = 149 (0x95), region = 32 }
   0xa   : > { %p620_p7 = scmp.ne.s32.totalorder (!%p199_p3), %s749_s12, 0 }
   0xe   : > { %s937_s13 = smov (!%p245_p5, %s753_s13), 1 }
   0xf   : > { %s256_s19 = scalar_select %p255_p6, %s749_s12, 1 }
  0x10   : > { %s638_s20 = sshll.u32 %s937_s13, 3  ;;  %s617_s21 = sshll.u32 %s937_s13, 5 }
  0x11   : > { %s252_s24 = scalar_lea.vmem %s922_s0, %s638_s20  ;;  %s616_s25 = sshll.u32 %s256_s19, 4 }
  0x12   : > { %s262_s26 = sadd.s32 %s617_s21, %s616_s25  ;;  %s832_s29 = scalar_lea.vmem %s924_s2, %s638_s20 }
  0x13   : > { %s618_s30 = sshll.u32 %s262_s26, 2  ;;  %s277_s6 = scalar_lea.vmem %s925_s3, %s937_s13 }
  0x14   : > { %s841_s9 = scalar_lea.vmem %s923_s1, %s618_s30  ;;  %281 = sbr.rel (%p620_p7) target bundleno = 27 (0x1b), region = 36 }
  0x19   : > { %vm282_vm0 = vcmask 523264   ;;  %v767_v0 = vmov 0.0  }
  0x1a   : > { %283 = vst.msk [vmem:[#allocation2] sm:$0xff] %vm282_vm0, %v767_v0 }
  0x1b PF: > { %v640_v1 = vld [vmem:[%s252_s24] sm:$0xff]   ;;  %vm296_vm1 = vcmask 523264   ;;  %v675_v7 = vld [vmem:[%s841_s9 + $0x8] sm:$0xff]   ;;  %v676_v8 = vld [vmem:[%s841_s9 + $0x10] sm:$0xff]   ;;  %vm308_vm2 = vcmask 516096   ;;  %p635_p8 = scmp.ne.s32.totalorder %s749_s12, 1 }
  0x1c   : > { %v644_v2 = vld [vmem:[%s841_s9] sm:$0xff]   ;;  %v845_v3 = vunpack.c.l.bf16 %v640_v1  ;;  %v847_v4 = vunpack.c.h.bf16 %v640_v1  ;;  %v649_v9 = vunpack.c.l.bf16 %v675_v7  ;;  %v650_v10 = vunpack.c.h.bf16 %v675_v7  ;;  %v677_v13 = vld [vmem:[%s841_s9 + $0x18] sm:$0xff]   ;;  %v679_v39 = vld [vmem:[%s841_s9 + $0x28] sm:$0xff]  }
  0x1d   : > { %v645_v5 = vunpack.c.l.bf16 %v644_v2  ;;  %v646_v6 = vunpack.c.h.bf16 %v644_v2  ;;  %v653_v11 = vunpack.c.l.bf16 %v676_v8  ;;  %v654_v12 = vunpack.c.h.bf16 %v676_v8  ;;  %v678_v34 = vld [vmem:[%s841_s9 + $0x20] sm:$0xff]  }
  0x1e   : > { %v657_v16 = vunpack.c.l.bf16 %v677_v13  ;;  %v658_v17 = vunpack.c.h.bf16 %v677_v13  ;;  %v315_v18 = vsub.f32 %v649_v9, %v845_v3  ;;  %v316_v19 = vsub.f32 %v650_v10, %v847_v4  ;;  %v680_v10 = vld [vmem:[%s841_s9 + $0x30] sm:$0xff]  }
  0x1f   : > { %v292_v14 = vsub.f32 %v645_v5, %v845_v3  ;;  %v293_v15 = vsub.f32 %v646_v6, %v847_v4  ;;  %v336_v20 = vsub.f32 %v653_v11, %v845_v3  ;;  %v337_v21 = vsub.f32 %v654_v12, %v847_v4 }
  0x20   : > { %v357_v24 = vsub.f32 %v657_v16, %v845_v3  ;;  %v358_v25 = vsub.f32 %v658_v17, %v847_v4  ;;  %v317_v26 = vmul.f32 %v315_v18, %v315_v18  ;;  %v318_v27 = vmul.f32 %v316_v19, %v316_v19 }
  0x21   : > { %v294_v22 = vmul.f32 %v292_v14, %v292_v14  ;;  %v295_v23 = vmul.f32 %v293_v15, %v293_v15  ;;  %v338_v28 = vmul.f32 %v336_v20, %v336_v20  ;;  %v339_v29 = vmul.f32 %v337_v21, %v337_v21  ;;  %v306_v19 = vld [vmem:[#allocation2] sm:$0x1] }
  0x22   : > { %v359_v32 = vmul.f32 %v357_v24, %v357_v24  ;;  %v360_v33 = vmul.f32 %v358_v25, %v358_v25  ;;  %v319_v36 = vsel %vm296_vm1, %v317_v26, 0.0  ;;  %v320_v37 = vsel %vm296_vm1, %v318_v27, 0.0  ;;  %v328_v25 = vld [vmem:[#allocation2 + $0x1] sm:$0x1] }
  0x23   : > { %v297_v30 = vsel %vm296_vm1, %v294_v22, 0.0  ;;  %v298_v31 = vsel %vm296_vm1, %v295_v23, 0.0  ;;  %v340_v38 = vsel %vm296_vm1, %v338_v28, 0.0  ;;  %v321_v40 = vadd.f32 %v320_v37, %v319_v36 }
  0x24   : > { %v299_v35 = vadd.f32 %v298_v31, %v297_v30  ;;  %v341_v41 = vsel %vm296_vm1, %v339_v29, 0.0  ;;  %v361_v42 = vsel %vm296_vm1, %v359_v32, 0.0  ;;  %v362_v43 = vsel %vm296_vm1, %v360_v33, 0.0  ;;  %v349_v30 = vld [vmem:[#allocation2 + $0x2] sm:$0x1] }
  0x25   : > { %v342_v45 = vadd.f32 %v341_v41, %v340_v38  ;;  %v363_v46 = vadd.f32 %v362_v43, %v361_v42  ;;  %v661_v47 = vunpack.c.l.bf16 %v678_v34  ;;  %v322_v48 = vrot.slane %v321_v40, 4  ;;  %v370_v31 = vld [vmem:[#allocation2 + $0x3] sm:$0x1] }
  0x26   : > { %v300_v44 = vrot.slane %v299_v35, 4  ;;  %v662_v49 = vunpack.c.h.bf16 %v678_v34  ;;  %v665_v50 = vunpack.c.l.bf16 %v679_v39  ;;  %v666_v51 = vunpack.c.h.bf16 %v679_v39 }
  0x27   : > { %v343_v53 = vrot.slane %v342_v45, 4  ;;  %v364_v54 = vrot.slane %v363_v46, 4  ;;  %v378_v55 = vsub.f32 %v661_v47, %v845_v3  ;;  %v323_v56 = vadd.f32 %v322_v48, %v321_v40 }
  0x28   : > { %v301_v52 = vadd.f32 %v300_v44, %v299_v35  ;;  %v379_v57 = vsub.f32 %v662_v49, %v847_v4  ;;  %v399_v58 = vsub.f32 %v665_v50, %v845_v3  ;;  %v400_v59 = vsub.f32 %v666_v51, %v847_v4  ;;  %v681_v35 = vld [vmem:[%s841_s9 + $0x38] sm:$0xff]  }
  0x29   : > { %v344_v61 = vadd.f32 %v343_v53, %v342_v45  ;;  %v365_v62 = vadd.f32 %v364_v54, %v363_v46  ;;  %v380_v63 = vmul.f32 %v378_v55, %v378_v55  ;;  %v324_v0 = vrot.slane %v323_v56, 2 }
  0x2a   : > { %v302_v60 = vrot.slane %v301_v52, 2  ;;  %v381_v1 = vmul.f32 %v379_v57, %v379_v57  ;;  %v401_v2 = vmul.f32 %v399_v58, %v399_v58  ;;  %v402_v5 = vmul.f32 %v400_v59, %v400_v59 }
  0x2b   : > { %v345_v7 = vrot.slane %v344_v61, 2  ;;  %v366_v8 = vrot.slane %v365_v62, 2  ;;  %v382_v9 = vsel %vm296_vm1, %v380_v63, 0.0  ;;  %v325_v11 = vadd.f32 %v324_v0, %v323_v56  ;;  %v412_v0 = vld [vmem:[#allocation2 + $0x5] sm:$0x1] }
  0x2c   : > { %v303_v6 = vadd.f32 %v302_v60, %v301_v52  ;;  %v383_v12 = vsel %vm296_vm1, %v381_v1, 0.0  ;;  %v403_v13 = vsel %vm296_vm1, %v401_v2, 0.0  ;;  %v404_v14 = vsel %vm296_vm1, %v402_v5, 0.0  ;;  %v391_v60 = vld [vmem:[#allocation2 + $0x4] sm:$0x1] }
  0x2d   : > { %v346_v16 = vadd.f32 %v345_v7, %v344_v61  ;;  %v367_v17 = vadd.f32 %v366_v8, %v365_v62  ;;  %v384_v18 = vadd.f32 %v383_v12, %v382_v9  ;;  %v326_v20 = vrot.slane %v325_v11, 1 }
  0x2e   : > { %v304_v15 = vrot.slane %v303_v6, 1  ;;  %v405_v21 = vadd.f32 %v404_v14, %v403_v13  ;;  %v669_v22 = vunpack.c.l.bf16 %v680_v10  ;;  %v670_v23 = vunpack.c.h.bf16 %v680_v10  ;;  %v433_v13 = vld [vmem:[#allocation2 + $0x6] sm:$0x1] }
  0x2f   : > { %v347_v26 = vrot.slane %v346_v16, 1  ;;  %v368_v27 = vrot.slane %v367_v17, 1  ;;  %v385_v28 = vrot.slane %v384_v18, 4  ;;  %v327_v29 = vadd.f32 %v326_v20, %v325_v11 }
  0x30   : > { %v305_v24 = vadd.f32 %v304_v15, %v303_v6  ;;  %v406_v32 = vrot.slane %v405_v21, 4  ;;  %v420_v33 = vsub.f32 %v669_v22, %v845_v3  ;;  %v421_v34 = vsub.f32 %v670_v23, %v847_v4 }
  0x31   : > { %v348_v37 = vadd.f32 %v347_v26, %v346_v16  ;;  %v369_v38 = vadd.f32 %v368_v27, %v367_v17  ;;  %v386_v39 = vadd.f32 %v385_v28, %v384_v18  ;;  %v329_v40 = vadd.f32 %v328_v25, %v327_v29 }
  0x32   : > { %v307_v36 = vadd.f32 %v306_v19, %v305_v24  ;;  %v407_v41 = vadd.f32 %v406_v32, %v405_v21  ;;  %v422_v42 = vmul.f32 %v420_v33, %v420_v33  ;;  %v423_v43 = vmul.f32 %v421_v34, %v421_v34  ;;  %v454_v19 = vld [vmem:[#allocation2 + $0x7] sm:$0x1] }
  0x33   : > { %v350_v44 = vadd.f32 %v349_v30, %v348_v37  ;;  %v371_v45 = vadd.f32 %v370_v31, %v369_v38  ;;  %v387_v46 = vrot.slane %v386_v39, 2  ;;  %v673_v47 = vunpack.c.l.bf16 %v681_v35  ;;  %330 = vst.msk [vmem:[#allocation2 + $0x1] sm:$0x1] %vm308_vm2, %v329_v40 }
  0x34   : > { %309 = vst.msk [vmem:[#allocation2] sm:$0x1] %vm308_vm2, %v307_v36  ;;  %v408_v48 = vrot.slane %v407_v41, 2  ;;  %v424_v49 = vsel %vm296_vm1, %v422_v42, 0.0  ;;  %v425_v50 = vsel %vm296_vm1, %v423_v43, 0.0  ;;  %v674_v51 = vunpack.c.h.bf16 %v681_v35 }
  0x35   : > { %351 = vst.msk [vmem:[#allocation2 + $0x2] sm:$0x1] %vm308_vm2, %v350_v44  ;;  %v388_v52 = vadd.f32 %v387_v46, %v386_v39  ;;  %v426_v53 = vadd.f32 %v425_v50, %v424_v49  ;;  %v441_v54 = vsub.f32 %v673_v47, %v845_v3 }
  0x36   : > { %372 = vst.msk [vmem:[#allocation2 + $0x3] sm:$0x1] %vm308_vm2, %v371_v45  ;;  %v409_v55 = vadd.f32 %v408_v48, %v407_v41  ;;  %v442_v56 = vsub.f32 %v674_v51, %v847_v4 }
  0x37   : > { %v389_v57 = vrot.slane %v388_v52, 1  ;;  %v427_v58 = vrot.slane %v426_v53, 4  ;;  %v443_v59 = vmul.f32 %v441_v54, %v441_v54 }
  0x38   : > { %v410_v61 = vrot.slane %v409_v55, 1  ;;  %v444_v62 = vmul.f32 %v442_v56, %v442_v56 }
  0x39   : > { %v390_v63 = vadd.f32 %v389_v57, %v388_v52  ;;  %v428_v1 = vadd.f32 %v427_v58, %v426_v53  ;;  %v445_v2 = vsel %vm296_vm1, %v443_v59, 0.0 }
  0x3a   : > { %v411_v5 = vadd.f32 %v410_v61, %v409_v55  ;;  %v446_v6 = vsel %vm296_vm1, %v444_v62, 0.0 }
  0x3b   : > { %v392_v3 = vadd.f32 %v391_v60, %v390_v63  ;;  %v429_v7 = vrot.slane %v428_v1, 2  ;;  %v447_v8 = vadd.f32 %v446_v6, %v445_v2 }
  0x3c   : > { %v413_v9 = vadd.f32 %v412_v0, %v411_v5 }
  0x3d   : > { %393 = vst.msk [vmem:[#allocation2 + $0x4] sm:$0x1] %vm308_vm2, %v392_v3  ;;  %v430_v4 = vadd.f32 %v429_v7, %v428_v1  ;;  %v448_v10 = vrot.slane %v447_v8, 4 }
  0x3e   : > { %414 = vst.msk [vmem:[#allocation2 + $0x5] sm:$0x1] %vm308_vm2, %v413_v9 }
  0x3f   : > { %v431_v11 = vrot.slane %v430_v4, 1  ;;  %v449_v12 = vadd.f32 %v448_v10, %v447_v8 }
  0x41   : > { %v432_v14 = vadd.f32 %v431_v11, %v430_v4  ;;  %v450_v15 = vrot.slane %v449_v12, 2 }
  0x43   : > { %v434_v16 = vadd.f32 %v433_v13, %v432_v14  ;;  %v451_v17 = vadd.f32 %v450_v15, %v449_v12 }
  0x45   : > { %435 = vst.msk [vmem:[#allocation2 + $0x6] sm:$0x1] %vm308_vm2, %v434_v16  ;;  %v452_v18 = vrot.slane %v451_v17, 1 }
  0x47   : > { %v453_v20 = vadd.f32 %v452_v18, %v451_v17  ;;  %460 = sbr.rel (%p635_p8) target bundleno = 149 (0x95), region = 40 }
  0x49   : > { %v455_v21 = vadd.f32 %v454_v19, %v453_v20 }
  0x4b   : > { %456 = vst.msk [vmem:[#allocation2 + $0x7] sm:$0x1] %vm308_vm2, %v455_v21 }
  0x4c   : > { %v483_v43 = vld [vmem:[%s832_s29] sm:$0xff] }
  0x52   : > { %v461_v22 = vld [vmem:[#allocation2] sm:$0xff] }
  0x53   : > { %v462_v23 = vmul.f32 0.5, %v461_v22 }
  0x55   : > { %v463_v24 = vsub.f32 0.0, %v462_v23 }
  0x57   : > { %v464_v25 = vsel %vm296_vm1, %v463_v24, -inf }
  0x58   : > { %v465_v26 = vrot.slane %v464_v25, 4 }
  0x5a   : > { %v466_v27 = vmax.f32 %v464_v25, %v465_v26 }
  0x5c   : > { %v467_v28 = vrot.slane %v466_v27, 2 }
  0x5e   : > { %v468_v29 = vmax.f32 %v466_v27, %v467_v28 }
  0x60   : > { %v469_v30 = vrot.slane %v468_v29, 1 }
  0x62   : > { %v470_v31 = vmax.f32 %v468_v29, %v469_v30 }
  0x64   : > { %v471_v32 = vsub.f32 %v463_v24, %v470_v31 }
  0x66   : > { %v472_v33 = vmul.f32 1.442695, %v471_v32 }
  0x68   : > { %723 = vpow2.f32 %v472_v33 }
  0x6e   : > { %v724_v34 = vpop.eup %723 }
  0x6f   : > { %v474_v35 = vsel %vm296_vm1, %v724_v34, 0.0 }
  0x70   : > { %v475_v36 = vrot.slane %v474_v35, 4 }
  0x72   : > { %v476_v37 = vadd.f32 %v475_v36, %v474_v35 }
  0x74   : > { %v477_v38 = vrot.slane %v476_v37, 2 }
  0x76   : > { %v478_v39 = vadd.f32 %v477_v38, %v476_v37 }
  0x78   : > { %v479_v40 = vrot.slane %v478_v39, 1 }
  0x7a   : > { %v480_v41 = vadd.f32 %v479_v40, %v478_v39 }
  0x7c   : > { %725 = vrcp.f32 %v480_v41 }
  0x82   : > { %v726_v42 = vpop.eup %725 }
  0x83   : > { %v482_v44 = vmul.f32 %v726_v42, %v724_v34 }
  0x85   : > { %v484_v45 = vmul.f32 %v483_v43, %v482_v44 }
  0x87   : > { %v485_v46 = vsel %vm296_vm1, %v484_v45, 0.0 }
  0x88   : > { %v486_v47 = vrot.slane %v485_v46, 4 }
  0x8a   : > { %v487_v48 = vadd.f32 %v486_v47, %v485_v46 }
  0x8c   : > { %v488_v49 = vrot.slane %v487_v48, 2 }
  0x8e   : > { %v489_v50 = vadd.f32 %v488_v49, %v487_v48 }
  0x90   : > { %v490_v51 = vrot.slane %v489_v50, 1 }
  0x92   : > { %v491_v52 = vadd.f32 %v490_v51, %v489_v50 }
  0x94   : > { %492 = vst.msk [vmem:[%s277_s6] sm:$0x1] %vm308_vm2, %v491_v52 }
  0x95 PF: > { %s13_s16 = sadd.s32 1, %s765_s16   ;;  %s926_s12 = smov %s757_s14 }
  0x96   : > { %p10_p9 = scmp.ge.s32.totalorder %s13_s16, 6   ;;  %s927_s13 = smov %s761_s15 }
  0x97   : > { %s928_s14 = smov %s931_s17  ;;  %s929_s15 = smov %s935_s18 }
  0x98   :  { %12 = sbr.rel (!%p10_p9) target bundleno = 3 (0x3), region = 83 }

// kernel: mono_mvsnet_forward.19
= control target key start
LH: loop header
LB: loop body
LE: loop exit
PB: predicated region body
PF: predicated region fallthrough
CT: control target
= control target key end

     0   :  { %s436_s12 = smov 0   ;;  %s438_s13 = smov 0   ;;  %s475_s0 = inlined_call_operand.vmem [shape: bf16[8,8], index: 0, kind: input, shape index: {}]   ;;  %s476_s1 = inlined_call_operand.vmem [shape: f32[8,1], index: 1, kind: input, shape index: {}]   ;;  %s477_s2 = inlined_call_operand.vmem [shape: bf16[6,8,256], index: 2, kind: input, shape index: {}]   ;;  %s478_s3 = inlined_call_operand.vmem [shape: f32[6,8,256], index: 3, kind: output, shape index: {}]  }
   0x1   :  { %s440_s14 = smov 0  }
   0x2 LB: > { %s25_s15 = sadd.s32 1, %s409_s13  ;;  %p354_p0 = scmp.ge.s32.totalorder %s413_s14, 1  ;;  %s413_s14 = sphi %s440_s14, %s13_s14   ;;  %s409_s13 = sphi %s438_s13, %s480_s13   ;;  %s405_s12 = sphi %s436_s12, %s479_s12  }
   0x3   : > { %p27_p1 = scmp.ge.s32.totalorder %s25_s15, 6  ;;  %p158_p2 = scmp.lt.s32.totalorder %s413_s14, 7 }
   0x5   : > { %s482_s15 = smov (%p27_p1, %s25_s15), 0  ;;  %p159_p3 = pnand %p354_p0, %p158_p2 }
   0x6   : > { %p191_p4 = scmp.lt.s32.totalorder (!%p159_p3), %s405_s12, 5 }
   0x7   : > { %162 = sbr.rel (%p159_p3) target bundleno = 158 (0x9e), region = 32 }
   0xc   : > { %v415_v0 = vmov 0   ;;  %v213_v1 = vld [vmem:[%s476_s1] sm:$0xff]  ;;  %s484_s12 = smov (!%p191_p4, %s405_s12), 5  ;;  %vm228_vm0 = vcmask 1043456   ;;  %vm224_vm1 = vcmask 64512  }
   0xd   : > { %390 = vset.pattern.permute.xlu0 %v415_v0  ;;  %s363_s18 = sshll.u32 %s484_s12, 3  ;;  %v211_v9 = vld [vmem:[%s475_s0] sm:$0xf]  ;;  %s364_s24 = sshll.u32 %s484_s12, 4 }
   0xe   : > { %216 = vperm.xlu0 %390, %v213_v1   ;;  %s198_s21 = scalar_lea.vmem %s477_s2, %s363_s18  ;;  %s208_s27 = scalar_lea.vmem %s478_s3, %s364_s24 }
   0xf   : > { %v212_v2 = vld [vmem:[%s198_s21] sm:$0xff] }
  0x10   : > { %v220_v3 = vunpack.c.l.b16 %v212_v2  ;;  %v221_v4 = vunpack.c.h.b16 %v212_v2 }
  0x12   : > { %v222_v5 = vpack.c.b16 %v220_v3, %v220_v3  ;;  %v223_v6 = vpack.c.b16 %v221_v4, %v221_v4 }
  0x14   : > { %v230_v7 = vsel %vm228_vm0, %v222_v5, 0  ;;  %v233_v8 = vsel %vm228_vm0, %v223_v6, 0 }
  0x15   : > { %242 = vmatpush.bf16.msra.mxu0 %v230_v7  ;;  %255 = vmatpush.bf16.msra.mxu1 %v233_v8 }
  0x18   : > { %359 = vmatmul.msk.bf16.vlgmr.msra.gmra.mxu0 %vm224_vm1, %v211_v9  ;;  %360 = vmatmul.msk.bf16.vlgmr.msra.gmra.mxu1 %vm224_vm1, %v211_v9 }
  0x80   : > { %v217_v10 = vpop.permute.xlu0 %216 }
  0x95   : > { %v244_v11 = vpop.f32.mrf.mxu0  ;;  %v257_v12 = vpop.f32.mrf.mxu1 }
  0x96   : > { %v245_v13 = vadd.f32 %v244_v11, %v217_v10  ;;  %v258_v14 = vadd.f32 %v257_v12, %v217_v10 }
  0x98   : > { %261 = vst [vmem:[%s208_s27] sm:$0xff] %v245_v13 }
  0x99   : > { %262 = vst [vmem:[%s208_s27 + $0x8] sm:$0xff] %v258_v14 }
  0x9d   : > { %v246_v15 = vpop.f32.mrf.mxu0  ;;  %v259_v16 = vpop.f32.mrf.mxu1 }
  0x9e PF: > { %s13_s14 = sadd.s32 1, %s413_s14   ;;  %s479_s12 = smov %s409_s13 }
  0x9f   : > { %p10_p5 = scmp.ge.s32.totalorder %s13_s14, 8   ;;  %s480_s13 = smov %s482_s15 }
  0xa1   :  { %12 = sbr.rel (!%p10_p5) target bundleno = 2 (0x2), region = 62 }

// kernel: squeeze.111
= control target key start
LH: loop header
LB: loop body
LE: loop exit
PB: predicated region body
PF: predicated region fallthrough
CT: control target
= control target key end

     0   :  { %s60_s6 = smov 3  ;;  %s63_s7 = smov 12  ;;  %vm65_vm0 = vcmask 1043458   ;;  %vm70_vm1 = vcmask 1045508   ;;  %vm75_vm2 = vcmask 1047558   ;;  %vm4_vm3 = vcmask 1047556   ;;  %s1502_s0 = inlined_call_operand.vmem [shape: f32[2,1,8,16,16], index: 0, kind: input, shape index: {}]   ;;  %s1503_s1 = inlined_call_operand.vmem [shape: f32[2,8,256], index: 1, kind: output, shape index: {}]  }
   0x1   :  { %v717_v0 = vld [vmem:[%s1502_s0 + $0x7] ss:$16 sm:%s60_s6]   ;;  %s68_s12 = smov 48  ;;  %s73_s13 = smov 192  ;;  %vm6_vm4 = vcmask 130048   ;;  %vm79_vm5 = vcmask 1048448  }
   0x2   :  { %v718_v1 = vld [vmem:[%s1502_s0 + $0x7] ss:$16 sm:%s63_s7]   ;;  %s105_s18 = smov 3  ;;  %s108_s21 = smov 12  ;;  %vm170_vm6 = vcmask 917248   ;;  %vm261_vm7 = vcmask 786048  }
   0x3   :  { %v66_v2 = vsel %vm65_vm0, %v718_v1, %v717_v0  ;;  %v719_v3 = vld [vmem:[%s1502_s0 + $0x7] ss:$16 sm:%s68_s12]   ;;  %s113_s22 = smov 48  ;;  %s118_s27 = smov 192  ;;  %vm352_vm8 = vcmask 654848   ;;  %vm443_vm9 = vcmask 523648  }
   0x4   :  { %v720_v4 = vld [vmem:[%s1502_s0 + $0x7] ss:$16 sm:%s73_s13]   ;;  %v71_v5 = vsel %vm70_vm1, %v719_v3, %v66_v2  ;;  %s82_s28 = smov 3  ;;  %s857_s29 = smov 112   ;;  %vm534_vm10 = vcmask 392448   ;;  %vm625_vm11 = vcmask 261248  }
   0x5   :  { %v726_v6 = vld [vmem:[%s1502_s0 + $0x87] ss:$16 sm:%s105_s18]   ;;  %v76_v7 = vsel %vm75_vm2, %v720_v4, %v71_v5  ;;  %s85_s3 = smov 12  ;;  %s90_s4 = smov 48  ;;  %v721_v13 = vld [vmem:[%s1502_s0 + $0xf] ss:$16 sm:%s82_s28]  }
   0x6   :  { %v727_v8 = vld [vmem:[%s1502_s0 + $0x87] ss:$16 sm:%s108_s21]   ;;  %77 = vrot.lane.b32.xlu0 %v76_v7, %s857_s29  ;;  %s95_s9 = smov 192  ;;  %s128_s10 = smov 3 }
   0x7   :  { %v728_v9 = vld [vmem:[%s1502_s0 + $0x87] ss:$16 sm:%s113_s22]   ;;  %v111_v10 = vsel %vm65_vm0, %v727_v8, %v726_v6  ;;  %v722_v14 = vld [vmem:[%s1502_s0 + $0xf] ss:$16 sm:%s85_s3]   ;;  %s131_s15 = smov 12  ;;  %s136_s16 = smov 48 }
   0x8   :  { %v729_v11 = vld [vmem:[%s1502_s0 + $0x87] ss:$16 sm:%s118_s27]   ;;  %v116_v12 = vsel %vm70_vm1, %v728_v9, %v111_v10  ;;  %v88_v16 = vsel %vm65_vm0, %v722_v14, %v721_v13  ;;  %v723_v17 = vld [vmem:[%s1502_s0 + $0xf] ss:$16 sm:%s90_s4]   ;;  %s141_s19 = smov 192  ;;  %s196_s24 = smov 3 }
   0x9   :  { %v121_v15 = vsel %vm75_vm2, %v729_v11, %v116_v12  ;;  %v724_v18 = vld [vmem:[%s1502_s0 + $0xf] ss:$16 sm:%s95_s9]   ;;  %v93_v19 = vsel %vm70_vm1, %v723_v17, %v88_v16  ;;  %s199_s25 = smov 12  ;;  %v745_v26 = vld [vmem:[%s1502_s0 + $0x86] ss:$16 sm:%s196_s24]   ;;  %s204_s2 = smov 48 }
   0xa   :  { %122 = vrot.lane.b32.xlu1 %v121_v15, %s857_s29  ;;  %v731_v20 = vld [vmem:[%s1502_s0 + $0x8f] ss:$16 sm:%s128_s10]   ;;  %v98_v23 = vsel %vm75_vm2, %v724_v18, %v93_v19  ;;  %s219_s5 = smov 3  ;;  %s222_s6 = smov 12 }
   0xb   :  { %v732_v21 = vld [vmem:[%s1502_s0 + $0x8f] ss:$16 sm:%s131_s15]   ;;  %v746_v28 = vld [vmem:[%s1502_s0 + $0x86] ss:$16 sm:%s199_s25]   ;;  %s209_s9 = smov 192  ;;  %s227_s12 = smov 48 }
   0xc   :  { %v733_v22 = vld [vmem:[%s1502_s0 + $0x8f] ss:$16 sm:%s136_s16]   ;;  %v134_v24 = vsel %vm65_vm0, %v732_v21, %v731_v20  ;;  %v202_v29 = vsel %vm65_vm0, %v746_v28, %v745_v26  ;;  %v747_v30 = vld [vmem:[%s1502_s0 + $0x86] ss:$16 sm:%s204_s2]   ;;  %s232_s15 = smov 192  ;;  %s264_s16 = smov 3 }
   0xd   :  { %v734_v25 = vld [vmem:[%s1502_s0 + $0x8f] ss:$16 sm:%s141_s19]   ;;  %v139_v27 = vsel %vm70_vm1, %v733_v22, %v134_v24  ;;  %v750_v31 = vld [vmem:[%s1502_s0 + $0x8e] ss:$16 sm:%s219_s5]   ;;  %s267_s17 = smov 12  ;;  %v207_v34 = vsel %vm70_vm1, %v747_v30, %v202_v29  ;;  %s272_s22 = smov 48 }
   0xe   :  { %99 = vrot.lane.b32.xlu0 %v98_v23, %s857_s29  ;;  %v144_v32 = vsel %vm75_vm2, %v734_v25, %v139_v27  ;;  %v751_v33 = vld [vmem:[%s1502_s0 + $0x8e] ss:$16 sm:%s222_s6]   ;;  %s151_s23 = smov 3  ;;  %s154_s27 = smov 12 }
   0xf   :  { %v748_v35 = vld [vmem:[%s1502_s0 + $0x86] ss:$16 sm:%s209_s9]   ;;  %v225_v36 = vsel %vm65_vm0, %v751_v33, %v750_v31  ;;  %v752_v37 = vld [vmem:[%s1502_s0 + $0x8e] ss:$16 sm:%s227_s12]   ;;  %s159_s28 = smov 48  ;;  %s164_s5 = smov 192 }
  0x10   :  { %v753_v38 = vld [vmem:[%s1502_s0 + $0x8e] ss:$16 sm:%s232_s15]   ;;  %v759_v39 = vld [vmem:[%s1502_s0 + $0xd] ss:$16 sm:%s264_s16]   ;;  %s287_s6 = smov 3  ;;  %v212_v42 = vsel %vm75_vm2, %v748_v35, %v207_v34  ;;  %v230_v43 = vsel %vm70_vm1, %v752_v37, %v225_v36  ;;  %s290_s11 = smov 12 }
  0x11   :  { %v760_v40 = vld [vmem:[%s1502_s0 + $0xd] ss:$16 sm:%s267_s17]   ;;  %v736_v41 = vld [vmem:[%s1502_s0 + $0x6] ss:$16 sm:%s151_s23]   ;;  %s277_s14 = smov 192  ;;  %s295_s21 = smov 48  ;;  %v235_v53 = vsel %vm75_vm2, %v753_v38, %v230_v43 }
  0x12   :  { %145 = vrot.lane.b32.xlu1 %v144_v32, %s857_s29  ;;  %v737_v44 = vld [vmem:[%s1502_s0 + $0x6] ss:$16 sm:%s154_s27]   ;;  %v270_v49 = vsel %vm65_vm0, %v760_v40, %v759_v39  ;;  %s858_s23 = smov 96   ;;  %s300_s29 = smov 192 }
  0x13   :  { %v738_v45 = vld [vmem:[%s1502_s0 + $0x6] ss:$16 sm:%s159_s28]   ;;  %v761_v46 = vld [vmem:[%s1502_s0 + $0xd] ss:$16 sm:%s272_s22]   ;;  %v157_v47 = vsel %vm65_vm0, %v737_v44, %v736_v41  ;;  %s333_s22 = smov 3  ;;  %s336_s24 = smov 12 }
  0x14   :  { %v739_v48 = vld [vmem:[%s1502_s0 + $0x6] ss:$16 sm:%s164_s5]   ;;  %v162_v50 = vsel %vm70_vm1, %v738_v45, %v157_v47  ;;  %v764_v51 = vld [vmem:[%s1502_s0 + $0x85] ss:$16 sm:%s287_s6]   ;;  %s173_s27 = smov 3  ;;  %s176_s28 = smov 12  ;;  %v275_v56 = vsel %vm70_vm1, %v761_v46, %v270_v49 }
  0x15   :  { %v765_v52 = vld [vmem:[%s1502_s0 + $0x85] ss:$16 sm:%s290_s11]   ;;  %v167_v54 = vsel %vm75_vm2, %v739_v48, %v162_v50  ;;  %v762_v55 = vld [vmem:[%s1502_s0 + $0xd] ss:$16 sm:%s277_s14]   ;;  %s181_s5 = smov 48  ;;  %s186_s6 = smov 192 }
  0x16   :  { %213 = vrot.lane.b32.xlu0 %v212_v42, %s858_s23  ;;  %168 = vrot.lane.b32.xlu2 %v167_v54, %s858_s23  ;;  %v293_v57 = vsel %vm65_vm0, %v765_v52, %v764_v51  ;;  %v766_v58 = vld [vmem:[%s1502_s0 + $0x85] ss:$16 sm:%s295_s21]   ;;  %s341_s11 = smov 48  ;;  %s355_s16 = smov 3  ;;  %v280_v0 = vsel %vm75_vm2, %v762_v55, %v275_v56 }
  0x17   :  { %v774_v59 = vld [vmem:[%s1502_s0 + $0x4] ss:$16 sm:%s333_s22]   ;;  %v767_v60 = vld [vmem:[%s1502_s0 + $0x85] ss:$16 sm:%s300_s29]   ;;  %s358_s17 = smov 12  ;;  %v298_v1 = vsel %vm70_vm1, %v766_v58, %v293_v57  ;;  %s346_s18 = smov 192 }
  0x18   :  { %v775_v61 = vld [vmem:[%s1502_s0 + $0x4] ss:$16 sm:%s336_s24]   ;;  %v740_v62 = vld [vmem:[%s1502_s0 + $0xe] ss:$16 sm:%s173_s27]   ;;  %s363_s25 = smov 48  ;;  %s401_s2 = smov 3  ;;  %v303_v11 = vsel %vm75_vm2, %v767_v60, %v298_v1 }
  0x19   :  { %v741_v63 = vld [vmem:[%s1502_s0 + $0xe] ss:$16 sm:%s176_s28]   ;;  %v776_v5 = vld [vmem:[%s1502_s0 + $0x4] ss:$16 sm:%s341_s11]   ;;  %v339_v7 = vsel %vm65_vm0, %v775_v61, %v774_v59  ;;  %s404_s3 = smov 12  ;;  %s859_s4 = smov 80  }
  0x1a   :  { %236 = vrot.lane.b32.xlu1 %v235_v53, %s858_s23  ;;  %v179_v2 = vsel %vm65_vm0, %v741_v63, %v740_v62  ;;  %v742_v3 = vld [vmem:[%s1502_s0 + $0xe] ss:$16 sm:%s181_s5]   ;;  %s242_s7 = smov 3  ;;  %s245_s9 = smov 12  ;;  %v344_v14 = vsel %vm70_vm1, %v776_v5, %v339_v7 }
  0x1b   :  { %v743_v4 = vld [vmem:[%s1502_s0 + $0xe] ss:$16 sm:%s186_s6]   ;;  %v184_v6 = vsel %vm70_vm1, %v742_v3, %v179_v2  ;;  %v778_v9 = vld [vmem:[%s1502_s0 + $0xc] ss:$16 sm:%s355_s16]   ;;  %s250_s10 = smov 48  ;;  %s368_s11 = smov 192 }
  0x1c   :  { %v189_v8 = vsel %vm75_vm2, %v743_v4, %v184_v6  ;;  %v779_v10 = vld [vmem:[%s1502_s0 + $0xc] ss:$16 sm:%s358_s17]   ;;  %v777_v12 = vld [vmem:[%s1502_s0 + $0x4] ss:$16 sm:%s346_s18]   ;;  %s255_s16 = smov 192  ;;  %s409_s17 = smov 48 }
  0x1d   :  { %v780_v13 = vld [vmem:[%s1502_s0 + $0xc] ss:$16 sm:%s363_s25]   ;;  %v361_v15 = vsel %vm65_vm0, %v779_v10, %v778_v9  ;;  %v755_v18 = vld [vmem:[%s1502_s0 + $0x5] ss:$16 sm:%s242_s7]   ;;  %s424_s24 = smov 3  ;;  %s427_s25 = smov 12  ;;  %v349_v21 = vsel %vm75_vm2, %v777_v12, %v344_v14 }
  0x1e   :  { %281 = vrot.lane.b32.xlu0 %v280_v0, %s859_s4  ;;  %190 = vrot.lane.b32.xlu2 %v189_v8, %s858_s23  ;;  %v788_v16 = vld [vmem:[%s1502_s0 + $0x8c] ss:$16 sm:%s401_s2]   ;;  %v366_v22 = vsel %vm70_vm1, %v780_v13, %v361_v15  ;;  %s414_s28 = smov 192  ;;  %s432_s6 = smov 48 }
  0x1f   :  { %v789_v17 = vld [vmem:[%s1502_s0 + $0x8c] ss:$16 sm:%s404_s3]   ;;  %v756_v19 = vld [vmem:[%s1502_s0 + $0x5] ss:$16 sm:%s245_s9]   ;;  %s469_s7 = smov 3  ;;  %s310_s12 = smov 3 }
  0x20   :  { %v757_v20 = vld [vmem:[%s1502_s0 + $0x5] ss:$16 sm:%s250_s10]   ;;  %v781_v23 = vld [vmem:[%s1502_s0 + $0xc] ss:$16 sm:%s368_s11]   ;;  %v248_v24 = vsel %vm65_vm0, %v756_v19, %v755_v18  ;;  %v407_v28 = vsel %vm65_vm0, %v789_v17, %v788_v16  ;;  %s472_s11 = smov 12  ;;  %s860_s13 = smov 64  }
  0x21   :  { %v758_v25 = vld [vmem:[%s1502_s0 + $0x5] ss:$16 sm:%s255_s16]   ;;  %v790_v26 = vld [vmem:[%s1502_s0 + $0x8c] ss:$16 sm:%s409_s17]   ;;  %v253_v27 = vsel %vm70_vm1, %v757_v20, %v248_v24  ;;  %v371_v32 = vsel %vm75_vm2, %v781_v23, %v366_v22  ;;  %s313_s16 = smov 12  ;;  %s318_s19 = smov 48 }
  0x22   :  { %304 = vrot.lane.b32.xlu1 %v303_v11, %s859_s4  ;;  %v258_v29 = vsel %vm75_vm2, %v758_v25, %v253_v27  ;;  %v793_v30 = vld [vmem:[%s1502_s0 + $0x3] ss:$16 sm:%s424_s24]   ;;  %s323_s20 = smov 192  ;;  %v412_v35 = vsel %vm70_vm1, %v790_v26, %v407_v28  ;;  %s437_s21 = smov 192 }
  0x23   :  { %v794_v31 = vld [vmem:[%s1502_s0 + $0x3] ss:$16 sm:%s427_s25]   ;;  %v791_v33 = vld [vmem:[%s1502_s0 + $0x8c] ss:$16 sm:%s414_s28]   ;;  %s477_s28 = smov 48  ;;  %s492_s23 = smov 3 }
  0x24   :  { %v795_v34 = vld [vmem:[%s1502_s0 + $0x3] ss:$16 sm:%s432_s6]   ;;  %v430_v36 = vsel %vm65_vm0, %v794_v31, %v793_v30  ;;  %v769_v39 = vld [vmem:[%s1502_s0 + $0x8d] ss:$16 sm:%s310_s12]   ;;  %s495_s8 = smov 12  ;;  %v417_v44 = vsel %vm75_vm2, %v791_v33, %v412_v35  ;;  %s500_s15 = smov 48 }
  0x25   :  { %v802_v37 = vld [vmem:[%s1502_s0 + $0x83] ss:$16 sm:%s469_s7]   ;;  %v770_v40 = vld [vmem:[%s1502_s0 + $0x8d] ss:$16 sm:%s313_s16]   ;;  %v435_v45 = vsel %vm70_vm1, %v795_v34, %v430_v36  ;;  %s537_s16 = smov 3  ;;  %s381_s22 = smov 12 }
  0x26   :  { %350 = vrot.lane.b32.xlu0 %v349_v21, %s860_s13  ;;  %259 = vrot.lane.b32.xlu2 %v258_v29, %s859_s4  ;;  %v803_v38 = vld [vmem:[%s1502_s0 + $0x83] ss:$16 sm:%s472_s11]   ;;  %v316_v41 = vsel %vm65_vm0, %v770_v40, %v769_v39  ;;  %s482_s11 = smov 192  ;;  %s386_s25 = smov 48 }
  0x27   :  { %v771_v42 = vld [vmem:[%s1502_s0 + $0x8d] ss:$16 sm:%s318_s19]   ;;  %v796_v46 = vld [vmem:[%s1502_s0 + $0x3] ss:$16 sm:%s437_s21]   ;;  %v475_v50 = vsel %vm65_vm0, %v803_v38, %v802_v37  ;;  %s378_s21 = smov 3  ;;  %s540_s27 = smov 12 }
  0x28   :  { %v772_v43 = vld [vmem:[%s1502_s0 + $0x8d] ss:$16 sm:%s323_s20]   ;;  %v321_v47 = vsel %vm70_vm1, %v771_v42, %v316_v41  ;;  %v804_v48 = vld [vmem:[%s1502_s0 + $0x83] ss:$16 sm:%s477_s28]   ;;  %v440_v53 = vsel %vm75_vm2, %v796_v46, %v435_v45  ;;  %s391_s28 = smov 192  ;;  %s505_s30 = smov 192 }
  0x29   :  { %v326_v49 = vsel %vm75_vm2, %v772_v43, %v321_v47  ;;  %v807_v51 = vld [vmem:[%s1502_s0 + $0x8b] ss:$16 sm:%s492_s23]   ;;  %v805_v54 = vld [vmem:[%s1502_s0 + $0x83] ss:$16 sm:%s482_s11]   ;;  %v480_v56 = vsel %vm70_vm1, %v804_v48, %v475_v50  ;;  %s545_s9 = smov 48  ;;  %s560_s17 = smov 3 }
  0x2a   :  { %372 = vrot.lane.b32.xlu1 %v371_v32, %s860_s13  ;;  %v808_v52 = vld [vmem:[%s1502_s0 + $0x8b] ss:$16 sm:%s495_s8]   ;;  %s861_s8 = smov 48   ;;  %s563_s18 = smov 12  ;;  %v485_v2 = vsel %vm75_vm2, %v805_v54, %v480_v56 }
  0x2b   :  { %v809_v55 = vld [vmem:[%s1502_s0 + $0x8b] ss:$16 sm:%s500_s15]   ;;  %v498_v57 = vsel %vm65_vm0, %v808_v52, %v807_v51  ;;  %v816_v58 = vld [vmem:[%s1502_s0 + $0xa] ss:$16 sm:%s537_s16]   ;;  %s454_s2 = smov 48  ;;  %s459_s23 = smov 192 }
  0x2c   :  { %v783_v59 = vld [vmem:[%s1502_s0 + $0x84] ss:$16 sm:%s378_s21]   ;;  %v817_v63 = vld [vmem:[%s1502_s0 + $0xa] ss:$16 sm:%s540_s27]   ;;  %v503_v3 = vsel %vm70_vm1, %v809_v55, %v498_v57  ;;  %s550_s21 = smov 192  ;;  %s573_s12 = smov 192 }
  0x2d   :  { %v784_v60 = vld [vmem:[%s1502_s0 + $0x84] ss:$16 sm:%s381_s22]   ;;  %v810_v4 = vld [vmem:[%s1502_s0 + $0x8b] ss:$16 sm:%s505_s30]   ;;  %s568_s22 = smov 48  ;;  %v543_v7 = vsel %vm65_vm0, %v817_v63, %v816_v58  ;;  %s449_s30 = smov 12 }
  0x2e   :  { %418 = vrot.lane.b32.xlu0 %v417_v44, %s860_s13  ;;  %327 = vrot.lane.b32.xlu2 %v326_v49, %s859_s4  ;;  %v384_v61 = vsel %vm65_vm0, %v784_v60, %v783_v59  ;;  %v785_v62 = vld [vmem:[%s1502_s0 + $0x84] ss:$16 sm:%s386_s25]   ;;  %s446_s25 = smov 3  ;;  %v508_v10 = vsel %vm75_vm2, %v810_v4, %v503_v3  ;;  %s631_s4 = smov 12 }
  0x2f   :  { %v389_v0 = vsel %vm70_vm1, %v785_v62, %v384_v61  ;;  %v786_v1 = vld [vmem:[%s1502_s0 + $0x84] ss:$16 sm:%s391_s28]   ;;  %v818_v5 = vld [vmem:[%s1502_s0 + $0xa] ss:$16 sm:%s545_s9]   ;;  %s609_s9 = smov 12  ;;  %s619_s28 = smov 192 }
  0x30   :  { %v394_v6 = vsel %vm75_vm2, %v786_v1, %v389_v0  ;;  %v821_v8 = vld [vmem:[%s1502_s0 + $0x82] ss:$16 sm:%s560_s17]   ;;  %v819_v11 = vld [vmem:[%s1502_s0 + $0xa] ss:$16 sm:%s550_s21]   ;;  %v548_v14 = vsel %vm70_vm1, %v818_v5, %v543_v7  ;;  %s518_s5 = smov 12  ;;  %s523_s10 = smov 48 }
  0x31   :  { %v822_v9 = vld [vmem:[%s1502_s0 + $0x82] ss:$16 sm:%s563_s18]   ;;  %v797_v13 = vld [vmem:[%s1502_s0 + $0xb] ss:$16 sm:%s446_s25]   ;;  %s614_s18 = smov 48  ;;  %s628_s25 = smov 3  ;;  %v553_v23 = vsel %vm75_vm2, %v819_v11, %v548_v14 }
  0x32   :  { %441 = vrot.lane.b32.xlu1 %v440_v53, %s861_s8  ;;  %v823_v12 = vld [vmem:[%s1502_s0 + $0x82] ss:$16 sm:%s568_s22]   ;;  %v566_v15 = vsel %vm65_vm0, %v822_v9, %v821_v8  ;;  %s862_s11 = smov 32   ;;  %s641_s15 = smov 192 }
  0x33   :  { %v798_v16 = vld [vmem:[%s1502_s0 + $0xb] ss:$16 sm:%s449_s30]   ;;  %v832_v21 = vld [vmem:[%s1502_s0 + $0x1] ss:$16 sm:%s609_s9]   ;;  %v571_v24 = vsel %vm70_vm1, %v823_v12, %v566_v15  ;;  %s515_s30 = smov 3  ;;  %s636_s9 = smov 48 }
  0x34   :  { %v799_v17 = vld [vmem:[%s1502_s0 + $0xb] ss:$16 sm:%s454_s2]   ;;  %v452_v18 = vsel %vm65_vm0, %v798_v16, %v797_v13  ;;  %v824_v25 = vld [vmem:[%s1502_s0 + $0x82] ss:$16 sm:%s573_s12]   ;;  %s677_s19 = smov 12  ;;  %s586_s26 = smov 12 }
  0x35   :  { %v800_v19 = vld [vmem:[%s1502_s0 + $0xb] ss:$16 sm:%s459_s23]   ;;  %v457_v22 = vsel %vm70_vm1, %v799_v17, %v452_v18  ;;  %v833_v26 = vld [vmem:[%s1502_s0 + $0x1] ss:$16 sm:%s614_s18]   ;;  %v576_v31 = vsel %vm75_vm2, %v824_v25, %v571_v24  ;;  %s528_s18 = smov 192  ;;  %s682_s23 = smov 48 }
  0x36   :  { %486 = vrot.lane.b32.xlu0 %v485_v2, %s861_s8  ;;  %395 = vrot.lane.b32.xlu2 %v394_v6, %s860_s13  ;;  %s606_s13 = smov 3  ;;  %v462_v27 = vsel %vm75_vm2, %v800_v19, %v457_v22  ;;  %v835_v29 = vld [vmem:[%s1502_s0 + $0x9] ss:$16 sm:%s628_s25]   ;;  %s591_s14 = smov 48 }
  0x37   :  { %v831_v20 = vld [vmem:[%s1502_s0 + $0x1] ss:$16 sm:%s606_s13]   ;;  %v836_v30 = vld [vmem:[%s1502_s0 + $0x9] ss:$16 sm:%s631_s4]   ;;  %s583_s4 = smov 3  ;;  %s687_s17 = smov 192 }
  0x38   :  { %v612_v28 = vsel %vm65_vm0, %v832_v21, %v831_v20  ;;  %v834_v32 = vld [vmem:[%s1502_s0 + $0x1] ss:$16 sm:%s619_s28]   ;;  %v812_v33 = vld [vmem:[%s1502_s0 + $0x2] ss:$16 sm:%s515_s30]   ;;  %v634_v36 = vsel %vm65_vm0, %v836_v30, %v835_v29  ;;  %s596_s20 = smov 192  ;;  %s651_s29 = smov 3 }
  0x39   :  { %v813_v34 = vld [vmem:[%s1502_s0 + $0x2] ss:$16 sm:%s518_s5]   ;;  %v617_v35 = vsel %vm70_vm1, %v833_v26, %v612_v28  ;;  %v837_v37 = vld [vmem:[%s1502_s0 + $0x9] ss:$16 sm:%s636_s9]   ;;  %s654_s24 = smov 12  ;;  %s659_s2 = smov 48 }
  0x3a   :  { %509 = vrot.lane.b32.xlu1 %v508_v10, %s861_s8  ;;  %v521_v38 = vsel %vm65_vm0, %v813_v34, %v812_v33  ;;  %v814_v39 = vld [vmem:[%s1502_s0 + $0x2] ss:$16 sm:%s523_s10]   ;;  %v622_v45 = vsel %vm75_vm2, %v834_v32, %v617_v35  ;;  %v639_v46 = vsel %vm70_vm1, %v837_v37, %v634_v36  ;;  %s664_s6 = smov 192  ;;  %v2_v4 = vld [vmem:[%s1502_s0] ss:$8 sm:$0xf]  }
  0x3b   :  { %v838_v40 = vld [vmem:[%s1502_s0 + $0x9] ss:$16 sm:%s641_s15]   ;;  %v526_v41 = vsel %vm70_vm1, %v814_v39, %v521_v38  ;;  %v815_v42 = vld [vmem:[%s1502_s0 + $0x2] ss:$16 sm:%s528_s18]   ;;  %s863_s18 = smov 16  }
  0x3c   :  { %v846_v44 = vld [vmem:[%s1502_s0 + $0x89] ss:$16 sm:%s677_s19]   ;;  %v826_v47 = vld [vmem:[%s1502_s0 + $0x8a] ss:$16 sm:%s583_s4]   ;;  %v531_v49 = vsel %vm75_vm2, %v815_v42, %v526_v41  ;;  %v644_v52 = vsel %vm75_vm2, %v838_v40, %v639_v46 }
  0x3d   :  { %v827_v48 = vld [vmem:[%s1502_s0 + $0x8a] ss:$16 sm:%s586_s26]   ;;  %v847_v51 = vld [vmem:[%s1502_s0 + $0x89] ss:$16 sm:%s682_s23]  }
  0x3e   :  { %554 = vrot.lane.b32.xlu0 %v553_v23, %s862_s11  ;;  %463 = vrot.lane.b32.xlu2 %v462_v27, %s861_s8  ;;  %s674_s8 = smov 3  ;;  %v589_v53 = vsel %vm65_vm0, %v827_v48, %v826_v47  ;;  %v828_v54 = vld [vmem:[%s1502_s0 + $0x8a] ss:$16 sm:%s591_s14]  }
  0x3f   :  { %v845_v43 = vld [vmem:[%s1502_s0 + $0x89] ss:$16 sm:%s674_s8]   ;;  %v594_v57 = vsel %vm70_vm1, %v828_v54, %v589_v53  ;;  %v829_v58 = vld [vmem:[%s1502_s0 + $0x8a] ss:$16 sm:%s596_s20]  }
  0x40   :  { %v680_v50 = vsel %vm65_vm0, %v846_v44, %v845_v43  ;;  %v848_v56 = vld [vmem:[%s1502_s0 + $0x89] ss:$16 sm:%s687_s17]   ;;  %v840_v60 = vld [vmem:[%s1502_s0 + $0x81] ss:$16 sm:%s651_s29]   ;;  %v599_v62 = vsel %vm75_vm2, %v829_v58, %v594_v57 }
  0x41   :  { %v685_v55 = vsel %vm70_vm1, %v847_v51, %v680_v50  ;;  %v841_v61 = vld [vmem:[%s1502_s0 + $0x81] ss:$16 sm:%s654_s24]   ;;  %v3_v5 = vld [vmem:[%s1502_s0] ss:$8 sm:$0xf0]  }
  0x42   :  { %577 = vrot.lane.b32.xlu1 %v576_v31, %s862_s11  ;;  %v690_v59 = vsel %vm75_vm2, %v848_v56, %v685_v55  ;;  %v657_v63 = vsel %vm65_vm0, %v841_v61, %v840_v60  ;;  %v842_v0 = vld [vmem:[%s1502_s0 + $0x81] ss:$16 sm:%s659_s2]   ;;  %v5_v6 = vsel %vm4_vm3, %v3_v5, %v2_v4  ;;  %v699_v7 = vld [vmem:[%s1502_s0 + $0x40] ss:$8 sm:$0xf]  }
  0x43   :  { %v662_v1 = vsel %vm70_vm1, %v842_v0, %v657_v63  ;;  %v843_v2 = vld [vmem:[%s1502_s0 + $0x81] ss:$16 sm:%s664_s6]   ;;  %7 = vst.msk [vmem:[%s1503_s1] ss:$8 sm:$0x3] %vm6_vm4, %v5_v6  }
  0x44   :  { %v667_v3 = vsel %vm75_vm2, %v843_v2, %v662_v1  ;;  %v700_v8 = vld [vmem:[%s1502_s0 + $0x40] ss:$8 sm:$0xf0]   ;;  %696 = vst.msk [vmem:[%s1503_s1 - $0xf] ss:$8 sm:$0xc] %vm6_vm4, %v5_v6  }
  0x45   :  { %v19_v9 = vsel %vm4_vm3, %v700_v8, %v699_v7  ;;  %697 = vst.msk [vmem:[%s1503_s1 - $0x1e] ss:$8 sm:$0x30] %vm6_vm4, %v5_v6   ;;  %v705_v10 = vld [vmem:[%s1502_s0 + $0x80] ss:$8 sm:$0xf]  }
  0x46   :  { %623 = vrot.lane.b32.xlu0 %v622_v45, %s863_s18  ;;  %532 = vrot.lane.b32.xlu2 %v531_v49, %s862_s11  ;;  %698 = vst.msk [vmem:[%s1503_s1 - $0x2d] ss:$8 sm:$0xc0] %vm6_vm4, %v5_v6   ;;  %v706_v11 = vld [vmem:[%s1502_s0 + $0x80] ss:$8 sm:$0xf0]  }
  0x47   :  { %701 = vst.msk [vmem:[%s1503_s1 + $0x4] ss:$8 sm:$0x3] %vm6_vm4, %v19_v9   ;;  %v34_v12 = vsel %vm4_vm3, %v706_v11, %v705_v10  ;;  %v711_v13 = vld [vmem:[%s1502_s0 + $0xc0] ss:$8 sm:$0xf]  }
  0x48   :  { %702 = vst.msk [vmem:[%s1503_s1 - $0xb] ss:$8 sm:$0xc] %vm6_vm4, %v19_v9   ;;  %v712_v14 = vld [vmem:[%s1502_s0 + $0xc0] ss:$8 sm:$0xf0]  }
  0x49   :  { %703 = vst.msk [vmem:[%s1503_s1 - $0x1a] ss:$8 sm:$0x30] %vm6_vm4, %v19_v9   ;;  %v49_v15 = vsel %vm4_vm3, %v712_v14, %v711_v13 }
  0x4a   :  { %645 = vrot.lane.b32.xlu1 %v644_v52, %s863_s18  ;;  %704 = vst.msk [vmem:[%s1503_s1 - $0x29] ss:$8 sm:$0xc0] %vm6_vm4, %v19_v9  }
  0x4b   :  { %707 = vst.msk [vmem:[%s1503_s1 + $0x10] ss:$8 sm:$0x3] %vm6_vm4, %v34_v12  }
  0x4c   :  { %708 = vst.msk [vmem:[%s1503_s1 + $0x1] ss:$8 sm:$0xc] %vm6_vm4, %v34_v12  }
  0x4d   :  { %709 = vst.msk [vmem:[%s1503_s1 - $0xe] ss:$8 sm:$0x30] %vm6_vm4, %v34_v12  }
  0x4e   :  { %691 = vrot.lane.b32.xlu0 %v690_v59, %s863_s18  ;;  %600 = vrot.lane.b32.xlu2 %v599_v62, %s862_s11  ;;  %710 = vst.msk [vmem:[%s1503_s1 - $0x1d] ss:$8 sm:$0xc0] %vm6_vm4, %v34_v12  }
  0x4f   :  { %713 = vst.msk [vmem:[%s1503_s1 + $0x14] ss:$8 sm:$0x3] %vm6_vm4, %v49_v15  }
  0x50   :  { %714 = vst.msk [vmem:[%s1503_s1 + $0x5] ss:$8 sm:$0xc] %vm6_vm4, %v49_v15  }
  0x51   :  { %715 = vst.msk [vmem:[%s1503_s1 - $0xa] ss:$8 sm:$0x30] %vm6_vm4, %v49_v15  }
  0x52   :  { %716 = vst.msk [vmem:[%s1503_s1 - $0x19] ss:$8 sm:$0xc0] %vm6_vm4, %v49_v15  }
  0x56   :  { %668 = vrot.lane.b32.xlu2 %v667_v3, %s863_s18 }
  0x70   :  { %v169_v16 = vpop.permute.xlu2 %168  }
  0x78   :  { %v78_v17 = vpop.permute.xlu0 %77   ;;  %v191_v18 = vpop.permute.xlu2 %190  }
  0x79   :  { %80 = vst.msk [vmem:[%s1503_s1] sm:$0xff] %vm79_vm5, %v78_v17  }
  0x7a   :  { %171 = vst.msk [vmem:[%s1503_s1] sm:$0xff] %vm170_vm6, %v169_v16  }
  0x7c   :  { %v123_v19 = vpop.permute.xlu1 %122  }
  0x7d   :  { %730 = vst.msk [vmem:[%s1503_s1 + $0x10] sm:$0xff] %vm79_vm5, %v123_v19  }
  0x80   :  { %v100_v20 = vpop.permute.xlu0 %99   ;;  %v260_v21 = vpop.permute.xlu2 %259  }
  0x81   :  { %725 = vst.msk [vmem:[%s1503_s1 + $0x8] sm:$0xff] %vm79_vm5, %v100_v20  }
  0x82   :  { %744 = vst.msk [vmem:[%s1503_s1 + $0x8] sm:$0xff] %vm170_vm6, %v191_v18  }
  0x83   :  { %262 = vst.msk [vmem:[%s1503_s1] sm:$0xff] %vm261_vm7, %v260_v21  }
  0x84   :  { %v146_v22 = vpop.permute.xlu1 %145  }
  0x85   :  { %735 = vst.msk [vmem:[%s1503_s1 + $0x18] sm:$0xff] %vm79_vm5, %v146_v22  }
  0x88   :  { %v214_v23 = vpop.permute.xlu0 %213   ;;  %v328_v24 = vpop.permute.xlu2 %327  }
  0x89   :  { %749 = vst.msk [vmem:[%s1503_s1 + $0x10] sm:$0xff] %vm170_vm6, %v214_v23  }
  0x8c   :  { %v237_v25 = vpop.permute.xlu1 %236  }
  0x8d   :  { %754 = vst.msk [vmem:[%s1503_s1 + $0x18] sm:$0xff] %vm170_vm6, %v237_v25  }
  0x8e   :  { %773 = vst.msk [vmem:[%s1503_s1 + $0x18] sm:$0xff] %vm261_vm7, %v328_v24  }
  0x90   :  { %v282_v26 = vpop.permute.xlu0 %281   ;;  %v396_v27 = vpop.permute.xlu2 %395  }
  0x91   :  { %763 = vst.msk [vmem:[%s1503_s1 + $0x8] sm:$0xff] %vm261_vm7, %v282_v26  }
  0x94   :  { %v305_v28 = vpop.permute.xlu1 %304  }
  0x95   :  { %768 = vst.msk [vmem:[%s1503_s1 + $0x10] sm:$0xff] %vm261_vm7, %v305_v28  }
  0x96   :  { %787 = vst.msk [vmem:[%s1503_s1 + $0x10] sm:$0xff] %vm352_vm8, %v396_v27  }
  0x98   :  { %v351_v29 = vpop.permute.xlu0 %350   ;;  %v464_v30 = vpop.permute.xlu2 %463  }
  0x99   :  { %353 = vst.msk [vmem:[%s1503_s1] sm:$0xff] %vm352_vm8, %v351_v29  }
  0x9c   :  { %v373_v31 = vpop.permute.xlu1 %372  }
  0x9d   :  { %782 = vst.msk [vmem:[%s1503_s1 + $0x8] sm:$0xff] %vm352_vm8, %v373_v31  }
  0x9e   :  { %801 = vst.msk [vmem:[%s1503_s1 + $0x8] sm:$0xff] %vm443_vm9, %v464_v30  }
  0xa0   :  { %v419_v32 = vpop.permute.xlu0 %418   ;;  %v533_v33 = vpop.permute.xlu2 %532  }
  0xa1   :  { %792 = vst.msk [vmem:[%s1503_s1 + $0x18] sm:$0xff] %vm352_vm8, %v419_v32  }
  0xa4   :  { %v442_v34 = vpop.permute.xlu1 %441  }
  0xa5   :  { %444 = vst.msk [vmem:[%s1503_s1] sm:$0xff] %vm443_vm9, %v442_v34  }
  0xa6   :  { %535 = vst.msk [vmem:[%s1503_s1] sm:$0xff] %vm534_vm10, %v533_v33  }
  0xa8   :  { %v487_v35 = vpop.permute.xlu0 %486   ;;  %v601_v36 = vpop.permute.xlu2 %600  }
  0xa9   :  { %806 = vst.msk [vmem:[%s1503_s1 + $0x10] sm:$0xff] %vm443_vm9, %v487_v35  }
  0xac   :  { %v510_v37 = vpop.permute.xlu1 %509  }
  0xad   :  { %811 = vst.msk [vmem:[%s1503_s1 + $0x18] sm:$0xff] %vm443_vm9, %v510_v37  }
  0xae   :  { %830 = vst.msk [vmem:[%s1503_s1 + $0x18] sm:$0xff] %vm534_vm10, %v601_v36  }
  0xb0   :  { %v555_v38 = vpop.permute.xlu0 %554   ;;  %v669_v39 = vpop.permute.xlu2 %668  }
  0xb1   :  { %820 = vst.msk [vmem:[%s1503_s1 + $0x8] sm:$0xff] %vm534_vm10, %v555_v38  }
  0xb4   :  { %v578_v40 = vpop.permute.xlu1 %577  }
  0xb5   :  { %825 = vst.msk [vmem:[%s1503_s1 + $0x10] sm:$0xff] %vm534_vm10, %v578_v40  }
  0xb6   :  { %844 = vst.msk [vmem:[%s1503_s1 + $0x10] sm:$0xff] %vm625_vm11, %v669_v39  }
  0xb8   :  { %v624_v41 = vpop.permute.xlu0 %623  }
  0xb9   :  { %626 = vst.msk [vmem:[%s1503_s1] sm:$0xff] %vm625_vm11, %v624_v41  }
  0xbc   :  { %v646_v42 = vpop.permute.xlu1 %645  }
  0xbd   :  { %839 = vst.msk [vmem:[%s1503_s1 + $0x8] sm:$0xff] %vm625_vm11, %v646_v42  }
  0xc0   :  { %v692_v43 = vpop.permute.xlu0 %691  }
  0xc1   :  { %849 = vst.msk [vmem:[%s1503_s1 + $0x18] sm:$0xff] %vm625_vm11, %v692_v43  }

// kernel: custom-call.161
= control target key start
LH: loop header
LB: loop body
LE: loop exit
PB: predicated region body
PF: predicated region fallthrough
CT: control target
= control target key end

     0   :  { %2 = vsyncpa [#allocation2], 0  ;;  %s442_s0 = inlined_call_operand.hbm [shape: f32[2,1,3,3], index: 0, kind: input, shape index: {}]   ;;  %s443_s1 = inlined_call_operand.vmem [shape: f32[2,1,3,3], index: 1, kind: output, shape index: {}]  }
   0x1   :  { %4 = vsyncpa [#allocation2 + $0x1], 0  ;;  %s392_s6 = smov 0   ;;  %s394_s7 = smov 0  }
   0x2   :  { %s396_s8 = smov 0  }
   0x3 LB: > { %s285_s9 = sadd.s32 4294967295, %s379_s8   ;;  %s36_s10 = sadd.s32 1, %s375_s7  ;;  %s379_s8 = sphi %s396_s8, %s10_s8   ;;  %s375_s7 = sphi %s394_s7, %s445_s7   ;;  %s371_s6 = sphi %s392_s6, %s444_s6  }
   0x4   : > { %p38_p0 = scmp.ge.s32.totalorder %s36_s10, 2  ;;  %p299_p1 = scmp.lt.s32.totalorder %s379_s8, 2 }
   0x5   : > { %s51_s11 = sand.u32 1, %s379_s8   ;;  %s289_s13 = sshll.u32 %s375_s7, 2 }
   0x6   : > { %s447_s10 = smov (%p38_p0, %s36_s10), 0  ;;  %s288_s12 = sshll.u32 %s51_s11, 2 }
   0x7   : > { %s62_s16 = scalar_lea.hbm %s442_s0, %s289_s13  ;;  %s55_s17 = scalar_lea.vmem [#allocation1], %s288_s12 }
   0x8   : > { %s66_s18 = sshll.u32 %s55_s17, 4  ;;  %s64_s19 = sshll.u32 %s62_s16, 4  ;;  %s67_s18 = int_to_ptr.vmem [resolvable:$true] %s66_s18  ;;  %s65_s19 = int_to_ptr.hbm [resolvable:$true] %s64_s19 }
   0x9   : > { %p290_p2 = scmp.ge.s32.totalorder %s379_s8, 1  ;;  %s52_s20 = scalar_lea.sflag [#allocation2], %s51_s11 }
   0xa   : > { %298 = dma.hbm_to_vmem [thread:$0]  (%p299_p1), %s65_s19, 64, %s67_s18, %s52_s20  }
   0xb   : > { %p71_p3 = scmp.lt.s32.totalorder %s379_s8, 3 }
   0xd   : > { %p72_p4 = pnand %p290_p2, %p71_p3 }
   0xf   : > { %75 = sbr.rel (%p72_p4) target bundleno = 438 (0x1b6), region = 20 }
  0x14   : > { %s419_s21 = sand.u32 1, %s285_s9  }
  0x15   : > { %s78_s22 = scalar_lea.sflag [#allocation2], %s419_s21 }
  0x16   : > { %367 = dma.done.wait %s78_s22, 64  }
  0x17   : > { %368 = vsyncadd %s78_s22, 4294967232  ;;  %s291_s23 = sshll.u32 %s419_s21, 2  ;;  %v97_v0 = vlaneseq  ;;  %v381_v19 = vmov -1.0   ;;  %s294_s26 = sshll.u32 %s371_s6, 2 }
  0x18   : > { %s88_s24 = scalar_lea.vmem [#allocation1], %s291_s23  ;;  %s92_s25 = scalar_lea.vmem [#allocation4], %s291_s23 }
  0x19   : > { %v95_v1 = vld [vmem:[%s88_s24] sm:$0xf]  ;;  %v98_v2 = vand.u32 127, %v97_v0  ;;  %v101_v3 = vshrl.u32 %v97_v0, 7  ;;  %s190_s29 = scalar_lea.vmem %s443_s1, %s294_s26 }
  0x1a   : > { %96 = vst [vmem:[#allocation0] sm:$0xf] %v95_v1 }
  0x1b   : > { %vm103_vm0 = vcmp.eq.s32.totalorder %v101_v3, %v98_v2  ;;  %vm99_vm1 = vcmp.lt.s32.totalorder %v98_v2, 3  ;;  %vm108_vm2 = vcmp.ge.s32.totalorder %v101_v3, %v98_v2  ;;  %vm135_vm8 = vcmp.eq.s32.totalorder %v98_v2, 0 }
  0x1c   : > { %vm109_vm3 = vmand %vm108_vm2, %vm99_vm1  ;;  %vm132_vm9 = vcmp.eq.s32.totalorder %v98_v2, %v101_v3  ;;  %v136_v20 = vsel %vm135_vm8, 1.0, %v381_v19  ;;  %vm143_vm10 = vcmp.eq.s32.totalorder %v98_v2, 1  ;;  %vm153_vm11 = vcmp.eq.s32.totalorder %v98_v2, 2 }
  0x1d   : > { %v137_v21 = vsel %vm132_vm9, %v136_v20, 0.0 }
  0x21   : > { %v104_v4 = vld [vmem:[#allocation0] sm:$0xff] }
  0x22   : > { %v105_v5 = vsel %vm103_vm0, %v104_v4, 0.0  ;;  %v110_v14 = vsel %vm109_vm3, %v104_v4, 0.0 }
  0x23   : > { %106 = vadd.xlane.f32.xlu0 %v105_v5 }
  0x96   : > { %v107_v6 = vpop.xlane.xlu0 %106 }
  0x97   : > { %325 = vrcp.f32 %v107_v6  ;;  %v122_v10 = vand.u32 2147483648, %v107_v6  ;;  %v120_v12 = vand.u32 2147483647, %v107_v6  ;;  %vm116_vm5 = vweird.f32 %v107_v6 }
  0x99   : > { %v123_v15 = vor.u32 1.1754944e-38, %v122_v10  ;;  %vm121_vm7 = vcmp.eq.f32.partialorder %v120_v12, 8.507059e+37 }
  0x9d   : > { %v326_v7 = vpop.eup %325 }
  0x9e   : > { %v112_v8 = vmul.f32 %v326_v7, %v107_v6  ;;  %vm117_vm4 = vweird.f32 %v326_v7 }
  0x9f   : > { %vm118_vm6 = vmor %vm116_vm5, %vm117_vm4 }
  0xa0   : > { %v113_v9 = vsub.f32 1.0, %v112_v8 }
  0xa2   : > { %v114_v11 = vmul.f32 %v326_v7, %v113_v9 }
  0xa4   : > { %v115_v13 = vadd.f32 %v326_v7, %v114_v11 }
  0xa6   : > { %v119_v16 = vsel %vm118_vm6, %v326_v7, %v115_v13 }
  0xa7   : > { %v124_v17 = vsel %vm121_vm7, %v123_v15, %v119_v16 }
  0xa8   : > { %v125_v18 = vmul.f32 %v124_v17, %v110_v14 }
  0xaa   : > { %126 = vst [vmem:[#allocation5] sm:$0xff] %v125_v18 }
  0xb1   : > { %v139_v22 = vld [vmem:[#allocation5 + $0x1] ss:$0 sm:$0xff]  ;;  %v149_v25 = vld [vmem:[#allocation5 + $0x2] ss:$0 sm:$0xff] }
  0xb2   : > { %v140_v23 = vxor.u32 2147483648, %v139_v22  ;;  %v150_v27 = vxor.u32 2147483648, %v149_v25 }
  0xb4   : > { %v144_v24 = vmul.f32 %v140_v23, %v137_v21 }
  0xb6   : > { %145 = vadd.xlane.f32.xlu0 %v144_v24 }
 0x129   : > { %v146_v26 = vpop.xlane.xlu0 %145 }
 0x12a   : > { %v147_v28 = vsel %vm143_vm10, %v146_v26, %v137_v21 }
 0x12b   : > { %v154_v29 = vmul.f32 %v150_v27, %v147_v28 }
 0x12d   : > { %155 = vadd.xlane.f32.xlu1 %v154_v29 }
 0x1a0   : > { %v156_v30 = vpop.xlane.xlu1 %155 }
 0x1a1   : > { %v157_v31 = vsel %vm153_vm11, %v156_v30, %v147_v28 }
 0x1a2   : > { %v172_v32 = vmul.f32 %v157_v31, %v124_v17 }
 0x1a4   : > { %v174_v33 = vsel %vm116_vm5, %v157_v31, %v172_v32 }
 0x1a5   : > { %175 = vst [vmem:[#allocation3] sm:$0xff] %v174_v33 }
 0x1ac   : > { %v178_v34 = vld [vmem:[#allocation3] sm:$0xf] }
 0x1ad   : > { %181 = vst [vmem:[%s92_s25] sm:$0xf] %v178_v34 }
 0x1b4   : > { %v207_v35 = vld [vmem:[%s92_s25] sm:$0xf] }
 0x1b5   : > { %208 = vst [vmem:[%s190_s29] sm:$0xf] %v207_v35 }
 0x1b6 PF: > { %s10_s8 = sadd.s32 1, %s379_s8   ;;  %s444_s6 = smov %s375_s7 }
 0x1b7   : > { %p7_p5 = scmp.ge.s32.totalorder %s10_s8, 4   ;;  %s445_s7 = smov %s447_s10 }
 0x1b9   :  { %9 = sbr.rel (!%p7_p5) target bundleno = 3 (0x3), region = 83 }
 0x1be   :  { %233 = vsyncpa [#allocation2], 1 }
 0x1bf   :  { %235 = vsyncpa [#allocation2 + $0x1], 1 }

// kernel: custom-call.160
= control target key start
LH: loop header
LB: loop body
LE: loop exit
PB: predicated region body
PF: predicated region fallthrough
CT: control target
= control target key end

     0   :  { %2 = vsyncpa [#allocation2], 0  ;;  %s441_s0 = inlined_call_operand.hbm [shape: f32[2,1,3,3], index: 0, kind: input, shape index: {}]   ;;  %s442_s1 = inlined_call_operand.vmem [shape: f32[2,1,3,3], index: 1, kind: output, shape index: {}]  }
   0x1   :  { %4 = vsyncpa [#allocation2 + $0x1], 0  ;;  %s391_s6 = smov 0   ;;  %s393_s7 = smov 0  }
   0x2   :  { %s395_s8 = smov 0  }
   0x3 LB: > { %s284_s9 = sadd.s32 4294967295, %s378_s8   ;;  %s36_s10 = sadd.s32 1, %s374_s7  ;;  %s378_s8 = sphi %s395_s8, %s10_s8   ;;  %s374_s7 = sphi %s393_s7, %s444_s7   ;;  %s370_s6 = sphi %s391_s6, %s443_s6  }
   0x4   : > { %p38_p0 = scmp.ge.s32.totalorder %s36_s10, 2  ;;  %p298_p1 = scmp.lt.s32.totalorder %s378_s8, 2 }
   0x5   : > { %s51_s11 = sand.u32 1, %s378_s8   ;;  %s288_s13 = sshll.u32 %s374_s7, 2 }
   0x6   : > { %s446_s10 = smov (%p38_p0, %s36_s10), 0  ;;  %s287_s12 = sshll.u32 %s51_s11, 2 }
   0x7   : > { %s62_s16 = scalar_lea.hbm %s441_s0, %s288_s13  ;;  %s55_s17 = scalar_lea.vmem [#allocation1], %s287_s12 }
   0x8   : > { %s66_s18 = sshll.u32 %s55_s17, 4  ;;  %s64_s19 = sshll.u32 %s62_s16, 4  ;;  %s67_s18 = int_to_ptr.vmem [resolvable:$true] %s66_s18  ;;  %s65_s19 = int_to_ptr.hbm [resolvable:$true] %s64_s19 }
   0x9   : > { %p289_p2 = scmp.ge.s32.totalorder %s378_s8, 1  ;;  %s52_s20 = scalar_lea.sflag [#allocation2], %s51_s11 }
   0xa   : > { %297 = dma.hbm_to_vmem [thread:$0]  (%p298_p1), %s65_s19, 64, %s67_s18, %s52_s20  }
   0xb   : > { %p71_p3 = scmp.lt.s32.totalorder %s378_s8, 3 }
   0xd   : > { %p72_p4 = pnand %p289_p2, %p71_p3 }
   0xf   : > { %75 = sbr.rel (%p72_p4) target bundleno = 438 (0x1b6), region = 20 }
  0x14   : > { %s418_s21 = sand.u32 1, %s284_s9  }
  0x15   : > { %s78_s22 = scalar_lea.sflag [#allocation2], %s418_s21 }
  0x16   : > { %366 = dma.done.wait %s78_s22, 64  }
  0x17   : > { %367 = vsyncadd %s78_s22, 4294967232  ;;  %s290_s23 = sshll.u32 %s418_s21, 2  ;;  %v97_v0 = vlaneseq  ;;  %v380_v19 = vmov -1.0   ;;  %s293_s26 = sshll.u32 %s370_s6, 2 }
  0x18   : > { %s88_s24 = scalar_lea.vmem [#allocation1], %s290_s23  ;;  %s92_s25 = scalar_lea.vmem [#allocation4], %s290_s23 }
  0x19   : > { %v95_v1 = vld [vmem:[%s88_s24] sm:$0xf]  ;;  %v98_v2 = vand.u32 127, %v97_v0  ;;  %v101_v3 = vshrl.u32 %v97_v0, 7  ;;  %s189_s29 = scalar_lea.vmem %s442_s1, %s293_s26 }
  0x1a   : > { %96 = vst [vmem:[#allocation0] sm:$0xf] %v95_v1 }
  0x1b   : > { %vm103_vm0 = vcmp.eq.s32.totalorder %v101_v3, %v98_v2  ;;  %vm99_vm1 = vcmp.lt.s32.totalorder %v98_v2, 3  ;;  %vm108_vm2 = vcmp.le.s32.totalorder %v101_v3, %v98_v2  ;;  %vm135_vm8 = vcmp.eq.s32.totalorder %v98_v2, 2 }
  0x1c   : > { %vm109_vm3 = vmand %vm108_vm2, %vm99_vm1  ;;  %vm132_vm9 = vcmp.eq.s32.totalorder %v98_v2, %v101_v3  ;;  %v136_v20 = vsel %vm135_vm8, 1.0, %v380_v19  ;;  %vm143_vm10 = vcmp.eq.s32.totalorder %v98_v2, 1  ;;  %vm152_vm11 = vcmp.eq.s32.totalorder %v98_v2, 0 }
  0x1d   : > { %v137_v21 = vsel %vm132_vm9, %v136_v20, 0.0 }
  0x21   : > { %v104_v4 = vld [vmem:[#allocation0] sm:$0xff] }
  0x22   : > { %v105_v5 = vsel %vm103_vm0, %v104_v4, 0.0  ;;  %v110_v14 = vsel %vm109_vm3, %v104_v4, 0.0 }
  0x23   : > { %106 = vadd.xlane.f32.xlu0 %v105_v5 }
  0x96   : > { %v107_v6 = vpop.xlane.xlu0 %106 }
  0x97   : > { %324 = vrcp.f32 %v107_v6  ;;  %v122_v10 = vand.u32 2147483648, %v107_v6  ;;  %v120_v12 = vand.u32 2147483647, %v107_v6  ;;  %vm116_vm5 = vweird.f32 %v107_v6 }
  0x99   : > { %v123_v15 = vor.u32 1.1754944e-38, %v122_v10  ;;  %vm121_vm7 = vcmp.eq.f32.partialorder %v120_v12, 8.507059e+37 }
  0x9d   : > { %v325_v7 = vpop.eup %324 }
  0x9e   : > { %v112_v8 = vmul.f32 %v325_v7, %v107_v6  ;;  %vm117_vm4 = vweird.f32 %v325_v7 }
  0x9f   : > { %vm118_vm6 = vmor %vm116_vm5, %vm117_vm4 }
  0xa0   : > { %v113_v9 = vsub.f32 1.0, %v112_v8 }
  0xa2   : > { %v114_v11 = vmul.f32 %v325_v7, %v113_v9 }
  0xa4   : > { %v115_v13 = vadd.f32 %v325_v7, %v114_v11 }
  0xa6   : > { %v119_v16 = vsel %vm118_vm6, %v325_v7, %v115_v13 }
  0xa7   : > { %v124_v17 = vsel %vm121_vm7, %v123_v15, %v119_v16 }
  0xa8   : > { %v125_v18 = vmul.f32 %v124_v17, %v110_v14 }
  0xaa   : > { %126 = vst [vmem:[#allocation5] sm:$0xff] %v125_v18 }
  0xb1   : > { %v139_v22 = vld [vmem:[#allocation5 + $0x1] ss:$0 sm:$0xff]  ;;  %v148_v25 = vld [vmem:[#allocation5] ss:$0 sm:$0xff] }
  0xb2   : > { %v140_v23 = vxor.u32 2147483648, %v139_v22  ;;  %v149_v27 = vxor.u32 2147483648, %v148_v25 }
  0xb4   : > { %v144_v24 = vmul.f32 %v140_v23, %v137_v21 }
  0xb6   : > { %145 = vadd.xlane.f32.xlu0 %v144_v24 }
 0x129   : > { %v146_v26 = vpop.xlane.xlu0 %145 }
 0x12a   : > { %v147_v28 = vsel %vm143_vm10, %v146_v26, %v137_v21 }
 0x12b   : > { %v153_v29 = vmul.f32 %v149_v27, %v147_v28 }
 0x12d   : > { %154 = vadd.xlane.f32.xlu1 %v153_v29 }
 0x1a0   : > { %v155_v30 = vpop.xlane.xlu1 %154 }
 0x1a1   : > { %v156_v31 = vsel %vm152_vm11, %v155_v30, %v147_v28 }
 0x1a2   : > { %v171_v32 = vmul.f32 %v156_v31, %v124_v17 }
 0x1a4   : > { %v173_v33 = vsel %vm116_vm5, %v156_v31, %v171_v32 }
 0x1a5   : > { %174 = vst [vmem:[#allocation3] sm:$0xff] %v173_v33 }
 0x1ac   : > { %v177_v34 = vld [vmem:[#allocation3] sm:$0xf] }
 0x1ad   : > { %180 = vst [vmem:[%s92_s25] sm:$0xf] %v177_v34 }
 0x1b4   : > { %v206_v35 = vld [vmem:[%s92_s25] sm:$0xf] }
 0x1b5   : > { %207 = vst [vmem:[%s189_s29] sm:$0xf] %v206_v35 }
 0x1b6 PF: > { %s10_s8 = sadd.s32 1, %s378_s8   ;;  %s443_s6 = smov %s374_s7 }
 0x1b7   : > { %p7_p5 = scmp.ge.s32.totalorder %s10_s8, 4   ;;  %s444_s7 = smov %s446_s10 }
 0x1b9   :  { %9 = sbr.rel (!%p7_p5) target bundleno = 3 (0x3), region = 82 }
 0x1be   :  { %232 = vsyncpa [#allocation2], 1 }
 0x1bf   :  { %234 = vsyncpa [#allocation2 + $0x1], 1 }

// kernel: mono_mvsnet_forward.23
= control target key start
LH: loop header
LB: loop body
LE: loop exit
PB: predicated region body
PF: predicated region fallthrough
CT: control target
= control target key end

     0   :  { %s884_s12 = smov 0   ;;  %s886_s13 = smov 0   ;;  %s1015_s0 = inlined_call_operand.vmem [shape: bf16[2,8,256], index: 0, kind: input, shape index: {}]   ;;  %s1016_s1 = inlined_call_operand.vmem [shape: bf16[2,2,8,8,256], index: 1, kind: input, shape index: {}]   ;;  %s1017_s2 = inlined_call_operand.vmem [shape: f32[2,8,256], index: 2, kind: input, shape index: {}]   ;;  %s1018_s3 = inlined_call_operand.vmem [shape: f32[2,1,256], index: 3, kind: output, shape index: {}]  }
   0x1   :  { %s888_s14 = smov 0   ;;  %s890_s15 = smov 0  }
   0x2   :  { %s892_s16 = smov 0  }
   0x3 LB: > { %s25_s17 = sadd.s32 1, %s853_s14  ;;  %s32_s18 = sadd.s32 1, %s857_s15  ;;  %s861_s16 = sphi %s892_s16, %s13_s16   ;;  %s857_s15 = sphi %s890_s15, %s1024_s15   ;;  %s853_s14 = sphi %s888_s14, %s1023_s14   ;;  %s849_s13 = sphi %s886_s13, %s1022_s13   ;;  %s845_s12 = sphi %s884_s12, %s1021_s12  }
   0x4   : > { %p26_p0 = scmp.ge.s32.totalorder %s25_s17, 2  ;;  %p752_p1 = scmp.ge.s32.totalorder %s861_s16, 1 }
   0x5   : > { %p205_p2 = scmp.lt.s32.totalorder %s861_s16, 5 }
   0x6   : > { %s1026_s17 = smov (%p26_p0, %s25_s17), 0  ;;  %s1028_s18 = smov (!%p26_p0, %s32_s18), %s857_s15 }
   0x7   : > { %p206_p3 = pnand %p752_p1, %p205_p2  ;;  %p34_p4 = scmp.ge.s32.totalorder %s1028_s18, 2 }
   0x8   : > { %p259_p5 = scmp.lt.s32.totalorder (!%p206_p3), %s849_s13, 1  ;;  %p271_p6 = scmp.lt.s32.totalorder (!%p206_p3), %s845_s12, 1 }
   0x9   : > { %s1030_s18 = smov (%p34_p4, %s1028_s18), 0  ;;  %209 = sbr.rel (%p206_p3) target bundleno = 154 (0x9a), region = 32 }
   0xa   : > { %p761_p7 = scmp.ne.s32.totalorder (!%p206_p3), %s845_s12, 0 }
   0xe   : > { %s1032_s13 = smov (!%p259_p5, %s849_s13), 1 }
   0xf   : > { %s272_s19 = scalar_select %p271_p6, %s845_s12, 1 }
  0x10   : > { %s772_s20 = sshll.u32 %s1032_s13, 3  ;;  %s756_s21 = sshll.u32 %s1032_s13, 5 }
  0x11   : > { %s266_s24 = scalar_lea.vmem %s1015_s0, %s772_s20  ;;  %s755_s25 = sshll.u32 %s272_s19, 4 }
  0x12   : > { %s278_s26 = sadd.s32 %s756_s21, %s755_s25  ;;  %s773_s27 = sshll.u32 %s1032_s13, 4 }
  0x13   : > { %s757_s28 = sshll.u32 %s278_s26, 2  ;;  %s924_s4 = scalar_lea.vmem %s1017_s2, %s773_s27 }
  0x14   : > { %s929_s7 = scalar_lea.vmem %s1016_s1, %s757_s28  ;;  %s760_s8 = sshll.u32 %s1032_s13, 1 }
  0x15   : > { %s934_s11 = scalar_lea.vmem %s1018_s3, %s760_s8  ;;  %304 = sbr.rel (%p761_p7) target bundleno = 29 (0x1d), region = 36 }
  0x1a   : > { %v863_v0 = vmov 0.0  }
  0x1b   : > { %305 = vst [vmem:[#allocation2] sm:$0xff] %v863_v0 }
  0x1c   : > { %306 = vst [vmem:[#allocation2 + $0x8] sm:$0xff] %v863_v0 }
  0x1d PF: > { %v307_v1 = vld [vmem:[%s266_s24] sm:$0xff]  ;;  %v762_v7 = vld [vmem:[%s929_s7 + $0x8] sm:$0xff]  ;;  %v763_v8 = vld [vmem:[%s929_s7 + $0x10] sm:$0xff]  ;;  %v337_v9 = vlaneseq  ;;  %vm333_vm0 = vcmask 1040384   ;;  %p769_p8 = scmp.ne.s32.totalorder %s845_s12, 1 }
  0x1e   : > { %v310_v2 = vld [vmem:[%s929_s7] sm:$0xff]  ;;  %v938_v3 = vunpack.c.l.bf16 %v307_v1  ;;  %v940_v4 = vunpack.c.h.bf16 %v307_v1  ;;  %v345_v10 = vunpack.c.l.bf16 %v762_v7  ;;  %v346_v11 = vunpack.c.h.bf16 %v762_v7  ;;  %v764_v13 = vld [vmem:[%s929_s7 + $0x18] sm:$0xff] }
  0x1f   : > { %v311_v5 = vunpack.c.l.bf16 %v310_v2  ;;  %v312_v6 = vunpack.c.h.bf16 %v310_v2  ;;  %v375_v12 = vunpack.c.l.bf16 %v763_v8  ;;  %v376_v16 = vunpack.c.h.bf16 %v763_v8 }
  0x20   : > { %v405_v17 = vunpack.c.l.bf16 %v764_v13  ;;  %v347_v18 = vsub.f32 %v345_v10, %v938_v3  ;;  %v348_v19 = vsub.f32 %v346_v11, %v940_v4  ;;  %v406_v21 = vunpack.c.h.bf16 %v764_v13  ;;  %v765_v13 = vld [vmem:[%s929_s7 + $0x20] sm:$0xff] }
  0x21   : > { %v313_v14 = vsub.f32 %v311_v5, %v938_v3  ;;  %v314_v15 = vsub.f32 %v312_v6, %v940_v4  ;;  %v377_v20 = vsub.f32 %v375_v12, %v938_v3  ;;  %v378_v24 = vsub.f32 %v376_v16, %v940_v4 }
  0x22   : > { %v407_v25 = vsub.f32 %v405_v17, %v938_v3  ;;  %v349_v26 = vmul.f32 %v347_v18, %v347_v18  ;;  %v350_v27 = vmul.f32 %v348_v19, %v348_v19  ;;  %v408_v29 = vsub.f32 %v406_v21, %v940_v4  ;;  %v766_v18 = vld [vmem:[%s929_s7 + $0x28] sm:$0xff] }
  0x23   : > { %v315_v22 = vmul.f32 %v313_v14, %v313_v14  ;;  %v316_v23 = vmul.f32 %v314_v15, %v314_v15  ;;  %v379_v28 = vmul.f32 %v377_v20, %v377_v20  ;;  %v380_v32 = vmul.f32 %v378_v24, %v378_v24  ;;  %v329_v19 = vld [vmem:[#allocation2] ss:$8 sm:$0x3]  ;;  %v364_v24 = vld [vmem:[#allocation2 + $0x1] ss:$8 sm:$0x3] }
  0x24   : > { %v409_v33 = vmul.f32 %v407_v25, %v407_v25  ;;  %v351_v34 = vrot.slane %v349_v26, 4  ;;  %v357_v35 = vrot.slane %v350_v27, 4  ;;  %v410_v37 = vmul.f32 %v408_v29, %v408_v29 }
  0x25   : > { %v317_v30 = vrot.slane %v315_v22, 4  ;;  %v323_v31 = vrot.slane %v316_v23, 4  ;;  %v381_v36 = vrot.slane %v379_v28, 4  ;;  %v387_v40 = vrot.slane %v380_v32, 4 }
  0x26   : > { %v411_v41 = vrot.slane %v409_v33, 4  ;;  %v352_v42 = vadd.f32 %v351_v34, %v349_v26  ;;  %v358_v43 = vadd.f32 %v357_v35, %v350_v27  ;;  %v417_v45 = vrot.slane %v410_v37, 4 }
  0x27   : > { %v318_v38 = vadd.f32 %v317_v30, %v315_v22  ;;  %v324_v39 = vadd.f32 %v323_v31, %v316_v23  ;;  %v382_v44 = vadd.f32 %v381_v36, %v379_v28  ;;  %v388_v48 = vadd.f32 %v387_v40, %v380_v32  ;;  %v394_v30 = vld [vmem:[#allocation2 + $0x2] ss:$8 sm:$0x3]  ;;  %v424_v36 = vld [vmem:[#allocation2 + $0x3] ss:$8 sm:$0x3] }
  0x28   : > { %v412_v49 = vadd.f32 %v411_v41, %v409_v33  ;;  %v353_v50 = vrot.slane %v352_v42, 2  ;;  %v359_v51 = vrot.slane %v358_v43, 2  ;;  %v418_v53 = vadd.f32 %v417_v45, %v410_v37 }
  0x29   : > { %v319_v46 = vrot.slane %v318_v38, 2  ;;  %v325_v47 = vrot.slane %v324_v39, 2  ;;  %v383_v52 = vrot.slane %v382_v44, 2  ;;  %vm953_vm1 = vcmp.lt.s32.totalorder %v337_v9, 256 }
  0x2a   : > { %v389_v57 = vrot.slane %v388_v48, 2  ;;  %v413_v58 = vrot.slane %v412_v49, 2  ;;  %v354_v59 = vadd.f32 %v353_v50, %v352_v42  ;;  %v360_v60 = vadd.f32 %v359_v51, %v358_v43  ;;  %v767_v43 = vld [vmem:[%s929_s7 + $0x30] sm:$0xff] }
  0x2b   : > { %v320_v54 = vadd.f32 %v319_v46, %v318_v38  ;;  %v326_v55 = vadd.f32 %v325_v47, %v324_v39  ;;  %v384_v61 = vadd.f32 %v383_v52, %v382_v44  ;;  %v419_v62 = vrot.slane %v418_v53, 2 }
  0x2c   : > { %v390_v1 = vadd.f32 %v389_v57, %v388_v48  ;;  %v414_v2 = vadd.f32 %v413_v58, %v412_v49  ;;  %v355_v5 = vrot.slane %v354_v59, 1  ;;  %v361_v6 = vrot.slane %v360_v60, 1  ;;  %v768_v48 = vld [vmem:[%s929_s7 + $0x38] sm:$0xff] }
  0x2d   : > { %v321_v63 = vrot.slane %v320_v54, 1  ;;  %v327_v0 = vrot.slane %v326_v55, 1  ;;  %v385_v7 = vrot.slane %v384_v61, 1  ;;  %v420_v8 = vadd.f32 %v419_v62, %v418_v53 }
  0x2e   : > { %v391_v11 = vrot.slane %v390_v1, 1  ;;  %v415_v12 = vrot.slane %v414_v2, 1  ;;  %v356_v14 = vadd.f32 %v355_v5, %v354_v59  ;;  %v362_v15 = vadd.f32 %v361_v6, %v360_v60 }
  0x2f   : > { %v322_v9 = vadd.f32 %v321_v63, %v320_v54  ;;  %v328_v10 = vadd.f32 %v327_v0, %v326_v55  ;;  %v386_v16 = vadd.f32 %v385_v7, %v384_v61  ;;  %v421_v17 = vrot.slane %v420_v8, 1 }
  0x30   : > { %v392_v21 = vadd.f32 %v391_v11, %v390_v1  ;;  %v416_v22 = vadd.f32 %v415_v12, %v414_v2  ;;  %v435_v23 = vunpack.c.l.bf16 %v765_v13  ;;  %v367_v25 = vrot.slane %v362_v15, 7 }
  0x31   : > { %v332_v20 = vrot.slane %v328_v10, 7  ;;  %v422_v26 = vadd.f32 %v421_v17, %v420_v8  ;;  %v436_v27 = vunpack.c.h.bf16 %v765_v13  ;;  %v465_v28 = vunpack.c.l.bf16 %v766_v18 }
  0x32   : > { %v397_v31 = vrot.slane %v392_v21, 7  ;;  %v437_v32 = vsub.f32 %v435_v23, %v938_v3  ;;  %v466_v33 = vunpack.c.h.bf16 %v766_v18  ;;  %v368_v35 = vsel %vm333_vm0, %v356_v14, %v367_v25 }
  0x33   : > { %v334_v29 = vsel %vm333_vm0, %v322_v9, %v332_v20  ;;  %v427_v37 = vrot.slane %v422_v26, 7  ;;  %v438_v38 = vsub.f32 %v436_v27, %v940_v4  ;;  %v370_v39 = vadd.f32 %v368_v35, %v364_v24 }
  0x34   : > { %v336_v34 = vadd.f32 %v334_v29, %v329_v19  ;;  %v398_v40 = vsel %vm333_vm0, %v386_v16, %v397_v31  ;;  %v439_v41 = vmul.f32 %v437_v32, %v437_v32  ;;  %v467_v42 = vsub.f32 %v465_v28, %v938_v3 }
  0x35   : > { %v400_v44 = vadd.f32 %v398_v40, %v394_v30  ;;  %v428_v45 = vsel %vm333_vm0, %v416_v22, %v427_v37  ;;  %v440_v46 = vmul.f32 %v438_v38, %v438_v38  ;;  %v468_v47 = vsub.f32 %v466_v33, %v940_v4  ;;  %371 = vst.msk [vmem:[#allocation2 + $0x1] ss:$8 sm:$0x3] %vm953_vm1, %v370_v39  ;;  %v454_v37 = vld [vmem:[#allocation2 + $0x4] ss:$8 sm:$0x3] }
  0x36   : > { %341 = vst.msk [vmem:[#allocation2] ss:$8 sm:$0x3] %vm953_vm1, %v336_v34  ;;  %v430_v49 = vadd.f32 %v428_v45, %v424_v36  ;;  %v441_v50 = vrot.slane %v439_v41, 4  ;;  %v469_v51 = vmul.f32 %v467_v42, %v467_v42  ;;  %v495_v52 = vunpack.c.l.bf16 %v767_v43 }
  0x37   : > { %401 = vst.msk [vmem:[#allocation2 + $0x2] ss:$8 sm:$0x3] %vm953_vm1, %v400_v44  ;;  %v447_v53 = vrot.slane %v440_v46, 4  ;;  %v470_v54 = vmul.f32 %v468_v47, %v468_v47  ;;  %v496_v55 = vunpack.c.h.bf16 %v767_v43  ;;  %v525_v57 = vunpack.c.l.bf16 %v768_v48 }
  0x38   : > { %431 = vst.msk [vmem:[#allocation2 + $0x3] ss:$8 sm:$0x3] %vm953_vm1, %v430_v49  ;;  %v442_v58 = vadd.f32 %v441_v50, %v439_v41  ;;  %v471_v59 = vrot.slane %v469_v51, 4  ;;  %v497_v60 = vsub.f32 %v495_v52, %v938_v3  ;;  %v526_v61 = vunpack.c.h.bf16 %v768_v48 }
  0x39   : > { %v448_v62 = vadd.f32 %v447_v53, %v440_v46  ;;  %v477_v63 = vrot.slane %v470_v54, 4  ;;  %v498_v0 = vsub.f32 %v496_v55, %v940_v4  ;;  %v527_v1 = vsub.f32 %v525_v57, %v938_v3  ;;  %v484_v45 = vld [vmem:[#allocation2 + $0x5] ss:$8 sm:$0x3] }
  0x3a   : > { %v443_v2 = vrot.slane %v442_v58, 2  ;;  %v472_v5 = vadd.f32 %v471_v59, %v469_v51  ;;  %v499_v6 = vmul.f32 %v497_v60, %v497_v60  ;;  %v528_v7 = vsub.f32 %v526_v61, %v940_v4  ;;  %v514_v55 = vld [vmem:[#allocation2 + $0x6] ss:$8 sm:$0x3] }
  0x3b   : > { %v449_v8 = vrot.slane %v448_v62, 2  ;;  %v478_v9 = vadd.f32 %v477_v63, %v470_v54  ;;  %v500_v10 = vmul.f32 %v498_v0, %v498_v0  ;;  %v529_v11 = vmul.f32 %v527_v1, %v527_v1  ;;  %v544_v60 = vld [vmem:[#allocation2 + $0x7] ss:$8 sm:$0x3] }
  0x3c   : > { %v444_v12 = vadd.f32 %v443_v2, %v442_v58  ;;  %v473_v13 = vrot.slane %v472_v5, 2  ;;  %v501_v14 = vrot.slane %v499_v6, 4  ;;  %v530_v15 = vmul.f32 %v528_v7, %v528_v7 }
  0x3d   : > { %v450_v16 = vadd.f32 %v449_v8, %v448_v62  ;;  %v479_v17 = vrot.slane %v478_v9, 2  ;;  %v507_v18 = vrot.slane %v500_v10, 4  ;;  %v531_v19 = vrot.slane %v529_v11, 4 }
  0x3e   : > { %v445_v20 = vrot.slane %v444_v12, 1  ;;  %v474_v21 = vadd.f32 %v473_v13, %v472_v5  ;;  %v502_v3 = vadd.f32 %v501_v14, %v499_v6  ;;  %v537_v22 = vrot.slane %v530_v15, 4 }
  0x3f   : > { %v451_v23 = vrot.slane %v450_v16, 1  ;;  %v480_v24 = vadd.f32 %v479_v17, %v478_v9  ;;  %v508_v25 = vadd.f32 %v507_v18, %v500_v10  ;;  %v532_v4 = vadd.f32 %v531_v19, %v529_v11 }
  0x40   : > { %v446_v26 = vadd.f32 %v445_v20, %v444_v12  ;;  %v475_v27 = vrot.slane %v474_v21, 1  ;;  %v503_v28 = vrot.slane %v502_v3, 2  ;;  %v538_v29 = vadd.f32 %v537_v22, %v530_v15 }
  0x41   : > { %v452_v30 = vadd.f32 %v451_v23, %v450_v16  ;;  %v481_v31 = vrot.slane %v480_v24, 1  ;;  %v509_v32 = vrot.slane %v508_v25, 2  ;;  %v533_v33 = vrot.slane %v532_v4, 2 }
  0x42   : > { %v476_v34 = vadd.f32 %v475_v27, %v474_v21  ;;  %v504_v35 = vadd.f32 %v503_v28, %v502_v3  ;;  %v539_v36 = vrot.slane %v538_v29, 2 }
  0x43   : > { %v457_v38 = vrot.slane %v452_v30, 7  ;;  %v482_v39 = vadd.f32 %v481_v31, %v480_v24  ;;  %v510_v40 = vadd.f32 %v509_v32, %v508_v25  ;;  %v534_v41 = vadd.f32 %v533_v33, %v532_v4 }
  0x44   : > { %v505_v42 = vrot.slane %v504_v35, 1  ;;  %v540_v43 = vadd.f32 %v539_v36, %v538_v29 }
  0x45   : > { %v458_v44 = vsel %vm333_vm0, %v446_v26, %v457_v38  ;;  %v487_v46 = vrot.slane %v482_v39, 7  ;;  %v511_v47 = vrot.slane %v510_v40, 1  ;;  %v535_v48 = vrot.slane %v534_v41, 1 }
  0x46   : > { %v460_v49 = vadd.f32 %v458_v44, %v454_v37  ;;  %v541_v50 = vrot.slane %v540_v43, 1  ;;  %v506_v52 = vadd.f32 %v505_v42, %v504_v35 }
  0x47   : > { %v488_v51 = vsel %vm333_vm0, %v476_v34, %v487_v46  ;;  %v512_v53 = vadd.f32 %v511_v47, %v510_v40  ;;  %v536_v57 = vadd.f32 %v535_v48, %v534_v41 }
  0x48   : > { %461 = vst.msk [vmem:[#allocation2 + $0x4] ss:$8 sm:$0x3] %vm953_vm1, %v460_v49  ;;  %v490_v54 = vadd.f32 %v488_v51, %v484_v45  ;;  %v542_v58 = vadd.f32 %v541_v50, %v540_v43 }
  0x49   : > { %v517_v59 = vrot.slane %v512_v53, 7 }
  0x4a   : > { %491 = vst.msk [vmem:[#allocation2 + $0x5] ss:$8 sm:$0x3] %vm953_vm1, %v490_v54  ;;  %v547_v61 = vrot.slane %v542_v58, 7 }
  0x4b   : > { %v518_v62 = vsel %vm333_vm0, %v506_v52, %v517_v59  ;;  %556 = sbr.rel (%p769_p8) target bundleno = 154 (0x9a), region = 40 }
  0x4c   : > { %v520_v63 = vadd.f32 %v518_v62, %v514_v55  ;;  %v548_v0 = vsel %vm333_vm0, %v536_v57, %v547_v61 }
  0x4d   : > { %v550_v1 = vadd.f32 %v548_v0, %v544_v60 }
  0x4e   : > { %521 = vst.msk [vmem:[#allocation2 + $0x6] ss:$8 sm:$0x3] %vm953_vm1, %v520_v63 }
  0x4f   : > { %551 = vst.msk [vmem:[#allocation2 + $0x7] ss:$8 sm:$0x3] %vm953_vm1, %v550_v1 }
  0x50   : > { %v597_v39 = vld [vmem:[%s924_s4] sm:$0xff]  ;;  %v598_v42 = vld [vmem:[%s924_s4 + $0x8] sm:$0xff] }
  0x56   : > { %v557_v2 = vld [vmem:[#allocation2] sm:$0xff]  ;;  %v558_v5 = vld [vmem:[#allocation2 + $0x8] sm:$0xff] }
  0x57   : > { %v559_v6 = vmul.f32 0.5, %v557_v2  ;;  %v560_v7 = vmul.f32 0.5, %v558_v5 }
  0x59   : > { %v561_v8 = vsub.f32 0.0, %v559_v6  ;;  %v562_v9 = vsub.f32 0.0, %v560_v7 }
  0x5b   : > { %v563_v10 = vrot.slane %v561_v8, 4  ;;  %v569_v11 = vrot.slane %v562_v9, 4 }
  0x5d   : > { %v564_v12 = vmax.f32 %v561_v8, %v563_v10  ;;  %v570_v13 = vmax.f32 %v562_v9, %v569_v11 }
  0x5f   : > { %v565_v14 = vrot.slane %v564_v12, 2  ;;  %v571_v15 = vrot.slane %v570_v13, 2 }
  0x61   : > { %v566_v16 = vmax.f32 %v564_v12, %v565_v14  ;;  %v572_v17 = vmax.f32 %v570_v13, %v571_v15 }
  0x63   : > { %v567_v18 = vrot.slane %v566_v16, 1  ;;  %v573_v19 = vrot.slane %v572_v17, 1 }
  0x65   : > { %v568_v20 = vmax.f32 %v566_v16, %v567_v18  ;;  %v574_v21 = vmax.f32 %v572_v17, %v573_v19 }
  0x67   : > { %v575_v3 = vsub.f32 %v561_v8, %v568_v20  ;;  %v576_v22 = vsub.f32 %v562_v9, %v574_v21 }
  0x69   : > { %v577_v23 = vmul.f32 1.442695, %v575_v3  ;;  %v579_v24 = vmul.f32 1.442695, %v576_v22 }
  0x6b   : > { %815 = vpow2.f32 %v577_v23 }
  0x6c   : > { %817 = vpow2.f32 %v579_v24 }
  0x71   : > { %v816_v25 = vpop.eup %815 }
  0x72   : > { %v818_v4 = vpop.eup %817  ;;  %v581_v26 = vrot.slane %v816_v25, 4 }
  0x73   : > { %v587_v27 = vrot.slane %v818_v4, 4 }
  0x74   : > { %v582_v28 = vadd.f32 %v816_v25, %v581_v26 }
  0x75   : > { %v588_v29 = vadd.f32 %v818_v4, %v587_v27 }
  0x76   : > { %v583_v30 = vrot.slane %v582_v28, 2 }
  0x77   : > { %v589_v31 = vrot.slane %v588_v29, 2 }
  0x78   : > { %v584_v32 = vadd.f32 %v583_v30, %v582_v28 }
  0x79   : > { %v590_v33 = vadd.f32 %v589_v31, %v588_v29 }
  0x7a   : > { %v585_v34 = vrot.slane %v584_v32, 1 }
  0x7b   : > { %v591_v35 = vrot.slane %v590_v33, 1 }
  0x7c   : > { %v586_v36 = vadd.f32 %v585_v34, %v584_v32 }
  0x7d   : > { %v592_v37 = vadd.f32 %v591_v35, %v590_v33 }
  0x7e   : > { %819 = vrcp.f32 %v586_v36 }
  0x7f   : > { %821 = vrcp.f32 %v592_v37 }
  0x84   : > { %v820_v38 = vpop.eup %819 }
  0x85   : > { %v822_v40 = vpop.eup %821  ;;  %v595_v41 = vmul.f32 %v820_v38, %v816_v25 }
  0x86   : > { %v596_v43 = vmul.f32 %v822_v40, %v818_v4 }
  0x87   : > { %v599_v44 = vmul.f32 %v597_v39, %v595_v41 }
  0x88   : > { %v600_v45 = vmul.f32 %v598_v42, %v596_v43 }
  0x89   : > { %v601_v46 = vrot.slane %v599_v44, 4 }
  0x8a   : > { %v607_v47 = vrot.slane %v600_v45, 4 }
  0x8b   : > { %v602_v48 = vadd.f32 %v601_v46, %v599_v44 }
  0x8c   : > { %v608_v49 = vadd.f32 %v607_v47, %v600_v45 }
  0x8d   : > { %v603_v50 = vrot.slane %v602_v48, 2 }
  0x8e   : > { %v609_v51 = vrot.slane %v608_v49, 2 }
  0x8f   : > { %v604_v52 = vadd.f32 %v603_v50, %v602_v48 }
  0x90   : > { %v610_v53 = vadd.f32 %v609_v51, %v608_v49 }
  0x91   : > { %v605_v54 = vrot.slane %v604_v52, 1 }
  0x92   : > { %v611_v55 = vrot.slane %v610_v53, 1 }
  0x93   : > { %v606_v57 = vadd.f32 %v605_v54, %v604_v52 }
  0x94   : > { %v612_v58 = vadd.f32 %v611_v55, %v610_v53 }
  0x96   : > { %v615_v59 = vrot.slane %v612_v58, 7 }
  0x98   : > { %v616_v60 = vsel %vm333_vm0, %v606_v57, %v615_v59 }
  0x99   : > { %618 = vst.msk [vmem:[%s934_s11] sm:$0x3] %vm953_vm1, %v616_v60 }
  0x9a PF: > { %s13_s16 = sadd.s32 1, %s861_s16   ;;  %s1021_s12 = smov %s853_s14 }
  0x9b   : > { %p10_p9 = scmp.ge.s32.totalorder %s13_s16, 6   ;;  %s1022_s13 = smov %s857_s15 }
  0x9c   : > { %s1023_s14 = smov %s1026_s17  ;;  %s1024_s15 = smov %s1030_s18 }
  0x9d   :  { %12 = sbr.rel (!%p10_p9) target bundleno = 3 (0x3), region = 90 }

// kernel: squeeze.113
= control target key start
LH: loop header
LB: loop body
LE: loop exit
PB: predicated region body
PF: predicated region fallthrough
CT: control target
= control target key end

     0   :  { %s144_s0 = inlined_call_operand.vmem [shape: f32[2,256], index: 0, kind: input, shape index: {}]   ;;  %s145_s1 = inlined_call_operand.hbm [shape: f32[2,16,16], index: 1, kind: output, shape index: {}]  }
   0x1   :  { %v73_v0 = vld [vmem:[%s144_s0 + $0x2] sm:$0x3]  ;;  %v9_v1 = vld [vmem:[%s144_s0] sm:$0x3] }
   0x2   :  { %8 = vst [vmem:[#allocation2 + $0x8] sm:$0x3] %v73_v0 }
   0x3   :  { %10 = vst [vmem:[#allocation2] sm:$0x3] %v9_v1 }
   0x4   :  { %2 = vsyncpa [#allocation1], 0  ;;  %s108_s0 = smov 112   ;;  %s109_s10 = smov 80   ;;  %vm12_vm0 = vcmask 130048  }
   0x5   :  { %s110_s11 = smov 48   ;;  %s111_s12 = smov 96  }
   0x6   :  { %s112_s13 = smov 64   ;;  %s113_s14 = smov 32  }
   0x7   :  { %s114_s15 = smov 16   ;;  %s115_s16 = smov [#allocation0]  }
   0x8   :  { %s64_s17 = sshll.u32 %s115_s16, 4  ;;  %s66_s1 = sshll.u32 %s145_s1, 4  ;;  %s65_s17 = int_to_ptr.vmem [resolvable:$true] %s64_s17  ;;  %s67_s1 = int_to_ptr.hbm [resolvable:$true] %s66_s1 }
   0x9   :  { %v15_v5 = vld [vmem:[#allocation2 + $0x8] sm:$0x3]  }
   0xa   :  { %v19_v2 = vld.sshfl [vmem:[#allocation2] sm:$0xff pattern:$0x99999180]   ;;  %18 = vst.msk [vmem:[#allocation0 + $0x8] ss:$16 sm:$0x3] %vm12_vm0, %v15_v5  }
   0xb   :  { %20 = vrot.lane.b32.xlu0 %v19_v2, %s108_s0  ;;  %32 = vrot.lane.b32.xlu1 %v19_v2, %s109_s10  ;;  %v11_v4 = vld [vmem:[#allocation2] sm:$0x3]  }
   0xc   :  { %44 = vrot.lane.b32.xlu2 %v19_v2, %s110_s11  ;;  %13 = vst.msk [vmem:[#allocation0] ss:$16 sm:$0x3] %vm12_vm0, %v11_v4  }
  0x13   :  { %26 = vrot.lane.b32.xlu0 %v19_v2, %s111_s12  ;;  %38 = vrot.lane.b32.xlu1 %v19_v2, %s112_s13 }
  0x14   :  { %50 = vrot.lane.b32.xlu2 %v19_v2, %s113_s14 }
  0x1b   :  { %56 = vrot.lane.b32.xlu0 %v19_v2, %s114_s15 }
  0x66   :  { %v45_v3 = vpop.permute.xlu2 %44  }
  0x67   :  { %48 = vst.msk [vmem:[#allocation0 + $0x5] ss:$8 sm:$0xf] %vm12_vm0, %v45_v3  }
  0x6e   :  { %v51_v6 = vpop.permute.xlu2 %50  }
  0x6f   :  { %54 = vst.msk [vmem:[#allocation0 + $0x6] ss:$8 sm:$0xf] %vm12_vm0, %v51_v6  }
  0x7d   :  { %v21_v7 = vpop.permute.xlu0 %20   ;;  %v33_v8 = vpop.permute.xlu1 %32  }
  0x7e   :  { %24 = vst.msk [vmem:[#allocation0 + $0x1] ss:$8 sm:$0xf] %vm12_vm0, %v21_v7  }
  0x7f   :  { %36 = vst.msk [vmem:[#allocation0 + $0x3] ss:$8 sm:$0xf] %vm12_vm0, %v33_v8  }
  0x85   :  { %v27_v9 = vpop.permute.xlu0 %26   ;;  %v39_v10 = vpop.permute.xlu1 %38  }
  0x86   :  { %30 = vst.msk [vmem:[#allocation0 + $0x2] ss:$8 sm:$0xf] %vm12_vm0, %v27_v9  }
  0x87   :  { %42 = vst.msk [vmem:[#allocation0 + $0x4] ss:$8 sm:$0xf] %vm12_vm0, %v39_v10  }
  0x8d   :  { %v57_v11 = vpop.permute.xlu0 %56  }
  0x8e   :  { %60 = vst.msk [vmem:[#allocation0 + $0x7] ss:$8 sm:$0xf] %vm12_vm0, %v57_v11  }
  0x8f   :  { %69 = dma.vmem_to_hbm [thread:$0]  %s65_s17, 512, %s67_s1, [#allocation1]  }
  0x90   :  { %106 = dma.done.wait [#allocation1], 512  }
  0x91   :  { %107 = vsyncadd [#allocation1], 4294966784 }
  0x92   :  { %72 = vsyncpa [#allocation1], 1 }

</bundles_post_ra>
